<compile_context>
chip_gen: v7x
topology: tpu7x:2x2x1
jax: 0.10.0
libtpu: 0.0.40
codegen_flags: <defaults>
</compile_context>

<pallas_src>
import functools

import jax
import jax.numpy as jnp
from jax import lax
from jax.experimental import pallas as pl
from jax.experimental.pallas import tpu as pltpu


# ----------------------------- Pallas kernel -------------------------------


def _sigmoid(x):
    # tanh form: one EUP transcendental + fused mul/add; avoids exp + divide
    # of 1/(1+exp(-x)) on the serial recurrence critical path.
    return 0.5 * jnp.tanh(0.5 * x) + 0.5


def _mish(z):
    # mish(z) = z * tanh(softplus(z)), numerically stable softplus.
    sp = jnp.maximum(z, 0.0) + jnp.log1p(jnp.exp(-jnp.abs(z)))
    return z * jnp.tanh(sp)


def _make_lstm_mlp_kernel(num_mlp_layers):
    """Builds the fused (2-layer LSTM + MLP head) kernel.

    Ref layout (positional):
      x_ref,
      wih1, whh1, b1, wih2, whh2, b2,
      (w_i, b_i) * num_mlp_layers,
      out_ref,
      h1, c1, h2, c2, pre_buf            # VMEM scratch
    """

    def kernel(*refs):
        x_ref = refs[0]
        wih1_ref, whh1_ref, b1_ref, wih2_ref, whh2_ref, b2_ref = refs[1:7]
        mlp_refs = refs[7:7 + 2 * num_mlp_layers]
        out_ref = refs[7 + 2 * num_mlp_layers]
        h1, c1, h2, c2, pre_buf = refs[8 + 2 * num_mlp_layers:]

        t = pl.program_id(1)
        n_t = pl.num_programs(1)
        H = whh1_ref.shape[0]
        bb = h1.shape[0]
        tc = x_ref.shape[0] // bb
        wdt = wih1_ref.dtype

        @pl.when(t == 0)
        def _():
            h1[...] = jnp.zeros_like(h1)
            c1[...] = jnp.zeros_like(c1)
            h2[...] = jnp.zeros_like(h2)
            c2[...] = jnp.zeros_like(c2)

        # Hoisted layer-1 input projection for the whole time chunk:
        # one (tc*bb, D) @ (D, 4H) MXU matmul instead of tc tiny ones.
        x2d = x_ref[...].astype(wdt)
        pre_buf[...] = (
            jnp.dot(x2d, wih1_ref[...], preferred_element_type=jnp.float32)
            + b1_ref[...]
        )

        whh1 = whh1_ref[...]
        wih2 = wih2_ref[...]
        whh2 = whh2_ref[...]
        b2 = b2_ref[...]

        def gates_to_hc(gates, c_prev):
            # PyTorch gate order: input, forget, cell(g), output.
            i_g = _sigmoid(gates[:, 0:H])
            f_g = _sigmoid(gates[:, H:2 * H])
            g_g = jnp.tanh(gates[:, 2 * H:3 * H])
            o_g = _sigmoid(gates[:, 3 * H:4 * H])
            c_new = f_g * c_prev + i_g * g_g
            h_new = o_g * jnp.tanh(c_new)
            return h_new, c_new

        h1_c = h1[...]
        c1_c = c1[...]
        h2_c = h2[...]
        c2_c = c2[...]

        # Fully unrolled (static) timestep loop over the chunk.
        for i in range(tc):
            # Layer 1: only the recurrent matmul remains per step.
            g1 = pre_buf[pl.ds(i * bb, bb), :] + jnp.dot(
                h1_c.astype(wdt), whh1, preferred_element_type=jnp.float32)
            h1_c, c1_c = gates_to_hc(g1, c1_c)

            # Layer 2.
            g2 = (
                jnp.dot(h1_c.astype(wdt), wih2, preferred_element_type=jnp.float32)
                + jnp.dot(h2_c.astype(wdt), whh2, preferred_element_type=jnp.float32)
                + b2
            )
            h2_c, c2_c = gates_to_hc(g2, c2_c)

        h1[...] = h1_c
        c1[...] = c1_c
        h2[...] = h2_c
        c2[...] = c2_c

        # Fused MLP head (Linear -> Mish, ..., Linear -> 1) on the final layer-2
        # hidden state; runs only on the last time chunk so the (bb, 1) output
        # is written exactly once per batch block.
        @pl.when(t == n_t - 1)
        def _():
            z = h2_c
            for li in range(num_mlp_layers):
                w_ref = mlp_refs[2 * li]
                bia_ref = mlp_refs[2 * li + 1]
                z = jnp.dot(z.astype(w_ref.dtype), w_ref[...],
                            preferred_element_type=jnp.float32) + bia_ref[...]
                if li < num_mlp_layers - 1:
                    z = _mish(z)
            out_ref[...] = z.astype(out_ref.dtype)

    return kernel


# ------------------------------- wrapper ------------------------------------


def big_lstm_forward(x, params, *, hidden, tc=16, bb=8):
    """x: (B, T, D) float32, batch-first like the PyTorch module."""
    B, T, D = x.shape
    H = hidden
    tc = min(tc, T)
    bb = min(bb, B)
    assert T % tc == 0 and B % bb == 0, (T, tc, B, bb)
    nb, nt = B // bb, T // tc

    # Layout plumbing (wrapper-side): block (b, t) holds a contiguous
    # (tc*bb, D) slab ordered [timestep-within-chunk, batch-within-block],
    # so the kernel's chunk matmul needs no in-kernel reshape.
    x_blocked = (
        x.reshape(nb, bb, nt, tc, D)
         .transpose(0, 2, 3, 1, 4)           # (nb, nt, tc, bb, D)
         .reshape(nb, nt, tc * bb, D)
    )

    n_mlp = 0
    while f"w{n_mlp}" in params:
        n_mlp += 1

    const2d = lambda b, t: (0, 0)
    mlp_args = []
    mlp_specs = []
    for li in range(n_mlp):
        w = params[f"w{li}"]
        bia = params[f"mb{li}"]
        mlp_args += [w, bia]
        mlp_specs += [pl.BlockSpec(w.shape, const2d),
                      pl.BlockSpec(bia.shape, const2d)]

    kernel = _make_lstm_mlp_kernel(n_mlp)

    out = pl.pallas_call(
        kernel,
        out_shape=jax.ShapeDtypeStruct((B, 1), jnp.float32),
        grid=(nb, nt),
        in_specs=[
            pl.BlockSpec((None, None, tc * bb, D), lambda b, t: (b, t, 0, 0)),
            pl.BlockSpec((D, 4 * H), const2d),       # W_ih layer 0 (in, 4H)
            pl.BlockSpec((H, 4 * H), const2d),       # W_hh layer 0
            pl.BlockSpec((1, 4 * H), const2d),       # b    layer 0
            pl.BlockSpec((H, 4 * H), const2d),       # W_ih layer 1
            pl.BlockSpec((H, 4 * H), const2d),       # W_hh layer 1
            pl.BlockSpec((1, 4 * H), const2d),       # b    layer 1
        ] + mlp_specs,
        out_specs=pl.BlockSpec((bb, 1), lambda b, t: (b, 0)),
        scratch_shapes=[pltpu.VMEM((bb, H), jnp.float32)] * 4      # h1,c1,h2,c2
                       + [pltpu.VMEM((tc * bb, 4 * H), jnp.float32)],  # pre-acts
        compiler_params=pltpu.CompilerParams(
            dimension_semantics=("parallel", "arbitrary")),  # time must stay sequential
    )(x_blocked, params["wih1"], params["whh1"], params["b1"],
      params["wih2"], params["whh2"], params["b2"], *mlp_args)
    return out


# ----------------------- deterministic parameter init ----------------------


def init_params(key, input_dim, hidden, mlp_units, param_dtype=jnp.float32):
    def uni(k, shape, bound):
        return jax.random.uniform(k, shape, jnp.float32, -bound, bound)

    n_linear = len(mlp_units) + 1
    ks = jax.random.split(key, 8 + 2 * n_linear)
    sH = 1.0 / float(hidden) ** 0.5
    p = {}
    # LSTM layer 0 (input_dim -> hidden), layer 1 (hidden -> hidden).
    # Stored pre-transposed: (in, 4H); biases combined (b_ih + b_hh) as (1, 4H).
    p["wih1"] = uni(ks[0], (input_dim, 4 * hidden), sH).astype(param_dtype)
    p["whh1"] = uni(ks[1], (hidden, 4 * hidden), sH).astype(param_dtype)
    p["b1"] = uni(ks[2], (1, 4 * hidden), sH) + uni(ks[3], (1, 4 * hidden), sH)
    p["wih2"] = uni(ks[4], (hidden, 4 * hidden), sH).astype(param_dtype)
    p["whh2"] = uni(ks[5], (hidden, 4 * hidden), sH).astype(param_dtype)
    p["b2"] = uni(ks[6], (1, 4 * hidden), sH) + uni(ks[7], (1, 4 * hidden), sH)
    # MLP: hidden -> mlp_units[0] -> ... -> 1, stored as (in, out).
    dims = [hidden] + list(mlp_units) + [1]
    for li in range(len(dims) - 1):
        fan_in, fan_out = dims[li], dims[li + 1]
        s = 1.0 / float(fan_in) ** 0.5
        p[f"w{li}"] = uni(ks[8 + 2 * li], (fan_in, fan_out), s).astype(param_dtype)
        p[f"mb{li}"] = uni(ks[9 + 2 * li], (1, fan_out), s)
    return p


# ----------------------------- pure-JAX reference --------------------------


def reference_forward(x, p, *, hidden):
    B = x.shape[0]
    H = hidden
    xs = jnp.transpose(x, (1, 0, 2)).astype(jnp.float32)

    def run_layer(xs, wih, whh, b):
        wih = wih.astype(jnp.float32)
        whh = whh.astype(jnp.float32)

        def step(carry, x_t):
            h, c = carry
            gates = x_t @ wih + h @ whh + b
            i = jax.nn.sigmoid(gates[:, :H])
            f = jax.nn.sigmoid(gates[:, H:2 * H])
            g = jnp.tanh(gates[:, 2 * H:3 * H])
            o = jax.nn.sigmoid(gates[:, 3 * H:])
            c = f * c + i * g
            h = o * jnp.tanh(c)
            return (h, c), h

        init = (jnp.zeros((B, H), jnp.float32), jnp.zeros((B, H), jnp.float32))
        _, hs = lax.scan(step, init, xs)
        return hs

    hs1 = run_layer(xs, p["wih1"], p["whh1"], p["b1"])
    hs2 = run_layer(hs1, p["wih2"], p["whh2"], p["b2"])
    h = hs2[-1]

    def mish(z):
        return z * jnp.tanh(jax.nn.softplus(z))

    li = 0
    while f"w{li}" in p:
        h = h @ p[f"w{li}"].astype(jnp.float32) + p[f"mb{li}"]
        if f"w{li + 1}" in p:      # Mish on all but the final Linear
            h = mish(h)
        li += 1
    return h


# ---------------------------------- main ------------------------------------


if __name__ == "__main__":
    B, T, D = 16, 32, 16        # batch, seq, input_dim
    HIDDEN = 128                # lane-aligned small stand-in for 256
    MLP_UNITS = [64, 32, 16]    # small stand-in for [256,128,64,32,16,8]
    TC, BB = 16, 8              # timesteps per chunk, batch rows per block

    key = jax.random.PRNGKey(0)
    kx, kp = jax.random.split(key)
    x = jax.random.normal(kx, (B, T, D), jnp.float32)
    params = init_params(kp, D, HIDDEN, MLP_UNITS)   # f32 weights (bf16 optional)

    fwd = jax.jit(functools.partial(big_lstm_forward, hidden=HIDDEN, tc=TC, bb=BB))
    out = jax.block_until_ready(fwd(x, params))

    ref = reference_forward(x, params, hidden=HIDDEN)
    assert out.shape == (B, 1), out.shape
    assert jnp.allclose(out, ref, atol=1e-4, rtol=1e-4), (out, ref)

    print("KERNEL_OK")
</pallas_src>

<mosaic_0001>
module attributes {stable_mosaic.version = 11 : i64} {
  func.func @kernel(%arg0: i32, %arg1: i32, %arg2: memref<1x1x128x16xf32, #tpu.memory_space<vmem>>, %arg3: memref<16x512xf32, #tpu.memory_space<vmem>>, %arg4: memref<128x512xf32, #tpu.memory_space<vmem>>, %arg5: memref<1x512xf32, #tpu.memory_space<vmem>>, %arg6: memref<128x512xf32, #tpu.memory_space<vmem>>, %arg7: memref<128x512xf32, #tpu.memory_space<vmem>>, %arg8: memref<1x512xf32, #tpu.memory_space<vmem>>, %arg9: memref<128x64xf32, #tpu.memory_space<vmem>>, %arg10: memref<1x64xf32, #tpu.memory_space<vmem>>, %arg11: memref<64x32xf32, #tpu.memory_space<vmem>>, %arg12: memref<1x32xf32, #tpu.memory_space<vmem>>, %arg13: memref<32x16xf32, #tpu.memory_space<vmem>>, %arg14: memref<1x16xf32, #tpu.memory_space<vmem>>, %arg15: memref<16x1xf32, #tpu.memory_space<vmem>>, %arg16: memref<1x1xf32, #tpu.memory_space<vmem>>, %arg17: memref<8x1xf32, #tpu.memory_space<vmem>>, %arg18: memref<8x128xf32, #tpu.memory_space<vmem>>, %arg19: memref<8x128xf32, #tpu.memory_space<vmem>>, %arg20: memref<8x128xf32, #tpu.memory_space<vmem>>, %arg21: memref<8x128xf32, #tpu.memory_space<vmem>>, %arg22: memref<128x512xf32, #tpu.memory_space<vmem>>) attributes {dimension_semantics = [#tpu.dimension_semantics<parallel>, #tpu.dimension_semantics<arbitrary>], iteration_bounds = array<i64: 2, 2>, scalar_prefetch = 0 : i64, scratch_operands = 5 : i64, tpu.core_type = #tpu.core_type<tc>, window_params = [{transform_indices = @transform_0, window_bounds = array<i64: 1, 1, 128, 16>}, {pipeline_mode = #tpu.pipeline_mode<synchronous>, transform_indices = @transform_1, window_bounds = array<i64: 16, 512>}, {pipeline_mode = #tpu.pipeline_mode<synchronous>, transform_indices = @transform_2, window_bounds = array<i64: 128, 512>}, {pipeline_mode = #tpu.pipeline_mode<synchronous>, transform_indices = @transform_3, window_bounds = array<i64: 1, 512>}, {pipeline_mode = #tpu.pipeline_mode<synchronous>, transform_indices = @transform_4, window_bounds = array<i64: 128, 512>}, {pipeline_mode = #tpu.pipeline_mode<synchronous>, transform_indices = @transform_5, window_bounds = array<i64: 128, 512>}, {pipeline_mode = #tpu.pipeline_mode<synchronous>, transform_indices = @transform_6, window_bounds = array<i64: 1, 512>}, {pipeline_mode = #tpu.pipeline_mode<synchronous>, transform_indices = @transform_7, window_bounds = array<i64: 128, 64>}, {pipeline_mode = #tpu.pipeline_mode<synchronous>, transform_indices = @transform_8, window_bounds = array<i64: 1, 64>}, {pipeline_mode = #tpu.pipeline_mode<synchronous>, transform_indices = @transform_9, window_bounds = array<i64: 64, 32>}, {pipeline_mode = #tpu.pipeline_mode<synchronous>, transform_indices = @transform_10, window_bounds = array<i64: 1, 32>}, {pipeline_mode = #tpu.pipeline_mode<synchronous>, transform_indices = @transform_11, window_bounds = array<i64: 32, 16>}, {pipeline_mode = #tpu.pipeline_mode<synchronous>, transform_indices = @transform_12, window_bounds = array<i64: 1, 16>}, {pipeline_mode = #tpu.pipeline_mode<synchronous>, transform_indices = @transform_13, window_bounds = array<i64: 16, 1>}, {pipeline_mode = #tpu.pipeline_mode<synchronous>, transform_indices = @transform_14, window_bounds = array<i64: 1, 1>}, {transform_indices = @transform_15, window_bounds = array<i64: 8, 1>}]} {
    %c0_i32 = arith.constant 0 : i32
    %0 = arith.cmpi eq, %arg1, %c0_i32 : i32
    %1 = arith.extui %0 : i1 to i32
    %c0_i32_0 = arith.constant 0 : i32
    %2 = arith.cmpi ne, %1, %c0_i32_0 : i32
    scf.if %2 {
      %cst_388 = arith.constant 0.000000e+00 : f32
      %1146 = vector.broadcast %cst_388 : f32 to vector<8x128xf32>
      %c0_389 = arith.constant 0 : index
      %c0_390 = arith.constant 0 : index
      %1147 = vector.load %arg18[%c0_389, %c0_390] : memref<8x128xf32, #tpu.memory_space<vmem>>, vector<8x128xf32>
      tpu.vector_store %arg18[%c0_389, %c0_390], %1146 {strides = array<i32>} : memref<8x128xf32, #tpu.memory_space<vmem>>, vector<8x128xf32>,
      %cst_391 = arith.constant 0.000000e+00 : f32
      %1148 = vector.broadcast %cst_391 : f32 to vector<8x128xf32>
      %c0_392 = arith.constant 0 : index
      %c0_393 = arith.constant 0 : index
      %1149 = vector.load %arg19[%c0_392, %c0_393] : memref<8x128xf32, #tpu.memory_space<vmem>>, vector<8x128xf32>
      tpu.vector_store %arg19[%c0_392, %c0_393], %1148 {strides = array<i32>} : memref<8x128xf32, #tpu.memory_space<vmem>>, vector<8x128xf32>,
      %cst_394 = arith.constant 0.000000e+00 : f32
      %1150 = vector.broadcast %cst_394 : f32 to vector<8x128xf32>
      %c0_395 = arith.constant 0 : index
      %c0_396 = arith.constant 0 : index
      %1151 = vector.load %arg20[%c0_395, %c0_396] : memref<8x128xf32, #tpu.memory_space<vmem>>, vector<8x128xf32>
      tpu.vector_store %arg20[%c0_395, %c0_396], %1150 {strides = array<i32>} : memref<8x128xf32, #tpu.memory_space<vmem>>, vector<8x128xf32>,
      %cst_397 = arith.constant 0.000000e+00 : f32
      %1152 = vector.broadcast %cst_397 : f32 to vector<8x128xf32>
      %c0_398 = arith.constant 0 : index
      %c0_399 = arith.constant 0 : index
      %1153 = vector.load %arg21[%c0_398, %c0_399] : memref<8x128xf32, #tpu.memory_space<vmem>>, vector<8x128xf32>
      tpu.vector_store %arg21[%c0_398, %c0_399], %1152 {strides = array<i32>} : memref<8x128xf32, #tpu.memory_space<vmem>>, vector<8x128xf32>,
    } else {
    }
    %c0 = arith.constant 0 : index
    %c0_1 = arith.constant 0 : index
    %c0_2 = arith.constant 0 : index
    %c0_3 = arith.constant 0 : index
    %3 = vector.load %arg2[%c0, %c0_1, %c0_2, %c0_3] : memref<1x1x128x16xf32, #tpu.memory_space<vmem>>, vector<1x1x128x16xf32>
    %4 = vector.shape_cast %3 : vector<1x1x128x16xf32> to vector<128x16xf32>
    %c0_4 = arith.constant 0 : index
    %c0_5 = arith.constant 0 : index
    %5 = vector.load %arg3[%c0_4, %c0_5] : memref<16x512xf32, #tpu.memory_space<vmem>>, vector<16x512xf32>
    %cst = arith.constant dense<0.000000e+00> : vector<128x512xf32>
    %6 = tpu.matmul %4, %5, %cst {dimension_numbers = #tpu.dot_dimension_numbers<[1], [0], [0], [1], [0, 0, 1, 1], [], []>} : vector<128x16xf32>, vector<16x512xf32>, vector<128x512xf32> -> vector<128x512xf32>
    %c0_6 = arith.constant 0 : index
    %c0_7 = arith.constant 0 : index
    %7 = vector.load %arg5[%c0_6, %c0_7] : memref<1x512xf32, #tpu.memory_space<vmem>>, vector<1x512xf32>
    %8 = vector.broadcast %7 : vector<1x512xf32> to vector<128x512xf32>
    %9 = arith.addf %6, %8 : vector<128x512xf32>
    %c0_8 = arith.constant 0 : index
    %c0_9 = arith.constant 0 : index
    %10 = vector.load %arg22[%c0_8, %c0_9] : memref<128x512xf32, #tpu.memory_space<vmem>>, vector<128x512xf32>
    tpu.vector_store %arg22[%c0_8, %c0_9], %9 {strides = array<i32>} : memref<128x512xf32, #tpu.memory_space<vmem>>, vector<128x512xf32>,
    %c0_10 = arith.constant 0 : index
    %c0_11 = arith.constant 0 : index
    %11 = vector.load %arg4[%c0_10, %c0_11] : memref<128x512xf32, #tpu.memory_space<vmem>>, vector<128x512xf32>
    %c0_12 = arith.constant 0 : index
    %c0_13 = arith.constant 0 : index
    %12 = vector.load %arg6[%c0_12, %c0_13] : memref<128x512xf32, #tpu.memory_space<vmem>>, vector<128x512xf32>
    %c0_14 = arith.constant 0 : index
    %c0_15 = arith.constant 0 : index
    %13 = vector.load %arg7[%c0_14, %c0_15] : memref<128x512xf32, #tpu.memory_space<vmem>>, vector<128x512xf32>
    %c0_16 = arith.constant 0 : index
    %c0_17 = arith.constant 0 : index
    %14 = vector.load %arg8[%c0_16, %c0_17] : memref<1x512xf32, #tpu.memory_space<vmem>>, vector<1x512xf32>
    %c0_18 = arith.constant 0 : index
    %c0_19 = arith.constant 0 : index
    %15 = vector.load %arg18[%c0_18, %c0_19] : memref<8x128xf32, #tpu.memory_space<vmem>>, vector<8x128xf32>
    %c0_20 = arith.constant 0 : index
    %c0_21 = arith.constant 0 : index
    %16 = vector.load %arg19[%c0_20, %c0_21] : memref<8x128xf32, #tpu.memory_space<vmem>>, vector<8x128xf32>
    %c0_22 = arith.constant 0 : index
    %c0_23 = arith.constant 0 : index
    %17 = vector.load %arg20[%c0_22, %c0_23] : memref<8x128xf32, #tpu.memory_space<vmem>>, vector<8x128xf32>
    %c0_24 = arith.constant 0 : index
    %c0_25 = arith.constant 0 : index
    %18 = vector.load %arg21[%c0_24, %c0_25] : memref<8x128xf32, #tpu.memory_space<vmem>>, vector<8x128xf32>
    %c0_26 = arith.constant 0 : index
    %c0_27 = arith.constant 0 : index
    %19 = vector.load %arg22[%c0_26, %c0_27] : memref<128x512xf32, #tpu.memory_space<vmem>>, vector<8x512xf32>
    %cst_28 = arith.constant dense<0.000000e+00> : vector<8x512xf32>
    %20 = tpu.matmul %15, %11, %cst_28 {dimension_numbers = #tpu.dot_dimension_numbers<[1], [0], [0], [1], [0, 0, 1, 1], [], []>} : vector<8x128xf32>, vector<128x512xf32>, vector<8x512xf32> -> vector<8x512xf32>
    %21 = arith.addf %19, %20 : vector<8x512xf32>
    %22 = vector.extract_strided_slice %21 {offsets = [0, 0], sizes = [8, 128], strides = [1, 1]} : vector<8x512xf32> to vector<8x128xf32>
    %cst_29 = arith.constant 5.000000e-01 : f32
    %23 = vector.broadcast %cst_29 : f32 to vector<8x128xf32>
    %24 = arith.mulf %23, %22 : vector<8x128xf32>
    %25 = math.tanh %24 : vector<8x128xf32>
    %cst_30 = arith.constant 5.000000e-01 : f32
    %26 = vector.broadcast %cst_30 : f32 to vector<8x128xf32>
    %27 = arith.mulf %26, %25 : vector<8x128xf32>
    %cst_31 = arith.constant 5.000000e-01 : f32
    %28 = vector.broadcast %cst_31 : f32 to vector<8x128xf32>
    %29 = arith.addf %27, %28 : vector<8x128xf32>
    %30 = vector.extract_strided_slice %21 {offsets = [0, 128], sizes = [8, 128], strides = [1, 1]} : vector<8x512xf32> to vector<8x128xf32>
    %cst_32 = arith.constant 5.000000e-01 : f32
    %31 = vector.broadcast %cst_32 : f32 to vector<8x128xf32>
    %32 = arith.mulf %31, %30 : vector<8x128xf32>
    %33 = math.tanh %32 : vector<8x128xf32>
    %cst_33 = arith.constant 5.000000e-01 : f32
    %34 = vector.broadcast %cst_33 : f32 to vector<8x128xf32>
    %35 = arith.mulf %34, %33 : vector<8x128xf32>
    %cst_34 = arith.constant 5.000000e-01 : f32
    %36 = vector.broadcast %cst_34 : f32 to vector<8x128xf32>
    %37 = arith.addf %35, %36 : vector<8x128xf32>
    %38 = vector.extract_strided_slice %21 {offsets = [0, 256], sizes = [8, 128], strides = [1, 1]} : vector<8x512xf32> to vector<8x128xf32>
    %39 = math.tanh %38 : vector<8x128xf32>
    %40 = vector.extract_strided_slice %21 {offsets = [0, 384], sizes = [8, 128], strides = [1, 1]} : vector<8x512xf32> to vector<8x128xf32>
    %cst_35 = arith.constant 5.000000e-01 : f32
    %41 = vector.broadcast %cst_35 : f32 to vector<8x128xf32>
    %42 = arith.mulf %41, %40 : vector<8x128xf32>
    %43 = math.tanh %42 : vector<8x128xf32>
    %cst_36 = arith.constant 5.000000e-01 : f32
    %44 = vector.broadcast %cst_36 : f32 to vector<8x128xf32>
    %45 = arith.mulf %44, %43 : vector<8x128xf32>
    %cst_37 = arith.constant 5.000000e-01 : f32
    %46 = vector.broadcast %cst_37 : f32 to vector<8x128xf32>
    %47 = arith.addf %45, %46 : vector<8x128xf32>
    %48 = arith.mulf %37, %16 : vector<8x128xf32>
    %49 = arith.mulf %29, %39 : vector<8x128xf32>
    %50 = arith.addf %48, %49 : vector<8x128xf32>
    %51 = math.tanh %50 : vector<8x128xf32>
    %52 = arith.mulf %47, %51 : vector<8x128xf32>
    %cst_38 = arith.constant dense<0.000000e+00> : vector<8x512xf32>
    %53 = tpu.matmul %52, %12, %cst_38 {dimension_numbers = #tpu.dot_dimension_numbers<[1], [0], [0], [1], [0, 0, 1, 1], [], []>} : vector<8x128xf32>, vector<128x512xf32>, vector<8x512xf32> -> vector<8x512xf32>
    %cst_39 = arith.constant dense<0.000000e+00> : vector<8x512xf32>
    %54 = tpu.matmul %17, %13, %cst_39 {dimension_numbers = #tpu.dot_dimension_numbers<[1], [0], [0], [1], [0, 0, 1, 1], [], []>} : vector<8x128xf32>, vector<128x512xf32>, vector<8x512xf32> -> vector<8x512xf32>
    %55 = arith.addf %53, %54 : vector<8x512xf32>
    %56 = vector.broadcast %14 : vector<1x512xf32> to vector<8x512xf32>
    %57 = arith.addf %55, %56 : vector<8x512xf32>
    %58 = vector.extract_strided_slice %57 {offsets = [0, 0], sizes = [8, 128], strides = [1, 1]} : vector<8x512xf32> to vector<8x128xf32>
    %cst_40 = arith.constant 5.000000e-01 : f32
    %59 = vector.broadcast %cst_40 : f32 to vector<8x128xf32>
    %60 = arith.mulf %59, %58 : vector<8x128xf32>
    %61 = math.tanh %60 : vector<8x128xf32>
    %cst_41 = arith.constant 5.000000e-01 : f32
    %62 = vector.broadcast %cst_41 : f32 to vector<8x128xf32>
    %63 = arith.mulf %62, %61 : vector<8x128xf32>
    %cst_42 = arith.constant 5.000000e-01 : f32
    %64 = vector.broadcast %cst_42 : f32 to vector<8x128xf32>
    %65 = arith.addf %63, %64 : vector<8x128xf32>
    %66 = vector.extract_strided_slice %57 {offsets = [0, 128], sizes = [8, 128], strides = [1, 1]} : vector<8x512xf32> to vector<8x128xf32>
    %cst_43 = arith.constant 5.000000e-01 : f32
    %67 = vector.broadcast %cst_43 : f32 to vector<8x128xf32>
    %68 = arith.mulf %67, %66 : vector<8x128xf32>
    %69 = math.tanh %68 : vector<8x128xf32>
    %cst_44 = arith.constant 5.000000e-01 : f32
    %70 = vector.broadcast %cst_44 : f32 to vector<8x128xf32>
    %71 = arith.mulf %70, %69 : vector<8x128xf32>
    %cst_45 = arith.constant 5.000000e-01 : f32
    %72 = vector.broadcast %cst_45 : f32 to vector<8x128xf32>
    %73 = arith.addf %71, %72 : vector<8x128xf32>
    %74 = vector.extract_strided_slice %57 {offsets = [0, 256], sizes = [8, 128], strides = [1, 1]} : vector<8x512xf32> to vector<8x128xf32>
    %75 = math.tanh %74 : vector<8x128xf32>
    %76 = vector.extract_strided_slice %57 {offsets = [0, 384], sizes = [8, 128], strides = [1, 1]} : vector<8x512xf32> to vector<8x128xf32>
    %cst_46 = arith.constant 5.000000e-01 : f32
    %77 = vector.broadcast %cst_46 : f32 to vector<8x128xf32>
    %78 = arith.mulf %77, %76 : vector<8x128xf32>
    %79 = math.tanh %78 : vector<8x128xf32>
    %cst_47 = arith.constant 5.000000e-01 : f32
    %80 = vector.broadcast %cst_47 : f32 to vector<8x128xf32>
    %81 = arith.mulf %80, %79 : vector<8x128xf32>
    %cst_48 = arith.constant 5.000000e-01 : f32
    %82 = vector.broadcast %cst_48 : f32 to vector<8x128xf32>
    %83 = arith.addf %81, %82 : vector<8x128xf32>
    %84 = arith.mulf %73, %18 : vector<8x128xf32>
    %85 = arith.mulf %65, %75 : vector<8x128xf32>
    %86 = arith.addf %84, %85 : vector<8x128xf32>
    %87 = math.tanh %86 : vector<8x128xf32>
    %88 = arith.mulf %83, %87 : vector<8x128xf32>
    %c8 = arith.constant 8 : index
    %c0_49 = arith.constant 0 : index
    %89 = vector.load %arg22[%c8, %c0_49] : memref<128x512xf32, #tpu.memory_space<vmem>>, vector<8x512xf32>
    %cst_50 = arith.constant dense<0.000000e+00> : vector<8x512xf32>
    %90 = tpu.matmul %52, %11, %cst_50 {dimension_numbers = #tpu.dot_dimension_numbers<[1], [0], [0], [1], [0, 0, 1, 1], [], []>} : vector<8x128xf32>, vector<128x512xf32>, vector<8x512xf32> -> vector<8x512xf32>
    %91 = arith.addf %89, %90 : vector<8x512xf32>
    %92 = vector.extract_strided_slice %91 {offsets = [0, 0], sizes = [8, 128], strides = [1, 1]} : vector<8x512xf32> to vector<8x128xf32>
    %cst_51 = arith.constant 5.000000e-01 : f32
    %93 = vector.broadcast %cst_51 : f32 to vector<8x128xf32>
    %94 = arith.mulf %93, %92 : vector<8x128xf32>
    %95 = math.tanh %94 : vector<8x128xf32>
    %cst_52 = arith.constant 5.000000e-01 : f32
    %96 = vector.broadcast %cst_52 : f32 to vector<8x128xf32>
    %97 = arith.mulf %96, %95 : vector<8x128xf32>
    %cst_53 = arith.constant 5.000000e-01 : f32
    %98 = vector.broadcast %cst_53 : f32 to vector<8x128xf32>
    %99 = arith.addf %97, %98 : vector<8x128xf32>
    %100 = vector.extract_strided_slice %91 {offsets = [0, 128], sizes = [8, 128], strides = [1, 1]} : vector<8x512xf32> to vector<8x128xf32>
    %cst_54 = arith.constant 5.000000e-01 : f32
    %101 = vector.broadcast %cst_54 : f32 to vector<8x128xf32>
    %102 = arith.mulf %101, %100 : vector<8x128xf32>
    %103 = math.tanh %102 : vector<8x128xf32>
    %cst_55 = arith.constant 5.000000e-01 : f32
    %104 = vector.broadcast %cst_55 : f32 to vector<8x128xf32>
    %105 = arith.mulf %104, %103 : vector<8x128xf32>
    %cst_56 = arith.constant 5.000000e-01 : f32
    %106 = vector.broadcast %cst_56 : f32 to vector<8x128xf32>
    %107 = arith.addf %105, %106 : vector<8x128xf32>
    %108 = vector.extract_strided_slice %91 {offsets = [0, 256], sizes = [8, 128], strides = [1, 1]} : vector<8x512xf32> to vector<8x128xf32>
    %109 = math.tanh %108 : vector<8x128xf32>
    %110 = vector.extract_strided_slice %91 {offsets = [0, 384], sizes = [8, 128], strides = [1, 1]} : vector<8x512xf32> to vector<8x128xf32>
    %cst_57 = arith.constant 5.000000e-01 : f32
    %111 = vector.broadcast %cst_57 : f32 to vector<8x128xf32>
    %112 = arith.mulf %111, %110 : vector<8x128xf32>
    %113 = math.tanh %112 : vector<8x128xf32>
    %cst_58 = arith.constant 5.000000e-01 : f32
    %114 = vector.broadcast %cst_58 : f32 to vector<8x128xf32>
    %115 = arith.mulf %114, %113 : vector<8x128xf32>
    %cst_59 = arith.constant 5.000000e-01 : f32
    %116 = vector.broadcast %cst_59 : f32 to vector<8x128xf32>
    %117 = arith.addf %115, %116 : vector<8x128xf32>
    %118 = arith.mulf %107, %50 : vector<8x128xf32>
    %119 = arith.mulf %99, %109 : vector<8x128xf32>
    %120 = arith.addf %118, %119 : vector<8x128xf32>
    %121 = math.tanh %120 : vector<8x128xf32>
    %122 = arith.mulf %117, %121 : vector<8x128xf32>
    %cst_60 = arith.constant dense<0.000000e+00> : vector<8x512xf32>
    %123 = tpu.matmul %122, %12, %cst_60 {dimension_numbers = #tpu.dot_dimension_numbers<[1], [0], [0], [1], [0, 0, 1, 1], [], []>} : vector<8x128xf32>, vector<128x512xf32>, vector<8x512xf32> -> vector<8x512xf32>
    %cst_61 = arith.constant dense<0.000000e+00> : vector<8x512xf32>
    %124 = tpu.matmul %88, %13, %cst_61 {dimension_numbers = #tpu.dot_dimension_numbers<[1], [0], [0], [1], [0, 0, 1, 1], [], []>} : vector<8x128xf32>, vector<128x512xf32>, vector<8x512xf32> -> vector<8x512xf32>
    %125 = arith.addf %123, %124 : vector<8x512xf32>
    %126 = vector.broadcast %14 : vector<1x512xf32> to vector<8x512xf32>
    %127 = arith.addf %125, %126 : vector<8x512xf32>
    %128 = vector.extract_strided_slice %127 {offsets = [0, 0], sizes = [8, 128], strides = [1, 1]} : vector<8x512xf32> to vector<8x128xf32>
    %cst_62 = arith.constant 5.000000e-01 : f32
    %129 = vector.broadcast %cst_62 : f32 to vector<8x128xf32>
    %130 = arith.mulf %129, %128 : vector<8x128xf32>
    %131 = math.tanh %130 : vector<8x128xf32>
    %cst_63 = arith.constant 5.000000e-01 : f32
    %132 = vector.broadcast %cst_63 : f32 to vector<8x128xf32>
    %133 = arith.mulf %132, %131 : vector<8x128xf32>
    %cst_64 = arith.constant 5.000000e-01 : f32
    %134 = vector.broadcast %cst_64 : f32 to vector<8x128xf32>
    %135 = arith.addf %133, %134 : vector<8x128xf32>
    %136 = vector.extract_strided_slice %127 {offsets = [0, 128], sizes = [8, 128], strides = [1, 1]} : vector<8x512xf32> to vector<8x128xf32>
    %cst_65 = arith.constant 5.000000e-01 : f32
    %137 = vector.broadcast %cst_65 : f32 to vector<8x128xf32>
    %138 = arith.mulf %137, %136 : vector<8x128xf32>
    %139 = math.tanh %138 : vector<8x128xf32>
    %cst_66 = arith.constant 5.000000e-01 : f32
    %140 = vector.broadcast %cst_66 : f32 to vector<8x128xf32>
    %141 = arith.mulf %140, %139 : vector<8x128xf32>
    %cst_67 = arith.constant 5.000000e-01 : f32
    %142 = vector.broadcast %cst_67 : f32 to vector<8x128xf32>
    %143 = arith.addf %141, %142 : vector<8x128xf32>
    %144 = vector.extract_strided_slice %127 {offsets = [0, 256], sizes = [8, 128], strides = [1, 1]} : vector<8x512xf32> to vector<8x128xf32>
    %145 = math.tanh %144 : vector<8x128xf32>
    %146 = vector.extract_strided_slice %127 {offsets = [0, 384], sizes = [8, 128], strides = [1, 1]} : vector<8x512xf32> to vector<8x128xf32>
    %cst_68 = arith.constant 5.000000e-01 : f32
    %147 = vector.broadcast %cst_68 : f32 to vector<8x128xf32>
    %148 = arith.mulf %147, %146 : vector<8x128xf32>
    %149 = math.tanh %148 : vector<8x128xf32>
    %cst_69 = arith.constant 5.000000e-01 : f32
    %150 = vector.broadcast %cst_69 : f32 to vector<8x128xf32>
    %151 = arith.mulf %150, %149 : vector<8x128xf32>
    %cst_70 = arith.constant 5.000000e-01 : f32
    %152 = vector.broadcast %cst_70 : f32 to vector<8x128xf32>
    %153 = arith.addf %151, %152 : vector<8x128xf32>
    %154 = arith.mulf %143, %86 : vector<8x128xf32>
    %155 = arith.mulf %135, %145 : vector<8x128xf32>
    %156 = arith.addf %154, %155 : vector<8x128xf32>
    %157 = math.tanh %156 : vector<8x128xf32>
    %158 = arith.mulf %153, %157 : vector<8x128xf32>
    %c16 = arith.constant 16 : index
    %c0_71 = arith.constant 0 : index
    %159 = vector.load %arg22[%c16, %c0_71] : memref<128x512xf32, #tpu.memory_space<vmem>>, vector<8x512xf32>
    %cst_72 = arith.constant dense<0.000000e+00> : vector<8x512xf32>
    %160 = tpu.matmul %122, %11, %cst_72 {dimension_numbers = #tpu.dot_dimension_numbers<[1], [0], [0], [1], [0, 0, 1, 1], [], []>} : vector<8x128xf32>, vector<128x512xf32>, vector<8x512xf32> -> vector<8x512xf32>
    %161 = arith.addf %159, %160 : vector<8x512xf32>
    %162 = vector.extract_strided_slice %161 {offsets = [0, 0], sizes = [8, 128], strides = [1, 1]} : vector<8x512xf32> to vector<8x128xf32>
    %cst_73 = arith.constant 5.000000e-01 : f32
    %163 = vector.broadcast %cst_73 : f32 to vector<8x128xf32>
    %164 = arith.mulf %163, %162 : vector<8x128xf32>
    %165 = math.tanh %164 : vector<8x128xf32>
    %cst_74 = arith.constant 5.000000e-01 : f32
    %166 = vector.broadcast %cst_74 : f32 to vector<8x128xf32>
    %167 = arith.mulf %166, %165 : vector<8x128xf32>
    %cst_75 = arith.constant 5.000000e-01 : f32
    %168 = vector.broadcast %cst_75 : f32 to vector<8x128xf32>
    %169 = arith.addf %167, %168 : vector<8x128xf32>
    %170 = vector.extract_strided_slice %161 {offsets = [0, 128], sizes = [8, 128], strides = [1, 1]} : vector<8x512xf32> to vector<8x128xf32>
    %cst_76 = arith.constant 5.000000e-01 : f32
    %171 = vector.broadcast %cst_76 : f32 to vector<8x128xf32>
    %172 = arith.mulf %171, %170 : vector<8x128xf32>
    %173 = math.tanh %172 : vector<8x128xf32>
    %cst_77 = arith.constant 5.000000e-01 : f32
    %174 = vector.broadcast %cst_77 : f32 to vector<8x128xf32>
    %175 = arith.mulf %174, %173 : vector<8x128xf32>
    %cst_78 = arith.constant 5.000000e-01 : f32
    %176 = vector.broadcast %cst_78 : f32 to vector<8x128xf32>
    %177 = arith.addf %175, %176 : vector<8x128xf32>
    %178 = vector.extract_strided_slice %161 {offsets = [0, 256], sizes = [8, 128], strides = [1, 1]} : vector<8x512xf32> to vector<8x128xf32>
    %179 = math.tanh %178 : vector<8x128xf32>
    %180 = vector.extract_strided_slice %161 {offsets = [0, 384], sizes = [8, 128], strides = [1, 1]} : vector<8x512xf32> to vector<8x128xf32>
    %cst_79 = arith.constant 5.000000e-01 : f32
    %181 = vector.broadcast %cst_79 : f32 to vector<8x128xf32>
    %182 = arith.mulf %181, %180 : vector<8x128xf32>
    %183 = math.tanh %182 : vector<8x128xf32>
    %cst_80 = arith.constant 5.000000e-01 : f32
    %184 = vector.broadcast %cst_80 : f32 to vector<8x128xf32>
    %185 = arith.mulf %184, %183 : vector<8x128xf32>
    %cst_81 = arith.constant 5.000000e-01 : f32
    %186 = vector.broadcast %cst_81 : f32 to vector<8x128xf32>
    %187 = arith.addf %185, %186 : vector<8x128xf32>
    %188 = arith.mulf %177, %120 : vector<8x128xf32>
    %189 = arith.mulf %169, %179 : vector<8x128xf32>
    %190 = arith.addf %188, %189 : vector<8x128xf32>
    %191 = math.tanh %190 : vector<8x128xf32>
    %192 = arith.mulf %187, %191 : vector<8x128xf32>
    %cst_82 = arith.constant dense<0.000000e+00> : vector<8x512xf32>
    %193 = tpu.matmul %192, %12, %cst_82 {dimension_numbers = #tpu.dot_dimension_numbers<[1], [0], [0], [1], [0, 0, 1, 1], [], []>} : vector<8x128xf32>, vector<128x512xf32>, vector<8x512xf32> -> vector<8x512xf32>
    %cst_83 = arith.constant dense<0.000000e+00> : vector<8x512xf32>
    %194 = tpu.matmul %158, %13, %cst_83 {dimension_numbers = #tpu.dot_dimension_numbers<[1], [0], [0], [1], [0, 0, 1, 1], [], []>} : vector<8x128xf32>, vector<128x512xf32>, vector<8x512xf32> -> vector<8x512xf32>
    %195 = arith.addf %193, %194 : vector<8x512xf32>
    %196 = vector.broadcast %14 : vector<1x512xf32> to vector<8x512xf32>
    %197 = arith.addf %195, %196 : vector<8x512xf32>
    %198 = vector.extract_strided_slice %197 {offsets = [0, 0], sizes = [8, 128], strides = [1, 1]} : vector<8x512xf32> to vector<8x128xf32>
    %cst_84 = arith.constant 5.000000e-01 : f32
    %199 = vector.broadcast %cst_84 : f32 to vector<8x128xf32>
    %200 = arith.mulf %199, %198 : vector<8x128xf32>
    %201 = math.tanh %200 : vector<8x128xf32>
    %cst_85 = arith.constant 5.000000e-01 : f32
    %202 = vector.broadcast %cst_85 : f32 to vector<8x128xf32>
    %203 = arith.mulf %202, %201 : vector<8x128xf32>
    %cst_86 = arith.constant 5.000000e-01 : f32
    %204 = vector.broadcast %cst_86 : f32 to vector<8x128xf32>
    %205 = arith.addf %203, %204 : vector<8x128xf32>
    %206 = vector.extract_strided_slice %197 {offsets = [0, 128], sizes = [8, 128], strides = [1, 1]} : vector<8x512xf32> to vector<8x128xf32>
    %cst_87 = arith.constant 5.000000e-01 : f32
    %207 = vector.broadcast %cst_87 : f32 to vector<8x128xf32>
    %208 = arith.mulf %207, %206 : vector<8x128xf32>
    %209 = math.tanh %208 : vector<8x128xf32>
    %cst_88 = arith.constant 5.000000e-01 : f32
    %210 = vector.broadcast %cst_88 : f32 to vector<8x128xf32>
    %211 = arith.mulf %210, %209 : vector<8x128xf32>
    %cst_89 = arith.constant 5.000000e-01 : f32
    %212 = vector.broadcast %cst_89 : f32 to vector<8x128xf32>
    %213 = arith.addf %211, %212 : vector<8x128xf32>
    %214 = vector.extract_strided_slice %197 {offsets = [0, 256], sizes = [8, 128], strides = [1, 1]} : vector<8x512xf32> to vector<8x128xf32>
    %215 = math.tanh %214 : vector<8x128xf32>
    %216 = vector.extract_strided_slice %197 {offsets = [0, 384], sizes = [8, 128], strides = [1, 1]} : vector<8x512xf32> to vector<8x128xf32>
    %cst_90 = arith.constant 5.000000e-01 : f32
    %217 = vector.broadcast %cst_90 : f32 to vector<8x128xf32>
    %218 = arith.mulf %217, %216 : vector<8x128xf32>
    %219 = math.tanh %218 : vector<8x128xf32>
    %cst_91 = arith.constant 5.000000e-01 : f32
    %220 = vector.broadcast %cst_91 : f32 to vector<8x128xf32>
    %221 = arith.mulf %220, %219 : vector<8x128xf32>
    %cst_92 = arith.constant 5.000000e-01 : f32
    %222 = vector.broadcast %cst_92 : f32 to vector<8x128xf32>
    %223 = arith.addf %221, %222 : vector<8x128xf32>
    %224 = arith.mulf %213, %156 : vector<8x128xf32>
    %225 = arith.mulf %205, %215 : vector<8x128xf32>
    %226 = arith.addf %224, %225 : vector<8x128xf32>
    %227 = math.tanh %226 : vector<8x128xf32>
    %228 = arith.mulf %223, %227 : vector<8x128xf32>
    %c24 = arith.constant 24 : index
    %c0_93 = arith.constant 0 : index
    %229 = vector.load %arg22[%c24, %c0_93] : memref<128x512xf32, #tpu.memory_space<vmem>>, vector<8x512xf32>
    %cst_94 = arith.constant dense<0.000000e+00> : vector<8x512xf32>
    %230 = tpu.matmul %192, %11, %cst_94 {dimension_numbers = #tpu.dot_dimension_numbers<[1], [0], [0], [1], [0, 0, 1, 1], [], []>} : vector<8x128xf32>, vector<128x512xf32>, vector<8x512xf32> -> vector<8x512xf32>
    %231 = arith.addf %229, %230 : vector<8x512xf32>
    %232 = vector.extract_strided_slice %231 {offsets = [0, 0], sizes = [8, 128], strides = [1, 1]} : vector<8x512xf32> to vector<8x128xf32>
    %cst_95 = arith.constant 5.000000e-01 : f32
    %233 = vector.broadcast %cst_95 : f32 to vector<8x128xf32>
    %234 = arith.mulf %233, %232 : vector<8x128xf32>
    %235 = math.tanh %234 : vector<8x128xf32>
    %cst_96 = arith.constant 5.000000e-01 : f32
    %236 = vector.broadcast %cst_96 : f32 to vector<8x128xf32>
    %237 = arith.mulf %236, %235 : vector<8x128xf32>
    %cst_97 = arith.constant 5.000000e-01 : f32
    %238 = vector.broadcast %cst_97 : f32 to vector<8x128xf32>
    %239 = arith.addf %237, %238 : vector<8x128xf32>
    %240 = vector.extract_strided_slice %231 {offsets = [0, 128], sizes = [8, 128], strides = [1, 1]} : vector<8x512xf32> to vector<8x128xf32>
    %cst_98 = arith.constant 5.000000e-01 : f32
    %241 = vector.broadcast %cst_98 : f32 to vector<8x128xf32>
    %242 = arith.mulf %241, %240 : vector<8x128xf32>
    %243 = math.tanh %242 : vector<8x128xf32>
    %cst_99 = arith.constant 5.000000e-01 : f32
    %244 = vector.broadcast %cst_99 : f32 to vector<8x128xf32>
    %245 = arith.mulf %244, %243 : vector<8x128xf32>
    %cst_100 = arith.constant 5.000000e-01 : f32
    %246 = vector.broadcast %cst_100 : f32 to vector<8x128xf32>
    %247 = arith.addf %245, %246 : vector<8x128xf32>
    %248 = vector.extract_strided_slice %231 {offsets = [0, 256], sizes = [8, 128], strides = [1, 1]} : vector<8x512xf32> to vector<8x128xf32>
    %249 = math.tanh %248 : vector<8x128xf32>
    %250 = vector.extract_strided_slice %231 {offsets = [0, 384], sizes = [8, 128], strides = [1, 1]} : vector<8x512xf32> to vector<8x128xf32>
    %cst_101 = arith.constant 5.000000e-01 : f32
    %251 = vector.broadcast %cst_101 : f32 to vector<8x128xf32>
    %252 = arith.mulf %251, %250 : vector<8x128xf32>
    %253 = math.tanh %252 : vector<8x128xf32>
    %cst_102 = arith.constant 5.000000e-01 : f32
    %254 = vector.broadcast %cst_102 : f32 to vector<8x128xf32>
    %255 = arith.mulf %254, %253 : vector<8x128xf32>
    %cst_103 = arith.constant 5.000000e-01 : f32
    %256 = vector.broadcast %cst_103 : f32 to vector<8x128xf32>
    %257 = arith.addf %255, %256 : vector<8x128xf32>
    %258 = arith.mulf %247, %190 : vector<8x128xf32>
    %259 = arith.mulf %239, %249 : vector<8x128xf32>
    %260 = arith.addf %258, %259 : vector<8x128xf32>
    %261 = math.tanh %260 : vector<8x128xf32>
    %262 = arith.mulf %257, %261 : vector<8x128xf32>
    %cst_104 = arith.constant dense<0.000000e+00> : vector<8x512xf32>
    %263 = tpu.matmul %262, %12, %cst_104 {dimension_numbers = #tpu.dot_dimension_numbers<[1], [0], [0], [1], [0, 0, 1, 1], [], []>} : vector<8x128xf32>, vector<128x512xf32>, vector<8x512xf32> -> vector<8x512xf32>
    %cst_105 = arith.constant dense<0.000000e+00> : vector<8x512xf32>
    %264 = tpu.matmul %228, %13, %cst_105 {dimension_numbers = #tpu.dot_dimension_numbers<[1], [0], [0], [1], [0, 0, 1, 1], [], []>} : vector<8x128xf32>, vector<128x512xf32>, vector<8x512xf32> -> vector<8x512xf32>
    %265 = arith.addf %263, %264 : vector<8x512xf32>
    %266 = vector.broadcast %14 : vector<1x512xf32> to vector<8x512xf32>
    %267 = arith.addf %265, %266 : vector<8x512xf32>
    %268 = vector.extract_strided_slice %267 {offsets = [0, 0], sizes = [8, 128], strides = [1, 1]} : vector<8x512xf32> to vector<8x128xf32>
    %cst_106 = arith.constant 5.000000e-01 : f32
    %269 = vector.broadcast %cst_106 : f32 to vector<8x128xf32>
    %270 = arith.mulf %269, %268 : vector<8x128xf32>
    %271 = math.tanh %270 : vector<8x128xf32>
    %cst_107 = arith.constant 5.000000e-01 : f32
    %272 = vector.broadcast %cst_107 : f32 to vector<8x128xf32>
    %273 = arith.mulf %272, %271 : vector<8x128xf32>
    %cst_108 = arith.constant 5.000000e-01 : f32
    %274 = vector.broadcast %cst_108 : f32 to vector<8x128xf32>
    %275 = arith.addf %273, %274 : vector<8x128xf32>
    %276 = vector.extract_strided_slice %267 {offsets = [0, 128], sizes = [8, 128], strides = [1, 1]} : vector<8x512xf32> to vector<8x128xf32>
    %cst_109 = arith.constant 5.000000e-01 : f32
    %277 = vector.broadcast %cst_109 : f32 to vector<8x128xf32>
    %278 = arith.mulf %277, %276 : vector<8x128xf32>
    %279 = math.tanh %278 : vector<8x128xf32>
    %cst_110 = arith.constant 5.000000e-01 : f32
    %280 = vector.broadcast %cst_110 : f32 to vector<8x128xf32>
    %281 = arith.mulf %280, %279 : vector<8x128xf32>
    %cst_111 = arith.constant 5.000000e-01 : f32
    %282 = vector.broadcast %cst_111 : f32 to vector<8x128xf32>
    %283 = arith.addf %281, %282 : vector<8x128xf32>
    %284 = vector.extract_strided_slice %267 {offsets = [0, 256], sizes = [8, 128], strides = [1, 1]} : vector<8x512xf32> to vector<8x128xf32>
    %285 = math.tanh %284 : vector<8x128xf32>
    %286 = vector.extract_strided_slice %267 {offsets = [0, 384], sizes = [8, 128], strides = [1, 1]} : vector<8x512xf32> to vector<8x128xf32>
    %cst_112 = arith.constant 5.000000e-01 : f32
    %287 = vector.broadcast %cst_112 : f32 to vector<8x128xf32>
    %288 = arith.mulf %287, %286 : vector<8x128xf32>
    %289 = math.tanh %288 : vector<8x128xf32>
    %cst_113 = arith.constant 5.000000e-01 : f32
    %290 = vector.broadcast %cst_113 : f32 to vector<8x128xf32>
    %291 = arith.mulf %290, %289 : vector<8x128xf32>
    %cst_114 = arith.constant 5.000000e-01 : f32
    %292 = vector.broadcast %cst_114 : f32 to vector<8x128xf32>
    %293 = arith.addf %291, %292 : vector<8x128xf32>
    %294 = arith.mulf %283, %226 : vector<8x128xf32>
    %295 = arith.mulf %275, %285 : vector<8x128xf32>
    %296 = arith.addf %294, %295 : vector<8x128xf32>
    %297 = math.tanh %296 : vector<8x128xf32>
    %298 = arith.mulf %293, %297 : vector<8x128xf32>
    %c32 = arith.constant 32 : index
    %c0_115 = arith.constant 0 : index
    %299 = vector.load %arg22[%c32, %c0_115] : memref<128x512xf32, #tpu.memory_space<vmem>>, vector<8x512xf32>
    %cst_116 = arith.constant dense<0.000000e+00> : vector<8x512xf32>
    %300 = tpu.matmul %262, %11, %cst_116 {dimension_numbers = #tpu.dot_dimension_numbers<[1], [0], [0], [1], [0, 0, 1, 1], [], []>} : vector<8x128xf32>, vector<128x512xf32>, vector<8x512xf32> -> vector<8x512xf32>
    %301 = arith.addf %299, %300 : vector<8x512xf32>
    %302 = vector.extract_strided_slice %301 {offsets = [0, 0], sizes = [8, 128], strides = [1, 1]} : vector<8x512xf32> to vector<8x128xf32>
    %cst_117 = arith.constant 5.000000e-01 : f32
    %303 = vector.broadcast %cst_117 : f32 to vector<8x128xf32>
    %304 = arith.mulf %303, %302 : vector<8x128xf32>
    %305 = math.tanh %304 : vector<8x128xf32>
    %cst_118 = arith.constant 5.000000e-01 : f32
    %306 = vector.broadcast %cst_118 : f32 to vector<8x128xf32>
    %307 = arith.mulf %306, %305 : vector<8x128xf32>
    %cst_119 = arith.constant 5.000000e-01 : f32
    %308 = vector.broadcast %cst_119 : f32 to vector<8x128xf32>
    %309 = arith.addf %307, %308 : vector<8x128xf32>
    %310 = vector.extract_strided_slice %301 {offsets = [0, 128], sizes = [8, 128], strides = [1, 1]} : vector<8x512xf32> to vector<8x128xf32>
    %cst_120 = arith.constant 5.000000e-01 : f32
    %311 = vector.broadcast %cst_120 : f32 to vector<8x128xf32>
    %312 = arith.mulf %311, %310 : vector<8x128xf32>
    %313 = math.tanh %312 : vector<8x128xf32>
    %cst_121 = arith.constant 5.000000e-01 : f32
    %314 = vector.broadcast %cst_121 : f32 to vector<8x128xf32>
    %315 = arith.mulf %314, %313 : vector<8x128xf32>
    %cst_122 = arith.constant 5.000000e-01 : f32
    %316 = vector.broadcast %cst_122 : f32 to vector<8x128xf32>
    %317 = arith.addf %315, %316 : vector<8x128xf32>
    %318 = vector.extract_strided_slice %301 {offsets = [0, 256], sizes = [8, 128], strides = [1, 1]} : vector<8x512xf32> to vector<8x128xf32>
    %319 = math.tanh %318 : vector<8x128xf32>
    %320 = vector.extract_strided_slice %301 {offsets = [0, 384], sizes = [8, 128], strides = [1, 1]} : vector<8x512xf32> to vector<8x128xf32>
    %cst_123 = arith.constant 5.000000e-01 : f32
    %321 = vector.broadcast %cst_123 : f32 to vector<8x128xf32>
    %322 = arith.mulf %321, %320 : vector<8x128xf32>
    %323 = math.tanh %322 : vector<8x128xf32>
    %cst_124 = arith.constant 5.000000e-01 : f32
    %324 = vector.broadcast %cst_124 : f32 to vector<8x128xf32>
    %325 = arith.mulf %324, %323 : vector<8x128xf32>
    %cst_125 = arith.constant 5.000000e-01 : f32
    %326 = vector.broadcast %cst_125 : f32 to vector<8x128xf32>
    %327 = arith.addf %325, %326 : vector<8x128xf32>
    %328 = arith.mulf %317, %260 : vector<8x128xf32>
    %329 = arith.mulf %309, %319 : vector<8x128xf32>
    %330 = arith.addf %328, %329 : vector<8x128xf32>
    %331 = math.tanh %330 : vector<8x128xf32>
    %332 = arith.mulf %327, %331 : vector<8x128xf32>
    %cst_126 = arith.constant dense<0.000000e+00> : vector<8x512xf32>
    %333 = tpu.matmul %332, %12, %cst_126 {dimension_numbers = #tpu.dot_dimension_numbers<[1], [0], [0], [1], [0, 0, 1, 1], [], []>} : vector<8x128xf32>, vector<128x512xf32>, vector<8x512xf32> -> vector<8x512xf32>
    %cst_127 = arith.constant dense<0.000000e+00> : vector<8x512xf32>
    %334 = tpu.matmul %298, %13, %cst_127 {dimension_numbers = #tpu.dot_dimension_numbers<[1], [0], [0], [1], [0, 0, 1, 1], [], []>} : vector<8x128xf32>, vector<128x512xf32>, vector<8x512xf32> -> vector<8x512xf32>
    %335 = arith.addf %333, %334 : vector<8x512xf32>
    %336 = vector.broadcast %14 : vector<1x512xf32> to vector<8x512xf32>
    %337 = arith.addf %335, %336 : vector<8x512xf32>
    %338 = vector.extract_strided_slice %337 {offsets = [0, 0], sizes = [8, 128], strides = [1, 1]} : vector<8x512xf32> to vector<8x128xf32>
    %cst_128 = arith.constant 5.000000e-01 : f32
    %339 = vector.broadcast %cst_128 : f32 to vector<8x128xf32>
    %340 = arith.mulf %339, %338 : vector<8x128xf32>
    %341 = math.tanh %340 : vector<8x128xf32>
    %cst_129 = arith.constant 5.000000e-01 : f32
    %342 = vector.broadcast %cst_129 : f32 to vector<8x128xf32>
    %343 = arith.mulf %342, %341 : vector<8x128xf32>
    %cst_130 = arith.constant 5.000000e-01 : f32
    %344 = vector.broadcast %cst_130 : f32 to vector<8x128xf32>
    %345 = arith.addf %343, %344 : vector<8x128xf32>
    %346 = vector.extract_strided_slice %337 {offsets = [0, 128], sizes = [8, 128], strides = [1, 1]} : vector<8x512xf32> to vector<8x128xf32>
    %cst_131 = arith.constant 5.000000e-01 : f32
    %347 = vector.broadcast %cst_131 : f32 to vector<8x128xf32>
    %348 = arith.mulf %347, %346 : vector<8x128xf32>
    %349 = math.tanh %348 : vector<8x128xf32>
    %cst_132 = arith.constant 5.000000e-01 : f32
    %350 = vector.broadcast %cst_132 : f32 to vector<8x128xf32>
    %351 = arith.mulf %350, %349 : vector<8x128xf32>
    %cst_133 = arith.constant 5.000000e-01 : f32
    %352 = vector.broadcast %cst_133 : f32 to vector<8x128xf32>
    %353 = arith.addf %351, %352 : vector<8x128xf32>
    %354 = vector.extract_strided_slice %337 {offsets = [0, 256], sizes = [8, 128], strides = [1, 1]} : vector<8x512xf32> to vector<8x128xf32>
    %355 = math.tanh %354 : vector<8x128xf32>
    %356 = vector.extract_strided_slice %337 {offsets = [0, 384], sizes = [8, 128], strides = [1, 1]} : vector<8x512xf32> to vector<8x128xf32>
    %cst_134 = arith.constant 5.000000e-01 : f32
    %357 = vector.broadcast %cst_134 : f32 to vector<8x128xf32>
    %358 = arith.mulf %357, %356 : vector<8x128xf32>
    %359 = math.tanh %358 : vector<8x128xf32>
    %cst_135 = arith.constant 5.000000e-01 : f32
    %360 = vector.broadcast %cst_135 : f32 to vector<8x128xf32>
    %361 = arith.mulf %360, %359 : vector<8x128xf32>
    %cst_136 = arith.constant 5.000000e-01 : f32
    %362 = vector.broadcast %cst_136 : f32 to vector<8x128xf32>
    %363 = arith.addf %361, %362 : vector<8x128xf32>
    %364 = arith.mulf %353, %296 : vector<8x128xf32>
    %365 = arith.mulf %345, %355 : vector<8x128xf32>
    %366 = arith.addf %364, %365 : vector<8x128xf32>
    %367 = math.tanh %366 : vector<8x128xf32>
    %368 = arith.mulf %363, %367 : vector<8x128xf32>
    %c40 = arith.constant 40 : index
    %c0_137 = arith.constant 0 : index
    %369 = vector.load %arg22[%c40, %c0_137] : memref<128x512xf32, #tpu.memory_space<vmem>>, vector<8x512xf32>
    %cst_138 = arith.constant dense<0.000000e+00> : vector<8x512xf32>
    %370 = tpu.matmul %332, %11, %cst_138 {dimension_numbers = #tpu.dot_dimension_numbers<[1], [0], [0], [1], [0, 0, 1, 1], [], []>} : vector<8x128xf32>, vector<128x512xf32>, vector<8x512xf32> -> vector<8x512xf32>
    %371 = arith.addf %369, %370 : vector<8x512xf32>
    %372 = vector.extract_strided_slice %371 {offsets = [0, 0], sizes = [8, 128], strides = [1, 1]} : vector<8x512xf32> to vector<8x128xf32>
    %cst_139 = arith.constant 5.000000e-01 : f32
    %373 = vector.broadcast %cst_139 : f32 to vector<8x128xf32>
    %374 = arith.mulf %373, %372 : vector<8x128xf32>
    %375 = math.tanh %374 : vector<8x128xf32>
    %cst_140 = arith.constant 5.000000e-01 : f32
    %376 = vector.broadcast %cst_140 : f32 to vector<8x128xf32>
    %377 = arith.mulf %376, %375 : vector<8x128xf32>
    %cst_141 = arith.constant 5.000000e-01 : f32
    %378 = vector.broadcast %cst_141 : f32 to vector<8x128xf32>
    %379 = arith.addf %377, %378 : vector<8x128xf32>
    %380 = vector.extract_strided_slice %371 {offsets = [0, 128], sizes = [8, 128], strides = [1, 1]} : vector<8x512xf32> to vector<8x128xf32>
    %cst_142 = arith.constant 5.000000e-01 : f32
    %381 = vector.broadcast %cst_142 : f32 to vector<8x128xf32>
    %382 = arith.mulf %381, %380 : vector<8x128xf32>
    %383 = math.tanh %382 : vector<8x128xf32>
    %cst_143 = arith.constant 5.000000e-01 : f32
    %384 = vector.broadcast %cst_143 : f32 to vector<8x128xf32>
    %385 = arith.mulf %384, %383 : vector<8x128xf32>
    %cst_144 = arith.constant 5.000000e-01 : f32
    %386 = vector.broadcast %cst_144 : f32 to vector<8x128xf32>
    %387 = arith.addf %385, %386 : vector<8x128xf32>
    %388 = vector.extract_strided_slice %371 {offsets = [0, 256], sizes = [8, 128], strides = [1, 1]} : vector<8x512xf32> to vector<8x128xf32>
    %389 = math.tanh %388 : vector<8x128xf32>
    %390 = vector.extract_strided_slice %371 {offsets = [0, 384], sizes = [8, 128], strides = [1, 1]} : vector<8x512xf32> to vector<8x128xf32>
    %cst_145 = arith.constant 5.000000e-01 : f32
    %391 = vector.broadcast %cst_145 : f32 to vector<8x128xf32>
    %392 = arith.mulf %391, %390 : vector<8x128xf32>
    %393 = math.tanh %392 : vector<8x128xf32>
    %cst_146 = arith.constant 5.000000e-01 : f32
    %394 = vector.broadcast %cst_146 : f32 to vector<8x128xf32>
    %395 = arith.mulf %394, %393 : vector<8x128xf32>
    %cst_147 = arith.constant 5.000000e-01 : f32
    %396 = vector.broadcast %cst_147 : f32 to vector<8x128xf32>
    %397 = arith.addf %395, %396 : vector<8x128xf32>
    %398 = arith.mulf %387, %330 : vector<8x128xf32>
    %399 = arith.mulf %379, %389 : vector<8x128xf32>
    %400 = arith.addf %398, %399 : vector<8x128xf32>
    %401 = math.tanh %400 : vector<8x128xf32>
    %402 = arith.mulf %397, %401 : vector<8x128xf32>
    %cst_148 = arith.constant dense<0.000000e+00> : vector<8x512xf32>
    %403 = tpu.matmul %402, %12, %cst_148 {dimension_numbers = #tpu.dot_dimension_numbers<[1], [0], [0], [1], [0, 0, 1, 1], [], []>} : vector<8x128xf32>, vector<128x512xf32>, vector<8x512xf32> -> vector<8x512xf32>
    %cst_149 = arith.constant dense<0.000000e+00> : vector<8x512xf32>
    %404 = tpu.matmul %368, %13, %cst_149 {dimension_numbers = #tpu.dot_dimension_numbers<[1], [0], [0], [1], [0, 0, 1, 1], [], []>} : vector<8x128xf32>, vector<128x512xf32>, vector<8x512xf32> -> vector<8x512xf32>
    %405 = arith.addf %403, %404 : vector<8x512xf32>
    %406 = vector.broadcast %14 : vector<1x512xf32> to vector<8x512xf32>
    %407 = arith.addf %405, %406 : vector<8x512xf32>
    %408 = vector.extract_strided_slice %407 {offsets = [0, 0], sizes = [8, 128], strides = [1, 1]} : vector<8x512xf32> to vector<8x128xf32>
    %cst_150 = arith.constant 5.000000e-01 : f32
    %409 = vector.broadcast %cst_150 : f32 to vector<8x128xf32>
    %410 = arith.mulf %409, %408 : vector<8x128xf32>
    %411 = math.tanh %410 : vector<8x128xf32>
    %cst_151 = arith.constant 5.000000e-01 : f32
    %412 = vector.broadcast %cst_151 : f32 to vector<8x128xf32>
    %413 = arith.mulf %412, %411 : vector<8x128xf32>
    %cst_152 = arith.constant 5.000000e-01 : f32
    %414 = vector.broadcast %cst_152 : f32 to vector<8x128xf32>
    %415 = arith.addf %413, %414 : vector<8x128xf32>
    %416 = vector.extract_strided_slice %407 {offsets = [0, 128], sizes = [8, 128], strides = [1, 1]} : vector<8x512xf32> to vector<8x128xf32>
    %cst_153 = arith.constant 5.000000e-01 : f32
    %417 = vector.broadcast %cst_153 : f32 to vector<8x128xf32>
    %418 = arith.mulf %417, %416 : vector<8x128xf32>
    %419 = math.tanh %418 : vector<8x128xf32>
    %cst_154 = arith.constant 5.000000e-01 : f32
    %420 = vector.broadcast %cst_154 : f32 to vector<8x128xf32>
    %421 = arith.mulf %420, %419 : vector<8x128xf32>
    %cst_155 = arith.constant 5.000000e-01 : f32
    %422 = vector.broadcast %cst_155 : f32 to vector<8x128xf32>
    %423 = arith.addf %421, %422 : vector<8x128xf32>
    %424 = vector.extract_strided_slice %407 {offsets = [0, 256], sizes = [8, 128], strides = [1, 1]} : vector<8x512xf32> to vector<8x128xf32>
    %425 = math.tanh %424 : vector<8x128xf32>
    %426 = vector.extract_strided_slice %407 {offsets = [0, 384], sizes = [8, 128], strides = [1, 1]} : vector<8x512xf32> to vector<8x128xf32>
    %cst_156 = arith.constant 5.000000e-01 : f32
    %427 = vector.broadcast %cst_156 : f32 to vector<8x128xf32>
    %428 = arith.mulf %427, %426 : vector<8x128xf32>
    %429 = math.tanh %428 : vector<8x128xf32>
    %cst_157 = arith.constant 5.000000e-01 : f32
    %430 = vector.broadcast %cst_157 : f32 to vector<8x128xf32>
    %431 = arith.mulf %430, %429 : vector<8x128xf32>
    %cst_158 = arith.constant 5.000000e-01 : f32
    %432 = vector.broadcast %cst_158 : f32 to vector<8x128xf32>
    %433 = arith.addf %431, %432 : vector<8x128xf32>
    %434 = arith.mulf %423, %366 : vector<8x128xf32>
    %435 = arith.mulf %415, %425 : vector<8x128xf32>
    %436 = arith.addf %434, %435 : vector<8x128xf32>
    %437 = math.tanh %436 : vector<8x128xf32>
    %438 = arith.mulf %433, %437 : vector<8x128xf32>
    %c48 = arith.constant 48 : index
    %c0_159 = arith.constant 0 : index
    %439 = vector.load %arg22[%c48, %c0_159] : memref<128x512xf32, #tpu.memory_space<vmem>>, vector<8x512xf32>
    %cst_160 = arith.constant dense<0.000000e+00> : vector<8x512xf32>
    %440 = tpu.matmul %402, %11, %cst_160 {dimension_numbers = #tpu.dot_dimension_numbers<[1], [0], [0], [1], [0, 0, 1, 1], [], []>} : vector<8x128xf32>, vector<128x512xf32>, vector<8x512xf32> -> vector<8x512xf32>
    %441 = arith.addf %439, %440 : vector<8x512xf32>
    %442 = vector.extract_strided_slice %441 {offsets = [0, 0], sizes = [8, 128], strides = [1, 1]} : vector<8x512xf32> to vector<8x128xf32>
    %cst_161 = arith.constant 5.000000e-01 : f32
    %443 = vector.broadcast %cst_161 : f32 to vector<8x128xf32>
    %444 = arith.mulf %443, %442 : vector<8x128xf32>
    %445 = math.tanh %444 : vector<8x128xf32>
    %cst_162 = arith.constant 5.000000e-01 : f32
    %446 = vector.broadcast %cst_162 : f32 to vector<8x128xf32>
    %447 = arith.mulf %446, %445 : vector<8x128xf32>
    %cst_163 = arith.constant 5.000000e-01 : f32
    %448 = vector.broadcast %cst_163 : f32 to vector<8x128xf32>
    %449 = arith.addf %447, %448 : vector<8x128xf32>
    %450 = vector.extract_strided_slice %441 {offsets = [0, 128], sizes = [8, 128], strides = [1, 1]} : vector<8x512xf32> to vector<8x128xf32>
    %cst_164 = arith.constant 5.000000e-01 : f32
    %451 = vector.broadcast %cst_164 : f32 to vector<8x128xf32>
    %452 = arith.mulf %451, %450 : vector<8x128xf32>
    %453 = math.tanh %452 : vector<8x128xf32>
    %cst_165 = arith.constant 5.000000e-01 : f32
    %454 = vector.broadcast %cst_165 : f32 to vector<8x128xf32>
    %455 = arith.mulf %454, %453 : vector<8x128xf32>
    %cst_166 = arith.constant 5.000000e-01 : f32
    %456 = vector.broadcast %cst_166 : f32 to vector<8x128xf32>
    %457 = arith.addf %455, %456 : vector<8x128xf32>
    %458 = vector.extract_strided_slice %441 {offsets = [0, 256], sizes = [8, 128], strides = [1, 1]} : vector<8x512xf32> to vector<8x128xf32>
    %459 = math.tanh %458 : vector<8x128xf32>
    %460 = vector.extract_strided_slice %441 {offsets = [0, 384], sizes = [8, 128], strides = [1, 1]} : vector<8x512xf32> to vector<8x128xf32>
    %cst_167 = arith.constant 5.000000e-01 : f32
    %461 = vector.broadcast %cst_167 : f32 to vector<8x128xf32>
    %462 = arith.mulf %461, %460 : vector<8x128xf32>
    %463 = math.tanh %462 : vector<8x128xf32>
    %cst_168 = arith.constant 5.000000e-01 : f32
    %464 = vector.broadcast %cst_168 : f32 to vector<8x128xf32>
    %465 = arith.mulf %464, %463 : vector<8x128xf32>
    %cst_169 = arith.constant 5.000000e-01 : f32
    %466 = vector.broadcast %cst_169 : f32 to vector<8x128xf32>
    %467 = arith.addf %465, %466 : vector<8x128xf32>
    %468 = arith.mulf %457, %400 : vector<8x128xf32>
    %469 = arith.mulf %449, %459 : vector<8x128xf32>
    %470 = arith.addf %468, %469 : vector<8x128xf32>
    %471 = math.tanh %470 : vector<8x128xf32>
    %472 = arith.mulf %467, %471 : vector<8x128xf32>
    %cst_170 = arith.constant dense<0.000000e+00> : vector<8x512xf32>
    %473 = tpu.matmul %472, %12, %cst_170 {dimension_numbers = #tpu.dot_dimension_numbers<[1], [0], [0], [1], [0, 0, 1, 1], [], []>} : vector<8x128xf32>, vector<128x512xf32>, vector<8x512xf32> -> vector<8x512xf32>
    %cst_171 = arith.constant dense<0.000000e+00> : vector<8x512xf32>
    %474 = tpu.matmul %438, %13, %cst_171 {dimension_numbers = #tpu.dot_dimension_numbers<[1], [0], [0], [1], [0, 0, 1, 1], [], []>} : vector<8x128xf32>, vector<128x512xf32>, vector<8x512xf32> -> vector<8x512xf32>
    %475 = arith.addf %473, %474 : vector<8x512xf32>
    %476 = vector.broadcast %14 : vector<1x512xf32> to vector<8x512xf32>
    %477 = arith.addf %475, %476 : vector<8x512xf32>
    %478 = vector.extract_strided_slice %477 {offsets = [0, 0], sizes = [8, 128], strides = [1, 1]} : vector<8x512xf32> to vector<8x128xf32>
    %cst_172 = arith.constant 5.000000e-01 : f32
    %479 = vector.broadcast %cst_172 : f32 to vector<8x128xf32>
    %480 = arith.mulf %479, %478 : vector<8x128xf32>
    %481 = math.tanh %480 : vector<8x128xf32>
    %cst_173 = arith.constant 5.000000e-01 : f32
    %482 = vector.broadcast %cst_173 : f32 to vector<8x128xf32>
    %483 = arith.mulf %482, %481 : vector<8x128xf32>
    %cst_174 = arith.constant 5.000000e-01 : f32
    %484 = vector.broadcast %cst_174 : f32 to vector<8x128xf32>
    %485 = arith.addf %483, %484 : vector<8x128xf32>
    %486 = vector.extract_strided_slice %477 {offsets = [0, 128], sizes = [8, 128], strides = [1, 1]} : vector<8x512xf32> to vector<8x128xf32>
    %cst_175 = arith.constant 5.000000e-01 : f32
    %487 = vector.broadcast %cst_175 : f32 to vector<8x128xf32>
    %488 = arith.mulf %487, %486 : vector<8x128xf32>
    %489 = math.tanh %488 : vector<8x128xf32>
    %cst_176 = arith.constant 5.000000e-01 : f32
    %490 = vector.broadcast %cst_176 : f32 to vector<8x128xf32>
    %491 = arith.mulf %490, %489 : vector<8x128xf32>
    %cst_177 = arith.constant 5.000000e-01 : f32
    %492 = vector.broadcast %cst_177 : f32 to vector<8x128xf32>
    %493 = arith.addf %491, %492 : vector<8x128xf32>
    %494 = vector.extract_strided_slice %477 {offsets = [0, 256], sizes = [8, 128], strides = [1, 1]} : vector<8x512xf32> to vector<8x128xf32>
    %495 = math.tanh %494 : vector<8x128xf32>
    %496 = vector.extract_strided_slice %477 {offsets = [0, 384], sizes = [8, 128], strides = [1, 1]} : vector<8x512xf32> to vector<8x128xf32>
    %cst_178 = arith.constant 5.000000e-01 : f32
    %497 = vector.broadcast %cst_178 : f32 to vector<8x128xf32>
    %498 = arith.mulf %497, %496 : vector<8x128xf32>
    %499 = math.tanh %498 : vector<8x128xf32>
    %cst_179 = arith.constant 5.000000e-01 : f32
    %500 = vector.broadcast %cst_179 : f32 to vector<8x128xf32>
    %501 = arith.mulf %500, %499 : vector<8x128xf32>
    %cst_180 = arith.constant 5.000000e-01 : f32
    %502 = vector.broadcast %cst_180 : f32 to vector<8x128xf32>
    %503 = arith.addf %501, %502 : vector<8x128xf32>
    %504 = arith.mulf %493, %436 : vector<8x128xf32>
    %505 = arith.mulf %485, %495 : vector<8x128xf32>
    %506 = arith.addf %504, %505 : vector<8x128xf32>
    %507 = math.tanh %506 : vector<8x128xf32>
    %508 = arith.mulf %503, %507 : vector<8x128xf32>
    %c56 = arith.constant 56 : index
    %c0_181 = arith.constant 0 : index
    %509 = vector.load %arg22[%c56, %c0_181] : memref<128x512xf32, #tpu.memory_space<vmem>>, vector<8x512xf32>
    %cst_182 = arith.constant dense<0.000000e+00> : vector<8x512xf32>
    %510 = tpu.matmul %472, %11, %cst_182 {dimension_numbers = #tpu.dot_dimension_numbers<[1], [0], [0], [1], [0, 0, 1, 1], [], []>} : vector<8x128xf32>, vector<128x512xf32>, vector<8x512xf32> -> vector<8x512xf32>
    %511 = arith.addf %509, %510 : vector<8x512xf32>
    %512 = vector.extract_strided_slice %511 {offsets = [0, 0], sizes = [8, 128], strides = [1, 1]} : vector<8x512xf32> to vector<8x128xf32>
    %cst_183 = arith.constant 5.000000e-01 : f32
    %513 = vector.broadcast %cst_183 : f32 to vector<8x128xf32>
    %514 = arith.mulf %513, %512 : vector<8x128xf32>
    %515 = math.tanh %514 : vector<8x128xf32>
    %cst_184 = arith.constant 5.000000e-01 : f32
    %516 = vector.broadcast %cst_184 : f32 to vector<8x128xf32>
    %517 = arith.mulf %516, %515 : vector<8x128xf32>
    %cst_185 = arith.constant 5.000000e-01 : f32
    %518 = vector.broadcast %cst_185 : f32 to vector<8x128xf32>
    %519 = arith.addf %517, %518 : vector<8x128xf32>
    %520 = vector.extract_strided_slice %511 {offsets = [0, 128], sizes = [8, 128], strides = [1, 1]} : vector<8x512xf32> to vector<8x128xf32>
    %cst_186 = arith.constant 5.000000e-01 : f32
    %521 = vector.broadcast %cst_186 : f32 to vector<8x128xf32>
    %522 = arith.mulf %521, %520 : vector<8x128xf32>
    %523 = math.tanh %522 : vector<8x128xf32>
    %cst_187 = arith.constant 5.000000e-01 : f32
    %524 = vector.broadcast %cst_187 : f32 to vector<8x128xf32>
    %525 = arith.mulf %524, %523 : vector<8x128xf32>
    %cst_188 = arith.constant 5.000000e-01 : f32
    %526 = vector.broadcast %cst_188 : f32 to vector<8x128xf32>
    %527 = arith.addf %525, %526 : vector<8x128xf32>
    %528 = vector.extract_strided_slice %511 {offsets = [0, 256], sizes = [8, 128], strides = [1, 1]} : vector<8x512xf32> to vector<8x128xf32>
    %529 = math.tanh %528 : vector<8x128xf32>
    %530 = vector.extract_strided_slice %511 {offsets = [0, 384], sizes = [8, 128], strides = [1, 1]} : vector<8x512xf32> to vector<8x128xf32>
    %cst_189 = arith.constant 5.000000e-01 : f32
    %531 = vector.broadcast %cst_189 : f32 to vector<8x128xf32>
    %532 = arith.mulf %531, %530 : vector<8x128xf32>
    %533 = math.tanh %532 : vector<8x128xf32>
    %cst_190 = arith.constant 5.000000e-01 : f32
    %534 = vector.broadcast %cst_190 : f32 to vector<8x128xf32>
    %535 = arith.mulf %534, %533 : vector<8x128xf32>
    %cst_191 = arith.constant 5.000000e-01 : f32
    %536 = vector.broadcast %cst_191 : f32 to vector<8x128xf32>
    %537 = arith.addf %535, %536 : vector<8x128xf32>
    %538 = arith.mulf %527, %470 : vector<8x128xf32>
    %539 = arith.mulf %519, %529 : vector<8x128xf32>
    %540 = arith.addf %538, %539 : vector<8x128xf32>
    %541 = math.tanh %540 : vector<8x128xf32>
    %542 = arith.mulf %537, %541 : vector<8x128xf32>
    %cst_192 = arith.constant dense<0.000000e+00> : vector<8x512xf32>
    %543 = tpu.matmul %542, %12, %cst_192 {dimension_numbers = #tpu.dot_dimension_numbers<[1], [0], [0], [1], [0, 0, 1, 1], [], []>} : vector<8x128xf32>, vector<128x512xf32>, vector<8x512xf32> -> vector<8x512xf32>
    %cst_193 = arith.constant dense<0.000000e+00> : vector<8x512xf32>
    %544 = tpu.matmul %508, %13, %cst_193 {dimension_numbers = #tpu.dot_dimension_numbers<[1], [0], [0], [1], [0, 0, 1, 1], [], []>} : vector<8x128xf32>, vector<128x512xf32>, vector<8x512xf32> -> vector<8x512xf32>
    %545 = arith.addf %543, %544 : vector<8x512xf32>
    %546 = vector.broadcast %14 : vector<1x512xf32> to vector<8x512xf32>
    %547 = arith.addf %545, %546 : vector<8x512xf32>
    %548 = vector.extract_strided_slice %547 {offsets = [0, 0], sizes = [8, 128], strides = [1, 1]} : vector<8x512xf32> to vector<8x128xf32>
    %cst_194 = arith.constant 5.000000e-01 : f32
    %549 = vector.broadcast %cst_194 : f32 to vector<8x128xf32>
    %550 = arith.mulf %549, %548 : vector<8x128xf32>
    %551 = math.tanh %550 : vector<8x128xf32>
    %cst_195 = arith.constant 5.000000e-01 : f32
    %552 = vector.broadcast %cst_195 : f32 to vector<8x128xf32>
    %553 = arith.mulf %552, %551 : vector<8x128xf32>
    %cst_196 = arith.constant 5.000000e-01 : f32
    %554 = vector.broadcast %cst_196 : f32 to vector<8x128xf32>
    %555 = arith.addf %553, %554 : vector<8x128xf32>
    %556 = vector.extract_strided_slice %547 {offsets = [0, 128], sizes = [8, 128], strides = [1, 1]} : vector<8x512xf32> to vector<8x128xf32>
    %cst_197 = arith.constant 5.000000e-01 : f32
    %557 = vector.broadcast %cst_197 : f32 to vector<8x128xf32>
    %558 = arith.mulf %557, %556 : vector<8x128xf32>
    %559 = math.tanh %558 : vector<8x128xf32>
    %cst_198 = arith.constant 5.000000e-01 : f32
    %560 = vector.broadcast %cst_198 : f32 to vector<8x128xf32>
    %561 = arith.mulf %560, %559 : vector<8x128xf32>
    %cst_199 = arith.constant 5.000000e-01 : f32
    %562 = vector.broadcast %cst_199 : f32 to vector<8x128xf32>
    %563 = arith.addf %561, %562 : vector<8x128xf32>
    %564 = vector.extract_strided_slice %547 {offsets = [0, 256], sizes = [8, 128], strides = [1, 1]} : vector<8x512xf32> to vector<8x128xf32>
    %565 = math.tanh %564 : vector<8x128xf32>
    %566 = vector.extract_strided_slice %547 {offsets = [0, 384], sizes = [8, 128], strides = [1, 1]} : vector<8x512xf32> to vector<8x128xf32>
    %cst_200 = arith.constant 5.000000e-01 : f32
    %567 = vector.broadcast %cst_200 : f32 to vector<8x128xf32>
    %568 = arith.mulf %567, %566 : vector<8x128xf32>
    %569 = math.tanh %568 : vector<8x128xf32>
    %cst_201 = arith.constant 5.000000e-01 : f32
    %570 = vector.broadcast %cst_201 : f32 to vector<8x128xf32>
    %571 = arith.mulf %570, %569 : vector<8x128xf32>
    %cst_202 = arith.constant 5.000000e-01 : f32
    %572 = vector.broadcast %cst_202 : f32 to vector<8x128xf32>
    %573 = arith.addf %571, %572 : vector<8x128xf32>
    %574 = arith.mulf %563, %506 : vector<8x128xf32>
    %575 = arith.mulf %555, %565 : vector<8x128xf32>
    %576 = arith.addf %574, %575 : vector<8x128xf32>
    %577 = math.tanh %576 : vector<8x128xf32>
    %578 = arith.mulf %573, %577 : vector<8x128xf32>
    %c64 = arith.constant 64 : index
    %c0_203 = arith.constant 0 : index
    %579 = vector.load %arg22[%c64, %c0_203] : memref<128x512xf32, #tpu.memory_space<vmem>>, vector<8x512xf32>
    %cst_204 = arith.constant dense<0.000000e+00> : vector<8x512xf32>
    %580 = tpu.matmul %542, %11, %cst_204 {dimension_numbers = #tpu.dot_dimension_numbers<[1], [0], [0], [1], [0, 0, 1, 1], [], []>} : vector<8x128xf32>, vector<128x512xf32>, vector<8x512xf32> -> vector<8x512xf32>
    %581 = arith.addf %579, %580 : vector<8x512xf32>
    %582 = vector.extract_strided_slice %581 {offsets = [0, 0], sizes = [8, 128], strides = [1, 1]} : vector<8x512xf32> to vector<8x128xf32>
    %cst_205 = arith.constant 5.000000e-01 : f32
    %583 = vector.broadcast %cst_205 : f32 to vector<8x128xf32>
    %584 = arith.mulf %583, %582 : vector<8x128xf32>
    %585 = math.tanh %584 : vector<8x128xf32>
    %cst_206 = arith.constant 5.000000e-01 : f32
    %586 = vector.broadcast %cst_206 : f32 to vector<8x128xf32>
    %587 = arith.mulf %586, %585 : vector<8x128xf32>
    %cst_207 = arith.constant 5.000000e-01 : f32
    %588 = vector.broadcast %cst_207 : f32 to vector<8x128xf32>
    %589 = arith.addf %587, %588 : vector<8x128xf32>
    %590 = vector.extract_strided_slice %581 {offsets = [0, 128], sizes = [8, 128], strides = [1, 1]} : vector<8x512xf32> to vector<8x128xf32>
    %cst_208 = arith.constant 5.000000e-01 : f32
    %591 = vector.broadcast %cst_208 : f32 to vector<8x128xf32>
    %592 = arith.mulf %591, %590 : vector<8x128xf32>
    %593 = math.tanh %592 : vector<8x128xf32>
    %cst_209 = arith.constant 5.000000e-01 : f32
    %594 = vector.broadcast %cst_209 : f32 to vector<8x128xf32>
    %595 = arith.mulf %594, %593 : vector<8x128xf32>
    %cst_210 = arith.constant 5.000000e-01 : f32
    %596 = vector.broadcast %cst_210 : f32 to vector<8x128xf32>
    %597 = arith.addf %595, %596 : vector<8x128xf32>
    %598 = vector.extract_strided_slice %581 {offsets = [0, 256], sizes = [8, 128], strides = [1, 1]} : vector<8x512xf32> to vector<8x128xf32>
    %599 = math.tanh %598 : vector<8x128xf32>
    %600 = vector.extract_strided_slice %581 {offsets = [0, 384], sizes = [8, 128], strides = [1, 1]} : vector<8x512xf32> to vector<8x128xf32>
    %cst_211 = arith.constant 5.000000e-01 : f32
    %601 = vector.broadcast %cst_211 : f32 to vector<8x128xf32>
    %602 = arith.mulf %601, %600 : vector<8x128xf32>
    %603 = math.tanh %602 : vector<8x128xf32>
    %cst_212 = arith.constant 5.000000e-01 : f32
    %604 = vector.broadcast %cst_212 : f32 to vector<8x128xf32>
    %605 = arith.mulf %604, %603 : vector<8x128xf32>
    %cst_213 = arith.constant 5.000000e-01 : f32
    %606 = vector.broadcast %cst_213 : f32 to vector<8x128xf32>
    %607 = arith.addf %605, %606 : vector<8x128xf32>
    %608 = arith.mulf %597, %540 : vector<8x128xf32>
    %609 = arith.mulf %589, %599 : vector<8x128xf32>
    %610 = arith.addf %608, %609 : vector<8x128xf32>
    %611 = math.tanh %610 : vector<8x128xf32>
    %612 = arith.mulf %607, %611 : vector<8x128xf32>
    %cst_214 = arith.constant dense<0.000000e+00> : vector<8x512xf32>
    %613 = tpu.matmul %612, %12, %cst_214 {dimension_numbers = #tpu.dot_dimension_numbers<[1], [0], [0], [1], [0, 0, 1, 1], [], []>} : vector<8x128xf32>, vector<128x512xf32>, vector<8x512xf32> -> vector<8x512xf32>
    %cst_215 = arith.constant dense<0.000000e+00> : vector<8x512xf32>
    %614 = tpu.matmul %578, %13, %cst_215 {dimension_numbers = #tpu.dot_dimension_numbers<[1], [0], [0], [1], [0, 0, 1, 1], [], []>} : vector<8x128xf32>, vector<128x512xf32>, vector<8x512xf32> -> vector<8x512xf32>
    %615 = arith.addf %613, %614 : vector<8x512xf32>
    %616 = vector.broadcast %14 : vector<1x512xf32> to vector<8x512xf32>
    %617 = arith.addf %615, %616 : vector<8x512xf32>
    %618 = vector.extract_strided_slice %617 {offsets = [0, 0], sizes = [8, 128], strides = [1, 1]} : vector<8x512xf32> to vector<8x128xf32>
    %cst_216 = arith.constant 5.000000e-01 : f32
    %619 = vector.broadcast %cst_216 : f32 to vector<8x128xf32>
    %620 = arith.mulf %619, %618 : vector<8x128xf32>
    %621 = math.tanh %620 : vector<8x128xf32>
    %cst_217 = arith.constant 5.000000e-01 : f32
    %622 = vector.broadcast %cst_217 : f32 to vector<8x128xf32>
    %623 = arith.mulf %622, %621 : vector<8x128xf32>
    %cst_218 = arith.constant 5.000000e-01 : f32
    %624 = vector.broadcast %cst_218 : f32 to vector<8x128xf32>
    %625 = arith.addf %623, %624 : vector<8x128xf32>
    %626 = vector.extract_strided_slice %617 {offsets = [0, 128], sizes = [8, 128], strides = [1, 1]} : vector<8x512xf32> to vector<8x128xf32>
    %cst_219 = arith.constant 5.000000e-01 : f32
    %627 = vector.broadcast %cst_219 : f32 to vector<8x128xf32>
    %628 = arith.mulf %627, %626 : vector<8x128xf32>
    %629 = math.tanh %628 : vector<8x128xf32>
    %cst_220 = arith.constant 5.000000e-01 : f32
    %630 = vector.broadcast %cst_220 : f32 to vector<8x128xf32>
    %631 = arith.mulf %630, %629 : vector<8x128xf32>
    %cst_221 = arith.constant 5.000000e-01 : f32
    %632 = vector.broadcast %cst_221 : f32 to vector<8x128xf32>
    %633 = arith.addf %631, %632 : vector<8x128xf32>
    %634 = vector.extract_strided_slice %617 {offsets = [0, 256], sizes = [8, 128], strides = [1, 1]} : vector<8x512xf32> to vector<8x128xf32>
    %635 = math.tanh %634 : vector<8x128xf32>
    %636 = vector.extract_strided_slice %617 {offsets = [0, 384], sizes = [8, 128], strides = [1, 1]} : vector<8x512xf32> to vector<8x128xf32>
    %cst_222 = arith.constant 5.000000e-01 : f32
    %637 = vector.broadcast %cst_222 : f32 to vector<8x128xf32>
    %638 = arith.mulf %637, %636 : vector<8x128xf32>
    %639 = math.tanh %638 : vector<8x128xf32>
    %cst_223 = arith.constant 5.000000e-01 : f32
    %640 = vector.broadcast %cst_223 : f32 to vector<8x128xf32>
    %641 = arith.mulf %640, %639 : vector<8x128xf32>
    %cst_224 = arith.constant 5.000000e-01 : f32
    %642 = vector.broadcast %cst_224 : f32 to vector<8x128xf32>
    %643 = arith.addf %641, %642 : vector<8x128xf32>
    %644 = arith.mulf %633, %576 : vector<8x128xf32>
    %645 = arith.mulf %625, %635 : vector<8x128xf32>
    %646 = arith.addf %644, %645 : vector<8x128xf32>
    %647 = math.tanh %646 : vector<8x128xf32>
    %648 = arith.mulf %643, %647 : vector<8x128xf32>
    %c72 = arith.constant 72 : index
    %c0_225 = arith.constant 0 : index
    %649 = vector.load %arg22[%c72, %c0_225] : memref<128x512xf32, #tpu.memory_space<vmem>>, vector<8x512xf32>
    %cst_226 = arith.constant dense<0.000000e+00> : vector<8x512xf32>
    %650 = tpu.matmul %612, %11, %cst_226 {dimension_numbers = #tpu.dot_dimension_numbers<[1], [0], [0], [1], [0, 0, 1, 1], [], []>} : vector<8x128xf32>, vector<128x512xf32>, vector<8x512xf32> -> vector<8x512xf32>
    %651 = arith.addf %649, %650 : vector<8x512xf32>
    %652 = vector.extract_strided_slice %651 {offsets = [0, 0], sizes = [8, 128], strides = [1, 1]} : vector<8x512xf32> to vector<8x128xf32>
    %cst_227 = arith.constant 5.000000e-01 : f32
    %653 = vector.broadcast %cst_227 : f32 to vector<8x128xf32>
    %654 = arith.mulf %653, %652 : vector<8x128xf32>
    %655 = math.tanh %654 : vector<8x128xf32>
    %cst_228 = arith.constant 5.000000e-01 : f32
    %656 = vector.broadcast %cst_228 : f32 to vector<8x128xf32>
    %657 = arith.mulf %656, %655 : vector<8x128xf32>
    %cst_229 = arith.constant 5.000000e-01 : f32
    %658 = vector.broadcast %cst_229 : f32 to vector<8x128xf32>
    %659 = arith.addf %657, %658 : vector<8x128xf32>
    %660 = vector.extract_strided_slice %651 {offsets = [0, 128], sizes = [8, 128], strides = [1, 1]} : vector<8x512xf32> to vector<8x128xf32>
    %cst_230 = arith.constant 5.000000e-01 : f32
    %661 = vector.broadcast %cst_230 : f32 to vector<8x128xf32>
    %662 = arith.mulf %661, %660 : vector<8x128xf32>
    %663 = math.tanh %662 : vector<8x128xf32>
    %cst_231 = arith.constant 5.000000e-01 : f32
    %664 = vector.broadcast %cst_231 : f32 to vector<8x128xf32>
    %665 = arith.mulf %664, %663 : vector<8x128xf32>
    %cst_232 = arith.constant 5.000000e-01 : f32
    %666 = vector.broadcast %cst_232 : f32 to vector<8x128xf32>
    %667 = arith.addf %665, %666 : vector<8x128xf32>
    %668 = vector.extract_strided_slice %651 {offsets = [0, 256], sizes = [8, 128], strides = [1, 1]} : vector<8x512xf32> to vector<8x128xf32>
    %669 = math.tanh %668 : vector<8x128xf32>
    %670 = vector.extract_strided_slice %651 {offsets = [0, 384], sizes = [8, 128], strides = [1, 1]} : vector<8x512xf32> to vector<8x128xf32>
    %cst_233 = arith.constant 5.000000e-01 : f32
    %671 = vector.broadcast %cst_233 : f32 to vector<8x128xf32>
    %672 = arith.mulf %671, %670 : vector<8x128xf32>
    %673 = math.tanh %672 : vector<8x128xf32>
    %cst_234 = arith.constant 5.000000e-01 : f32
    %674 = vector.broadcast %cst_234 : f32 to vector<8x128xf32>
    %675 = arith.mulf %674, %673 : vector<8x128xf32>
    %cst_235 = arith.constant 5.000000e-01 : f32
    %676 = vector.broadcast %cst_235 : f32 to vector<8x128xf32>
    %677 = arith.addf %675, %676 : vector<8x128xf32>
    %678 = arith.mulf %667, %610 : vector<8x128xf32>
    %679 = arith.mulf %659, %669 : vector<8x128xf32>
    %680 = arith.addf %678, %679 : vector<8x128xf32>
    %681 = math.tanh %680 : vector<8x128xf32>
    %682 = arith.mulf %677, %681 : vector<8x128xf32>
    %cst_236 = arith.constant dense<0.000000e+00> : vector<8x512xf32>
    %683 = tpu.matmul %682, %12, %cst_236 {dimension_numbers = #tpu.dot_dimension_numbers<[1], [0], [0], [1], [0, 0, 1, 1], [], []>} : vector<8x128xf32>, vector<128x512xf32>, vector<8x512xf32> -> vector<8x512xf32>
    %cst_237 = arith.constant dense<0.000000e+00> : vector<8x512xf32>
    %684 = tpu.matmul %648, %13, %cst_237 {dimension_numbers = #tpu.dot_dimension_numbers<[1], [0], [0], [1], [0, 0, 1, 1], [], []>} : vector<8x128xf32>, vector<128x512xf32>, vector<8x512xf32> -> vector<8x512xf32>
    %685 = arith.addf %683, %684 : vector<8x512xf32>
    %686 = vector.broadcast %14 : vector<1x512xf32> to vector<8x512xf32>
    %687 = arith.addf %685, %686 : vector<8x512xf32>
    %688 = vector.extract_strided_slice %687 {offsets = [0, 0], sizes = [8, 128], strides = [1, 1]} : vector<8x512xf32> to vector<8x128xf32>
    %cst_238 = arith.constant 5.000000e-01 : f32
    %689 = vector.broadcast %cst_238 : f32 to vector<8x128xf32>
    %690 = arith.mulf %689, %688 : vector<8x128xf32>
    %691 = math.tanh %690 : vector<8x128xf32>
    %cst_239 = arith.constant 5.000000e-01 : f32
    %692 = vector.broadcast %cst_239 : f32 to vector<8x128xf32>
    %693 = arith.mulf %692, %691 : vector<8x128xf32>
    %cst_240 = arith.constant 5.000000e-01 : f32
    %694 = vector.broadcast %cst_240 : f32 to vector<8x128xf32>
    %695 = arith.addf %693, %694 : vector<8x128xf32>
    %696 = vector.extract_strided_slice %687 {offsets = [0, 128], sizes = [8, 128], strides = [1, 1]} : vector<8x512xf32> to vector<8x128xf32>
    %cst_241 = arith.constant 5.000000e-01 : f32
    %697 = vector.broadcast %cst_241 : f32 to vector<8x128xf32>
    %698 = arith.mulf %697, %696 : vector<8x128xf32>
    %699 = math.tanh %698 : vector<8x128xf32>
    %cst_242 = arith.constant 5.000000e-01 : f32
    %700 = vector.broadcast %cst_242 : f32 to vector<8x128xf32>
    %701 = arith.mulf %700, %699 : vector<8x128xf32>
    %cst_243 = arith.constant 5.000000e-01 : f32
    %702 = vector.broadcast %cst_243 : f32 to vector<8x128xf32>
    %703 = arith.addf %701, %702 : vector<8x128xf32>
    %704 = vector.extract_strided_slice %687 {offsets = [0, 256], sizes = [8, 128], strides = [1, 1]} : vector<8x512xf32> to vector<8x128xf32>
    %705 = math.tanh %704 : vector<8x128xf32>
    %706 = vector.extract_strided_slice %687 {offsets = [0, 384], sizes = [8, 128], strides = [1, 1]} : vector<8x512xf32> to vector<8x128xf32>
    %cst_244 = arith.constant 5.000000e-01 : f32
    %707 = vector.broadcast %cst_244 : f32 to vector<8x128xf32>
    %708 = arith.mulf %707, %706 : vector<8x128xf32>
    %709 = math.tanh %708 : vector<8x128xf32>
    %cst_245 = arith.constant 5.000000e-01 : f32
    %710 = vector.broadcast %cst_245 : f32 to vector<8x128xf32>
    %711 = arith.mulf %710, %709 : vector<8x128xf32>
    %cst_246 = arith.constant 5.000000e-01 : f32
    %712 = vector.broadcast %cst_246 : f32 to vector<8x128xf32>
    %713 = arith.addf %711, %712 : vector<8x128xf32>
    %714 = arith.mulf %703, %646 : vector<8x128xf32>
    %715 = arith.mulf %695, %705 : vector<8x128xf32>
    %716 = arith.addf %714, %715 : vector<8x128xf32>
    %717 = math.tanh %716 : vector<8x128xf32>
    %718 = arith.mulf %713, %717 : vector<8x128xf32>
    %c80 = arith.constant 80 : index
    %c0_247 = arith.constant 0 : index
    %719 = vector.load %arg22[%c80, %c0_247] : memref<128x512xf32, #tpu.memory_space<vmem>>, vector<8x512xf32>
    %cst_248 = arith.constant dense<0.000000e+00> : vector<8x512xf32>
    %720 = tpu.matmul %682, %11, %cst_248 {dimension_numbers = #tpu.dot_dimension_numbers<[1], [0], [0], [1], [0, 0, 1, 1], [], []>} : vector<8x128xf32>, vector<128x512xf32>, vector<8x512xf32> -> vector<8x512xf32>
    %721 = arith.addf %719, %720 : vector<8x512xf32>
    %722 = vector.extract_strided_slice %721 {offsets = [0, 0], sizes = [8, 128], strides = [1, 1]} : vector<8x512xf32> to vector<8x128xf32>
    %cst_249 = arith.constant 5.000000e-01 : f32
    %723 = vector.broadcast %cst_249 : f32 to vector<8x128xf32>
    %724 = arith.mulf %723, %722 : vector<8x128xf32>
    %725 = math.tanh %724 : vector<8x128xf32>
    %cst_250 = arith.constant 5.000000e-01 : f32
    %726 = vector.broadcast %cst_250 : f32 to vector<8x128xf32>
    %727 = arith.mulf %726, %725 : vector<8x128xf32>
    %cst_251 = arith.constant 5.000000e-01 : f32
    %728 = vector.broadcast %cst_251 : f32 to vector<8x128xf32>
    %729 = arith.addf %727, %728 : vector<8x128xf32>
    %730 = vector.extract_strided_slice %721 {offsets = [0, 128], sizes = [8, 128], strides = [1, 1]} : vector<8x512xf32> to vector<8x128xf32>
    %cst_252 = arith.constant 5.000000e-01 : f32
    %731 = vector.broadcast %cst_252 : f32 to vector<8x128xf32>
    %732 = arith.mulf %731, %730 : vector<8x128xf32>
    %733 = math.tanh %732 : vector<8x128xf32>
    %cst_253 = arith.constant 5.000000e-01 : f32
    %734 = vector.broadcast %cst_253 : f32 to vector<8x128xf32>
    %735 = arith.mulf %734, %733 : vector<8x128xf32>
    %cst_254 = arith.constant 5.000000e-01 : f32
    %736 = vector.broadcast %cst_254 : f32 to vector<8x128xf32>
    %737 = arith.addf %735, %736 : vector<8x128xf32>
    %738 = vector.extract_strided_slice %721 {offsets = [0, 256], sizes = [8, 128], strides = [1, 1]} : vector<8x512xf32> to vector<8x128xf32>
    %739 = math.tanh %738 : vector<8x128xf32>
    %740 = vector.extract_strided_slice %721 {offsets = [0, 384], sizes = [8, 128], strides = [1, 1]} : vector<8x512xf32> to vector<8x128xf32>
    %cst_255 = arith.constant 5.000000e-01 : f32
    %741 = vector.broadcast %cst_255 : f32 to vector<8x128xf32>
    %742 = arith.mulf %741, %740 : vector<8x128xf32>
    %743 = math.tanh %742 : vector<8x128xf32>
    %cst_256 = arith.constant 5.000000e-01 : f32
    %744 = vector.broadcast %cst_256 : f32 to vector<8x128xf32>
    %745 = arith.mulf %744, %743 : vector<8x128xf32>
    %cst_257 = arith.constant 5.000000e-01 : f32
    %746 = vector.broadcast %cst_257 : f32 to vector<8x128xf32>
    %747 = arith.addf %745, %746 : vector<8x128xf32>
    %748 = arith.mulf %737, %680 : vector<8x128xf32>
    %749 = arith.mulf %729, %739 : vector<8x128xf32>
    %750 = arith.addf %748, %749 : vector<8x128xf32>
    %751 = math.tanh %750 : vector<8x128xf32>
    %752 = arith.mulf %747, %751 : vector<8x128xf32>
    %cst_258 = arith.constant dense<0.000000e+00> : vector<8x512xf32>
    %753 = tpu.matmul %752, %12, %cst_258 {dimension_numbers = #tpu.dot_dimension_numbers<[1], [0], [0], [1], [0, 0, 1, 1], [], []>} : vector<8x128xf32>, vector<128x512xf32>, vector<8x512xf32> -> vector<8x512xf32>
    %cst_259 = arith.constant dense<0.000000e+00> : vector<8x512xf32>
    %754 = tpu.matmul %718, %13, %cst_259 {dimension_numbers = #tpu.dot_dimension_numbers<[1], [0], [0], [1], [0, 0, 1, 1], [], []>} : vector<8x128xf32>, vector<128x512xf32>, vector<8x512xf32> -> vector<8x512xf32>
    %755 = arith.addf %753, %754 : vector<8x512xf32>
    %756 = vector.broadcast %14 : vector<1x512xf32> to vector<8x512xf32>
    %757 = arith.addf %755, %756 : vector<8x512xf32>
    %758 = vector.extract_strided_slice %757 {offsets = [0, 0], sizes = [8, 128], strides = [1, 1]} : vector<8x512xf32> to vector<8x128xf32>
    %cst_260 = arith.constant 5.000000e-01 : f32
    %759 = vector.broadcast %cst_260 : f32 to vector<8x128xf32>
    %760 = arith.mulf %759, %758 : vector<8x128xf32>
    %761 = math.tanh %760 : vector<8x128xf32>
    %cst_261 = arith.constant 5.000000e-01 : f32
    %762 = vector.broadcast %cst_261 : f32 to vector<8x128xf32>
    %763 = arith.mulf %762, %761 : vector<8x128xf32>
    %cst_262 = arith.constant 5.000000e-01 : f32
    %764 = vector.broadcast %cst_262 : f32 to vector<8x128xf32>
    %765 = arith.addf %763, %764 : vector<8x128xf32>
    %766 = vector.extract_strided_slice %757 {offsets = [0, 128], sizes = [8, 128], strides = [1, 1]} : vector<8x512xf32> to vector<8x128xf32>
    %cst_263 = arith.constant 5.000000e-01 : f32
    %767 = vector.broadcast %cst_263 : f32 to vector<8x128xf32>
    %768 = arith.mulf %767, %766 : vector<8x128xf32>
    %769 = math.tanh %768 : vector<8x128xf32>
    %cst_264 = arith.constant 5.000000e-01 : f32
    %770 = vector.broadcast %cst_264 : f32 to vector<8x128xf32>
    %771 = arith.mulf %770, %769 : vector<8x128xf32>
    %cst_265 = arith.constant 5.000000e-01 : f32
    %772 = vector.broadcast %cst_265 : f32 to vector<8x128xf32>
    %773 = arith.addf %771, %772 : vector<8x128xf32>
    %774 = vector.extract_strided_slice %757 {offsets = [0, 256], sizes = [8, 128], strides = [1, 1]} : vector<8x512xf32> to vector<8x128xf32>
    %775 = math.tanh %774 : vector<8x128xf32>
    %776 = vector.extract_strided_slice %757 {offsets = [0, 384], sizes = [8, 128], strides = [1, 1]} : vector<8x512xf32> to vector<8x128xf32>
    %cst_266 = arith.constant 5.000000e-01 : f32
    %777 = vector.broadcast %cst_266 : f32 to vector<8x128xf32>
    %778 = arith.mulf %777, %776 : vector<8x128xf32>
    %779 = math.tanh %778 : vector<8x128xf32>
    %cst_267 = arith.constant 5.000000e-01 : f32
    %780 = vector.broadcast %cst_267 : f32 to vector<8x128xf32>
    %781 = arith.mulf %780, %779 : vector<8x128xf32>
    %cst_268 = arith.constant 5.000000e-01 : f32
    %782 = vector.broadcast %cst_268 : f32 to vector<8x128xf32>
    %783 = arith.addf %781, %782 : vector<8x128xf32>
    %784 = arith.mulf %773, %716 : vector<8x128xf32>
    %785 = arith.mulf %765, %775 : vector<8x128xf32>
    %786 = arith.addf %784, %785 : vector<8x128xf32>
    %787 = math.tanh %786 : vector<8x128xf32>
    %788 = arith.mulf %783, %787 : vector<8x128xf32>
    %c88 = arith.constant 88 : index
    %c0_269 = arith.constant 0 : index
    %789 = vector.load %arg22[%c88, %c0_269] : memref<128x512xf32, #tpu.memory_space<vmem>>, vector<8x512xf32>
    %cst_270 = arith.constant dense<0.000000e+00> : vector<8x512xf32>
    %790 = tpu.matmul %752, %11, %cst_270 {dimension_numbers = #tpu.dot_dimension_numbers<[1], [0], [0], [1], [0, 0, 1, 1], [], []>} : vector<8x128xf32>, vector<128x512xf32>, vector<8x512xf32> -> vector<8x512xf32>
    %791 = arith.addf %789, %790 : vector<8x512xf32>
    %792 = vector.extract_strided_slice %791 {offsets = [0, 0], sizes = [8, 128], strides = [1, 1]} : vector<8x512xf32> to vector<8x128xf32>
    %cst_271 = arith.constant 5.000000e-01 : f32
    %793 = vector.broadcast %cst_271 : f32 to vector<8x128xf32>
    %794 = arith.mulf %793, %792 : vector<8x128xf32>
    %795 = math.tanh %794 : vector<8x128xf32>
    %cst_272 = arith.constant 5.000000e-01 : f32
    %796 = vector.broadcast %cst_272 : f32 to vector<8x128xf32>
    %797 = arith.mulf %796, %795 : vector<8x128xf32>
    %cst_273 = arith.constant 5.000000e-01 : f32
    %798 = vector.broadcast %cst_273 : f32 to vector<8x128xf32>
    %799 = arith.addf %797, %798 : vector<8x128xf32>
    %800 = vector.extract_strided_slice %791 {offsets = [0, 128], sizes = [8, 128], strides = [1, 1]} : vector<8x512xf32> to vector<8x128xf32>
    %cst_274 = arith.constant 5.000000e-01 : f32
    %801 = vector.broadcast %cst_274 : f32 to vector<8x128xf32>
    %802 = arith.mulf %801, %800 : vector<8x128xf32>
    %803 = math.tanh %802 : vector<8x128xf32>
    %cst_275 = arith.constant 5.000000e-01 : f32
    %804 = vector.broadcast %cst_275 : f32 to vector<8x128xf32>
    %805 = arith.mulf %804, %803 : vector<8x128xf32>
    %cst_276 = arith.constant 5.000000e-01 : f32
    %806 = vector.broadcast %cst_276 : f32 to vector<8x128xf32>
    %807 = arith.addf %805, %806 : vector<8x128xf32>
    %808 = vector.extract_strided_slice %791 {offsets = [0, 256], sizes = [8, 128], strides = [1, 1]} : vector<8x512xf32> to vector<8x128xf32>
    %809 = math.tanh %808 : vector<8x128xf32>
    %810 = vector.extract_strided_slice %791 {offsets = [0, 384], sizes = [8, 128], strides = [1, 1]} : vector<8x512xf32> to vector<8x128xf32>
    %cst_277 = arith.constant 5.000000e-01 : f32
    %811 = vector.broadcast %cst_277 : f32 to vector<8x128xf32>
    %812 = arith.mulf %811, %810 : vector<8x128xf32>
    %813 = math.tanh %812 : vector<8x128xf32>
    %cst_278 = arith.constant 5.000000e-01 : f32
    %814 = vector.broadcast %cst_278 : f32 to vector<8x128xf32>
    %815 = arith.mulf %814, %813 : vector<8x128xf32>
    %cst_279 = arith.constant 5.000000e-01 : f32
    %816 = vector.broadcast %cst_279 : f32 to vector<8x128xf32>
    %817 = arith.addf %815, %816 : vector<8x128xf32>
    %818 = arith.mulf %807, %750 : vector<8x128xf32>
    %819 = arith.mulf %799, %809 : vector<8x128xf32>
    %820 = arith.addf %818, %819 : vector<8x128xf32>
    %821 = math.tanh %820 : vector<8x128xf32>
    %822 = arith.mulf %817, %821 : vector<8x128xf32>
    %cst_280 = arith.constant dense<0.000000e+00> : vector<8x512xf32>
    %823 = tpu.matmul %822, %12, %cst_280 {dimension_numbers = #tpu.dot_dimension_numbers<[1], [0], [0], [1], [0, 0, 1, 1], [], []>} : vector<8x128xf32>, vector<128x512xf32>, vector<8x512xf32> -> vector<8x512xf32>
    %cst_281 = arith.constant dense<0.000000e+00> : vector<8x512xf32>
    %824 = tpu.matmul %788, %13, %cst_281 {dimension_numbers = #tpu.dot_dimension_numbers<[1], [0], [0], [1], [0, 0, 1, 1], [], []>} : vector<8x128xf32>, vector<128x512xf32>, vector<8x512xf32> -> vector<8x512xf32>
    %825 = arith.addf %823, %824 : vector<8x512xf32>
    %826 = vector.broadcast %14 : vector<1x512xf32> to vector<8x512xf32>
    %827 = arith.addf %825, %826 : vector<8x512xf32>
    %828 = vector.extract_strided_slice %827 {offsets = [0, 0], sizes = [8, 128], strides = [1, 1]} : vector<8x512xf32> to vector<8x128xf32>
    %cst_282 = arith.constant 5.000000e-01 : f32
    %829 = vector.broadcast %cst_282 : f32 to vector<8x128xf32>
    %830 = arith.mulf %829, %828 : vector<8x128xf32>
    %831 = math.tanh %830 : vector<8x128xf32>
    %cst_283 = arith.constant 5.000000e-01 : f32
    %832 = vector.broadcast %cst_283 : f32 to vector<8x128xf32>
    %833 = arith.mulf %832, %831 : vector<8x128xf32>
    %cst_284 = arith.constant 5.000000e-01 : f32
    %834 = vector.broadcast %cst_284 : f32 to vector<8x128xf32>
    %835 = arith.addf %833, %834 : vector<8x128xf32>
    %836 = vector.extract_strided_slice %827 {offsets = [0, 128], sizes = [8, 128], strides = [1, 1]} : vector<8x512xf32> to vector<8x128xf32>
    %cst_285 = arith.constant 5.000000e-01 : f32
    %837 = vector.broadcast %cst_285 : f32 to vector<8x128xf32>
    %838 = arith.mulf %837, %836 : vector<8x128xf32>
    %839 = math.tanh %838 : vector<8x128xf32>
    %cst_286 = arith.constant 5.000000e-01 : f32
    %840 = vector.broadcast %cst_286 : f32 to vector<8x128xf32>
    %841 = arith.mulf %840, %839 : vector<8x128xf32>
    %cst_287 = arith.constant 5.000000e-01 : f32
    %842 = vector.broadcast %cst_287 : f32 to vector<8x128xf32>
    %843 = arith.addf %841, %842 : vector<8x128xf32>
    %844 = vector.extract_strided_slice %827 {offsets = [0, 256], sizes = [8, 128], strides = [1, 1]} : vector<8x512xf32> to vector<8x128xf32>
    %845 = math.tanh %844 : vector<8x128xf32>
    %846 = vector.extract_strided_slice %827 {offsets = [0, 384], sizes = [8, 128], strides = [1, 1]} : vector<8x512xf32> to vector<8x128xf32>
    %cst_288 = arith.constant 5.000000e-01 : f32
    %847 = vector.broadcast %cst_288 : f32 to vector<8x128xf32>
    %848 = arith.mulf %847, %846 : vector<8x128xf32>
    %849 = math.tanh %848 : vector<8x128xf32>
    %cst_289 = arith.constant 5.000000e-01 : f32
    %850 = vector.broadcast %cst_289 : f32 to vector<8x128xf32>
    %851 = arith.mulf %850, %849 : vector<8x128xf32>
    %cst_290 = arith.constant 5.000000e-01 : f32
    %852 = vector.broadcast %cst_290 : f32 to vector<8x128xf32>
    %853 = arith.addf %851, %852 : vector<8x128xf32>
    %854 = arith.mulf %843, %786 : vector<8x128xf32>
    %855 = arith.mulf %835, %845 : vector<8x128xf32>
    %856 = arith.addf %854, %855 : vector<8x128xf32>
    %857 = math.tanh %856 : vector<8x128xf32>
    %858 = arith.mulf %853, %857 : vector<8x128xf32>
    %c96 = arith.constant 96 : index
    %c0_291 = arith.constant 0 : index
    %859 = vector.load %arg22[%c96, %c0_291] : memref<128x512xf32, #tpu.memory_space<vmem>>, vector<8x512xf32>
    %cst_292 = arith.constant dense<0.000000e+00> : vector<8x512xf32>
    %860 = tpu.matmul %822, %11, %cst_292 {dimension_numbers = #tpu.dot_dimension_numbers<[1], [0], [0], [1], [0, 0, 1, 1], [], []>} : vector<8x128xf32>, vector<128x512xf32>, vector<8x512xf32> -> vector<8x512xf32>
    %861 = arith.addf %859, %860 : vector<8x512xf32>
    %862 = vector.extract_strided_slice %861 {offsets = [0, 0], sizes = [8, 128], strides = [1, 1]} : vector<8x512xf32> to vector<8x128xf32>
    %cst_293 = arith.constant 5.000000e-01 : f32
    %863 = vector.broadcast %cst_293 : f32 to vector<8x128xf32>
    %864 = arith.mulf %863, %862 : vector<8x128xf32>
    %865 = math.tanh %864 : vector<8x128xf32>
    %cst_294 = arith.constant 5.000000e-01 : f32
    %866 = vector.broadcast %cst_294 : f32 to vector<8x128xf32>
    %867 = arith.mulf %866, %865 : vector<8x128xf32>
    %cst_295 = arith.constant 5.000000e-01 : f32
    %868 = vector.broadcast %cst_295 : f32 to vector<8x128xf32>
    %869 = arith.addf %867, %868 : vector<8x128xf32>
    %870 = vector.extract_strided_slice %861 {offsets = [0, 128], sizes = [8, 128], strides = [1, 1]} : vector<8x512xf32> to vector<8x128xf32>
    %cst_296 = arith.constant 5.000000e-01 : f32
    %871 = vector.broadcast %cst_296 : f32 to vector<8x128xf32>
    %872 = arith.mulf %871, %870 : vector<8x128xf32>
    %873 = math.tanh %872 : vector<8x128xf32>
    %cst_297 = arith.constant 5.000000e-01 : f32
    %874 = vector.broadcast %cst_297 : f32 to vector<8x128xf32>
    %875 = arith.mulf %874, %873 : vector<8x128xf32>
    %cst_298 = arith.constant 5.000000e-01 : f32
    %876 = vector.broadcast %cst_298 : f32 to vector<8x128xf32>
    %877 = arith.addf %875, %876 : vector<8x128xf32>
    %878 = vector.extract_strided_slice %861 {offsets = [0, 256], sizes = [8, 128], strides = [1, 1]} : vector<8x512xf32> to vector<8x128xf32>
    %879 = math.tanh %878 : vector<8x128xf32>
    %880 = vector.extract_strided_slice %861 {offsets = [0, 384], sizes = [8, 128], strides = [1, 1]} : vector<8x512xf32> to vector<8x128xf32>
    %cst_299 = arith.constant 5.000000e-01 : f32
    %881 = vector.broadcast %cst_299 : f32 to vector<8x128xf32>
    %882 = arith.mulf %881, %880 : vector<8x128xf32>
    %883 = math.tanh %882 : vector<8x128xf32>
    %cst_300 = arith.constant 5.000000e-01 : f32
    %884 = vector.broadcast %cst_300 : f32 to vector<8x128xf32>
    %885 = arith.mulf %884, %883 : vector<8x128xf32>
    %cst_301 = arith.constant 5.000000e-01 : f32
    %886 = vector.broadcast %cst_301 : f32 to vector<8x128xf32>
    %887 = arith.addf %885, %886 : vector<8x128xf32>
    %888 = arith.mulf %877, %820 : vector<8x128xf32>
    %889 = arith.mulf %869, %879 : vector<8x128xf32>
    %890 = arith.addf %888, %889 : vector<8x128xf32>
    %891 = math.tanh %890 : vector<8x128xf32>
    %892 = arith.mulf %887, %891 : vector<8x128xf32>
    %cst_302 = arith.constant dense<0.000000e+00> : vector<8x512xf32>
    %893 = tpu.matmul %892, %12, %cst_302 {dimension_numbers = #tpu.dot_dimension_numbers<[1], [0], [0], [1], [0, 0, 1, 1], [], []>} : vector<8x128xf32>, vector<128x512xf32>, vector<8x512xf32> -> vector<8x512xf32>
    %cst_303 = arith.constant dense<0.000000e+00> : vector<8x512xf32>
    %894 = tpu.matmul %858, %13, %cst_303 {dimension_numbers = #tpu.dot_dimension_numbers<[1], [0], [0], [1], [0, 0, 1, 1], [], []>} : vector<8x128xf32>, vector<128x512xf32>, vector<8x512xf32> -> vector<8x512xf32>
    %895 = arith.addf %893, %894 : vector<8x512xf32>
    %896 = vector.broadcast %14 : vector<1x512xf32> to vector<8x512xf32>
    %897 = arith.addf %895, %896 : vector<8x512xf32>
    %898 = vector.extract_strided_slice %897 {offsets = [0, 0], sizes = [8, 128], strides = [1, 1]} : vector<8x512xf32> to vector<8x128xf32>
    %cst_304 = arith.constant 5.000000e-01 : f32
    %899 = vector.broadcast %cst_304 : f32 to vector<8x128xf32>
    %900 = arith.mulf %899, %898 : vector<8x128xf32>
    %901 = math.tanh %900 : vector<8x128xf32>
    %cst_305 = arith.constant 5.000000e-01 : f32
    %902 = vector.broadcast %cst_305 : f32 to vector<8x128xf32>
    %903 = arith.mulf %902, %901 : vector<8x128xf32>
    %cst_306 = arith.constant 5.000000e-01 : f32
    %904 = vector.broadcast %cst_306 : f32 to vector<8x128xf32>
    %905 = arith.addf %903, %904 : vector<8x128xf32>
    %906 = vector.extract_strided_slice %897 {offsets = [0, 128], sizes = [8, 128], strides = [1, 1]} : vector<8x512xf32> to vector<8x128xf32>
    %cst_307 = arith.constant 5.000000e-01 : f32
    %907 = vector.broadcast %cst_307 : f32 to vector<8x128xf32>
    %908 = arith.mulf %907, %906 : vector<8x128xf32>
    %909 = math.tanh %908 : vector<8x128xf32>
    %cst_308 = arith.constant 5.000000e-01 : f32
    %910 = vector.broadcast %cst_308 : f32 to vector<8x128xf32>
    %911 = arith.mulf %910, %909 : vector<8x128xf32>
    %cst_309 = arith.constant 5.000000e-01 : f32
    %912 = vector.broadcast %cst_309 : f32 to vector<8x128xf32>
    %913 = arith.addf %911, %912 : vector<8x128xf32>
    %914 = vector.extract_strided_slice %897 {offsets = [0, 256], sizes = [8, 128], strides = [1, 1]} : vector<8x512xf32> to vector<8x128xf32>
    %915 = math.tanh %914 : vector<8x128xf32>
    %916 = vector.extract_strided_slice %897 {offsets = [0, 384], sizes = [8, 128], strides = [1, 1]} : vector<8x512xf32> to vector<8x128xf32>
    %cst_310 = arith.constant 5.000000e-01 : f32
    %917 = vector.broadcast %cst_310 : f32 to vector<8x128xf32>
    %918 = arith.mulf %917, %916 : vector<8x128xf32>
    %919 = math.tanh %918 : vector<8x128xf32>
    %cst_311 = arith.constant 5.000000e-01 : f32
    %920 = vector.broadcast %cst_311 : f32 to vector<8x128xf32>
    %921 = arith.mulf %920, %919 : vector<8x128xf32>
    %cst_312 = arith.constant 5.000000e-01 : f32
    %922 = vector.broadcast %cst_312 : f32 to vector<8x128xf32>
    %923 = arith.addf %921, %922 : vector<8x128xf32>
    %924 = arith.mulf %913, %856 : vector<8x128xf32>
    %925 = arith.mulf %905, %915 : vector<8x128xf32>
    %926 = arith.addf %924, %925 : vector<8x128xf32>
    %927 = math.tanh %926 : vector<8x128xf32>
    %928 = arith.mulf %923, %927 : vector<8x128xf32>
    %c104 = arith.constant 104 : index
    %c0_313 = arith.constant 0 : index
    %929 = vector.load %arg22[%c104, %c0_313] : memref<128x512xf32, #tpu.memory_space<vmem>>, vector<8x512xf32>
    %cst_314 = arith.constant dense<0.000000e+00> : vector<8x512xf32>
    %930 = tpu.matmul %892, %11, %cst_314 {dimension_numbers = #tpu.dot_dimension_numbers<[1], [0], [0], [1], [0, 0, 1, 1], [], []>} : vector<8x128xf32>, vector<128x512xf32>, vector<8x512xf32> -> vector<8x512xf32>
    %931 = arith.addf %929, %930 : vector<8x512xf32>
    %932 = vector.extract_strided_slice %931 {offsets = [0, 0], sizes = [8, 128], strides = [1, 1]} : vector<8x512xf32> to vector<8x128xf32>
    %cst_315 = arith.constant 5.000000e-01 : f32
    %933 = vector.broadcast %cst_315 : f32 to vector<8x128xf32>
    %934 = arith.mulf %933, %932 : vector<8x128xf32>
    %935 = math.tanh %934 : vector<8x128xf32>
    %cst_316 = arith.constant 5.000000e-01 : f32
    %936 = vector.broadcast %cst_316 : f32 to vector<8x128xf32>
    %937 = arith.mulf %936, %935 : vector<8x128xf32>
    %cst_317 = arith.constant 5.000000e-01 : f32
    %938 = vector.broadcast %cst_317 : f32 to vector<8x128xf32>
    %939 = arith.addf %937, %938 : vector<8x128xf32>
    %940 = vector.extract_strided_slice %931 {offsets = [0, 128], sizes = [8, 128], strides = [1, 1]} : vector<8x512xf32> to vector<8x128xf32>
    %cst_318 = arith.constant 5.000000e-01 : f32
    %941 = vector.broadcast %cst_318 : f32 to vector<8x128xf32>
    %942 = arith.mulf %941, %940 : vector<8x128xf32>
    %943 = math.tanh %942 : vector<8x128xf32>
    %cst_319 = arith.constant 5.000000e-01 : f32
    %944 = vector.broadcast %cst_319 : f32 to vector<8x128xf32>
    %945 = arith.mulf %944, %943 : vector<8x128xf32>
    %cst_320 = arith.constant 5.000000e-01 : f32
    %946 = vector.broadcast %cst_320 : f32 to vector<8x128xf32>
    %947 = arith.addf %945, %946 : vector<8x128xf32>
    %948 = vector.extract_strided_slice %931 {offsets = [0, 256], sizes = [8, 128], strides = [1, 1]} : vector<8x512xf32> to vector<8x128xf32>
    %949 = math.tanh %948 : vector<8x128xf32>
    %950 = vector.extract_strided_slice %931 {offsets = [0, 384], sizes = [8, 128], strides = [1, 1]} : vector<8x512xf32> to vector<8x128xf32>
    %cst_321 = arith.constant 5.000000e-01 : f32
    %951 = vector.broadcast %cst_321 : f32 to vector<8x128xf32>
    %952 = arith.mulf %951, %950 : vector<8x128xf32>
    %953 = math.tanh %952 : vector<8x128xf32>
    %cst_322 = arith.constant 5.000000e-01 : f32
    %954 = vector.broadcast %cst_322 : f32 to vector<8x128xf32>
    %955 = arith.mulf %954, %953 : vector<8x128xf32>
    %cst_323 = arith.constant 5.000000e-01 : f32
    %956 = vector.broadcast %cst_323 : f32 to vector<8x128xf32>
    %957 = arith.addf %955, %956 : vector<8x128xf32>
    %958 = arith.mulf %947, %890 : vector<8x128xf32>
    %959 = arith.mulf %939, %949 : vector<8x128xf32>
    %960 = arith.addf %958, %959 : vector<8x128xf32>
    %961 = math.tanh %960 : vector<8x128xf32>
    %962 = arith.mulf %957, %961 : vector<8x128xf32>
    %cst_324 = arith.constant dense<0.000000e+00> : vector<8x512xf32>
    %963 = tpu.matmul %962, %12, %cst_324 {dimension_numbers = #tpu.dot_dimension_numbers<[1], [0], [0], [1], [0, 0, 1, 1], [], []>} : vector<8x128xf32>, vector<128x512xf32>, vector<8x512xf32> -> vector<8x512xf32>
    %cst_325 = arith.constant dense<0.000000e+00> : vector<8x512xf32>
    %964 = tpu.matmul %928, %13, %cst_325 {dimension_numbers = #tpu.dot_dimension_numbers<[1], [0], [0], [1], [0, 0, 1, 1], [], []>} : vector<8x128xf32>, vector<128x512xf32>, vector<8x512xf32> -> vector<8x512xf32>
    %965 = arith.addf %963, %964 : vector<8x512xf32>
    %966 = vector.broadcast %14 : vector<1x512xf32> to vector<8x512xf32>
    %967 = arith.addf %965, %966 : vector<8x512xf32>
    %968 = vector.extract_strided_slice %967 {offsets = [0, 0], sizes = [8, 128], strides = [1, 1]} : vector<8x512xf32> to vector<8x128xf32>
    %cst_326 = arith.constant 5.000000e-01 : f32
    %969 = vector.broadcast %cst_326 : f32 to vector<8x128xf32>
    %970 = arith.mulf %969, %968 : vector<8x128xf32>
    %971 = math.tanh %970 : vector<8x128xf32>
    %cst_327 = arith.constant 5.000000e-01 : f32
    %972 = vector.broadcast %cst_327 : f32 to vector<8x128xf32>
    %973 = arith.mulf %972, %971 : vector<8x128xf32>
    %cst_328 = arith.constant 5.000000e-01 : f32
    %974 = vector.broadcast %cst_328 : f32 to vector<8x128xf32>
    %975 = arith.addf %973, %974 : vector<8x128xf32>
    %976 = vector.extract_strided_slice %967 {offsets = [0, 128], sizes = [8, 128], strides = [1, 1]} : vector<8x512xf32> to vector<8x128xf32>
    %cst_329 = arith.constant 5.000000e-01 : f32
    %977 = vector.broadcast %cst_329 : f32 to vector<8x128xf32>
    %978 = arith.mulf %977, %976 : vector<8x128xf32>
    %979 = math.tanh %978 : vector<8x128xf32>
    %cst_330 = arith.constant 5.000000e-01 : f32
    %980 = vector.broadcast %cst_330 : f32 to vector<8x128xf32>
    %981 = arith.mulf %980, %979 : vector<8x128xf32>
    %cst_331 = arith.constant 5.000000e-01 : f32
    %982 = vector.broadcast %cst_331 : f32 to vector<8x128xf32>
    %983 = arith.addf %981, %982 : vector<8x128xf32>
    %984 = vector.extract_strided_slice %967 {offsets = [0, 256], sizes = [8, 128], strides = [1, 1]} : vector<8x512xf32> to vector<8x128xf32>
    %985 = math.tanh %984 : vector<8x128xf32>
    %986 = vector.extract_strided_slice %967 {offsets = [0, 384], sizes = [8, 128], strides = [1, 1]} : vector<8x512xf32> to vector<8x128xf32>
    %cst_332 = arith.constant 5.000000e-01 : f32
    %987 = vector.broadcast %cst_332 : f32 to vector<8x128xf32>
    %988 = arith.mulf %987, %986 : vector<8x128xf32>
    %989 = math.tanh %988 : vector<8x128xf32>
    %cst_333 = arith.constant 5.000000e-01 : f32
    %990 = vector.broadcast %cst_333 : f32 to vector<8x128xf32>
    %991 = arith.mulf %990, %989 : vector<8x128xf32>
    %cst_334 = arith.constant 5.000000e-01 : f32
    %992 = vector.broadcast %cst_334 : f32 to vector<8x128xf32>
    %993 = arith.addf %991, %992 : vector<8x128xf32>
    %994 = arith.mulf %983, %926 : vector<8x128xf32>
    %995 = arith.mulf %975, %985 : vector<8x128xf32>
    %996 = arith.addf %994, %995 : vector<8x128xf32>
    %997 = math.tanh %996 : vector<8x128xf32>
    %998 = arith.mulf %993, %997 : vector<8x128xf32>
    %c112 = arith.constant 112 : index
    %c0_335 = arith.constant 0 : index
    %999 = vector.load %arg22[%c112, %c0_335] : memref<128x512xf32, #tpu.memory_space<vmem>>, vector<8x512xf32>
    %cst_336 = arith.constant dense<0.000000e+00> : vector<8x512xf32>
    %1000 = tpu.matmul %962, %11, %cst_336 {dimension_numbers = #tpu.dot_dimension_numbers<[1], [0], [0], [1], [0, 0, 1, 1], [], []>} : vector<8x128xf32>, vector<128x512xf32>, vector<8x512xf32> -> vector<8x512xf32>
    %1001 = arith.addf %999, %1000 : vector<8x512xf32>
    %1002 = vector.extract_strided_slice %1001 {offsets = [0, 0], sizes = [8, 128], strides = [1, 1]} : vector<8x512xf32> to vector<8x128xf32>
    %cst_337 = arith.constant 5.000000e-01 : f32
    %1003 = vector.broadcast %cst_337 : f32 to vector<8x128xf32>
    %1004 = arith.mulf %1003, %1002 : vector<8x128xf32>
    %1005 = math.tanh %1004 : vector<8x128xf32>
    %cst_338 = arith.constant 5.000000e-01 : f32
    %1006 = vector.broadcast %cst_338 : f32 to vector<8x128xf32>
    %1007 = arith.mulf %1006, %1005 : vector<8x128xf32>
    %cst_339 = arith.constant 5.000000e-01 : f32
    %1008 = vector.broadcast %cst_339 : f32 to vector<8x128xf32>
    %1009 = arith.addf %1007, %1008 : vector<8x128xf32>
    %1010 = vector.extract_strided_slice %1001 {offsets = [0, 128], sizes = [8, 128], strides = [1, 1]} : vector<8x512xf32> to vector<8x128xf32>
    %cst_340 = arith.constant 5.000000e-01 : f32
    %1011 = vector.broadcast %cst_340 : f32 to vector<8x128xf32>
    %1012 = arith.mulf %1011, %1010 : vector<8x128xf32>
    %1013 = math.tanh %1012 : vector<8x128xf32>
    %cst_341 = arith.constant 5.000000e-01 : f32
    %1014 = vector.broadcast %cst_341 : f32 to vector<8x128xf32>
    %1015 = arith.mulf %1014, %1013 : vector<8x128xf32>
    %cst_342 = arith.constant 5.000000e-01 : f32
    %1016 = vector.broadcast %cst_342 : f32 to vector<8x128xf32>
    %1017 = arith.addf %1015, %1016 : vector<8x128xf32>
    %1018 = vector.extract_strided_slice %1001 {offsets = [0, 256], sizes = [8, 128], strides = [1, 1]} : vector<8x512xf32> to vector<8x128xf32>
    %1019 = math.tanh %1018 : vector<8x128xf32>
    %1020 = vector.extract_strided_slice %1001 {offsets = [0, 384], sizes = [8, 128], strides = [1, 1]} : vector<8x512xf32> to vector<8x128xf32>
    %cst_343 = arith.constant 5.000000e-01 : f32
    %1021 = vector.broadcast %cst_343 : f32 to vector<8x128xf32>
    %1022 = arith.mulf %1021, %1020 : vector<8x128xf32>
    %1023 = math.tanh %1022 : vector<8x128xf32>
    %cst_344 = arith.constant 5.000000e-01 : f32
    %1024 = vector.broadcast %cst_344 : f32 to vector<8x128xf32>
    %1025 = arith.mulf %1024, %1023 : vector<8x128xf32>
    %cst_345 = arith.constant 5.000000e-01 : f32
    %1026 = vector.broadcast %cst_345 : f32 to vector<8x128xf32>
    %1027 = arith.addf %1025, %1026 : vector<8x128xf32>
    %1028 = arith.mulf %1017, %960 : vector<8x128xf32>
    %1029 = arith.mulf %1009, %1019 : vector<8x128xf32>
    %1030 = arith.addf %1028, %1029 : vector<8x128xf32>
    %1031 = math.tanh %1030 : vector<8x128xf32>
    %1032 = arith.mulf %1027, %1031 : vector<8x128xf32>
    %cst_346 = arith.constant dense<0.000000e+00> : vector<8x512xf32>
    %1033 = tpu.matmul %1032, %12, %cst_346 {dimension_numbers = #tpu.dot_dimension_numbers<[1], [0], [0], [1], [0, 0, 1, 1], [], []>} : vector<8x128xf32>, vector<128x512xf32>, vector<8x512xf32> -> vector<8x512xf32>
    %cst_347 = arith.constant dense<0.000000e+00> : vector<8x512xf32>
    %1034 = tpu.matmul %998, %13, %cst_347 {dimension_numbers = #tpu.dot_dimension_numbers<[1], [0], [0], [1], [0, 0, 1, 1], [], []>} : vector<8x128xf32>, vector<128x512xf32>, vector<8x512xf32> -> vector<8x512xf32>
    %1035 = arith.addf %1033, %1034 : vector<8x512xf32>
    %1036 = vector.broadcast %14 : vector<1x512xf32> to vector<8x512xf32>
    %1037 = arith.addf %1035, %1036 : vector<8x512xf32>
    %1038 = vector.extract_strided_slice %1037 {offsets = [0, 0], sizes = [8, 128], strides = [1, 1]} : vector<8x512xf32> to vector<8x128xf32>
    %cst_348 = arith.constant 5.000000e-01 : f32
    %1039 = vector.broadcast %cst_348 : f32 to vector<8x128xf32>
    %1040 = arith.mulf %1039, %1038 : vector<8x128xf32>
    %1041 = math.tanh %1040 : vector<8x128xf32>
    %cst_349 = arith.constant 5.000000e-01 : f32
    %1042 = vector.broadcast %cst_349 : f32 to vector<8x128xf32>
    %1043 = arith.mulf %1042, %1041 : vector<8x128xf32>
    %cst_350 = arith.constant 5.000000e-01 : f32
    %1044 = vector.broadcast %cst_350 : f32 to vector<8x128xf32>
    %1045 = arith.addf %1043, %1044 : vector<8x128xf32>
    %1046 = vector.extract_strided_slice %1037 {offsets = [0, 128], sizes = [8, 128], strides = [1, 1]} : vector<8x512xf32> to vector<8x128xf32>
    %cst_351 = arith.constant 5.000000e-01 : f32
    %1047 = vector.broadcast %cst_351 : f32 to vector<8x128xf32>
    %1048 = arith.mulf %1047, %1046 : vector<8x128xf32>
    %1049 = math.tanh %1048 : vector<8x128xf32>
    %cst_352 = arith.constant 5.000000e-01 : f32
    %1050 = vector.broadcast %cst_352 : f32 to vector<8x128xf32>
    %1051 = arith.mulf %1050, %1049 : vector<8x128xf32>
    %cst_353 = arith.constant 5.000000e-01 : f32
    %1052 = vector.broadcast %cst_353 : f32 to vector<8x128xf32>
    %1053 = arith.addf %1051, %1052 : vector<8x128xf32>
    %1054 = vector.extract_strided_slice %1037 {offsets = [0, 256], sizes = [8, 128], strides = [1, 1]} : vector<8x512xf32> to vector<8x128xf32>
    %1055 = math.tanh %1054 : vector<8x128xf32>
    %1056 = vector.extract_strided_slice %1037 {offsets = [0, 384], sizes = [8, 128], strides = [1, 1]} : vector<8x512xf32> to vector<8x128xf32>
    %cst_354 = arith.constant 5.000000e-01 : f32
    %1057 = vector.broadcast %cst_354 : f32 to vector<8x128xf32>
    %1058 = arith.mulf %1057, %1056 : vector<8x128xf32>
    %1059 = math.tanh %1058 : vector<8x128xf32>
    %cst_355 = arith.constant 5.000000e-01 : f32
    %1060 = vector.broadcast %cst_355 : f32 to vector<8x128xf32>
    %1061 = arith.mulf %1060, %1059 : vector<8x128xf32>
    %cst_356 = arith.constant 5.000000e-01 : f32
    %1062 = vector.broadcast %cst_356 : f32 to vector<8x128xf32>
    %1063 = arith.addf %1061, %1062 : vector<8x128xf32>
    %1064 = arith.mulf %1053, %996 : vector<8x128xf32>
    %1065 = arith.mulf %1045, %1055 : vector<8x128xf32>
    %1066 = arith.addf %1064, %1065 : vector<8x128xf32>
    %1067 = math.tanh %1066 : vector<8x128xf32>
    %1068 = arith.mulf %1063, %1067 : vector<8x128xf32>
    %c120 = arith.constant 120 : index
    %c0_357 = arith.constant 0 : index
    %1069 = vector.load %arg22[%c120, %c0_357] : memref<128x512xf32, #tpu.memory_space<vmem>>, vector<8x512xf32>
    %cst_358 = arith.constant dense<0.000000e+00> : vector<8x512xf32>
    %1070 = tpu.matmul %1032, %11, %cst_358 {dimension_numbers = #tpu.dot_dimension_numbers<[1], [0], [0], [1], [0, 0, 1, 1], [], []>} : vector<8x128xf32>, vector<128x512xf32>, vector<8x512xf32> -> vector<8x512xf32>
    %1071 = arith.addf %1069, %1070 : vector<8x512xf32>
    %1072 = vector.extract_strided_slice %1071 {offsets = [0, 0], sizes = [8, 128], strides = [1, 1]} : vector<8x512xf32> to vector<8x128xf32>
    %cst_359 = arith.constant 5.000000e-01 : f32
    %1073 = vector.broadcast %cst_359 : f32 to vector<8x128xf32>
    %1074 = arith.mulf %1073, %1072 : vector<8x128xf32>
    %1075 = math.tanh %1074 : vector<8x128xf32>
    %cst_360 = arith.constant 5.000000e-01 : f32
    %1076 = vector.broadcast %cst_360 : f32 to vector<8x128xf32>
    %1077 = arith.mulf %1076, %1075 : vector<8x128xf32>
    %cst_361 = arith.constant 5.000000e-01 : f32
    %1078 = vector.broadcast %cst_361 : f32 to vector<8x128xf32>
    %1079 = arith.addf %1077, %1078 : vector<8x128xf32>
    %1080 = vector.extract_strided_slice %1071 {offsets = [0, 128], sizes = [8, 128], strides = [1, 1]} : vector<8x512xf32> to vector<8x128xf32>
    %cst_362 = arith.constant 5.000000e-01 : f32
    %1081 = vector.broadcast %cst_362 : f32 to vector<8x128xf32>
    %1082 = arith.mulf %1081, %1080 : vector<8x128xf32>
    %1083 = math.tanh %1082 : vector<8x128xf32>
    %cst_363 = arith.constant 5.000000e-01 : f32
    %1084 = vector.broadcast %cst_363 : f32 to vector<8x128xf32>
    %1085 = arith.mulf %1084, %1083 : vector<8x128xf32>
    %cst_364 = arith.constant 5.000000e-01 : f32
    %1086 = vector.broadcast %cst_364 : f32 to vector<8x128xf32>
    %1087 = arith.addf %1085, %1086 : vector<8x128xf32>
    %1088 = vector.extract_strided_slice %1071 {offsets = [0, 256], sizes = [8, 128], strides = [1, 1]} : vector<8x512xf32> to vector<8x128xf32>
    %1089 = math.tanh %1088 : vector<8x128xf32>
    %1090 = vector.extract_strided_slice %1071 {offsets = [0, 384], sizes = [8, 128], strides = [1, 1]} : vector<8x512xf32> to vector<8x128xf32>
    %cst_365 = arith.constant 5.000000e-01 : f32
    %1091 = vector.broadcast %cst_365 : f32 to vector<8x128xf32>
    %1092 = arith.mulf %1091, %1090 : vector<8x128xf32>
    %1093 = math.tanh %1092 : vector<8x128xf32>
    %cst_366 = arith.constant 5.000000e-01 : f32
    %1094 = vector.broadcast %cst_366 : f32 to vector<8x128xf32>
    %1095 = arith.mulf %1094, %1093 : vector<8x128xf32>
    %cst_367 = arith.constant 5.000000e-01 : f32
    %1096 = vector.broadcast %cst_367 : f32 to vector<8x128xf32>
    %1097 = arith.addf %1095, %1096 : vector<8x128xf32>
    %1098 = arith.mulf %1087, %1030 : vector<8x128xf32>
    %1099 = arith.mulf %1079, %1089 : vector<8x128xf32>
    %1100 = arith.addf %1098, %1099 : vector<8x128xf32>
    %1101 = math.tanh %1100 : vector<8x128xf32>
    %1102 = arith.mulf %1097, %1101 : vector<8x128xf32>
    %cst_368 = arith.constant dense<0.000000e+00> : vector<8x512xf32>
    %1103 = tpu.matmul %1102, %12, %cst_368 {dimension_numbers = #tpu.dot_dimension_numbers<[1], [0], [0], [1], [0, 0, 1, 1], [], []>} : vector<8x128xf32>, vector<128x512xf32>, vector<8x512xf32> -> vector<8x512xf32>
    %cst_369 = arith.constant dense<0.000000e+00> : vector<8x512xf32>
    %1104 = tpu.matmul %1068, %13, %cst_369 {dimension_numbers = #tpu.dot_dimension_numbers<[1], [0], [0], [1], [0, 0, 1, 1], [], []>} : vector<8x128xf32>, vector<128x512xf32>, vector<8x512xf32> -> vector<8x512xf32>
    %1105 = arith.addf %1103, %1104 : vector<8x512xf32>
    %1106 = vector.broadcast %14 : vector<1x512xf32> to vector<8x512xf32>
    %1107 = arith.addf %1105, %1106 : vector<8x512xf32>
    %1108 = vector.extract_strided_slice %1107 {offsets = [0, 0], sizes = [8, 128], strides = [1, 1]} : vector<8x512xf32> to vector<8x128xf32>
    %cst_370 = arith.constant 5.000000e-01 : f32
    %1109 = vector.broadcast %cst_370 : f32 to vector<8x128xf32>
    %1110 = arith.mulf %1109, %1108 : vector<8x128xf32>
    %1111 = math.tanh %1110 : vector<8x128xf32>
    %cst_371 = arith.constant 5.000000e-01 : f32
    %1112 = vector.broadcast %cst_371 : f32 to vector<8x128xf32>
    %1113 = arith.mulf %1112, %1111 : vector<8x128xf32>
    %cst_372 = arith.constant 5.000000e-01 : f32
    %1114 = vector.broadcast %cst_372 : f32 to vector<8x128xf32>
    %1115 = arith.addf %1113, %1114 : vector<8x128xf32>
    %1116 = vector.extract_strided_slice %1107 {offsets = [0, 128], sizes = [8, 128], strides = [1, 1]} : vector<8x512xf32> to vector<8x128xf32>
    %cst_373 = arith.constant 5.000000e-01 : f32
    %1117 = vector.broadcast %cst_373 : f32 to vector<8x128xf32>
    %1118 = arith.mulf %1117, %1116 : vector<8x128xf32>
    %1119 = math.tanh %1118 : vector<8x128xf32>
    %cst_374 = arith.constant 5.000000e-01 : f32
    %1120 = vector.broadcast %cst_374 : f32 to vector<8x128xf32>
    %1121 = arith.mulf %1120, %1119 : vector<8x128xf32>
    %cst_375 = arith.constant 5.000000e-01 : f32
    %1122 = vector.broadcast %cst_375 : f32 to vector<8x128xf32>
    %1123 = arith.addf %1121, %1122 : vector<8x128xf32>
    %1124 = vector.extract_strided_slice %1107 {offsets = [0, 256], sizes = [8, 128], strides = [1, 1]} : vector<8x512xf32> to vector<8x128xf32>
    %1125 = math.tanh %1124 : vector<8x128xf32>
    %1126 = vector.extract_strided_slice %1107 {offsets = [0, 384], sizes = [8, 128], strides = [1, 1]} : vector<8x512xf32> to vector<8x128xf32>
    %cst_376 = arith.constant 5.000000e-01 : f32
    %1127 = vector.broadcast %cst_376 : f32 to vector<8x128xf32>
    %1128 = arith.mulf %1127, %1126 : vector<8x128xf32>
    %1129 = math.tanh %1128 : vector<8x128xf32>
    %cst_377 = arith.constant 5.000000e-01 : f32
    %1130 = vector.broadcast %cst_377 : f32 to vector<8x128xf32>
    %1131 = arith.mulf %1130, %1129 : vector<8x128xf32>
    %cst_378 = arith.constant 5.000000e-01 : f32
    %1132 = vector.broadcast %cst_378 : f32 to vector<8x128xf32>
    %1133 = arith.addf %1131, %1132 : vector<8x128xf32>
    %1134 = arith.mulf %1123, %1066 : vector<8x128xf32>
    %1135 = arith.mulf %1115, %1125 : vector<8x128xf32>
    %1136 = arith.addf %1134, %1135 : vector<8x128xf32>
    %1137 = math.tanh %1136 : vector<8x128xf32>
    %1138 = arith.mulf %1133, %1137 : vector<8x128xf32>
    %c0_379 = arith.constant 0 : index
    %c0_380 = arith.constant 0 : index
    %1139 = vector.load %arg18[%c0_379, %c0_380] : memref<8x128xf32, #tpu.memory_space<vmem>>, vector<8x128xf32>
    tpu.vector_store %arg18[%c0_379, %c0_380], %1102 {strides = array<i32>} : memref<8x128xf32, #tpu.memory_space<vmem>>, vector<8x128xf32>,
    %c0_381 = arith.constant 0 : index
    %c0_382 = arith.constant 0 : index
    %1140 = vector.load %arg19[%c0_381, %c0_382] : memref<8x128xf32, #tpu.memory_space<vmem>>, vector<8x128xf32>
    tpu.vector_store %arg19[%c0_381, %c0_382], %1100 {strides = array<i32>} : memref<8x128xf32, #tpu.memory_space<vmem>>, vector<8x128xf32>,
    %c0_383 = arith.constant 0 : index
    %c0_384 = arith.constant 0 : index
    %1141 = vector.load %arg20[%c0_383, %c0_384] : memref<8x128xf32, #tpu.memory_space<vmem>>, vector<8x128xf32>
    tpu.vector_store %arg20[%c0_383, %c0_384], %1138 {strides = array<i32>} : memref<8x128xf32, #tpu.memory_space<vmem>>, vector<8x128xf32>,
    %c0_385 = arith.constant 0 : index
    %c0_386 = arith.constant 0 : index
    %1142 = vector.load %arg21[%c0_385, %c0_386] : memref<8x128xf32, #tpu.memory_space<vmem>>, vector<8x128xf32>
    tpu.vector_store %arg21[%c0_385, %c0_386], %1136 {strides = array<i32>} : memref<8x128xf32, #tpu.memory_space<vmem>>, vector<8x128xf32>,
    %c1_i32 = arith.constant 1 : i32
    %1143 = arith.cmpi eq, %arg1, %c1_i32 : i32
    %1144 = arith.extui %1143 : i1 to i32
    %c0_i32_387 = arith.constant 0 : i32
    %1145 = arith.cmpi ne, %1144, %c0_i32_387 : i32
    scf.if %1145 {
      %c0_388 = arith.constant 0 : index
      %c0_389 = arith.constant 0 : index
      %1146 = vector.load %arg9[%c0_388, %c0_389] : memref<128x64xf32, #tpu.memory_space<vmem>>, vector<128x64xf32>
      %cst_390 = arith.constant dense<0.000000e+00> : vector<8x64xf32>
      %1147 = tpu.matmul %1138, %1146, %cst_390 {dimension_numbers = #tpu.dot_dimension_numbers<[1], [0], [0], [1], [0, 0, 1, 1], [], []>} : vector<8x128xf32>, vector<128x64xf32>, vector<8x64xf32> -> vector<8x64xf32>
      %c0_391 = arith.constant 0 : index
      %c0_392 = arith.constant 0 : index
      %1148 = vector.load %arg10[%c0_391, %c0_392] : memref<1x64xf32, #tpu.memory_space<vmem>>, vector<1x64xf32>
      %1149 = vector.broadcast %1148 : vector<1x64xf32> to vector<8x64xf32>
      %1150 = arith.addf %1147, %1149 : vector<8x64xf32>
      %cst_393 = arith.constant 0.000000e+00 : f32
      %1151 = vector.broadcast %cst_393 : f32 to vector<8x64xf32>
      %1152 = arith.maximumf %1150, %1151 : vector<8x64xf32>
      %1153 = math.absf %1150 : vector<8x64xf32>
      %cst_394 = arith.constant 0.000000e+00 : f32
      %1154 = vector.broadcast %cst_394 : f32 to vector<8x64xf32>
      %1155 = arith.subf %1154, %1153 : vector<8x64xf32>
      %1156 = math.exp %1155 : vector<8x64xf32>
      %1157 = math.log1p %1156 : vector<8x64xf32>
      %1158 = arith.addf %1152, %1157 : vector<8x64xf32>
      %1159 = math.tanh %1158 : vector<8x64xf32>
      %1160 = arith.mulf %1150, %1159 : vector<8x64xf32>
      %c0_395 = arith.constant 0 : index
      %c0_396 = arith.constant 0 : index
      %1161 = vector.load %arg11[%c0_395, %c0_396] : memref<64x32xf32, #tpu.memory_space<vmem>>, vector<64x32xf32>
      %cst_397 = arith.constant dense<0.000000e+00> : vector<8x32xf32>
      %1162 = tpu.matmul %1160, %1161, %cst_397 {dimension_numbers = #tpu.dot_dimension_numbers<[1], [0], [0], [1], [0, 0, 1, 1], [], []>} : vector<8x64xf32>, vector<64x32xf32>, vector<8x32xf32> -> vector<8x32xf32>
      %c0_398 = arith.constant 0 : index
      %c0_399 = arith.constant 0 : index
      %1163 = vector.load %arg12[%c0_398, %c0_399] : memref<1x32xf32, #tpu.memory_space<vmem>>, vector<1x32xf32>
      %1164 = vector.broadcast %1163 : vector<1x32xf32> to vector<8x32xf32>
      %1165 = arith.addf %1162, %1164 : vector<8x32xf32>
      %cst_400 = arith.constant 0.000000e+00 : f32
      %1166 = vector.broadcast %cst_400 : f32 to vector<8x32xf32>
      %1167 = arith.maximumf %1165, %1166 : vector<8x32xf32>
      %1168 = math.absf %1165 : vector<8x32xf32>
      %cst_401 = arith.constant 0.000000e+00 : f32
      %1169 = vector.broadcast %cst_401 : f32 to vector<8x32xf32>
      %1170 = arith.subf %1169, %1168 : vector<8x32xf32>
      %1171 = math.exp %1170 : vector<8x32xf32>
      %1172 = math.log1p %1171 : vector<8x32xf32>
      %1173 = arith.addf %1167, %1172 : vector<8x32xf32>
      %1174 = math.tanh %1173 : vector<8x32xf32>
      %1175 = arith.mulf %1165, %1174 : vector<8x32xf32>
      %c0_402 = arith.constant 0 : index
      %c0_403 = arith.constant 0 : index
      %1176 = vector.load %arg13[%c0_402, %c0_403] : memref<32x16xf32, #tpu.memory_space<vmem>>, vector<32x16xf32>
      %cst_404 = arith.constant dense<0.000000e+00> : vector<8x16xf32>
      %1177 = tpu.matmul %1175, %1176, %cst_404 {dimension_numbers = #tpu.dot_dimension_numbers<[1], [0], [0], [1], [0, 0, 1, 1], [], []>} : vector<8x32xf32>, vector<32x16xf32>, vector<8x16xf32> -> vector<8x16xf32>
      %c0_405 = arith.constant 0 : index
      %c0_406 = arith.constant 0 : index
      %1178 = vector.load %arg14[%c0_405, %c0_406] : memref<1x16xf32, #tpu.memory_space<vmem>>, vector<1x16xf32>
      %1179 = vector.broadcast %1178 : vector<1x16xf32> to vector<8x16xf32>
      %1180 = arith.addf %1177, %1179 : vector<8x16xf32>
      %cst_407 = arith.constant 0.000000e+00 : f32
      %1181 = vector.broadcast %cst_407 : f32 to vector<8x16xf32>
      %1182 = arith.maximumf %1180, %1181 : vector<8x16xf32>
      %1183 = math.absf %1180 : vector<8x16xf32>
      %cst_408 = arith.constant 0.000000e+00 : f32
      %1184 = vector.broadcast %cst_408 : f32 to vector<8x16xf32>
      %1185 = arith.subf %1184, %1183 : vector<8x16xf32>
      %1186 = math.exp %1185 : vector<8x16xf32>
      %1187 = math.log1p %1186 : vector<8x16xf32>
      %1188 = arith.addf %1182, %1187 : vector<8x16xf32>
      %1189 = math.tanh %1188 : vector<8x16xf32>
      %1190 = arith.mulf %1180, %1189 : vector<8x16xf32>
      %c0_409 = arith.constant 0 : index
      %c0_410 = arith.constant 0 : index
      %1191 = vector.load %arg15[%c0_409, %c0_410] : memref<16x1xf32, #tpu.memory_space<vmem>>, vector<16x1xf32>
      %cst_411 = arith.constant dense<0.000000e+00> : vector<8x1xf32>
      %1192 = tpu.matmul %1190, %1191, %cst_411 {dimension_numbers = #tpu.dot_dimension_numbers<[1], [0], [0], [1], [0, 0, 1, 1], [], []>} : vector<8x16xf32>, vector<16x1xf32>, vector<8x1xf32> -> vector<8x1xf32>
      %c0_412 = arith.constant 0 : index
      %c0_413 = arith.constant 0 : index
      %1193 = vector.load %arg16[%c0_412, %c0_413] : memref<1x1xf32, #tpu.memory_space<vmem>>, vector<1x1xf32>
      %1194 = vector.broadcast %1193 : vector<1x1xf32> to vector<8x1xf32>
      %1195 = arith.addf %1192, %1194 : vector<8x1xf32>
      %c0_414 = arith.constant 0 : index
      %c0_415 = arith.constant 0 : index
      %1196 = vector.load %arg17[%c0_414, %c0_415] : memref<8x1xf32, #tpu.memory_space<vmem>>, vector<8x1xf32>
      tpu.vector_store %arg17[%c0_414, %c0_415], %1195 {strides = array<i32>} : memref<8x1xf32, #tpu.memory_space<vmem>>, vector<8x1xf32>,
    } else {
    }
    return
  }
  func.func @transform_0(%arg0: i32, %arg1: i32) -> (i32, i32, i32, i32) {
    %c0_i32 = arith.constant 0 : i32
    %c0_i32_0 = arith.constant 0 : i32
    %c0_i32_1 = arith.constant 0 : i32
    return %arg0, %arg1, %c0_i32, %c0_i32_0 : i32, i32, i32, i32
  }
  func.func @transform_1(%arg0: i32, %arg1: i32) -> (i32, i32) {
    %c0_i32 = arith.constant 0 : i32
    %c0_i32_0 = arith.constant 0 : i32
    %c0_i32_1 = arith.constant 0 : i32
    return %c0_i32, %c0_i32_0 : i32, i32
  }
  func.func @transform_2(%arg0: i32, %arg1: i32) -> (i32, i32) {
    %c0_i32 = arith.constant 0 : i32
    %c0_i32_0 = arith.constant 0 : i32
    %c0_i32_1 = arith.constant 0 : i32
    return %c0_i32, %c0_i32_0 : i32, i32
  }
  func.func @transform_3(%arg0: i32, %arg1: i32) -> (i32, i32) {
    %c0_i32 = arith.constant 0 : i32
    %c0_i32_0 = arith.constant 0 : i32
    %c0_i32_1 = arith.constant 0 : i32
    return %c0_i32, %c0_i32_0 : i32, i32
  }
  func.func @transform_4(%arg0: i32, %arg1: i32) -> (i32, i32) {
    %c0_i32 = arith.constant 0 : i32
    %c0_i32_0 = arith.constant 0 : i32
    %c0_i32_1 = arith.constant 0 : i32
    return %c0_i32, %c0_i32_0 : i32, i32
  }
  func.func @transform_5(%arg0: i32, %arg1: i32) -> (i32, i32) {
    %c0_i32 = arith.constant 0 : i32
    %c0_i32_0 = arith.constant 0 : i32
    %c0_i32_1 = arith.constant 0 : i32
    return %c0_i32, %c0_i32_0 : i32, i32
  }
  func.func @transform_6(%arg0: i32, %arg1: i32) -> (i32, i32) {
    %c0_i32 = arith.constant 0 : i32
    %c0_i32_0 = arith.constant 0 : i32
    %c0_i32_1 = arith.constant 0 : i32
    return %c0_i32, %c0_i32_0 : i32, i32
  }
  func.func @transform_7(%arg0: i32, %arg1: i32) -> (i32, i32) {
    %c0_i32 = arith.constant 0 : i32
    %c0_i32_0 = arith.constant 0 : i32
    %c0_i32_1 = arith.constant 0 : i32
    return %c0_i32, %c0_i32_0 : i32, i32
  }
  func.func @transform_8(%arg0: i32, %arg1: i32) -> (i32, i32) {
    %c0_i32 = arith.constant 0 : i32
    %c0_i32_0 = arith.constant 0 : i32
    %c0_i32_1 = arith.constant 0 : i32
    return %c0_i32, %c0_i32_0 : i32, i32
  }
  func.func @transform_9(%arg0: i32, %arg1: i32) -> (i32, i32) {
    %c0_i32 = arith.constant 0 : i32
    %c0_i32_0 = arith.constant 0 : i32
    %c0_i32_1 = arith.constant 0 : i32
    return %c0_i32, %c0_i32_0 : i32, i32
  }
  func.func @transform_10(%arg0: i32, %arg1: i32) -> (i32, i32) {
    %c0_i32 = arith.constant 0 : i32
    %c0_i32_0 = arith.constant 0 : i32
    %c0_i32_1 = arith.constant 0 : i32
    return %c0_i32, %c0_i32_0 : i32, i32
  }
  func.func @transform_11(%arg0: i32, %arg1: i32) -> (i32, i32) {
    %c0_i32 = arith.constant 0 : i32
    %c0_i32_0 = arith.constant 0 : i32
    %c0_i32_1 = arith.constant 0 : i32
    return %c0_i32, %c0_i32_0 : i32, i32
  }
  func.func @transform_12(%arg0: i32, %arg1: i32) -> (i32, i32) {
    %c0_i32 = arith.constant 0 : i32
    %c0_i32_0 = arith.constant 0 : i32
    %c0_i32_1 = arith.constant 0 : i32
    return %c0_i32, %c0_i32_0 : i32, i32
  }
  func.func @transform_13(%arg0: i32, %arg1: i32) -> (i32, i32) {
    %c0_i32 = arith.constant 0 : i32
    %c0_i32_0 = arith.constant 0 : i32
    %c0_i32_1 = arith.constant 0 : i32
    return %c0_i32, %c0_i32_0 : i32, i32
  }
  func.func @transform_14(%arg0: i32, %arg1: i32) -> (i32, i32) {
    %c0_i32 = arith.constant 0 : i32
    %c0_i32_0 = arith.constant 0 : i32
    %c0_i32_1 = arith.constant 0 : i32
    return %c0_i32, %c0_i32_0 : i32, i32
  }
  func.func @transform_15(%arg0: i32, %arg1: i32) -> (i32, i32) {
    %c0_i32 = arith.constant 0 : i32
    %c0_i32_0 = arith.constant 0 : i32
    return %arg0, %c0_i32 : i32, i32
  }
}

</mosaic_0001>

<bundles_post_ra>
// kernel: big_lstm_forward.1
= control target key start
LH: loop header
LB: loop body
LE: loop exit
PB: predicated region body
PF: predicated region fallthrough
CT: control target
= control target key end

     0   :  { %s13281_s20 = smov 0   ;;  %s13283_s21 = smov 0   ;;  %s16262_s0 = inlined_call_operand.vmem [shape: f32[2,2,128,16], index: 0, kind: input, shape index: {}]   ;;  %s16263_s1 = inlined_call_operand.vmem [shape: f32[16,512], index: 1, kind: input, shape index: {}]   ;;  %s16264_s2 = inlined_call_operand.vmem [shape: f32[128,512], index: 2, kind: input, shape index: {}]   ;;  %s16265_s3 = inlined_call_operand.vmem [shape: f32[1,512], index: 3, kind: input, shape index: {}]   ;;  %s16266_s4 = inlined_call_operand.vmem [shape: f32[128,512], index: 4, kind: input, shape index: {}]   ;;  %s16267_s5 = inlined_call_operand.vmem [shape: f32[128,512], index: 5, kind: input, shape index: {}]   ;;  %s16268_s6 = inlined_call_operand.vmem [shape: f32[1,512], index: 6, kind: input, shape index: {}]   ;;  %s16269_s7 = inlined_call_operand.vmem [shape: f32[128,64], index: 7, kind: input, shape index: {}]   ;;  %s16270_s8 = inlined_call_operand.vmem [shape: f32[1,64], index: 8, kind: input, shape index: {}]   ;;  %s16271_s9 = inlined_call_operand.vmem [shape: f32[64,32], index: 9, kind: input, shape index: {}]   ;;  %s16272_s10 = inlined_call_operand.vmem [shape: f32[1,32], index: 10, kind: input, shape index: {}]   ;;  %s16273_s11 = inlined_call_operand.vmem [shape: f32[32,16], index: 11, kind: input, shape index: {}]   ;;  %s16274_s12 = inlined_call_operand.vmem [shape: f32[1,16], index: 12, kind: input, shape index: {}]   ;;  %s16275_s13 = inlined_call_operand.vmem [shape: f32[16,1], index: 13, kind: input, shape index: {}]   ;;  %s16276_s14 = inlined_call_operand.<no memory space> [shape: f32[1,1], index: 14, kind: input, shape index: {}]   ;;  %s16277_s15 = inlined_call_operand.vmem [shape: f32[16,1], index: 15, kind: output, shape index: {}]  }
   0x1   :  { %v20_v0 = vstv %s16276_s14  ;;  %s13285_s22 = smov 0   ;;  %s13287_s23 = smov 0  }
   0x2   :  { %21 = vst [vmem:[#allocation7] sm:$0x1] %v20_v0  ;;  %s13289_s24 = smov 0  }
   0x3 LB: > { %16486 = sst [smem:[#allocation8_spill]] %s13187_s23  ;;  %s36_s14 = sadd.s32 1, %s13183_s22  ;;  %s13191_s24 = sphi %s13289_s24, %s27_s24   ;;  %s13187_s23 = sphi %s13287_s23, %s17474_s23   ;;  %s13183_s22 = sphi %s13285_s22, %s17476_s22   ;;  %s13179_s21 = sphi %s13283_s21, %s17472_s21   ;;  %s13175_s20 = sphi %s13281_s20, %s17475_s20  }
   0x4   : > { %s39_s25 = sadd.s32 1, %s13187_s23  ;;  %p37_p0 = scmp.ge.s32.totalorder %s36_s14, 2 }
   0x5   : > { %p9299_p1 = scmp.ge.s32.totalorder %s13191_s24, 1  ;;  %p457_p2 = scmp.lt.s32.totalorder %s13191_s24, 5 }
   0x6   : > { %s17478_s14 = smov (%p37_p0, %s36_s14), 0  ;;  %s17480_s25 = smov (!%p37_p0, %s39_s25), %s13187_s23 }
   0x7   : > { %16487 = sst [smem:[#allocation9_spill]] %s17478_s14  ;;  %p458_p3 = pnand %p9299_p1, %p457_p2 }
   0x8   : > { %p41_p4 = scmp.ge.s32.totalorder %s17480_s25, 2 }
   0x9   : > { %461 = sbr.rel (%p458_p3) target bundleno = 5815 (0x16b7), region = 80 }
   0xa   : > { %s17482_s25 = smov (%p41_p4, %s17480_s25), 0 }
   0xb   : > { %16488 = sst [smem:[#allocation10_spill]] %s17482_s25 }
  0x10   : > { %p508_p5 = scmp.lt.s32.totalorder %s13179_s21, 1  ;;  %p510_p6 = scmp.lt.s32.totalorder %s13175_s20, 1 }
  0x11   : > { %p9304_p7 = scmp.ne.s32.totalorder %s13175_s20, 0 }
  0x12   : > { %s17484_s21 = smov (!%p508_p5, %s13179_s21), 1  ;;  %v13193_v1 = vmov (!%p9304_p7), 0.0  }
  0x13   : > { %s511_s26 = scalar_select %p510_p6, %s13175_s20, 1 }
  0x14   : > { %s9301_s27 = sshll.u32 %s17484_s21, 5  ;;  %s9303_s28 = sshll.u32 %s17484_s21, 3  ;;  %525 = vst [vmem:[#allocation2] sm:$0xff] (!%p9304_p7), %v13193_v1  ;;  %526 = vst [vmem:[#allocation3] sm:$0xff] (!%p9304_p7), %v13193_v1 }
  0x15   : > { %s9300_s29 = sshll.u32 %s511_s26, 4  ;;  %s13318_s17 = scalar_lea.vmem %s16277_s15, %s9303_s28  ;;  %527 = vst [vmem:[#allocation4] sm:$0xff] (!%p9304_p7), %v13193_v1  ;;  %528 = vst [vmem:[#allocation5] sm:$0xff] (!%p9304_p7), %v13193_v1 }
  0x16   : > { %s514_s18 = sadd.s32 %s9301_s27, %s9300_s29  ;;  %524 = sbr.rel (%p9304_p7) target bundleno = 29 (0x1d), region = 84 }
  0x17   : > { %s9302_s19 = sshll.u32 %s514_s18, 3 }
  0x18   : > { %s13323_s25 = scalar_lea.vmem %s16262_s0, %s9302_s19 }
  0x1d PF: > { %v546_v2 = vld [vmem:[%s16263_s1 + $0x8] sm:$0xff]  ;;  %v548_v4 = vld [vmem:[%s16263_s1 + $0x18] sm:$0xff]  ;;  %v545_v7 = vld [vmem:[%s16263_s1] sm:$0xff]  ;;  %v16279_v9 = vmov 0.0   ;;  %vm575_vm0 = vcmask 130048   ;;  %p9337_p8 = scmp.ne.s32.totalorder %s13175_s20, 1 }
  0x1e   : > { %v550_v3 = vld [vmem:[%s16263_s1 + $0x28] sm:$0xff]  ;;  %v552_v6 = vld [vmem:[%s16263_s1 + $0x38] sm:$0xff]  ;;  %v549_v8 = vld [vmem:[%s16263_s1 + $0x20] sm:$0xff]  ;;  %688 = vmatprep.mubr.f32.mxu0 %v16279_v9  ;;  %849 = vmatprep.mubr.f32.mxu1 %v16279_v9  ;;  %vm13196_vm1 = vmmov (!%p9337_p8), 0   ;;  %vm8945_vm3 = vcmask (!%p9337_p8), 523264   ;;  %vm9047_vm5 = vcmask (!%p9337_p8), 261120  }
  0x1f   : > { %v9453_v5 = vpack.c.bf16 %v550_v3, %v546_v2  ;;  %v9457_v10 = vpack.c.bf16 %v552_v6, %v548_v4  ;;  %v9455_v11 = vpack.c.bf16 %v549_v8, %v545_v7  ;;  %v547_v12 = vld [vmem:[%s16263_s1 + $0x10] sm:$0xff]  ;;  %v1011_v15 = vld [vmem:[%s16264_s2 + $0x8] sm:$0xff]  ;;  %v1010_v17 = vld [vmem:[%s16264_s2] sm:$0xff]  ;;  %vm9220_vm7 = vcmask (!%p9337_p8), 7168  }
  0x20   : > { %v551_v13 = vld [vmem:[%s16263_s1 + $0x30] sm:$0xff]  ;;  %v1015_v16 = vld [vmem:[%s16264_s2 + $0x28] sm:$0xff]  ;;  %v529_v18 = vld [vmem:[%s13323_s25] sm:$0xff] }
  0x21   : > { %9454 = vmatprep.subr.bf16.mxu0 %v9453_v5  ;;  %v9459_v14 = vpack.c.bf16 %v551_v13, %v547_v12  ;;  %9458 = vmatprep.subr.bf16.mxu1 %v9457_v10  ;;  %v13362_v19 = vpack.c.bf16 %v1015_v16, %v1011_v15  ;;  %v1014_v20 = vld [vmem:[%s16264_s2 + $0x20] sm:$0xff]  ;;  %v1013_v21 = vld [vmem:[%s16264_s2 + $0x18] sm:$0xff]  ;;  %v1019_v24 = vld [vmem:[%s16264_s2 + $0x48] sm:$0xff] }
  0x22   : > { %9456 = vmatpush1.bf16.msra.mxu0 %v9455_v11  ;;  %v13370_v22 = vpack.c.bf16 %v1014_v20, %v1010_v17  ;;  %v1017_v23 = vld [vmem:[%s16264_s2 + $0x38] sm:$0xff]  ;;  %v1023_v26 = vld [vmem:[%s16264_s2 + $0x68] sm:$0xff]  ;;  %v1012_v27 = vld [vmem:[%s16264_s2 + $0x10] sm:$0xff] }
  0x23   : > { %16489 = vst [vmem:[#allocation11_spill] sm:$0xff] %v13362_v19  ;;  %9460 = vmatpush1.bf16.msra.mxu1 %v9459_v14  ;;  %9462 = vmatprep.subr.bf16.mxu0 %v13362_v19  ;;  %v13379_v25 = vpack.c.bf16 %v1017_v23, %v1013_v21  ;;  %v1016_v28 = vld [vmem:[%s16264_s2 + $0x30] sm:$0xff]  ;;  %v13391_v29 = vpack.c.bf16 %v1023_v26, %v1019_v24  ;;  %v1018_v31 = vld [vmem:[%s16264_s2 + $0x40] sm:$0xff]  ;;  %v530_v33 = vld [vmem:[%s13323_s25 + $0x8] sm:$0xff] }
  0x24   : > { %v13393_v30 = vpack.c.bf16 %v1016_v28, %v1012_v27  ;;  %v1022_v32 = vld [vmem:[%s16264_s2 + $0x60] sm:$0xff]  ;;  %v1021_v34 = vld [vmem:[%s16264_s2 + $0x58] sm:$0xff]  ;;  %v1027_v37 = vld [vmem:[%s16264_s2 + $0x88] sm:$0xff] }
  0x25   : > { %16490 = vst [vmem:[#allocation12_spill] sm:$0xff] %v13379_v25  ;;  %9305 = vmatmul.mubr.msk.f32.vlgmr.msra.gmra.mrb[0].mxu0 %vm575_vm0, %v529_v18  ;;  %v1025_v35 = vld [vmem:[%s16264_s2 + $0x78] sm:$0xff]  ;;  %v13412_v36 = vpack.c.bf16 %v1022_v32, %v1018_v31  ;;  %v1031_v38 = vld [vmem:[%s16264_s2 + $0xa8] sm:$0xff]  ;;  %v1020_v39 = vld [vmem:[%s16264_s2 + $0x50] sm:$0xff]  ;;  %9494 = vmatprep.subr.bf16.mxu1 %v13379_v25 }
  0x26   : > { %9321 = vmatmul.mubr.msk.f32.vlgmr.msra.gmra.mrb[0].mxu1 %vm575_vm0, %v529_v18  ;;  %9464 = vmatpush1.bf16.msra.mxu0 %v13370_v22  ;;  %v13425_v40 = vpack.c.bf16 %v1025_v35, %v1021_v34  ;;  %v13427_v41 = vpack.c.bf16 %v1031_v38, %v1027_v37  ;;  %v1024_v42 = vld [vmem:[%s16264_s2 + $0x70] sm:$0xff]  ;;  %v1026_v43 = vld [vmem:[%s16264_s2 + $0x80] sm:$0xff]  ;;  %v1029_v46 = vld [vmem:[%s16264_s2 + $0x98] sm:$0xff] }
  0x27   : > { %694 = vmatprep.mubr.f32.mxu0 %v16279_v9  ;;  %855 = vmatprep.mubr.f32.mxu1 %v16279_v9  ;;  %16491 = vst [vmem:[#allocation13_spill] sm:$0xff] %v13412_v36  ;;  %v1030_v44 = vld [vmem:[%s16264_s2 + $0xa0] sm:$0xff]  ;;  %v13440_v45 = vpack.c.bf16 %v1024_v42, %v1020_v39  ;;  %v1033_v47 = vld [vmem:[%s16264_s2 + $0xb8] sm:$0xff]  ;;  %v531_v48 = vld [vmem:[%s13323_s25 + $0x10] sm:$0xff] }
  0x28   : > { %9466 = vmatprep.subr.bf16.mxu0 %v13391_v29  ;;  %16492 = vst [vmem:[#allocation14_spill] sm:$0xff] %v13427_v41  ;;  %9496 = vmatpush1.bf16.msra.mxu1 %v13393_v30  ;;  %v1035_v49 = vld [vmem:[%s16264_s2 + $0xc8] sm:$0xff]  ;;  %v13459_v51 = vpack.c.bf16 %v1030_v44, %v1026_v43  ;;  %v1028_v52 = vld [vmem:[%s16264_s2 + $0x90] sm:$0xff]  ;;  %v532_v54 = vld [vmem:[%s13323_s25 + $0x18] sm:$0xff]  ;;  %v13470_v55 = vpack.c.bf16 %v1033_v47, %v1029_v46 }
  0x29   : > { %9306 = vmatmul.mubr.msk.f32.gmra.mrb[2].mxu0 %vm575_vm0, %v530_v33  ;;  %16493 = vst [vmem:[#allocation15_spill] sm:$0xff] %v13440_v45  ;;  %v1039_v50 = vld [vmem:[%s16264_s2 + $0xe8] sm:$0xff]  ;;  %v1032_v53 = vld [vmem:[%s16264_s2 + $0xb0] sm:$0xff]  ;;  %9498 = vmatprep.subr.bf16.mxu1 %v13425_v40  ;;  %v1034_v57 = vld [vmem:[%s16264_s2 + $0xc0] sm:$0xff] }
  0x2a   : > { %9322 = vmatmul.mubr.msk.f32.gmra.mrb[2].mxu1 %vm575_vm0, %v530_v33  ;;  %700 = vmatprep.mubr.f32.mxu0 %v16279_v9  ;;  %16494 = vst [vmem:[#allocation16_spill] sm:$0xff] %v13459_v51  ;;  %16495 = vst [vmem:[#allocation17_spill] sm:$0xff] %v13470_v55  ;;  %v13472_v56 = vpack.c.bf16 %v1039_v50, %v1035_v49  ;;  %v1038_v58 = vld [vmem:[%s16264_s2 + $0xe0] sm:$0xff]  ;;  %v13482_v59 = vpack.c.bf16 %v1032_v53, %v1028_v52  ;;  %v1037_v60 = vld [vmem:[%s16264_s2 + $0xd8] sm:$0xff] }
  0x2b   : > { %861 = vmatprep.mubr.f32.mxu1 %v16279_v9  ;;  %9468 = vmatpush1.bf16.msra.mxu0 %v13412_v36  ;;  %v1041_v61 = vld [vmem:[%s16264_s2 + $0xf8] sm:$0xff]  ;;  %v1043_v62 = vld [vmem:[%s16264_s2 + $0x108] sm:$0xff]  ;;  %v1036_v0 = vld [vmem:[%s16264_s2 + $0xd0] sm:$0xff]  ;;  %v13506_v2 = vpack.c.bf16 %v1038_v58, %v1034_v57 }
  0x2c   : > { %9470 = vmatprep.subr.bf16.mxu0 %v13427_v41  ;;  %16496 = vst [vmem:[#allocation18_spill] sm:$0xff] %v13472_v56  ;;  %9500 = vmatpush1.bf16.msra.mxu1 %v13440_v45  ;;  %16497 = vst [vmem:[#allocation19_spill] sm:$0xff] %v13482_v59  ;;  %v1047_v63 = vld [vmem:[%s16264_s2 + $0x128] sm:$0xff]  ;;  %v1040_v1 = vld [vmem:[%s16264_s2 + $0xf0] sm:$0xff]  ;;  %v13510_v3 = vpack.c.bf16 %v1041_v61, %v1037_v60 }
  0x2d   : > { %9307 = vmatmul.mubr.msk.f32.gmra.mrb[4].mxu0 %vm575_vm0, %v531_v48  ;;  %16498 = vst [vmem:[#allocation20_spill] sm:$0xff] %v13506_v2  ;;  %9502 = vmatprep.subr.bf16.mxu1 %v13470_v55  ;;  %v13512_v4 = vpack.c.bf16 %v1047_v63, %v1043_v62  ;;  %v1042_v5 = vld [vmem:[%s16264_s2 + $0x100] sm:$0xff]  ;;  %v1045_v7 = vld [vmem:[%s16264_s2 + $0x118] sm:$0xff]  ;;  %v13525_v8 = vpack.c.bf16 %v1040_v1, %v1036_v0  ;;  %v1051_v11 = vld [vmem:[%s16264_s2 + $0x148] sm:$0xff] }
  0x2e   : > { %9323 = vmatmul.mubr.msk.f32.gmra.mrb[4].mxu1 %vm575_vm0, %v531_v48  ;;  %706 = vmatprep.mubr.f32.mxu0 %v16279_v9  ;;  %16499 = vst [vmem:[#allocation21_spill] sm:$0xff] %v13510_v3  ;;  %v1046_v6 = vld [vmem:[%s16264_s2 + $0x120] sm:$0xff]  ;;  %v1049_v10 = vld [vmem:[%s16264_s2 + $0x138] sm:$0xff]  ;;  %v1055_v12 = vld [vmem:[%s16264_s2 + $0x168] sm:$0xff] }
  0x2f   : > { %867 = vmatprep.mubr.f32.mxu1 %v16279_v9  ;;  %9472 = vmatpush1.bf16.msra.mxu0 %v13459_v51  ;;  %16500 = vst [vmem:[#allocation22_spill] sm:$0xff] %v13512_v4  ;;  %16501 = vst [vmem:[#allocation23_spill] sm:$0xff] %v13525_v8  ;;  %v533_v13 = vld [vmem:[%s13323_s25 + $0x20] sm:$0xff]  ;;  %v1044_v14 = vld [vmem:[%s16264_s2 + $0x110] sm:$0xff]  ;;  %v13547_v16 = vpack.c.bf16 %v1046_v6, %v1042_v5  ;;  %v13551_v17 = vpack.c.bf16 %v1049_v10, %v1045_v7 }
  0x30   : > { %9474 = vmatprep.subr.bf16.mxu0 %v13472_v56  ;;  %9504 = vmatpush1.bf16.msra.mxu1 %v13482_v59  ;;  %v1048_v15 = vld [vmem:[%s16264_s2 + $0x130] sm:$0xff]  ;;  %v13553_v18 = vpack.c.bf16 %v1055_v12, %v1051_v11  ;;  %v1050_v20 = vld [vmem:[%s16264_s2 + $0x140] sm:$0xff]  ;;  %v1053_v23 = vld [vmem:[%s16264_s2 + $0x158] sm:$0xff] }
  0x31   : > { %9308 = vmatmul.mubr.msk.f32.gmra.mrb[6].mxu0 %vm575_vm0, %v532_v54  ;;  %16502 = vst [vmem:[#allocation24_spill] sm:$0xff] %v13547_v16  ;;  %9506 = vmatprep.subr.bf16.mxu1 %v13510_v3  ;;  %16503 = vst [vmem:[#allocation25_spill] sm:$0xff] %v13551_v17  ;;  %v1054_v21 = vld [vmem:[%s16264_s2 + $0x160] sm:$0xff]  ;;  %v13566_v24 = vpack.c.bf16 %v1048_v15, %v1044_v14  ;;  %v1057_v26 = vld [vmem:[%s16264_s2 + $0x178] sm:$0xff] }
  0x32   : > { %9324 = vmatmul.mubr.msk.f32.gmra.mrb[6].mxu1 %vm575_vm0, %v532_v54  ;;  %712 = vmatprep.mubr.f32.mxu0 %v16279_v9  ;;  %16504 = vst [vmem:[#allocation26_spill] sm:$0xff] %v13553_v18  ;;  %v1059_v27 = vld [vmem:[%s16264_s2 + $0x188] sm:$0xff]  ;;  %v1052_v32 = vld [vmem:[%s16264_s2 + $0x150] sm:$0xff]  ;;  %v13588_v34 = vpack.c.bf16 %v1054_v21, %v1050_v20  ;;  %v13592_v35 = vpack.c.bf16 %v1057_v26, %v1053_v23  ;;  %v1058_v38 = vld [vmem:[%s16264_s2 + $0x180] sm:$0xff] }
  0x33   : > { %873 = vmatprep.mubr.f32.mxu1 %v16279_v9  ;;  %9476 = vmatpush1.bf16.msra.mxu0 %v13506_v2  ;;  %16505 = vst [vmem:[#allocation27_spill] sm:$0xff] %v13566_v24  ;;  %v1063_v28 = vld [vmem:[%s16264_s2 + $0x1a8] sm:$0xff]  ;;  %v1056_v33 = vld [vmem:[%s16264_s2 + $0x170] sm:$0xff]  ;;  %v1062_v39 = vld [vmem:[%s16264_s2 + $0x1a0] sm:$0xff] }
  0x34   : > { %9478 = vmatprep.subr.bf16.mxu0 %v13512_v4  ;;  %9508 = vmatpush1.bf16.msra.mxu1 %v13525_v8  ;;  %v534_v31 = vld [vmem:[%s13323_s25 + $0x28] sm:$0xff]  ;;  %16506 = vst [vmem:[#allocation28_spill] sm:$0xff] %v13588_v34  ;;  %16507 = vst [vmem:[#allocation29_spill] sm:$0xff] %v13592_v35  ;;  %v13594_v37 = vpack.c.bf16 %v1063_v28, %v1059_v27  ;;  %v1061_v42 = vld [vmem:[%s16264_s2 + $0x198] sm:$0xff]  ;;  %v13607_v43 = vpack.c.bf16 %v1056_v33, %v1052_v32 }
  0x35   : > { %9309 = vmatmul.mubr.msk.f32.gmra.mrb[8].mxu0 %vm575_vm0, %v533_v13  ;;  %9510 = vmatprep.subr.bf16.mxu1 %v13551_v17  ;;  %v1065_v44 = vld [vmem:[%s16264_s2 + $0x1b8] sm:$0xff]  ;;  %v1067_v46 = vld [vmem:[%s16264_s2 + $0x1c8] sm:$0xff]  ;;  %v535_v48 = vld [vmem:[%s13323_s25 + $0x30] sm:$0xff]  ;;  %v13629_v52 = vpack.c.bf16 %v1062_v39, %v1058_v38 }
  0x36   : > { %9325 = vmatmul.mubr.msk.f32.gmra.mrb[8].mxu1 %vm575_vm0, %v533_v13  ;;  %718 = vmatprep.mubr.f32.mxu0 %v16279_v9  ;;  %16508 = vst [vmem:[#allocation30_spill] sm:$0xff] %v13594_v37  ;;  %16509 = vst [vmem:[#allocation31_spill] sm:$0xff] %v13607_v43  ;;  %v1071_v47 = vld [vmem:[%s16264_s2 + $0x1e8] sm:$0xff]  ;;  %v1060_v49 = vld [vmem:[%s16264_s2 + $0x190] sm:$0xff]  ;;  %v13633_v53 = vpack.c.bf16 %v1065_v44, %v1061_v42 }
  0x37   : > { %879 = vmatprep.mubr.f32.mxu1 %v16279_v9  ;;  %9480 = vmatpush1.bf16.msra.mxu0 %v13547_v16  ;;  %v1064_v50 = vld [vmem:[%s16264_s2 + $0x1b0] sm:$0xff]  ;;  %16510 = vst [vmem:[#allocation32_spill] sm:$0xff] %v13629_v52  ;;  %v13635_v54 = vpack.c.bf16 %v1071_v47, %v1067_v46  ;;  %v1066_v57 = vld [vmem:[%s16264_s2 + $0x1c0] sm:$0xff]  ;;  %v1069_v60 = vld [vmem:[%s16264_s2 + $0x1d8] sm:$0xff] }
  0x38   : > { %9482 = vmatprep.subr.bf16.mxu0 %v13553_v18  ;;  %9512 = vmatpush1.bf16.msra.mxu1 %v13566_v24  ;;  %16511 = vst [vmem:[#allocation33_spill] sm:$0xff] %v13633_v53  ;;  %v1070_v58 = vld [vmem:[%s16264_s2 + $0x1e0] sm:$0xff]  ;;  %v13648_v61 = vpack.c.bf16 %v1064_v50, %v1060_v49  ;;  %v1073_v62 = vld [vmem:[%s16264_s2 + $0x1f8] sm:$0xff]  ;;  %v1139_v63 = vld [vmem:[%s16267_s5 + $0x8] sm:$0xff] }
  0x39   : > { %9310 = vmatmul.mubr.msk.f32.gmra.mrb[10].mxu0 %vm575_vm0, %v534_v31  ;;  %9514 = vmatprep.subr.bf16.mxu1 %v13592_v35  ;;  %16512 = vst [vmem:[#allocation34_spill] sm:$0xff] %v13635_v54  ;;  %v1143_v0 = vld [vmem:[%s16267_s5 + $0x28] sm:$0xff]  ;;  %v536_v1 = vld [vmem:[%s13323_s25 + $0x38] sm:$0xff]  ;;  %v1068_v5 = vld [vmem:[%s16264_s2 + $0x1d0] sm:$0xff]  ;;  %v13670_v7 = vpack.c.bf16 %v1070_v58, %v1066_v57  ;;  %v13674_v10 = vpack.c.bf16 %v1073_v62, %v1069_v60 }
  0x3a   : > { %9326 = vmatmul.mubr.msk.f32.gmra.mrb[10].mxu1 %vm575_vm0, %v534_v31  ;;  %724 = vmatprep.mubr.f32.mxu0 %v16279_v9  ;;  %16513 = vst [vmem:[#allocation35_spill] sm:$0xff] %v13648_v61  ;;  %v1072_v6 = vld [vmem:[%s16264_s2 + $0x1f0] sm:$0xff]  ;;  %v13676_v11 = vpack.c.bf16 %v1143_v0, %v1139_v63  ;;  %v1141_v12 = vld [vmem:[%s16267_s5 + $0x18] sm:$0xff]  ;;  %v537_v15 = vld [vmem:[%s13323_s25 + $0x40] sm:$0xff] }
  0x3b   : > { %885 = vmatprep.mubr.f32.mxu1 %v16279_v9  ;;  %9484 = vmatpush1.bf16.msra.mxu0 %v13588_v34  ;;  %16514 = vst [vmem:[#allocation36_spill] sm:$0xff] %v13670_v7  ;;  %16515 = vst [vmem:[#allocation37_spill] sm:$0xff] %v13674_v10  ;;  %v1145_v13 = vld [vmem:[%s16267_s5 + $0x38] sm:$0xff]  ;;  %v13686_v14 = vpack.c.bf16 %v1072_v6, %v1068_v5  ;;  %v538_v21 = vld [vmem:[%s13323_s25 + $0x48] sm:$0xff] }
  0x3c   : > { %9486 = vmatprep.subr.bf16.mxu0 %v13594_v37  ;;  %9516 = vmatpush1.bf16.msra.mxu1 %v13607_v43  ;;  %16516 = vst [vmem:[#allocation38_spill] sm:$0xff] %v13676_v11  ;;  %v13693_v20 = vpack.c.bf16 %v1145_v13, %v1141_v12  ;;  %v539_v23 = vld [vmem:[%s13323_s25 + $0x50] sm:$0xff]  ;;  %v540_v26 = vld [vmem:[%s13323_s25 + $0x58] sm:$0xff]  ;;  %v541_v27 = vld [vmem:[%s13323_s25 + $0x60] sm:$0xff] }
  0x3d   : > { %9311 = vmatmul.mubr.msk.f32.gmra.mrb[12].mxu0 %vm575_vm0, %v535_v48  ;;  %9518 = vmatprep.subr.bf16.mxu1 %v13633_v53  ;;  %16517 = vst [vmem:[#allocation39_spill] sm:$0xff] %v13686_v14  ;;  %v542_v28 = vld [vmem:[%s13323_s25 + $0x68] sm:$0xff]  ;;  %v543_v31 = vld [vmem:[%s13323_s25 + $0x70] sm:$0xff]  ;;  %v544_v32 = vld [vmem:[%s13323_s25 + $0x78] sm:$0xff] }
  0x3e   : > { %9327 = vmatmul.mubr.msk.f32.gmra.mrb[12].mxu1 %vm575_vm0, %v535_v48  ;;  %730 = vmatprep.mubr.f32.mxu0 %v16279_v9  ;;  %16518 = vst [vmem:[#allocation40_spill] sm:$0xff] %v13693_v20  ;;  %v1138_v33 = vld [vmem:[%s16267_s5] sm:$0xff]  ;;  %v1140_v39 = vld [vmem:[%s16267_s5 + $0x10] sm:$0xff]  ;;  %v1147_v44 = vld [vmem:[%s16267_s5 + $0x48] sm:$0xff] }
  0x3f   : > { %891 = vmatprep.mubr.f32.mxu1 %v16279_v9  ;;  %9488 = vmatpush1.bf16.msra.mxu0 %v13629_v52  ;;  %v1142_v38 = vld [vmem:[%s16267_s5 + $0x20] sm:$0xff]  ;;  %v1144_v42 = vld [vmem:[%s16267_s5 + $0x30] sm:$0xff]  ;;  %v1151_v46 = vld [vmem:[%s16267_s5 + $0x68] sm:$0xff] }
  0x40   : > { %9490 = vmatprep.subr.bf16.mxu0 %v13635_v54  ;;  %9520 = vmatpush1.bf16.msra.mxu1 %v13648_v61  ;;  %v1149_v47 = vld [vmem:[%s16267_s5 + $0x58] sm:$0xff]  ;;  %v1203_v49 = vld [vmem:[#allocation2] sm:$0xff]  ;;  %v13761_v50 = vpack.c.bf16 %v1142_v38, %v1138_v33  ;;  %v13764_v57 = vpack.c.bf16 %v1144_v42, %v1140_v39  ;;  %v13766_v58 = vpack.c.bf16 %v1151_v46, %v1147_v44  ;;  %v1148_v63 = vld [vmem:[%s16267_s5 + $0x50] sm:$0xff] }
  0x41   : > { %9312 = vmatmul.mubr.msk.f32.gmra.mrb[14].mxu0 %vm575_vm0, %v536_v1  ;;  %9522 = vmatprep.subr.bf16.mxu1 %v13674_v10  ;;  %v1153_v48 = vld [vmem:[%s16267_s5 + $0x78] sm:$0xff]  ;;  %v1146_v60 = vld [vmem:[%s16267_s5 + $0x40] sm:$0xff]  ;;  %v1155_v5 = vld [vmem:[%s16267_s5 + $0x88] sm:$0xff] }
  0x42   : > { %9328 = vmatmul.mubr.msk.f32.gmra.mrb[14].mxu1 %vm575_vm0, %v536_v1  ;;  %736 = vmatprep.mubr.f32.mxu0 %v16279_v9  ;;  %16519 = vst [vmem:[#allocation41_spill] sm:$0xff] %v13761_v50  ;;  %16520 = vst [vmem:[#allocation42_spill] sm:$0xff] %v13764_v57  ;;  %v1150_v62 = vld [vmem:[%s16267_s5 + $0x60] sm:$0xff]  ;;  %v13777_v0 = vpack.c.bf16 %v1153_v48, %v1149_v47  ;;  %v1152_v1 = vld [vmem:[%s16267_s5 + $0x70] sm:$0xff] }
  0x43   : > { %897 = vmatprep.mubr.f32.mxu1 %v16279_v9  ;;  %9492 = vmatpush1.bf16.msra.mxu0 %v13670_v7  ;;  %16521 = vst [vmem:[#allocation43_spill] sm:$0xff] %v13766_v58  ;;  %v1159_v6 = vld [vmem:[%s16267_s5 + $0xa8] sm:$0xff]  ;;  %v1157_v12 = vld [vmem:[%s16267_s5 + $0x98] sm:$0xff]  ;;  %v1162_v48 = vld [vmem:[%s16267_s5 + $0xc0] sm:$0xff] }
  0x44   : > { %9526 = vmatprep.subr.bf16.mxu0 %v13676_v11  ;;  %9524 = vmatpush1.bf16.msra.mxu1 %v13686_v14  ;;  %16522 = vst [vmem:[#allocation44_spill] sm:$0xff] %v13777_v0  ;;  %v1161_v13 = vld [vmem:[%s16267_s5 + $0xb8] sm:$0xff]  ;;  %v1163_v33 = vld [vmem:[%s16267_s5 + $0xc8] sm:$0xff] }
  0x45   : > { %9313 = vmatmul.mubr.msk.f32.gmra.mrb[16].mxu0 %vm575_vm0, %v537_v15  ;;  %9558 = vmatprep.subr.bf16.mxu1 %v13693_v20  ;;  %v1167_v38 = vld [vmem:[%s16267_s5 + $0xe8] sm:$0xff]  ;;  %v1165_v39 = vld [vmem:[%s16267_s5 + $0xd8] sm:$0xff] }
  0x46   : > { %9329 = vmatmul.mubr.msk.f32.gmra.mrb[16].mxu1 %vm575_vm0, %v537_v15  ;;  %742 = vmatprep.mubr.f32.mxu0 %v16279_v9  ;;  %v13795_v15 = vpack.c.bf16 %v1150_v62, %v1146_v60  ;;  %v1169_v42 = vld [vmem:[%s16267_s5 + $0xf8] sm:$0xff]  ;;  %v13839_v47 = vpack.c.bf16 %v1167_v38, %v1163_v33  ;;  %v1164_v60 = vld [vmem:[%s16267_s5 + $0xd0] sm:$0xff] }
  0x47   : > { %903 = vmatprep.mubr.f32.mxu1 %v16279_v9  ;;  %v13851_v62 = vpack.c.bf16 %v1169_v42, %v1165_v39  ;;  %v1172_v33 = vld [vmem:[%s16267_s5 + $0x110] sm:$0xff]  ;;  %v1179_v42 = vld [vmem:[%s16267_s5 + $0x148] sm:$0xff] }
  0x48   : > { %16523 = vst [vmem:[#allocation45_spill] sm:$0xff] %v13795_v15  ;;  %16529 = vst [vmem:[#allocation51_spill] sm:$0xff] %v13839_v47  ;;  %v1176_v39 = vld [vmem:[%s16267_s5 + $0x130] sm:$0xff] }
  0x49   : > { %9314 = vmatmul.mubr.msk.f32.gmra.mrb[18].mxu0 %vm575_vm0, %v538_v21  ;;  %16530 = vst [vmem:[#allocation52_spill] sm:$0xff] %v13851_v62 }
  0x4a   : > { %9330 = vmatmul.mubr.msk.f32.gmra.mrb[18].mxu1 %vm575_vm0, %v538_v21  ;;  %748 = vmatprep.mubr.f32.mxu0 %v16279_v9  ;;  %v13799_v21 = vpack.c.bf16 %v1152_v1, %v1148_v63  ;;  %v1168_v63 = vld [vmem:[%s16267_s5 + $0xf0] sm:$0xff]  ;;  %v1171_v1 = vld [vmem:[%s16267_s5 + $0x108] sm:$0xff] }
  0x4b   : > { %909 = vmatprep.mubr.f32.mxu1 %v16279_v9 }
  0x4c   : > { %16524 = vst [vmem:[#allocation46_spill] sm:$0xff] %v13799_v21 }
  0x4d   : > { %9315 = vmatmul.mubr.msk.f32.gmra.mrb[20].mxu0 %vm575_vm0, %v539_v23 }
  0x4e   : > { %9331 = vmatmul.mubr.msk.f32.gmra.mrb[20].mxu1 %vm575_vm0, %v539_v23  ;;  %754 = vmatprep.mubr.f32.mxu0 %v16279_v9  ;;  %v13801_v23 = vpack.c.bf16 %v1159_v6, %v1155_v5  ;;  %v1175_v5 = vld [vmem:[%s16267_s5 + $0x128] sm:$0xff]  ;;  %v1173_v6 = vld [vmem:[%s16267_s5 + $0x118] sm:$0xff] }
  0x4f   : > { %915 = vmatprep.mubr.f32.mxu1 %v16279_v9 }
  0x50   : > { %16525 = vst [vmem:[#allocation47_spill] sm:$0xff] %v13801_v23 }
  0x51   : > { %9316 = vmatmul.mubr.msk.f32.gmra.mrb[22].mxu0 %vm575_vm0, %v540_v26 }
  0x52   : > { %9332 = vmatmul.mubr.msk.f32.gmra.mrb[22].mxu1 %vm575_vm0, %v540_v26  ;;  %760 = vmatprep.mubr.f32.mxu0 %v16279_v9  ;;  %v1154_v26 = vld [vmem:[%s16267_s5 + $0x80] sm:$0xff] }
  0x53   : > { %921 = vmatprep.mubr.f32.mxu1 %v16279_v9 }
  0x55   : > { %9317 = vmatmul.mubr.msk.f32.gmra.mrb[24].mxu0 %vm575_vm0, %v541_v27 }
  0x56   : > { %9333 = vmatmul.mubr.msk.f32.gmra.mrb[24].mxu1 %vm575_vm0, %v541_v27  ;;  %766 = vmatprep.mubr.f32.mxu0 %v16279_v9  ;;  %v1158_v27 = vld [vmem:[%s16267_s5 + $0xa0] sm:$0xff] }
  0x57   : > { %927 = vmatprep.mubr.f32.mxu1 %v16279_v9  ;;  %v13833_v44 = vpack.c.bf16 %v1158_v27, %v1154_v26  ;;  %v13873_v26 = vpack.c.bf16 %v1168_v63, %v1164_v60  ;;  %v13875_v27 = vpack.c.bf16 %v1175_v5, %v1171_v1  ;;  %v1185_v60 = vld [vmem:[%s16267_s5 + $0x178] sm:$0xff]  ;;  %v13909_v1 = vpack.c.bf16 %v1176_v39, %v1172_v33  ;;  %v1184_v33 = vld [vmem:[%s16267_s5 + $0x170] sm:$0xff]  ;;  %v1187_v39 = vld [vmem:[%s16267_s5 + $0x188] sm:$0xff] }
  0x59   : > { %9318 = vmatmul.mubr.msk.f32.gmra.mrb[26].mxu0 %vm575_vm0, %v542_v28  ;;  %16527 = vst [vmem:[#allocation49_spill] sm:$0xff] %v13833_v44  ;;  %16532 = vst [vmem:[#allocation54_spill] sm:$0xff] %v13873_v26 }
  0x5a   : > { %9334 = vmatmul.mubr.msk.f32.gmra.mrb[26].mxu1 %vm575_vm0, %v542_v28  ;;  %772 = vmatprep.mubr.f32.mxu0 %v16279_v9  ;;  %v1156_v28 = vld [vmem:[%s16267_s5 + $0x90] sm:$0xff]  ;;  %16533 = vst [vmem:[#allocation55_spill] sm:$0xff] %v13875_v27  ;;  %16536 = vst [vmem:[#allocation58_spill] sm:$0xff] %v13909_v1 }
  0x5b   : > { %933 = vmatprep.mubr.f32.mxu1 %v16279_v9 }
  0x5d   : > { %9319 = vmatmul.mubr.msk.f32.gmra.mrb[28].mxu0 %vm575_vm0, %v543_v31 }
  0x5e   : > { %9335 = vmatmul.mubr.msk.f32.gmra.mrb[28].mxu1 %vm575_vm0, %v543_v31  ;;  %778 = vmatprep.mubr.f32.mxu0 %v16279_v9  ;;  %v13813_v31 = vpack.c.bf16 %v1161_v13, %v1157_v12  ;;  %v1177_v12 = vld [vmem:[%s16267_s5 + $0x138] sm:$0xff] }
  0x5f   : > { %939 = vmatprep.mubr.f32.mxu1 %v16279_v9  ;;  %v13887_v38 = vpack.c.bf16 %v1177_v12, %v1173_v6  ;;  %v1178_v6 = vld [vmem:[%s16267_s5 + $0x140] sm:$0xff] }
  0x60   : > { %16526 = vst [vmem:[#allocation48_spill] sm:$0xff] %v13813_v31  ;;  %v1182_v12 = vld [vmem:[%s16267_s5 + $0x160] sm:$0xff] }
  0x61   : > { %9320 = vmatmul.mubr.msk.f32.gmra.mrb[30].mxu0 %vm575_vm0, %v544_v32  ;;  %16534 = vst [vmem:[#allocation56_spill] sm:$0xff] %v13887_v38 }
  0x62   : > { %9336 = vmatmul.mubr.msk.f32.gmra.mrb[30].mxu1 %vm575_vm0, %v544_v32  ;;  %1275 = vmatprep.mubr.f32.mxu0 %v16279_v9  ;;  %v1160_v32 = vld [vmem:[%s16267_s5 + $0xb0] sm:$0xff] }
  0x63   : > { %1346 = vmatprep.mubr.f32.mxu1 %v16279_v9  ;;  %v13837_v46 = vpack.c.bf16 %v1160_v32, %v1156_v28  ;;  %v1170_v28 = vld [vmem:[%s16267_s5 + $0x100] sm:$0xff] }
  0x64   : > { %v1174_v32 = vld [vmem:[%s16267_s5 + $0x120] sm:$0xff] }
  0x65   : > { %1276 = vmatmul.mubr.f32.vlgmr.msra.gmra.mrb[0].mxu0 %v1203_v49  ;;  %16528 = vst [vmem:[#allocation50_spill] sm:$0xff] %v13837_v46  ;;  %v13905_v63 = vpack.c.bf16 %v1174_v32, %v1170_v28  ;;  %v1180_v28 = vld [vmem:[%s16267_s5 + $0x150] sm:$0xff] }
  0x66   : > { %1347 = vmatmul.mubr.f32.vlgmr.msra.gmra.mrb[0].mxu1 %v1203_v49  ;;  %9528 = vmatpush1.bf16.msra.mxu0 %v13761_v50  ;;  %v1166_v49 = vld [vmem:[%s16267_s5 + $0xe0] sm:$0xff] }
  0x67   : > { %9560 = vmatpush1.bf16.msra.mxu1 %v13764_v57  ;;  %9530 = vmatprep.subr.bf16.mxu0 %v13766_v58  ;;  %v13869_v13 = vpack.c.bf16 %v1166_v49, %v1162_v48  ;;  %v1183_v48 = vld [vmem:[%s16267_s5 + $0x168] sm:$0xff]  ;;  %v1181_v49 = vld [vmem:[%s16267_s5 + $0x158] sm:$0xff]  ;;  %16535 = vst [vmem:[#allocation57_spill] sm:$0xff] %v13905_v63 }
  0x68   : > { %9562 = vmatprep.subr.bf16.mxu1 %v13777_v0  ;;  %1439 = vmatprep.mubr.f32.mxu0 %v16279_v9  ;;  %v13911_v5 = vpack.c.bf16 %v1183_v48, %v1179_v42  ;;  %v13923_v32 = vpack.c.bf16 %v1185_v60, %v1181_v49  ;;  %v1191_v42 = vld [vmem:[%s16267_s5 + $0x1a8] sm:$0xff]  ;;  %v1189_v48 = vld [vmem:[%s16267_s5 + $0x198] sm:$0xff]  ;;  %v13941_v60 = vpack.c.bf16 %v1182_v12, %v1178_v6  ;;  %v1188_v12 = vld [vmem:[%s16267_s5 + $0x190] sm:$0xff] }
  0x69   : > { %1510 = vmatprep.mubr.f32.mxu1 %v16279_v9  ;;  %16531 = vst [vmem:[#allocation53_spill] sm:$0xff] %v13869_v13  ;;  %v1193_v49 = vld [vmem:[%s16267_s5 + $0x1b8] sm:$0xff]  ;;  %v13945_v9 = vpack.c.bf16 %v1184_v33, %v1180_v28  ;;  %v1192_v28 = vld [vmem:[%s16267_s5 + $0x1b0] sm:$0xff] }
  0x6a   : > { %9532 = vmatpush1.bf16.msra.mxu0 %v13795_v15  ;;  %16537 = vst [vmem:[#allocation59_spill] sm:$0xff] %v13911_v5  ;;  %16538 = vst [vmem:[#allocation60_spill] sm:$0xff] %v13923_v32  ;;  %v13956_v6 = vpack.c.bf16 %v1193_v49, %v1189_v48  ;;  %v1201_v49 = vld [vmem:[%s16267_s5 + $0x1f8] sm:$0xff] }
  0x6b   : > { %9564 = vmatpush1.bf16.msra.mxu1 %v13799_v21  ;;  %9534 = vmatprep.subr.bf16.mxu0 %v13801_v23  ;;  %16539 = vst [vmem:[#allocation61_spill] sm:$0xff] %v13941_v60  ;;  %16540 = vst [vmem:[#allocation62_spill] sm:$0xff] %v13945_v9 }
  0x6c   : > { %9566 = vmatprep.subr.bf16.mxu1 %v13813_v31  ;;  %16542 = vst [vmem:[#allocation64_spill] sm:$0xff] %v13956_v6 }
  0x6e   : > { %9536 = vmatpush1.bf16.msra.mxu0 %v13833_v44 }
  0x6f   : > { %9568 = vmatpush1.bf16.msra.mxu1 %v13837_v46  ;;  %9538 = vmatprep.subr.bf16.mxu0 %v13839_v47 }
  0x70   : > { %9570 = vmatprep.subr.bf16.mxu1 %v13851_v62 }
  0x72   : > { %9540 = vmatpush1.bf16.msra.mxu0 %v13869_v13 }
  0x73   : > { %9572 = vmatpush1.bf16.msra.mxu1 %v13873_v26  ;;  %9542 = vmatprep.subr.bf16.mxu0 %v13875_v27  ;;  %v1186_v27 = vld [vmem:[%s16267_s5 + $0x180] sm:$0xff] }
  0x74   : > { %9574 = vmatprep.subr.bf16.mxu1 %v13887_v38  ;;  %v13947_v38 = vpack.c.bf16 %v1191_v42, %v1187_v39  ;;  %v1190_v26 = vld [vmem:[%s16267_s5 + $0x1a0] sm:$0xff]  ;;  %v13969_v39 = vpack.c.bf16 %v1192_v28, %v1188_v12  ;;  %v1195_v42 = vld [vmem:[%s16267_s5 + $0x1c8] sm:$0xff] }
  0x75   : > { %v13965_v33 = vpack.c.bf16 %v1190_v26, %v1186_v27  ;;  %v1199_v26 = vld [vmem:[%s16267_s5 + $0x1e8] sm:$0xff]  ;;  %v1197_v27 = vld [vmem:[%s16267_s5 + $0x1d8] sm:$0xff]  ;;  %v1194_v12 = vld [vmem:[%s16267_s5 + $0x1c0] sm:$0xff] }
  0x76   : > { %9544 = vmatpush1.bf16.msra.mxu0 %v13905_v63  ;;  %16541 = vst [vmem:[#allocation63_spill] sm:$0xff] %v13947_v38  ;;  %16544 = vst [vmem:[#allocation66_spill] sm:$0xff] %v13969_v39  ;;  %v13983_v48 = vpack.c.bf16 %v1199_v26, %v1195_v42  ;;  %v1198_v28 = vld [vmem:[%s16267_s5 + $0x1e0] sm:$0xff]  ;;  %v1196_v42 = vld [vmem:[%s16267_s5 + $0x1d0] sm:$0xff] }
  0x77   : > { %9576 = vmatpush1.bf16.msra.mxu1 %v13909_v1  ;;  %9546 = vmatprep.subr.bf16.mxu0 %v13911_v5  ;;  %16543 = vst [vmem:[#allocation65_spill] sm:$0xff] %v13965_v33  ;;  %v1200_v26 = vld [vmem:[%s16267_s5 + $0x1f0] sm:$0xff] }
  0x78   : > { %9578 = vmatprep.subr.bf16.mxu1 %v13923_v32  ;;  %16545 = vst [vmem:[#allocation67_spill] sm:$0xff] %v13983_v48 }
  0x7a   : > { %9548 = vmatpush1.bf16.msra.mxu0 %v13941_v60 }
  0x7b   : > { %9580 = vmatpush1.bf16.msra.mxu1 %v13945_v9  ;;  %9550 = vmatprep.subr.bf16.mxu0 %v13947_v38 }
  0x7c   : > { %9582 = vmatprep.subr.bf16.mxu1 %v13956_v6  ;;  %v14005_v6 = vpack.c.bf16 %v1200_v26, %v1196_v42  ;;  %v1081_v42 = vld [vmem:[%s16266_s4 + $0x38] sm:$0xff]  ;;  %v1074_v26 = vld [vmem:[%s16266_s4] sm:$0xff] }
  0x7e   : > { %9552 = vmatpush1.bf16.msra.mxu0 %v13965_v33  ;;  %v13996_v33 = vpack.c.bf16 %v1198_v28, %v1194_v12  ;;  %16548 = vst [vmem:[#allocation70_spill] sm:$0xff] %v14005_v6  ;;  %v1077_v12 = vld [vmem:[%s16266_s4 + $0x18] sm:$0xff] }
  0x7f   : > { %9584 = vmatpush1.bf16.msra.mxu1 %v13969_v39  ;;  %v13994_v39 = vpack.c.bf16 %v1201_v49, %v1197_v27  ;;  %9554 = vmatprep.subr.bf16.mxu0 %v13983_v48  ;;  %v1075_v27 = vld [vmem:[%s16266_s4 + $0x8] sm:$0xff] }
  0x80   : > { %16547 = vst [vmem:[#allocation69_spill] sm:$0xff] %v13996_v33  ;;  %v1079_v49 = vld [vmem:[%s16266_s4 + $0x28] sm:$0xff] }
  0x81   : > { %16546 = vst [vmem:[#allocation68_spill] sm:$0xff] %v13994_v39  ;;  %9586 = vmatprep.subr.bf16.mxu1 %v13994_v39  ;;  %v14019_v28 = vpack.c.bf16 %v1079_v49, %v1075_v27  ;;  %v14030_v39 = vpack.c.bf16 %v1081_v42, %v1077_v12  ;;  %v1076_v27 = vld [vmem:[%s16266_s4 + $0x10] sm:$0xff]  ;;  %v1087_v12 = vld [vmem:[%s16266_s4 + $0x68] sm:$0xff]  ;;  %v1085_v42 = vld [vmem:[%s16266_s4 + $0x58] sm:$0xff] }
  0x82   : > { %9556 = vmatpush1.bf16.msra.mxu0 %v13996_v33  ;;  %v1078_v33 = vld [vmem:[%s16266_s4 + $0x20] sm:$0xff]  ;;  %v1080_v49 = vld [vmem:[%s16266_s4 + $0x30] sm:$0xff] }
  0x83   : > { %9588 = vmatpush1.bf16.msra.mxu1 %v14005_v6  ;;  %16549 = vst [vmem:[#allocation71_spill] sm:$0xff] %v14019_v28  ;;  %16550 = vst [vmem:[#allocation72_spill] sm:$0xff] %v14030_v39  ;;  %v14032_v48 = vpack.c.bf16 %v1078_v33, %v1074_v26  ;;  %9590 = vmatprep.subr.bf16.mxu0 %v14019_v28  ;;  %v1205_v6 = vld [vmem:[#allocation4] sm:$0xff]  ;;  %v14041_v38 = vpack.c.bf16 %v1080_v49, %v1076_v27  ;;  %v1083_v33 = vld [vmem:[%s16266_s4 + $0x48] sm:$0xff] }
  0x84   : > { %9622 = vmatprep.subr.bf16.mxu1 %v14030_v39  ;;  %v14054_v26 = vpack.c.bf16 %v1087_v12, %v1083_v33  ;;  %v1089_v27 = vld [vmem:[%s16266_s4 + $0x78] sm:$0xff]  ;;  %v1082_v49 = vld [vmem:[%s16266_s4 + $0x40] sm:$0xff]  ;;  %v1084_v33 = vld [vmem:[%s16266_s4 + $0x50] sm:$0xff] }
  0x85   : > { %16551 = vst [vmem:[#allocation73_spill] sm:$0xff] %v14032_v48  ;;  %16552 = vst [vmem:[#allocation74_spill] sm:$0xff] %v14041_v38  ;;  %1440 = vmatmul.mubr.f32.vlgmr.msra.gmra.mrb[32].mxu0 %v1205_v6  ;;  %v1086_v39 = vld [vmem:[%s16266_s4 + $0x60] sm:$0xff]  ;;  %v14066_v28 = vpack.c.bf16 %v1089_v27, %v1085_v42  ;;  %v1088_v12 = vld [vmem:[%s16266_s4 + $0x70] sm:$0xff] }
  0x86   : > { %1511 = vmatmul.mubr.f32.vlgmr.msra.gmra.mrb[32].mxu1 %v1205_v6  ;;  %9592 = vmatpush1.bf16.msra.mxu0 %v14032_v48  ;;  %16553 = vst [vmem:[#allocation75_spill] sm:$0xff] %v14054_v26  ;;  %v14068_v6 = vpack.c.bf16 %v1086_v39, %v1082_v49  ;;  %v16556_v48 = vmov 0.0   ;;  %v14078_v9 = vpack.c.bf16 %v1088_v12, %v1084_v33  ;;  %v1091_v39 = vld [vmem:[%s16266_s4 + $0x88] sm:$0xff]  ;;  %v1093_v27 = vld [vmem:[%s16266_s4 + $0x98] sm:$0xff]  ;;  %v1090_v12 = vld [vmem:[%s16266_s4 + $0x80] sm:$0xff] }
  0x87   : > { %9624 = vmatpush1.bf16.msra.mxu1 %v14041_v38  ;;  %16554 = vst [vmem:[#allocation76_spill] sm:$0xff] %v14066_v28  ;;  %1581 = vmatprep.mubr.f32.mxu0 %v16556_v48  ;;  %v1095_v42 = vld [vmem:[%s16266_s4 + $0xa8] sm:$0xff]  ;;  %v1097_v33 = vld [vmem:[%s16266_s4 + $0xb8] sm:$0xff] }
  0x88   : > { %16555 = vst [vmem:[#allocation77_spill] sm:$0xff] %v14068_v6  ;;  %9594 = vmatprep.subr.bf16.mxu0 %v14054_v26  ;;  %16557 = vst [vmem:[#allocation78_spill] sm:$0xff] %v14078_v9  ;;  %1652 = vmatprep.mubr.f32.mxu1 %v16556_v48  ;;  %v14092_v49 = vpack.c.bf16 %v1095_v42, %v1091_v39  ;;  %v14104_v26 = vpack.c.bf16 %v1097_v33, %v1093_v27  ;;  %v1092_v39 = vld [vmem:[%s16266_s4 + $0x90] sm:$0xff]  ;;  %v1099_v27 = vld [vmem:[%s16266_s4 + $0xc8] sm:$0xff] }
  0x89   : > { %9626 = vmatprep.subr.bf16.mxu1 %v14066_v28  ;;  %v1094_v28 = vld [vmem:[%s16266_s4 + $0xa0] sm:$0xff]  ;;  %v1096_v42 = vld [vmem:[%s16266_s4 + $0xb0] sm:$0xff]  ;;  %v1101_v33 = vld [vmem:[%s16266_s4 + $0xd8] sm:$0xff] }
  0x8a   : > { %9596 = vmatpush1.bf16.msra.mxu0 %v14068_v6  ;;  %16558 = vst [vmem:[#allocation79_spill] sm:$0xff] %v14092_v49  ;;  %16559 = vst [vmem:[#allocation80_spill] sm:$0xff] %v14104_v26  ;;  %v14106_v38 = vpack.c.bf16 %v1094_v28, %v1090_v12  ;;  %v14115_v6 = vpack.c.bf16 %v1096_v42, %v1092_v39  ;;  %v1103_v28 = vld [vmem:[%s16266_s4 + $0xe8] sm:$0xff]  ;;  %v1105_v39 = vld [vmem:[%s16266_s4 + $0xf8] sm:$0xff] }
  0x8b   : > { %9628 = vmatpush1.bf16.msra.mxu1 %v14078_v9  ;;  %9598 = vmatprep.subr.bf16.mxu0 %v14092_v49  ;;  %v14128_v12 = vpack.c.bf16 %v1103_v28, %v1099_v27  ;;  %v1098_v42 = vld [vmem:[%s16266_s4 + $0xc0] sm:$0xff]  ;;  %v14140_v49 = vpack.c.bf16 %v1105_v39, %v1101_v33  ;;  %v1100_v27 = vld [vmem:[%s16266_s4 + $0xd0] sm:$0xff]  ;;  %v1107_v33 = vld [vmem:[%s16266_s4 + $0x108] sm:$0xff] }
  0x8c   : > { %16560 = vst [vmem:[#allocation81_spill] sm:$0xff] %v14106_v38  ;;  %16561 = vst [vmem:[#allocation82_spill] sm:$0xff] %v14115_v6  ;;  %9630 = vmatprep.subr.bf16.mxu1 %v14104_v26  ;;  %v1102_v26 = vld [vmem:[%s16266_s4 + $0xe0] sm:$0xff]  ;;  %v1104_v28 = vld [vmem:[%s16266_s4 + $0xf0] sm:$0xff] }
  0x8d   : > { %16562 = vst [vmem:[#allocation83_spill] sm:$0xff] %v14128_v12  ;;  %16563 = vst [vmem:[#allocation84_spill] sm:$0xff] %v14140_v49  ;;  %v14142_v9 = vpack.c.bf16 %v1102_v26, %v1098_v42  ;;  %v1111_v26 = vld [vmem:[%s16266_s4 + $0x128] sm:$0xff]  ;;  %v1109_v39 = vld [vmem:[%s16266_s4 + $0x118] sm:$0xff] }
  0x8e   : > { %9600 = vmatpush1.bf16.msra.mxu0 %v14106_v38  ;;  %v14151_v38 = vpack.c.bf16 %v1104_v28, %v1100_v27  ;;  %v14164_v42 = vpack.c.bf16 %v1111_v26, %v1107_v33  ;;  %v1113_v27 = vld [vmem:[%s16266_s4 + $0x138] sm:$0xff]  ;;  %v1106_v28 = vld [vmem:[%s16266_s4 + $0x100] sm:$0xff]  ;;  %v1108_v33 = vld [vmem:[%s16266_s4 + $0x110] sm:$0xff] }
  0x8f   : > { %9632 = vmatpush1.bf16.msra.mxu1 %v14115_v6  ;;  %16564 = vst [vmem:[#allocation85_spill] sm:$0xff] %v14142_v9  ;;  %9602 = vmatprep.subr.bf16.mxu0 %v14128_v12  ;;  %v14176_v12 = vpack.c.bf16 %v1113_v27, %v1109_v39  ;;  %v1112_v26 = vld [vmem:[%s16266_s4 + $0x130] sm:$0xff]  ;;  %v1115_v39 = vld [vmem:[%s16266_s4 + $0x148] sm:$0xff]  ;;  %v1117_v27 = vld [vmem:[%s16266_s4 + $0x158] sm:$0xff] }
  0x90   : > { %16565 = vst [vmem:[#allocation86_spill] sm:$0xff] %v14151_v38  ;;  %9634 = vmatprep.subr.bf16.mxu1 %v14140_v49  ;;  %16566 = vst [vmem:[#allocation87_spill] sm:$0xff] %v14164_v42  ;;  %v1110_v49 = vld [vmem:[%s16266_s4 + $0x120] sm:$0xff] }
  0x91   : > { %16567 = vst [vmem:[#allocation88_spill] sm:$0xff] %v14176_v12  ;;  %v14178_v6 = vpack.c.bf16 %v1110_v49, %v1106_v28  ;;  %v1119_v49 = vld [vmem:[%s16266_s4 + $0x168] sm:$0xff] }
  0x92   : > { %9604 = vmatpush1.bf16.msra.mxu0 %v14142_v9  ;;  %v14187_v9 = vpack.c.bf16 %v1112_v26, %v1108_v33  ;;  %v14200_v28 = vpack.c.bf16 %v1119_v49, %v1115_v39  ;;  %v1121_v33 = vld [vmem:[%s16266_s4 + $0x178] sm:$0xff]  ;;  %v1114_v26 = vld [vmem:[%s16266_s4 + $0x140] sm:$0xff]  ;;  %v1116_v39 = vld [vmem:[%s16266_s4 + $0x150] sm:$0xff] }
  0x93   : > { %9636 = vmatpush1.bf16.msra.mxu1 %v14151_v38  ;;  %16568 = vst [vmem:[#allocation89_spill] sm:$0xff] %v14178_v6  ;;  %9606 = vmatprep.subr.bf16.mxu0 %v14164_v42  ;;  %v14212_v42 = vpack.c.bf16 %v1121_v33, %v1117_v27  ;;  %v1120_v49 = vld [vmem:[%s16266_s4 + $0x170] sm:$0xff]  ;;  %v1123_v27 = vld [vmem:[%s16266_s4 + $0x188] sm:$0xff]  ;;  %v1125_v33 = vld [vmem:[%s16266_s4 + $0x198] sm:$0xff] }
  0x94   : > { %16569 = vst [vmem:[#allocation90_spill] sm:$0xff] %v14187_v9  ;;  %9638 = vmatprep.subr.bf16.mxu1 %v14176_v12  ;;  %16570 = vst [vmem:[#allocation91_spill] sm:$0xff] %v14200_v28  ;;  %v1118_v12 = vld [vmem:[%s16266_s4 + $0x160] sm:$0xff] }
  0x95   : > { %16571 = vst [vmem:[#allocation92_spill] sm:$0xff] %v14212_v42  ;;  %v14214_v38 = vpack.c.bf16 %v1118_v12, %v1114_v26  ;;  %v1127_v12 = vld [vmem:[%s16266_s4 + $0x1a8] sm:$0xff] }
  0x96   : > { %9608 = vmatpush1.bf16.msra.mxu0 %v14178_v6  ;;  %v14223_v6 = vpack.c.bf16 %v1120_v49, %v1116_v39  ;;  %v14236_v26 = vpack.c.bf16 %v1127_v12, %v1123_v27  ;;  %v1129_v39 = vld [vmem:[%s16266_s4 + $0x1b8] sm:$0xff]  ;;  %v1122_v49 = vld [vmem:[%s16266_s4 + $0x180] sm:$0xff]  ;;  %v1124_v27 = vld [vmem:[%s16266_s4 + $0x190] sm:$0xff] }
  0x97   : > { %9640 = vmatpush1.bf16.msra.mxu1 %v14187_v9  ;;  %16572 = vst [vmem:[#allocation93_spill] sm:$0xff] %v14214_v38  ;;  %9610 = vmatprep.subr.bf16.mxu0 %v14200_v28  ;;  %v14248_v28 = vpack.c.bf16 %v1129_v39, %v1125_v33  ;;  %v1128_v12 = vld [vmem:[%s16266_s4 + $0x1b0] sm:$0xff]  ;;  %v1131_v33 = vld [vmem:[%s16266_s4 + $0x1c8] sm:$0xff]  ;;  %v1133_v39 = vld [vmem:[%s16266_s4 + $0x1d8] sm:$0xff] }
  0x98   : > { %16573 = vst [vmem:[#allocation94_spill] sm:$0xff] %v14223_v6  ;;  %9642 = vmatprep.subr.bf16.mxu1 %v14212_v42  ;;  %16574 = vst [vmem:[#allocation95_spill] sm:$0xff] %v14236_v26  ;;  %v1126_v42 = vld [vmem:[%s16266_s4 + $0x1a0] sm:$0xff] }
  0x99   : > { %16575 = vst [vmem:[#allocation96_spill] sm:$0xff] %v14248_v28  ;;  %v14250_v9 = vpack.c.bf16 %v1126_v42, %v1122_v49  ;;  %v1135_v42 = vld [vmem:[%s16266_s4 + $0x1e8] sm:$0xff] }
  0x9a   : > { %9612 = vmatpush1.bf16.msra.mxu0 %v14214_v38  ;;  %v14259_v38 = vpack.c.bf16 %v1128_v12, %v1124_v27  ;;  %v14272_v49 = vpack.c.bf16 %v1135_v42, %v1131_v33  ;;  %v1137_v27 = vld [vmem:[%s16266_s4 + $0x1f8] sm:$0xff]  ;;  %v1130_v12 = vld [vmem:[%s16266_s4 + $0x1c0] sm:$0xff]  ;;  %v1132_v33 = vld [vmem:[%s16266_s4 + $0x1d0] sm:$0xff] }
  0x9b   : > { %9644 = vmatpush1.bf16.msra.mxu1 %v14223_v6  ;;  %16576 = vst [vmem:[#allocation97_spill] sm:$0xff] %v14250_v9  ;;  %9614 = vmatprep.subr.bf16.mxu0 %v14236_v26  ;;  %v14284_v26 = vpack.c.bf16 %v1137_v27, %v1133_v39  ;;  %v1136_v42 = vld [vmem:[%s16266_s4 + $0x1f0] sm:$0xff] }
  0x9c   : > { %16577 = vst [vmem:[#allocation98_spill] sm:$0xff] %v14259_v38  ;;  %9646 = vmatprep.subr.bf16.mxu1 %v14248_v28  ;;  %16578 = vst [vmem:[#allocation99_spill] sm:$0xff] %v14272_v49  ;;  %v1134_v28 = vld [vmem:[%s16266_s4 + $0x1e0] sm:$0xff] }
  0x9d   : > { %16579 = vst [vmem:[#allocation100_spill] sm:$0xff] %v14284_v26  ;;  %v14286_v6 = vpack.c.bf16 %v1134_v28, %v1130_v12  ;;  %v555_v28 = vlaneseq  ;;  %v553_v12 = vld [vmem:[%s16265_s3] sm:$0xf] }
  0x9e   : > { %9616 = vmatpush1.bf16.msra.mxu0 %v14250_v9  ;;  %v14295_v9 = vpack.c.bf16 %v1136_v42, %v1132_v33 }
  0x9f   : > { %9648 = vmatpush1.bf16.msra.mxu1 %v14259_v38  ;;  %16580 = vst [vmem:[#allocation101_spill] sm:$0xff] %v14286_v6  ;;  %9618 = vmatprep.subr.bf16.mxu0 %v14272_v49  ;;  %v14302_v39 = vshrl.u32 %v555_v28, 7 }
  0xa0   : > { %16581 = vst [vmem:[#allocation102_spill] sm:$0xff] %v14295_v9  ;;  %9650 = vmatprep.subr.bf16.mxu1 %v14284_v26 }
  0xa1   : > { %v16373_v27 = vsub.s32 0, %v14302_v39  ;;  %v16380_v33 = vsub.s32 1, %v14302_v39  ;;  %v16396_v38 = vsub.s32 3, %v14302_v39 }
  0xa2   : > { %9620 = vmatpush1.bf16.msra.mxu0 %v14286_v6 }
  0xa3   : > { %9652 = vmatpush1.bf16.msra.mxu1 %v14295_v9  ;;  %9654 = vmatprep.subr.bf16.mxu0 %v13362_v19  ;;  %v14311_v42 = vrot.slane %v553_v12, %v16373_v27  ;;  %v16383_v9 = vsub.s32 2, %v14302_v39  ;;  %v14328_v1 = vrot.slane %v553_v12, %v16396_v38  ;;  %v16602_v38 = vld [vmem:[#allocation68_spill] sm:$0xff] }
  0xa4   : > { %9686 = vmatprep.subr.bf16.mxu1 %v13379_v25  ;;  %v14316_v25 = vrot.slane %v553_v12, %v16380_v33 }
  0xa5   : > { %16582 = vst [vmem:[#allocation103_spill] sm:$0xff] %v14311_v42  ;;  %v14321_v6 = vrot.slane %v553_v12, %v16383_v9  ;;  %16585 = vst [vmem:[#allocation106_spill] sm:$0xff] %v14328_v1 }
  0xa6   : > { %16583 = vst [vmem:[#allocation104_spill] sm:$0xff] %v14316_v25 }
  0xa7   : > { %16584 = vst [vmem:[#allocation105_spill] sm:$0xff] %v14321_v6 }
 0x138   : > { %v1277_v28 = vpop.f32.mrb[0].mxu0 }
 0x139   : > { %v12578_v19 = vadd.f32 %v1277_v28, %v14311_v42  ;;  %v1348_v26 = vpop.f32.mrb[0].mxu1  ;;  %v1279_v49 = vpop.f32.mrb[1].mxu0 }
 0x13a   : > { %v12579_v27 = vadd.f32 %v1279_v49, %v14316_v25  ;;  %v1350_v60 = vpop.f32.mrb[1].mxu1  ;;  %v12610_v33 = vadd.f32 %v1348_v26, %v14321_v6 }
 0x13b   : > { %v1357_v32 = vmul.f32 0.5, %v12578_v19  ;;  %v12611_v28 = vadd.f32 %v1350_v60, %v14328_v1  ;;  %v1204_v19 = vld [vmem:[#allocation3] sm:$0xff] }
 0x13c   : > { %v1361_v5 = vmul.f32 0.5, %v12579_v27 }
 0x13d   : > { %12815 = vtanh.f32 %v1357_v32  ;;  %v1366_v9 = vmul.f32 0.5, %v12611_v28 }
 0x13e   : > { %12817 = vtanh.f32 %v1361_v5 }
 0x13f   : > { %12819 = vtanh.f32 %v12610_v33 }
 0x140   : > { %12821 = vtanh.f32 %v1366_v9  ;;  %v16586_v9 = vld [vmem:[#allocation52_spill] sm:$0xff] }
 0x147   : > { %v12816_v42 = vpop.eup %12815 }
 0x148   : > { %v12818_v63 = vpop.eup %12817  ;;  %v1359_v13 = vmul.f32 0.5, %v12816_v42  ;;  %v16591_v42 = vld [vmem:[#allocation57_spill] sm:$0xff] }
 0x149   : > { %v1363_v62 = vmul.f32 0.5, %v12818_v63  ;;  %v12820_v27 = vpop.eup %12819  ;;  %v16590_v63 = vld [vmem:[#allocation56_spill] sm:$0xff] }
 0x14a   : > { %v1360_v49 = vadd.f32 0.5, %v1359_v13  ;;  %v12822_v5 = vpop.eup %12821  ;;  %v16589_v13 = vld [vmem:[#allocation55_spill] sm:$0xff] }
 0x14b   : > { %v1364_v32 = vadd.f32 0.5, %v1363_v62  ;;  %v1368_v12 = vmul.f32 0.5, %v12822_v5  ;;  %v16588_v62 = vld [vmem:[#allocation54_spill] sm:$0xff]  ;;  %v16597_v5 = vld [vmem:[#allocation63_spill] sm:$0xff] }
 0x14c   : > { %v1371_v25 = vmul.f32 %v12820_v27, %v1360_v49  ;;  %v16592_v49 = vld [vmem:[#allocation58_spill] sm:$0xff]  ;;  %v16594_v27 = vld [vmem:[#allocation60_spill] sm:$0xff] }
 0x14d   : > { %v1370_v26 = vmul.f32 %v1364_v32, %v1204_v19  ;;  %v1369_v33 = vadd.f32 0.5, %v1368_v12  ;;  %v16593_v19 = vld [vmem:[#allocation59_spill] sm:$0xff]  ;;  %v16595_v32 = vld [vmem:[#allocation61_spill] sm:$0xff]  ;;  %v16598_v12 = vld [vmem:[#allocation64_spill] sm:$0xff] }
 0x14f   : > { %v14331_v6 = vadd.f32 %v1371_v25, %v1370_v26  ;;  %v16587_v25 = vld [vmem:[#allocation53_spill] sm:$0xff]  ;;  %v16596_v26 = vld [vmem:[#allocation62_spill] sm:$0xff] }
 0x151   : > { %12823 = vtanh.f32 %v14331_v6 }
 0x15b   : > { %v12824_v60 = vpop.eup %12823 }
 0x15c   : > { %v1374_v28 = vmul.f32 %v12824_v60, %v1369_v33  ;;  %v16599_v33 = vld [vmem:[#allocation65_spill] sm:$0xff]  ;;  %v16600_v60 = vld [vmem:[#allocation66_spill] sm:$0xff] }
 0x15e   : > { %1582 = vmatmul.mubr.f32.vlgmr.msra.gmra.mrb[32].mxu0 %v1374_v28  ;;  %1653 = vmatmul.mubr.f32.vlgmr.msra.gmra.mrb[32].mxu1 %v1374_v28 }
 0x15f   : > { %9656 = vmatpush1.bf16.msra.mxu0 %v13370_v22  ;;  %9688 = vmatpush1.bf16.msra.mxu1 %v13393_v30 }
 0x160   : > { %9658 = vmatprep.subr.bf16.mxu0 %v13391_v29  ;;  %9690 = vmatprep.subr.bf16.mxu1 %v13425_v40 }
 0x161   : > { %1770 = vmatprep.mubr.f32.mxu0 %v16556_v48  ;;  %1841 = vmatprep.mubr.f32.mxu1 %v16556_v48 }
 0x163   : > { %9660 = vmatpush1.bf16.msra.mxu0 %v13412_v36  ;;  %9692 = vmatpush1.bf16.msra.mxu1 %v13440_v45 }
 0x164   : > { %9662 = vmatprep.subr.bf16.mxu0 %v13427_v41  ;;  %9694 = vmatprep.subr.bf16.mxu1 %v13470_v55 }
 0x167   : > { %9664 = vmatpush1.bf16.msra.mxu0 %v13459_v51  ;;  %9696 = vmatpush1.bf16.msra.mxu1 %v13482_v59 }
 0x168   : > { %9666 = vmatprep.subr.bf16.mxu0 %v13472_v56  ;;  %9698 = vmatprep.subr.bf16.mxu1 %v13510_v3 }
 0x16b   : > { %9668 = vmatpush1.bf16.msra.mxu0 %v13506_v2  ;;  %9700 = vmatpush1.bf16.msra.mxu1 %v13525_v8 }
 0x16c   : > { %9670 = vmatprep.subr.bf16.mxu0 %v13512_v4  ;;  %9702 = vmatprep.subr.bf16.mxu1 %v13551_v17 }
 0x16f   : > { %9672 = vmatpush1.bf16.msra.mxu0 %v13547_v16  ;;  %9704 = vmatpush1.bf16.msra.mxu1 %v13566_v24 }
 0x170   : > { %9674 = vmatprep.subr.bf16.mxu0 %v13553_v18  ;;  %9706 = vmatprep.subr.bf16.mxu1 %v13592_v35 }
 0x173   : > { %9676 = vmatpush1.bf16.msra.mxu0 %v13588_v34  ;;  %9708 = vmatpush1.bf16.msra.mxu1 %v13607_v43 }
 0x174   : > { %9678 = vmatprep.subr.bf16.mxu0 %v13594_v37  ;;  %9710 = vmatprep.subr.bf16.mxu1 %v13633_v53 }
 0x177   : > { %9680 = vmatpush1.bf16.msra.mxu0 %v13629_v52  ;;  %9712 = vmatpush1.bf16.msra.mxu1 %v13648_v61 }
 0x178   : > { %9682 = vmatprep.subr.bf16.mxu0 %v13635_v54  ;;  %9714 = vmatprep.subr.bf16.mxu1 %v13674_v10 }
 0x17b   : > { %9684 = vmatpush1.bf16.msra.mxu0 %v13670_v7  ;;  %9716 = vmatpush1.bf16.msra.mxu1 %v13686_v14 }
 0x17c   : > { %9718 = vmatprep.subr.bf16.mxu0 %v13676_v11  ;;  %9750 = vmatprep.subr.bf16.mxu1 %v13693_v20 }
 0x17e   : > { %1771 = vmatmul.mubr.f32.vlgmr.msra.gmra.mrb[2].mxu0 %v1374_v28  ;;  %1842 = vmatmul.mubr.f32.vlgmr.msra.gmra.mrb[2].mxu1 %v1374_v28  ;;  %v16601_v28 = vld [vmem:[#allocation67_spill] sm:$0xff] }
 0x17f   : > { %9720 = vmatpush1.bf16.msra.mxu0 %v13761_v50  ;;  %9752 = vmatpush1.bf16.msra.mxu1 %v13764_v57 }
 0x180   : > { %9722 = vmatprep.subr.bf16.mxu0 %v13766_v58  ;;  %9754 = vmatprep.subr.bf16.mxu1 %v13777_v0 }
 0x181   : > { %1934 = vmatprep.mubr.f32.mxu0 %v16556_v48  ;;  %2005 = vmatprep.mubr.f32.mxu1 %v16556_v48 }
 0x183   : > { %9724 = vmatpush1.bf16.msra.mxu0 %v13795_v15  ;;  %9756 = vmatpush1.bf16.msra.mxu1 %v13799_v21 }
 0x184   : > { %9726 = vmatprep.subr.bf16.mxu0 %v13801_v23  ;;  %9758 = vmatprep.subr.bf16.mxu1 %v13813_v31 }
 0x187   : > { %9728 = vmatpush1.bf16.msra.mxu0 %v13833_v44  ;;  %9760 = vmatpush1.bf16.msra.mxu1 %v13837_v46 }
 0x188   : > { %9730 = vmatprep.subr.bf16.mxu0 %v13839_v47  ;;  %9762 = vmatprep.subr.bf16.mxu1 %v16586_v9 }
 0x18b   : > { %9732 = vmatpush1.bf16.msra.mxu0 %v16587_v25  ;;  %9764 = vmatpush1.bf16.msra.mxu1 %v16588_v62 }
 0x18c   : > { %9734 = vmatprep.subr.bf16.mxu0 %v16589_v13  ;;  %9766 = vmatprep.subr.bf16.mxu1 %v16590_v63 }
 0x18f   : > { %9736 = vmatpush1.bf16.msra.mxu0 %v16591_v42  ;;  %9768 = vmatpush1.bf16.msra.mxu1 %v16592_v49  ;;  %v16603_v49 = vld [vmem:[#allocation69_spill] sm:$0xff] }
 0x190   : > { %9738 = vmatprep.subr.bf16.mxu0 %v16593_v19  ;;  %9770 = vmatprep.subr.bf16.mxu1 %v16594_v27  ;;  %v16604_v19 = vld [vmem:[#allocation70_spill] sm:$0xff]  ;;  %v16605_v27 = vld [vmem:[#allocation71_spill] sm:$0xff] }
 0x193   : > { %9740 = vmatpush1.bf16.msra.mxu0 %v16595_v32  ;;  %9772 = vmatpush1.bf16.msra.mxu1 %v16596_v26  ;;  %v16606_v32 = vld [vmem:[#allocation72_spill] sm:$0xff] }
 0x194   : > { %9742 = vmatprep.subr.bf16.mxu0 %v16597_v5  ;;  %9774 = vmatprep.subr.bf16.mxu1 %v16598_v12  ;;  %v1202_v12 = vld [vmem:[%s16268_s6] sm:$0xf] }
 0x197   : > { %9744 = vmatpush1.bf16.msra.mxu0 %v16599_v33  ;;  %9776 = vmatpush1.bf16.msra.mxu1 %v16600_v60  ;;  %v16607_v33 = vsub.s32 0, %v14302_v39 }
 0x198   : > { %9746 = vmatprep.subr.bf16.mxu0 %v16601_v28  ;;  %9778 = vmatprep.subr.bf16.mxu1 %v16602_v38  ;;  %v16609_v28 = vsub.s32 1, %v14302_v39 }
 0x199   : > { %v14407_v5 = vrot.slane %v1202_v12, %v16607_v33 }
 0x19a   : > { %v14411_v60 = vrot.slane %v1202_v12, %v16609_v28  ;;  %v16613_v28 = vsub.s32 3, %v14302_v39 }
 0x19b   : > { %9748 = vmatpush1.bf16.msra.mxu0 %v16603_v49  ;;  %9780 = vmatpush1.bf16.msra.mxu1 %v16604_v19  ;;  %16608 = vst [vmem:[#allocation107_spill] sm:$0xff] %v14407_v5 }
 0x19c   : > { %9782 = vmatprep.subr.bf16.mxu0 %v16605_v27  ;;  %9814 = vmatprep.subr.bf16.mxu1 %v16606_v32  ;;  %16610 = vst [vmem:[#allocation108_spill] sm:$0xff] %v14411_v60  ;;  %v16611_v27 = vsub.s32 2, %v14302_v39  ;;  %v14422_v25 = vrot.slane %v1202_v12, %v16613_v28 }
 0x19e   : > { %v14416_v26 = vrot.slane %v1202_v12, %v16611_v27  ;;  %16614 = vst [vmem:[#allocation110_spill] sm:$0xff] %v14422_v25 }
 0x1a0   : > { %16612 = vst [vmem:[#allocation109_spill] sm:$0xff] %v14416_v26 }
 0x231   : > { %v1583_v38 = vpop.f32.mrb[32].mxu0  ;;  %v1654_v49 = vpop.f32.mrb[32].mxu1 }
 0x232   : > { %v1680_v19 = vadd.f32 %v14407_v5, %v1583_v38  ;;  %v1585_v32 = vpop.f32.mrb[33].mxu0  ;;  %v1656_v42 = vpop.f32.mrb[33].mxu1  ;;  %v1682_v33 = vadd.f32 %v14416_v26, %v1654_v49 }
 0x233   : > { %v1681_v63 = vadd.f32 %v14411_v60, %v1585_v32  ;;  %v1683_v38 = vadd.f32 %v14422_v25, %v1656_v42 }
 0x234   : > { %v1684_v13 = vmul.f32 0.5, %v1680_v19  ;;  %v1206_v19 = vld [vmem:[#allocation5] sm:$0xff] }
 0x235   : > { %v1688_v62 = vmul.f32 0.5, %v1681_v63  ;;  %v1693_v5 = vmul.f32 0.5, %v1683_v38 }
 0x236   : > { %12825 = vtanh.f32 %v1684_v13 }
 0x237   : > { %12827 = vtanh.f32 %v1688_v62 }
 0x238   : > { %12829 = vtanh.f32 %v1682_v33  ;;  %v16615_v33 = vld [vmem:[#allocation103_spill] sm:$0xff] }
 0x239   : > { %12831 = vtanh.f32 %v1693_v5  ;;  %v16616_v5 = vld [vmem:[#allocation104_spill] sm:$0xff] }
 0x240   : > { %v12826_v27 = vpop.eup %12825 }
 0x241   : > { %v12828_v9 = vpop.eup %12827  ;;  %v1686_v47 = vmul.f32 0.5, %v12826_v27 }
 0x242   : > { %v1690_v46 = vmul.f32 0.5, %v12828_v9  ;;  %v12830_v63 = vpop.eup %12829 }
 0x243   : > { %v1687_v32 = vadd.f32 0.5, %v1686_v47  ;;  %v12832_v39 = vpop.eup %12831 }
 0x244   : > { %v1691_v13 = vadd.f32 0.5, %v1690_v46  ;;  %v1695_v62 = vmul.f32 0.5, %v12832_v39  ;;  %v16621_v39 = vld [vmem:[#allocation76_spill] sm:$0xff] }
 0x245   : > { %v1698_v60 = vmul.f32 %v12830_v63, %v1687_v32  ;;  %v16618_v63 = vld [vmem:[#allocation73_spill] sm:$0xff] }
 0x246   : > { %v1697_v49 = vmul.f32 %v1691_v13, %v1206_v19  ;;  %v1696_v9 = vadd.f32 0.5, %v1695_v62  ;;  %v16619_v13 = vld [vmem:[#allocation74_spill] sm:$0xff] }
 0x248   : > { %v14425_v26 = vadd.f32 %v1698_v60, %v1697_v49  ;;  %v16617_v60 = vld [vmem:[#allocation105_spill] sm:$0xff]  ;;  %v16620_v49 = vld [vmem:[#allocation75_spill] sm:$0xff] }
 0x24a   : > { %12833 = vtanh.f32 %v14425_v26 }
 0x251   : > { %v1772_v12 = vpop.f32.mrb[2].mxu0  ;;  %v1843_v42 = vpop.f32.mrb[2].mxu1 }
 0x252   : > { %v12580_v28 = vadd.f32 %v1772_v12, %v16615_v33  ;;  %v1774_v38 = vpop.f32.mrb[3].mxu0  ;;  %v1845_v27 = vpop.f32.mrb[3].mxu1  ;;  %v12612_v19 = vadd.f32 %v1843_v42, %v16617_v60  ;;  %v16624_v12 = vld [vmem:[#allocation79_spill] sm:$0xff]  ;;  %v16625_v42 = vld [vmem:[#allocation80_spill] sm:$0xff] }
 0x253   : > { %v12581_v47 = vadd.f32 %v1774_v38, %v16616_v5  ;;  %v12613_v62 = vadd.f32 %v1845_v27, %v14328_v1 }
 0x254   : > { %v12834_v25 = vpop.eup %12833  ;;  %v1852_v44 = vmul.f32 0.5, %v12580_v28 }
 0x255   : > { %v1701_v46 = vmul.f32 %v12834_v25, %v1696_v9  ;;  %v1856_v32 = vmul.f32 0.5, %v12581_v47  ;;  %v16623_v25 = vld [vmem:[#allocation78_spill] sm:$0xff]  ;;  %v1861_v28 = vmul.f32 0.5, %v12613_v62  ;;  %v16626_v9 = vld [vmem:[#allocation81_spill] sm:$0xff] }
 0x256   : > { %12835 = vtanh.f32 %v1852_v44  ;;  %v16622_v44 = vld [vmem:[#allocation77_spill] sm:$0xff]  ;;  %v16627_v47 = vld [vmem:[#allocation82_spill] sm:$0xff] }
 0x257   : > { %12837 = vtanh.f32 %v1856_v32  ;;  %1935 = vmatmul.mubr.f32.vlgmr.msra.gmra.mrb[34].mxu0 %v1701_v46  ;;  %2006 = vmatmul.mubr.f32.vlgmr.msra.gmra.mrb[34].mxu1 %v1701_v46  ;;  %v16628_v32 = vld [vmem:[#allocation83_spill] sm:$0xff] }
 0x258   : > { %9784 = vmatpush1.bf16.msra.mxu0 %v16618_v63  ;;  %9816 = vmatpush1.bf16.msra.mxu1 %v16619_v13  ;;  %12839 = vtanh.f32 %v12612_v19  ;;  %v16629_v19 = vld [vmem:[#allocation84_spill] sm:$0xff] }
 0x259   : > { %9786 = vmatprep.subr.bf16.mxu0 %v16620_v49  ;;  %9818 = vmatprep.subr.bf16.mxu1 %v16621_v39  ;;  %12841 = vtanh.f32 %v1861_v28  ;;  %v16632_v49 = vld [vmem:[#allocation87_spill] sm:$0xff] }
 0x25a   : > { %2076 = vmatprep.mubr.f32.mxu0 %v16556_v48  ;;  %2147 = vmatprep.mubr.f32.mxu1 %v16556_v48  ;;  %v16637_v28 = vld [vmem:[#allocation91_spill] sm:$0xff] }
 0x25c   : > { %9788 = vmatpush1.bf16.msra.mxu0 %v16622_v44  ;;  %9820 = vmatpush1.bf16.msra.mxu1 %v16623_v25 }
 0x25d   : > { %9790 = vmatprep.subr.bf16.mxu0 %v16624_v12  ;;  %9822 = vmatprep.subr.bf16.mxu1 %v16625_v42  ;;  %v16630_v12 = vld [vmem:[#allocation85_spill] sm:$0xff]  ;;  %v16631_v42 = vld [vmem:[#allocation86_spill] sm:$0xff] }
 0x260   : > { %v12836_v38 = vpop.eup %12835  ;;  %9792 = vmatpush1.bf16.msra.mxu0 %v16626_v9  ;;  %9824 = vmatpush1.bf16.msra.mxu1 %v16627_v47  ;;  %v16633_v9 = vld [vmem:[#allocation88_spill] sm:$0xff] }
 0x261   : > { %v12838_v46 = vpop.eup %12837  ;;  %v1854_v27 = vmul.f32 0.5, %v12836_v38  ;;  %9794 = vmatprep.subr.bf16.mxu0 %v16628_v32  ;;  %9826 = vmatprep.subr.bf16.mxu1 %v16629_v19  ;;  %v16635_v32 = vld [vmem:[#allocation89_spill] sm:$0xff] }
 0x262   : > { %v1858_v1 = vmul.f32 0.5, %v12838_v46  ;;  %v12840_v25 = vpop.eup %12839  ;;  %v16636_v46 = vld [vmem:[#allocation90_spill] sm:$0xff] }
 0x263   : > { %v1855_v44 = vadd.f32 0.5, %v1854_v27  ;;  %v12842_v27 = vpop.eup %12841 }
 0x264   : > { %v1859_v39 = vadd.f32 0.5, %v1858_v1  ;;  %9796 = vmatpush1.bf16.msra.mxu0 %v16630_v12  ;;  %9828 = vmatpush1.bf16.msra.mxu1 %v16631_v42  ;;  %v16638_v1 = vld [vmem:[#allocation92_spill] sm:$0xff] }
 0x265   : > { %v1866_v62 = vmul.f32 %v12840_v25, %v1855_v44  ;;  %9798 = vmatprep.subr.bf16.mxu0 %v16632_v49  ;;  %9830 = vmatprep.subr.bf16.mxu1 %v16633_v9  ;;  %v16639_v44 = vld [vmem:[#allocation93_spill] sm:$0xff]  ;;  %v16640_v25 = vld [vmem:[#allocation94_spill] sm:$0xff]  ;;  %v16641_v9 = vld [vmem:[#allocation95_spill] sm:$0xff] }
 0x266   : > { %v1865_v38 = vmul.f32 %v1859_v39, %v14331_v6  ;;  %v16642_v6 = vld [vmem:[#allocation96_spill] sm:$0xff]  ;;  %v1863_v39 = vmul.f32 0.5, %v12842_v27  ;;  %v16649_v49 = vld [vmem:[#allocation11_spill] sm:$0xff] }
 0x267   : > { %v16653_v27 = vld [vmem:[#allocation51_spill] sm:$0xff] }
 0x268   : > { %v14451_v47 = vadd.f32 %v1866_v62, %v1865_v38  ;;  %9800 = vmatpush1.bf16.msra.mxu0 %v16635_v32  ;;  %9832 = vmatpush1.bf16.msra.mxu1 %v16636_v46  ;;  %v16643_v62 = vld [vmem:[#allocation97_spill] sm:$0xff]  ;;  %v16644_v38 = vld [vmem:[#allocation98_spill] sm:$0xff]  ;;  %v16645_v46 = vld [vmem:[#allocation99_spill] sm:$0xff] }
 0x269   : > { %9802 = vmatprep.subr.bf16.mxu0 %v16637_v28  ;;  %9834 = vmatprep.subr.bf16.mxu1 %v16638_v1  ;;  %v16646_v28 = vld [vmem:[#allocation100_spill] sm:$0xff]  ;;  %v1864_v1 = vadd.f32 0.5, %v1863_v39  ;;  %v16655_v39 = vld [vmem:[#allocation53_spill] sm:$0xff] }
 0x26a   : > { %16634 = vst [vmem:[#allocation103_spill] sm:$0xff] %v14451_v47  ;;  %12843 = vtanh.f32 %v14451_v47  ;;  %v16647_v47 = vld [vmem:[#allocation101_spill] sm:$0xff] }
 0x26c   : > { %9804 = vmatpush1.bf16.msra.mxu0 %v16639_v44  ;;  %9836 = vmatpush1.bf16.msra.mxu1 %v16640_v25  ;;  %v16648_v44 = vld [vmem:[#allocation102_spill] sm:$0xff] }
 0x26d   : > { %9806 = vmatprep.subr.bf16.mxu0 %v16641_v9  ;;  %9838 = vmatprep.subr.bf16.mxu1 %v16642_v6  ;;  %v16650_v9 = vld [vmem:[#allocation12_spill] sm:$0xff] }
 0x270   : > { %9808 = vmatpush1.bf16.msra.mxu0 %v16643_v62  ;;  %9840 = vmatpush1.bf16.msra.mxu1 %v16644_v38 }
 0x271   : > { %9810 = vmatprep.subr.bf16.mxu0 %v16645_v46  ;;  %9842 = vmatprep.subr.bf16.mxu1 %v16646_v28 }
 0x274   : > { %v12844_v32 = vpop.eup %12843  ;;  %9812 = vmatpush1.bf16.msra.mxu0 %v16647_v47  ;;  %9844 = vmatpush1.bf16.msra.mxu1 %v16648_v44 }
 0x275   : > { %v1869_v25 = vmul.f32 %v12844_v32, %v1864_v1  ;;  %9846 = vmatprep.subr.bf16.mxu0 %v16649_v49  ;;  %9878 = vmatprep.subr.bf16.mxu1 %v16650_v9  ;;  %v16651_v32 = vld [vmem:[#allocation49_spill] sm:$0xff]  ;;  %v16652_v1 = vld [vmem:[#allocation50_spill] sm:$0xff] }
 0x277   : > { %2077 = vmatmul.mubr.f32.vlgmr.msra.gmra.mrb[34].mxu0 %v1869_v25  ;;  %2148 = vmatmul.mubr.f32.vlgmr.msra.gmra.mrb[34].mxu1 %v1869_v25 }
 0x278   : > { %9848 = vmatpush1.bf16.msra.mxu0 %v13370_v22  ;;  %9880 = vmatpush1.bf16.msra.mxu1 %v13393_v30 }
 0x279   : > { %9850 = vmatprep.subr.bf16.mxu0 %v13391_v29  ;;  %9882 = vmatprep.subr.bf16.mxu1 %v13425_v40 }
 0x27a   : > { %2244 = vmatprep.mubr.f32.mxu0 %v16556_v48  ;;  %2315 = vmatprep.mubr.f32.mxu1 %v16556_v48 }
 0x27c   : > { %9852 = vmatpush1.bf16.msra.mxu0 %v13412_v36  ;;  %9884 = vmatpush1.bf16.msra.mxu1 %v13440_v45 }
 0x27d   : > { %9854 = vmatprep.subr.bf16.mxu0 %v13427_v41  ;;  %9886 = vmatprep.subr.bf16.mxu1 %v13470_v55 }
 0x280   : > { %9856 = vmatpush1.bf16.msra.mxu0 %v13459_v51  ;;  %9888 = vmatpush1.bf16.msra.mxu1 %v13482_v59 }
 0x281   : > { %9858 = vmatprep.subr.bf16.mxu0 %v13472_v56  ;;  %9890 = vmatprep.subr.bf16.mxu1 %v13510_v3 }
 0x284   : > { %9860 = vmatpush1.bf16.msra.mxu0 %v13506_v2  ;;  %9892 = vmatpush1.bf16.msra.mxu1 %v13525_v8 }
 0x285   : > { %9862 = vmatprep.subr.bf16.mxu0 %v13512_v4  ;;  %9894 = vmatprep.subr.bf16.mxu1 %v13551_v17 }
 0x288   : > { %9864 = vmatpush1.bf16.msra.mxu0 %v13547_v16  ;;  %9896 = vmatpush1.bf16.msra.mxu1 %v13566_v24 }
 0x289   : > { %9866 = vmatprep.subr.bf16.mxu0 %v13553_v18  ;;  %9898 = vmatprep.subr.bf16.mxu1 %v13592_v35 }
 0x28c   : > { %9868 = vmatpush1.bf16.msra.mxu0 %v13588_v34  ;;  %9900 = vmatpush1.bf16.msra.mxu1 %v13607_v43 }
 0x28d   : > { %9870 = vmatprep.subr.bf16.mxu0 %v13594_v37  ;;  %9902 = vmatprep.subr.bf16.mxu1 %v13633_v53 }
 0x290   : > { %9872 = vmatpush1.bf16.msra.mxu0 %v13629_v52  ;;  %9904 = vmatpush1.bf16.msra.mxu1 %v13648_v61 }
 0x291   : > { %9874 = vmatprep.subr.bf16.mxu0 %v13635_v54  ;;  %9906 = vmatprep.subr.bf16.mxu1 %v13674_v10 }
 0x294   : > { %9876 = vmatpush1.bf16.msra.mxu0 %v13670_v7  ;;  %9908 = vmatpush1.bf16.msra.mxu1 %v13686_v14 }
 0x295   : > { %9910 = vmatprep.subr.bf16.mxu0 %v13676_v11  ;;  %9942 = vmatprep.subr.bf16.mxu1 %v13693_v20  ;;  %v16676_v20 = vld [vmem:[#allocation108_spill] sm:$0xff] }
 0x297   : > { %2245 = vmatmul.mubr.f32.vlgmr.msra.gmra.mrb[4].mxu0 %v1869_v25  ;;  %2316 = vmatmul.mubr.f32.vlgmr.msra.gmra.mrb[4].mxu1 %v1869_v25  ;;  %v16654_v25 = vld [vmem:[#allocation52_spill] sm:$0xff] }
 0x298   : > { %9912 = vmatpush1.bf16.msra.mxu0 %v13761_v50  ;;  %9944 = vmatpush1.bf16.msra.mxu1 %v13764_v57  ;;  %v16675_v57 = vld [vmem:[#allocation107_spill] sm:$0xff] }
 0x299   : > { %9914 = vmatprep.subr.bf16.mxu0 %v13766_v58  ;;  %9946 = vmatprep.subr.bf16.mxu1 %v13777_v0  ;;  %v16656_v0 = vld [vmem:[#allocation54_spill] sm:$0xff]  ;;  %v16657_v58 = vld [vmem:[#allocation55_spill] sm:$0xff] }
 0x29a   : > { %2408 = vmatprep.mubr.f32.mxu0 %v16556_v48  ;;  %2479 = vmatprep.mubr.f32.mxu1 %v16556_v48 }
 0x29c   : > { %9916 = vmatpush1.bf16.msra.mxu0 %v13795_v15  ;;  %9948 = vmatpush1.bf16.msra.mxu1 %v13799_v21  ;;  %v16658_v15 = vld [vmem:[#allocation56_spill] sm:$0xff]  ;;  %v16659_v21 = vld [vmem:[#allocation57_spill] sm:$0xff] }
 0x29d   : > { %9918 = vmatprep.subr.bf16.mxu0 %v13801_v23  ;;  %9950 = vmatprep.subr.bf16.mxu1 %v13813_v31  ;;  %v16660_v23 = vld [vmem:[#allocation58_spill] sm:$0xff]  ;;  %v16661_v31 = vld [vmem:[#allocation59_spill] sm:$0xff] }
 0x2a0   : > { %9920 = vmatpush1.bf16.msra.mxu0 %v16651_v32  ;;  %9952 = vmatpush1.bf16.msra.mxu1 %v16652_v1  ;;  %v16662_v32 = vld [vmem:[#allocation60_spill] sm:$0xff]  ;;  %v16663_v1 = vld [vmem:[#allocation61_spill] sm:$0xff] }
 0x2a1   : > { %9922 = vmatprep.subr.bf16.mxu0 %v16653_v27  ;;  %9954 = vmatprep.subr.bf16.mxu1 %v16654_v25  ;;  %v16664_v27 = vld [vmem:[#allocation62_spill] sm:$0xff]  ;;  %v16665_v25 = vld [vmem:[#allocation63_spill] sm:$0xff] }
 0x2a4   : > { %9924 = vmatpush1.bf16.msra.mxu0 %v16655_v39  ;;  %9956 = vmatpush1.bf16.msra.mxu1 %v16656_v0  ;;  %v16666_v39 = vld [vmem:[#allocation64_spill] sm:$0xff]  ;;  %v16667_v0 = vld [vmem:[#allocation65_spill] sm:$0xff] }
 0x2a5   : > { %9926 = vmatprep.subr.bf16.mxu0 %v16657_v58  ;;  %9958 = vmatprep.subr.bf16.mxu1 %v16658_v15  ;;  %v16668_v58 = vld [vmem:[#allocation66_spill] sm:$0xff]  ;;  %v16669_v15 = vld [vmem:[#allocation67_spill] sm:$0xff] }
 0x2a8   : > { %9928 = vmatpush1.bf16.msra.mxu0 %v16659_v21  ;;  %9960 = vmatpush1.bf16.msra.mxu1 %v16660_v23  ;;  %v16670_v21 = vld [vmem:[#allocation68_spill] sm:$0xff]  ;;  %v16671_v23 = vld [vmem:[#allocation69_spill] sm:$0xff] }
 0x2a9   : > { %9930 = vmatprep.subr.bf16.mxu0 %v16661_v31  ;;  %9962 = vmatprep.subr.bf16.mxu1 %v16662_v32  ;;  %v16672_v31 = vld [vmem:[#allocation70_spill] sm:$0xff]  ;;  %v16673_v32 = vld [vmem:[#allocation71_spill] sm:$0xff] }
 0x2ac   : > { %9932 = vmatpush1.bf16.msra.mxu0 %v16663_v1  ;;  %9964 = vmatpush1.bf16.msra.mxu1 %v16664_v27  ;;  %v16674_v1 = vld [vmem:[#allocation72_spill] sm:$0xff] }
 0x2ad   : > { %9934 = vmatprep.subr.bf16.mxu0 %v16665_v25  ;;  %9966 = vmatprep.subr.bf16.mxu1 %v16666_v39 }
 0x2b0   : > { %9936 = vmatpush1.bf16.msra.mxu0 %v16667_v0  ;;  %9968 = vmatpush1.bf16.msra.mxu1 %v16668_v58 }
 0x2b1   : > { %9938 = vmatprep.subr.bf16.mxu0 %v16669_v15  ;;  %9970 = vmatprep.subr.bf16.mxu1 %v16670_v21  ;;  %v16677_v21 = vld [vmem:[#allocation109_spill] sm:$0xff] }
 0x2b4   : > { %9940 = vmatpush1.bf16.msra.mxu0 %v16671_v23  ;;  %9972 = vmatpush1.bf16.msra.mxu1 %v16672_v31  ;;  %v16678_v31 = vld [vmem:[#allocation110_spill] sm:$0xff] }
 0x2b5   : > { %9974 = vmatprep.subr.bf16.mxu0 %v16673_v32  ;;  %10006 = vmatprep.subr.bf16.mxu1 %v16674_v1 }
 0x34a   : > { %v2078_v27 = vpop.f32.mrb[34].mxu0  ;;  %v2149_v25 = vpop.f32.mrb[34].mxu1 }
 0x34b   : > { %v2154_v39 = vadd.f32 %v2078_v27, %v16675_v57  ;;  %v2080_v50 = vpop.f32.mrb[35].mxu0  ;;  %v2151_v0 = vpop.f32.mrb[35].mxu1  ;;  %v2156_v14 = vadd.f32 %v2149_v25, %v16677_v21 }
 0x34c   : > { %v2155_v58 = vadd.f32 %v2080_v50, %v16676_v20  ;;  %v2157_v23 = vadd.f32 %v2151_v0, %v16678_v31 }
 0x34d   : > { %v2158_v11 = vmul.f32 0.5, %v2154_v39 }
 0x34e   : > { %v2162_v15 = vmul.f32 0.5, %v2155_v58  ;;  %v2167_v32 = vmul.f32 0.5, %v2157_v23 }
 0x34f   : > { %12845 = vtanh.f32 %v2158_v11 }
 0x350   : > { %12847 = vtanh.f32 %v2162_v15 }
 0x351   : > { %12849 = vtanh.f32 %v2156_v14 }
 0x352   : > { %12851 = vtanh.f32 %v2167_v32 }
 0x359   : > { %v12846_v7 = vpop.eup %12845 }
 0x35a   : > { %v12848_v1 = vpop.eup %12847  ;;  %v2160_v10 = vmul.f32 0.5, %v12846_v7 }
 0x35b   : > { %v2164_v54 = vmul.f32 0.5, %v12848_v1  ;;  %v12850_v57 = vpop.eup %12849 }
 0x35c   : > { %v2161_v27 = vadd.f32 0.5, %v2160_v10  ;;  %v12852_v11 = vpop.eup %12851 }
 0x35d   : > { %v2165_v61 = vadd.f32 0.5, %v2164_v54  ;;  %v2169_v14 = vmul.f32 0.5, %v12852_v11  ;;  %v16682_v11 = vld [vmem:[#allocation77_spill] sm:$0xff] }
 0x35e   : > { %v2172_v52 = vmul.f32 %v12850_v57, %v2161_v27  ;;  %v16681_v27 = vld [vmem:[#allocation106_spill] sm:$0xff] }
 0x35f   : > { %v2171_v50 = vmul.f32 %v2165_v61, %v14425_v26  ;;  %v2170_v1 = vadd.f32 0.5, %v2169_v14  ;;  %v16679_v61 = vld [vmem:[#allocation75_spill] sm:$0xff]  ;;  %v16680_v26 = vld [vmem:[#allocation76_spill] sm:$0xff]  ;;  %v16683_v14 = vld [vmem:[#allocation78_spill] sm:$0xff] }
 0x361   : > { %v14543_v58 = vadd.f32 %v2172_v52, %v2171_v50 }
 0x363   : > { %12853 = vtanh.f32 %v14543_v58 }
 0x36a   : > { %v2246_v15 = vpop.f32.mrb[4].mxu0  ;;  %v2317_v0 = vpop.f32.mrb[4].mxu1 }
 0x36b   : > { %v12582_v23 = vadd.f32 %v2246_v15, %v16615_v33  ;;  %v2248_v25 = vpop.f32.mrb[5].mxu0  ;;  %v2319_v7 = vpop.f32.mrb[5].mxu1  ;;  %v12614_v52 = vadd.f32 %v2317_v0, %v16617_v60  ;;  %v16684_v15 = vld [vmem:[#allocation79_spill] sm:$0xff]  ;;  %v16685_v0 = vld [vmem:[#allocation80_spill] sm:$0xff] }
 0x36c   : > { %v12583_v10 = vadd.f32 %v2248_v25, %v16616_v5  ;;  %v12615_v50 = vadd.f32 %v2319_v7, %v16681_v27 }
 0x36d   : > { %v12854_v32 = vpop.eup %12853  ;;  %v2326_v54 = vmul.f32 0.5, %v12582_v23 }
 0x36e   : > { %v2175_v57 = vmul.f32 %v12854_v32, %v2170_v1  ;;  %v2330_v39 = vmul.f32 0.5, %v12583_v10  ;;  %v2335_v23 = vmul.f32 0.5, %v12615_v50  ;;  %v16686_v1 = vld [vmem:[#allocation81_spill] sm:$0xff]  ;;  %v16687_v10 = vld [vmem:[#allocation82_spill] sm:$0xff] }
 0x36f   : > { %12855 = vtanh.f32 %v2326_v54  ;;  %v16688_v54 = vld [vmem:[#allocation83_spill] sm:$0xff] }
 0x370   : > { %12857 = vtanh.f32 %v2330_v39  ;;  %2409 = vmatmul.mubr.f32.vlgmr.msra.gmra.mrb[36].mxu0 %v2175_v57  ;;  %2480 = vmatmul.mubr.f32.vlgmr.msra.gmra.mrb[36].mxu1 %v2175_v57 }
 0x371   : > { %9976 = vmatpush1.bf16.msra.mxu0 %v16618_v63  ;;  %10008 = vmatpush1.bf16.msra.mxu1 %v16619_v13  ;;  %12859 = vtanh.f32 %v12614_v52 }
 0x372   : > { %9978 = vmatprep.subr.bf16.mxu0 %v16679_v61  ;;  %10010 = vmatprep.subr.bf16.mxu1 %v16680_v26  ;;  %12861 = vtanh.f32 %v2335_v23  ;;  %v16694_v23 = vld [vmem:[#allocation91_spill] sm:$0xff] }
 0x373   : > { %2550 = vmatprep.mubr.f32.mxu0 %v16556_v48  ;;  %2621 = vmatprep.mubr.f32.mxu1 %v16556_v48 }
 0x375   : > { %9980 = vmatpush1.bf16.msra.mxu0 %v16682_v11  ;;  %10012 = vmatpush1.bf16.msra.mxu1 %v16683_v14 }
 0x376   : > { %9982 = vmatprep.subr.bf16.mxu0 %v16684_v15  ;;  %10014 = vmatprep.subr.bf16.mxu1 %v16685_v0  ;;  %v16689_v0 = vld [vmem:[#allocation87_spill] sm:$0xff] }
 0x379   : > { %v12856_v25 = vpop.eup %12855  ;;  %9984 = vmatpush1.bf16.msra.mxu0 %v16686_v1  ;;  %10016 = vmatpush1.bf16.msra.mxu1 %v16687_v10  ;;  %v16690_v1 = vld [vmem:[#allocation88_spill] sm:$0xff]  ;;  %v16691_v10 = vld [vmem:[#allocation103_spill] sm:$0xff] }
 0x37a   : > { %v12858_v32 = vpop.eup %12857  ;;  %v2328_v7 = vmul.f32 0.5, %v12856_v25  ;;  %9986 = vmatprep.subr.bf16.mxu0 %v16688_v54  ;;  %10018 = vmatprep.subr.bf16.mxu1 %v16629_v19  ;;  %v16692_v54 = vld [vmem:[#allocation89_spill] sm:$0xff] }
 0x37b   : > { %v2332_v57 = vmul.f32 0.5, %v12858_v32  ;;  %v12860_v52 = vpop.eup %12859  ;;  %v16693_v32 = vld [vmem:[#allocation90_spill] sm:$0xff] }
 0x37c   : > { %v2329_v39 = vadd.f32 0.5, %v2328_v7  ;;  %v16695_v7 = vld [vmem:[#allocation92_spill] sm:$0xff] }
 0x37d   : > { %v2333_v14 = vadd.f32 0.5, %v2332_v57  ;;  %9988 = vmatpush1.bf16.msra.mxu0 %v16630_v12  ;;  %10020 = vmatpush1.bf16.msra.mxu1 %v16631_v42  ;;  %v12862_v57 = vpop.eup %12861 }
 0x37e   : > { %v2340_v50 = vmul.f32 %v12860_v52, %v2329_v39  ;;  %9990 = vmatprep.subr.bf16.mxu0 %v16689_v0  ;;  %10022 = vmatprep.subr.bf16.mxu1 %v16690_v1  ;;  %v16696_v39 = vld [vmem:[#allocation93_spill] sm:$0xff]  ;;  %v16697_v52 = vld [vmem:[#allocation94_spill] sm:$0xff]  ;;  %v16698_v1 = vld [vmem:[#allocation95_spill] sm:$0xff] }
 0x37f   : > { %v2339_v25 = vmul.f32 %v2333_v14, %v16691_v10  ;;  %v2337_v14 = vmul.f32 0.5, %v12862_v57  ;;  %v16699_v57 = vld [vmem:[#allocation32_spill] sm:$0xff] }
 0x381   : > { %v14569_v15 = vadd.f32 %v2340_v50, %v2339_v25  ;;  %9992 = vmatpush1.bf16.msra.mxu0 %v16692_v54  ;;  %10024 = vmatpush1.bf16.msra.mxu1 %v16693_v32  ;;  %v2338_v10 = vadd.f32 0.5, %v2337_v14  ;;  %v16700_v14 = vld [vmem:[#allocation35_spill] sm:$0xff] }
 0x382   : > { %9994 = vmatprep.subr.bf16.mxu0 %v16694_v23  ;;  %10026 = vmatprep.subr.bf16.mxu1 %v16695_v7 }
 0x383   : > { %12863 = vtanh.f32 %v14569_v15 }
 0x385   : > { %9996 = vmatpush1.bf16.msra.mxu0 %v16696_v39  ;;  %10028 = vmatpush1.bf16.msra.mxu1 %v16697_v52 }
 0x386   : > { %9998 = vmatprep.subr.bf16.mxu0 %v16698_v1  ;;  %10030 = vmatprep.subr.bf16.mxu1 %v16642_v6 }
 0x389   : > { %10000 = vmatpush1.bf16.msra.mxu0 %v16643_v62  ;;  %10032 = vmatpush1.bf16.msra.mxu1 %v16644_v38 }
 0x38a   : > { %10002 = vmatprep.subr.bf16.mxu0 %v16645_v46  ;;  %10034 = vmatprep.subr.bf16.mxu1 %v16646_v28 }
 0x38d   : > { %v12864_v50 = vpop.eup %12863  ;;  %10004 = vmatpush1.bf16.msra.mxu0 %v16647_v47  ;;  %10036 = vmatpush1.bf16.msra.mxu1 %v16648_v44 }
 0x38e   : > { %v2343_v25 = vmul.f32 %v12864_v50, %v2338_v10  ;;  %10038 = vmatprep.subr.bf16.mxu0 %v16649_v49  ;;  %10070 = vmatprep.subr.bf16.mxu1 %v16650_v9  ;;  %v16701_v10 = vld [vmem:[#allocation34_spill] sm:$0xff]  ;;  %v16702_v50 = vld [vmem:[#allocation37_spill] sm:$0xff] }
 0x390   : > { %2551 = vmatmul.mubr.f32.vlgmr.msra.gmra.mrb[36].mxu0 %v2343_v25  ;;  %2622 = vmatmul.mubr.f32.vlgmr.msra.gmra.mrb[36].mxu1 %v2343_v25 }
 0x391   : > { %10040 = vmatpush1.bf16.msra.mxu0 %v13370_v22  ;;  %10072 = vmatpush1.bf16.msra.mxu1 %v13393_v30 }
 0x392   : > { %10042 = vmatprep.subr.bf16.mxu0 %v13391_v29  ;;  %10074 = vmatprep.subr.bf16.mxu1 %v13425_v40 }
 0x393   : > { %2718 = vmatprep.mubr.f32.mxu0 %v16556_v48  ;;  %2789 = vmatprep.mubr.f32.mxu1 %v16556_v48 }
 0x395   : > { %10044 = vmatpush1.bf16.msra.mxu0 %v13412_v36  ;;  %10076 = vmatpush1.bf16.msra.mxu1 %v13440_v45 }
 0x396   : > { %10046 = vmatprep.subr.bf16.mxu0 %v13427_v41  ;;  %10078 = vmatprep.subr.bf16.mxu1 %v13470_v55 }
 0x399   : > { %10048 = vmatpush1.bf16.msra.mxu0 %v13459_v51  ;;  %10080 = vmatpush1.bf16.msra.mxu1 %v13482_v59 }
 0x39a   : > { %10050 = vmatprep.subr.bf16.mxu0 %v13472_v56  ;;  %10082 = vmatprep.subr.bf16.mxu1 %v13510_v3 }
 0x39d   : > { %10052 = vmatpush1.bf16.msra.mxu0 %v13506_v2  ;;  %10084 = vmatpush1.bf16.msra.mxu1 %v13525_v8 }
 0x39e   : > { %10054 = vmatprep.subr.bf16.mxu0 %v13512_v4  ;;  %10086 = vmatprep.subr.bf16.mxu1 %v13551_v17 }
 0x3a1   : > { %10056 = vmatpush1.bf16.msra.mxu0 %v13547_v16  ;;  %10088 = vmatpush1.bf16.msra.mxu1 %v13566_v24  ;;  %v16703_v24 = vld [vmem:[#allocation36_spill] sm:$0xff] }
 0x3a2   : > { %10058 = vmatprep.subr.bf16.mxu0 %v13553_v18  ;;  %10090 = vmatprep.subr.bf16.mxu1 %v13592_v35  ;;  %v16704_v18 = vld [vmem:[#allocation39_spill] sm:$0xff]  ;;  %v16705_v35 = vld [vmem:[#allocation38_spill] sm:$0xff] }
 0x3a5   : > { %10060 = vmatpush1.bf16.msra.mxu0 %v13588_v34  ;;  %10092 = vmatpush1.bf16.msra.mxu1 %v13607_v43  ;;  %v16706_v34 = vld [vmem:[#allocation40_spill] sm:$0xff]  ;;  %v16739_v43 = vld [vmem:[#allocation107_spill] sm:$0xff] }
 0x3a6   : > { %10062 = vmatprep.subr.bf16.mxu0 %v13594_v37  ;;  %10094 = vmatprep.subr.bf16.mxu1 %v13633_v53  ;;  %v16707_v37 = vld [vmem:[#allocation41_spill] sm:$0xff]  ;;  %v16708_v53 = vld [vmem:[#allocation42_spill] sm:$0xff] }
 0x3a9   : > { %10064 = vmatpush1.bf16.msra.mxu0 %v16699_v57  ;;  %10096 = vmatpush1.bf16.msra.mxu1 %v16700_v14  ;;  %v16709_v57 = vld [vmem:[#allocation43_spill] sm:$0xff]  ;;  %v16710_v14 = vld [vmem:[#allocation44_spill] sm:$0xff] }
 0x3aa   : > { %10066 = vmatprep.subr.bf16.mxu0 %v16701_v10  ;;  %10098 = vmatprep.subr.bf16.mxu1 %v16702_v50  ;;  %v16720_v50 = vld [vmem:[#allocation54_spill] sm:$0xff]  ;;  %v16721_v10 = vld [vmem:[#allocation55_spill] sm:$0xff] }
 0x3ad   : > { %10068 = vmatpush1.bf16.msra.mxu0 %v16703_v24  ;;  %10100 = vmatpush1.bf16.msra.mxu1 %v16704_v18  ;;  %v16711_v24 = vld [vmem:[#allocation45_spill] sm:$0xff]  ;;  %v16712_v18 = vld [vmem:[#allocation46_spill] sm:$0xff] }
 0x3ae   : > { %10102 = vmatprep.subr.bf16.mxu0 %v16705_v35  ;;  %10134 = vmatprep.subr.bf16.mxu1 %v16706_v34  ;;  %v16713_v35 = vld [vmem:[#allocation47_spill] sm:$0xff]  ;;  %v16714_v34 = vld [vmem:[#allocation48_spill] sm:$0xff] }
 0x3b0   : > { %2719 = vmatmul.mubr.f32.vlgmr.msra.gmra.mrb[6].mxu0 %v2343_v25  ;;  %2790 = vmatmul.mubr.f32.vlgmr.msra.gmra.mrb[6].mxu1 %v2343_v25  ;;  %v16715_v25 = vld [vmem:[#allocation49_spill] sm:$0xff] }
 0x3b1   : > { %10104 = vmatpush1.bf16.msra.mxu0 %v16707_v37  ;;  %10136 = vmatpush1.bf16.msra.mxu1 %v16708_v53  ;;  %v16716_v37 = vld [vmem:[#allocation50_spill] sm:$0xff]  ;;  %v16717_v53 = vld [vmem:[#allocation51_spill] sm:$0xff] }
 0x3b2   : > { %10106 = vmatprep.subr.bf16.mxu0 %v16709_v57  ;;  %10138 = vmatprep.subr.bf16.mxu1 %v16710_v14  ;;  %v16718_v57 = vld [vmem:[#allocation52_spill] sm:$0xff]  ;;  %v16719_v14 = vld [vmem:[#allocation53_spill] sm:$0xff] }
 0x3b3   : > { %2882 = vmatprep.mubr.f32.mxu0 %v16556_v48  ;;  %2953 = vmatprep.mubr.f32.mxu1 %v16556_v48 }
 0x3b5   : > { %10108 = vmatpush1.bf16.msra.mxu0 %v16711_v24  ;;  %10140 = vmatpush1.bf16.msra.mxu1 %v16712_v18  ;;  %v16722_v24 = vld [vmem:[#allocation56_spill] sm:$0xff]  ;;  %v16723_v18 = vld [vmem:[#allocation57_spill] sm:$0xff] }
 0x3b6   : > { %10110 = vmatprep.subr.bf16.mxu0 %v16713_v35  ;;  %10142 = vmatprep.subr.bf16.mxu1 %v16714_v34  ;;  %v16724_v35 = vld [vmem:[#allocation58_spill] sm:$0xff]  ;;  %v16725_v34 = vld [vmem:[#allocation59_spill] sm:$0xff] }
 0x3b9   : > { %10112 = vmatpush1.bf16.msra.mxu0 %v16715_v25  ;;  %10144 = vmatpush1.bf16.msra.mxu1 %v16716_v37  ;;  %v16726_v25 = vld [vmem:[#allocation60_spill] sm:$0xff]  ;;  %v16727_v37 = vld [vmem:[#allocation61_spill] sm:$0xff] }
 0x3ba   : > { %10114 = vmatprep.subr.bf16.mxu0 %v16717_v53  ;;  %10146 = vmatprep.subr.bf16.mxu1 %v16718_v57  ;;  %v16728_v53 = vld [vmem:[#allocation62_spill] sm:$0xff]  ;;  %v16729_v57 = vld [vmem:[#allocation63_spill] sm:$0xff] }
 0x3bd   : > { %10116 = vmatpush1.bf16.msra.mxu0 %v16719_v14  ;;  %10148 = vmatpush1.bf16.msra.mxu1 %v16720_v50  ;;  %v16730_v14 = vld [vmem:[#allocation64_spill] sm:$0xff]  ;;  %v16731_v50 = vld [vmem:[#allocation65_spill] sm:$0xff] }
 0x3be   : > { %10118 = vmatprep.subr.bf16.mxu0 %v16721_v10  ;;  %10150 = vmatprep.subr.bf16.mxu1 %v16722_v24  ;;  %v16732_v10 = vld [vmem:[#allocation66_spill] sm:$0xff]  ;;  %v16733_v24 = vld [vmem:[#allocation67_spill] sm:$0xff] }
 0x3c1   : > { %10120 = vmatpush1.bf16.msra.mxu0 %v16723_v18  ;;  %10152 = vmatpush1.bf16.msra.mxu1 %v16724_v35  ;;  %v16734_v18 = vld [vmem:[#allocation68_spill] sm:$0xff]  ;;  %v16735_v35 = vld [vmem:[#allocation69_spill] sm:$0xff] }
 0x3c2   : > { %10122 = vmatprep.subr.bf16.mxu0 %v16725_v34  ;;  %10154 = vmatprep.subr.bf16.mxu1 %v16726_v25  ;;  %v16736_v34 = vld [vmem:[#allocation70_spill] sm:$0xff]  ;;  %v16737_v25 = vld [vmem:[#allocation71_spill] sm:$0xff] }
 0x3c5   : > { %10124 = vmatpush1.bf16.msra.mxu0 %v16727_v37  ;;  %10156 = vmatpush1.bf16.msra.mxu1 %v16728_v53  ;;  %v16738_v37 = vld [vmem:[#allocation72_spill] sm:$0xff] }
 0x3c6   : > { %10126 = vmatprep.subr.bf16.mxu0 %v16729_v57  ;;  %10158 = vmatprep.subr.bf16.mxu1 %v16730_v14 }
 0x3c9   : > { %10128 = vmatpush1.bf16.msra.mxu0 %v16731_v50  ;;  %10160 = vmatpush1.bf16.msra.mxu1 %v16732_v10 }
 0x3ca   : > { %10130 = vmatprep.subr.bf16.mxu0 %v16733_v24  ;;  %10162 = vmatprep.subr.bf16.mxu1 %v16734_v18 }
 0x3cd   : > { %10132 = vmatpush1.bf16.msra.mxu0 %v16735_v35  ;;  %10164 = vmatpush1.bf16.msra.mxu1 %v16736_v34 }
 0x3ce   : > { %10166 = vmatprep.subr.bf16.mxu0 %v16737_v25  ;;  %10198 = vmatprep.subr.bf16.mxu1 %v16738_v37 }
 0x463   : > { %v2552_v53 = vpop.f32.mrb[36].mxu0  ;;  %v2623_v57 = vpop.f32.mrb[36].mxu1 }
 0x464   : > { %v2628_v14 = vadd.f32 %v2552_v53, %v16739_v43  ;;  %v2554_v16 = vpop.f32.mrb[37].mxu0  ;;  %v2625_v50 = vpop.f32.mrb[37].mxu1  ;;  %v2630_v18 = vadd.f32 %v2623_v57, %v16677_v21 }
 0x465   : > { %v2629_v10 = vadd.f32 %v2554_v16, %v16676_v20  ;;  %v2631_v34 = vadd.f32 %v2625_v50, %v16678_v31 }
 0x466   : > { %v2632_v17 = vmul.f32 0.5, %v2628_v14 }
 0x467   : > { %v2636_v24 = vmul.f32 0.5, %v2629_v10  ;;  %v2641_v25 = vmul.f32 0.5, %v2631_v34 }
 0x468   : > { %12865 = vtanh.f32 %v2632_v17 }
 0x469   : > { %12867 = vtanh.f32 %v2636_v24 }
 0x46a   : > { %12869 = vtanh.f32 %v2630_v18 }
 0x46b   : > { %12871 = vtanh.f32 %v2641_v25 }
 0x472   : > { %v12866_v35 = vpop.eup %12865 }
 0x473   : > { %v12868_v37 = vpop.eup %12867  ;;  %v2634_v4 = vmul.f32 0.5, %v12866_v35 }
 0x474   : > { %v2638_v8 = vmul.f32 0.5, %v12868_v37  ;;  %v12870_v43 = vpop.eup %12869 }
 0x475   : > { %v2635_v53 = vadd.f32 0.5, %v2634_v4  ;;  %v12872_v17 = vpop.eup %12871 }
 0x476   : > { %v2639_v2 = vadd.f32 0.5, %v2638_v8  ;;  %v2643_v18 = vmul.f32 0.5, %v12872_v17 }
 0x477   : > { %v2646_v3 = vmul.f32 %v12870_v43, %v2635_v53  ;;  %v16741_v53 = vld [vmem:[#allocation79_spill] sm:$0xff] }
 0x478   : > { %v2645_v16 = vmul.f32 %v2639_v2, %v14543_v58  ;;  %v2644_v37 = vadd.f32 0.5, %v2643_v18  ;;  %v16740_v58 = vld [vmem:[#allocation78_spill] sm:$0xff] }
 0x47a   : > { %v14661_v14 = vadd.f32 %v2646_v3, %v2645_v16  ;;  %v16742_v16 = vld [vmem:[#allocation80_spill] sm:$0xff] }
 0x47c   : > { %12873 = vtanh.f32 %v14661_v14 }
 0x483   : > { %v2720_v24 = vpop.f32.mrb[6].mxu0  ;;  %v2791_v57 = vpop.f32.mrb[6].mxu1 }
 0x484   : > { %v12584_v34 = vadd.f32 %v2720_v24, %v16615_v33  ;;  %v2722_v10 = vpop.f32.mrb[7].mxu0  ;;  %v2793_v35 = vpop.f32.mrb[7].mxu1  ;;  %v12616_v2 = vadd.f32 %v2791_v57, %v16617_v60  ;;  %v16743_v24 = vld [vmem:[#allocation81_spill] sm:$0xff]  ;;  %v16744_v57 = vld [vmem:[#allocation82_spill] sm:$0xff] }
 0x485   : > { %v12585_v4 = vadd.f32 %v2722_v10, %v16616_v5  ;;  %v12617_v3 = vadd.f32 %v2793_v35, %v16681_v27  ;;  %v16745_v35 = vld [vmem:[#allocation83_spill] sm:$0xff] }
 0x486   : > { %v12874_v50 = vpop.eup %12873  ;;  %v2800_v8 = vmul.f32 0.5, %v12584_v34 }
 0x487   : > { %v2649_v43 = vmul.f32 %v12874_v50, %v2644_v37  ;;  %v2804_v25 = vmul.f32 0.5, %v12585_v4  ;;  %v2809_v17 = vmul.f32 0.5, %v12617_v3 }
 0x488   : > { %12875 = vtanh.f32 %v2800_v8 }
 0x489   : > { %12877 = vtanh.f32 %v2804_v25  ;;  %2883 = vmatmul.mubr.f32.vlgmr.msra.gmra.mrb[38].mxu0 %v2649_v43  ;;  %2954 = vmatmul.mubr.f32.vlgmr.msra.gmra.mrb[38].mxu1 %v2649_v43  ;;  %v16746_v25 = vld [vmem:[#allocation88_spill] sm:$0xff] }
 0x48a   : > { %10168 = vmatpush1.bf16.msra.mxu0 %v16618_v63  ;;  %10200 = vmatpush1.bf16.msra.mxu1 %v16619_v13  ;;  %12879 = vtanh.f32 %v12616_v2 }
 0x48b   : > { %10170 = vmatprep.subr.bf16.mxu0 %v16679_v61  ;;  %10202 = vmatprep.subr.bf16.mxu1 %v16680_v26  ;;  %12881 = vtanh.f32 %v2809_v17 }
 0x48c   : > { %3024 = vmatprep.mubr.f32.mxu0 %v16556_v48  ;;  %3095 = vmatprep.mubr.f32.mxu1 %v16556_v48 }
 0x48e   : > { %10172 = vmatpush1.bf16.msra.mxu0 %v16682_v11  ;;  %10204 = vmatpush1.bf16.msra.mxu1 %v16740_v58 }
 0x48f   : > { %10174 = vmatprep.subr.bf16.mxu0 %v16741_v53  ;;  %10206 = vmatprep.subr.bf16.mxu1 %v16742_v16 }
 0x492   : > { %v12876_v18 = vpop.eup %12875  ;;  %10176 = vmatpush1.bf16.msra.mxu0 %v16743_v24  ;;  %10208 = vmatpush1.bf16.msra.mxu1 %v16744_v57 }
 0x493   : > { %v12878_v34 = vpop.eup %12877  ;;  %v2802_v10 = vmul.f32 0.5, %v12876_v18  ;;  %10178 = vmatprep.subr.bf16.mxu0 %v16745_v35  ;;  %10210 = vmatprep.subr.bf16.mxu1 %v16629_v19 }
 0x494   : > { %v2806_v37 = vmul.f32 0.5, %v12878_v34  ;;  %v12880_v50 = vpop.eup %12879 }
 0x495   : > { %v2803_v4 = vadd.f32 0.5, %v2802_v10  ;;  %v12882_v17 = vpop.eup %12881 }
 0x496   : > { %v2807_v8 = vadd.f32 0.5, %v2806_v37  ;;  %10180 = vmatpush1.bf16.msra.mxu0 %v16630_v12  ;;  %10212 = vmatpush1.bf16.msra.mxu1 %v16631_v42  ;;  %v16747_v37 = vld [vmem:[#allocation21_spill] sm:$0xff] }
 0x497   : > { %v2814_v43 = vmul.f32 %v12880_v50, %v2803_v4  ;;  %10182 = vmatprep.subr.bf16.mxu0 %v16689_v0  ;;  %10214 = vmatprep.subr.bf16.mxu1 %v16746_v25  ;;  %v16748_v4 = vld [vmem:[#allocation20_spill] sm:$0xff]  ;;  %v16749_v50 = vld [vmem:[#allocation23_spill] sm:$0xff] }
 0x498   : > { %v2813_v2 = vmul.f32 %v2807_v8, %v14569_v15  ;;  %v2811_v15 = vmul.f32 0.5, %v12882_v17  ;;  %v16750_v8 = vld [vmem:[#allocation22_spill] sm:$0xff]  ;;  %v16753_v17 = vld [vmem:[#allocation27_spill] sm:$0xff] }
 0x49a   : > { %v14687_v3 = vadd.f32 %v2814_v43, %v2813_v2  ;;  %10184 = vmatpush1.bf16.msra.mxu0 %v16692_v54  ;;  %10216 = vmatpush1.bf16.msra.mxu1 %v16693_v32  ;;  %v2812_v18 = vadd.f32 0.5, %v2811_v15  ;;  %v16751_v43 = vld [vmem:[#allocation25_spill] sm:$0xff]  ;;  %v16752_v2 = vld [vmem:[#allocation24_spill] sm:$0xff]  ;;  %v16754_v15 = vld [vmem:[#allocation26_spill] sm:$0xff] }
 0x49b   : > { %10186 = vmatprep.subr.bf16.mxu0 %v16694_v23  ;;  %10218 = vmatprep.subr.bf16.mxu1 %v16695_v7 }
 0x49c   : > { %12883 = vtanh.f32 %v14687_v3 }
 0x49e   : > { %10188 = vmatpush1.bf16.msra.mxu0 %v16696_v39  ;;  %10220 = vmatpush1.bf16.msra.mxu1 %v16697_v52 }
 0x49f   : > { %10190 = vmatprep.subr.bf16.mxu0 %v16698_v1  ;;  %10222 = vmatprep.subr.bf16.mxu1 %v16642_v6 }
 0x4a2   : > { %10192 = vmatpush1.bf16.msra.mxu0 %v16643_v62  ;;  %10224 = vmatpush1.bf16.msra.mxu1 %v16644_v38 }
 0x4a3   : > { %10194 = vmatprep.subr.bf16.mxu0 %v16645_v46  ;;  %10226 = vmatprep.subr.bf16.mxu1 %v16646_v28 }
 0x4a6   : > { %v12884_v34 = vpop.eup %12883  ;;  %10196 = vmatpush1.bf16.msra.mxu0 %v16647_v47  ;;  %10228 = vmatpush1.bf16.msra.mxu1 %v16648_v44 }
 0x4a7   : > { %v2817_v10 = vmul.f32 %v12884_v34, %v2812_v18  ;;  %10230 = vmatprep.subr.bf16.mxu0 %v16649_v49  ;;  %10262 = vmatprep.subr.bf16.mxu1 %v16650_v9  ;;  %v16755_v18 = vld [vmem:[#allocation29_spill] sm:$0xff]  ;;  %v16756_v34 = vld [vmem:[#allocation28_spill] sm:$0xff] }
 0x4a9   : > { %3025 = vmatmul.mubr.f32.vlgmr.msra.gmra.mrb[38].mxu0 %v2817_v10  ;;  %3096 = vmatmul.mubr.f32.vlgmr.msra.gmra.mrb[38].mxu1 %v2817_v10 }
 0x4aa   : > { %10232 = vmatpush1.bf16.msra.mxu0 %v13370_v22  ;;  %10264 = vmatpush1.bf16.msra.mxu1 %v13393_v30 }
 0x4ab   : > { %10234 = vmatprep.subr.bf16.mxu0 %v13391_v29  ;;  %10266 = vmatprep.subr.bf16.mxu1 %v13425_v40 }
 0x4ac   : > { %3192 = vmatprep.mubr.f32.mxu0 %v16556_v48  ;;  %3263 = vmatprep.mubr.f32.mxu1 %v16556_v48 }
 0x4ae   : > { %10236 = vmatpush1.bf16.msra.mxu0 %v13412_v36  ;;  %10268 = vmatpush1.bf16.msra.mxu1 %v13440_v45 }
 0x4af   : > { %10238 = vmatprep.subr.bf16.mxu0 %v13427_v41  ;;  %10270 = vmatprep.subr.bf16.mxu1 %v13470_v55 }
 0x4b2   : > { %10240 = vmatpush1.bf16.msra.mxu0 %v13459_v51  ;;  %10272 = vmatpush1.bf16.msra.mxu1 %v13482_v59 }
 0x4b3   : > { %10242 = vmatprep.subr.bf16.mxu0 %v13472_v56  ;;  %10274 = vmatprep.subr.bf16.mxu1 %v16747_v37  ;;  %v16757_v56 = vld [vmem:[#allocation31_spill] sm:$0xff]  ;;  %v16758_v37 = vld [vmem:[#allocation30_spill] sm:$0xff] }
 0x4b6   : > { %10244 = vmatpush1.bf16.msra.mxu0 %v16748_v4  ;;  %10276 = vmatpush1.bf16.msra.mxu1 %v16749_v50  ;;  %v16759_v4 = vld [vmem:[#allocation33_spill] sm:$0xff]  ;;  %v16760_v50 = vld [vmem:[#allocation32_spill] sm:$0xff] }
 0x4b7   : > { %10246 = vmatprep.subr.bf16.mxu0 %v16750_v8  ;;  %10278 = vmatprep.subr.bf16.mxu1 %v16751_v43  ;;  %v16761_v8 = vld [vmem:[#allocation35_spill] sm:$0xff]  ;;  %v16762_v43 = vld [vmem:[#allocation34_spill] sm:$0xff] }
 0x4ba   : > { %10248 = vmatpush1.bf16.msra.mxu0 %v16752_v2  ;;  %10280 = vmatpush1.bf16.msra.mxu1 %v16753_v17  ;;  %v16763_v2 = vld [vmem:[#allocation37_spill] sm:$0xff]  ;;  %v16764_v17 = vld [vmem:[#allocation36_spill] sm:$0xff] }
 0x4bb   : > { %10250 = vmatprep.subr.bf16.mxu0 %v16754_v15  ;;  %10282 = vmatprep.subr.bf16.mxu1 %v16755_v18  ;;  %v16765_v15 = vld [vmem:[#allocation39_spill] sm:$0xff]  ;;  %v16766_v18 = vld [vmem:[#allocation38_spill] sm:$0xff] }
 0x4be   : > { %10252 = vmatpush1.bf16.msra.mxu0 %v16756_v34  ;;  %10284 = vmatpush1.bf16.msra.mxu1 %v16757_v56  ;;  %v16767_v34 = vld [vmem:[#allocation40_spill] sm:$0xff]  ;;  %v16800_v56 = vld [vmem:[#allocation107_spill] sm:$0xff] }
 0x4bf   : > { %10254 = vmatprep.subr.bf16.mxu0 %v16758_v37  ;;  %10286 = vmatprep.subr.bf16.mxu1 %v16759_v4  ;;  %v16768_v37 = vld [vmem:[#allocation41_spill] sm:$0xff]  ;;  %v16769_v4 = vld [vmem:[#allocation42_spill] sm:$0xff] }
 0x4c2   : > { %10256 = vmatpush1.bf16.msra.mxu0 %v16760_v50  ;;  %10288 = vmatpush1.bf16.msra.mxu1 %v16761_v8  ;;  %v16770_v50 = vld [vmem:[#allocation43_spill] sm:$0xff]  ;;  %v16771_v8 = vld [vmem:[#allocation44_spill] sm:$0xff] }
 0x4c3   : > { %10258 = vmatprep.subr.bf16.mxu0 %v16762_v43  ;;  %10290 = vmatprep.subr.bf16.mxu1 %v16763_v2  ;;  %v16781_v2 = vld [vmem:[#allocation54_spill] sm:$0xff]  ;;  %v16782_v43 = vld [vmem:[#allocation55_spill] sm:$0xff] }
 0x4c6   : > { %10260 = vmatpush1.bf16.msra.mxu0 %v16764_v17  ;;  %10292 = vmatpush1.bf16.msra.mxu1 %v16765_v15  ;;  %v16772_v17 = vld [vmem:[#allocation45_spill] sm:$0xff]  ;;  %v16773_v15 = vld [vmem:[#allocation46_spill] sm:$0xff] }
 0x4c7   : > { %10294 = vmatprep.subr.bf16.mxu0 %v16766_v18  ;;  %10326 = vmatprep.subr.bf16.mxu1 %v16767_v34  ;;  %v16774_v18 = vld [vmem:[#allocation47_spill] sm:$0xff]  ;;  %v16775_v34 = vld [vmem:[#allocation48_spill] sm:$0xff] }
 0x4c9   : > { %3193 = vmatmul.mubr.f32.vlgmr.msra.gmra.mrb[8].mxu0 %v2817_v10  ;;  %3264 = vmatmul.mubr.f32.vlgmr.msra.gmra.mrb[8].mxu1 %v2817_v10  ;;  %v16776_v10 = vld [vmem:[#allocation49_spill] sm:$0xff] }
 0x4ca   : > { %10296 = vmatpush1.bf16.msra.mxu0 %v16768_v37  ;;  %10328 = vmatpush1.bf16.msra.mxu1 %v16769_v4  ;;  %v16777_v37 = vld [vmem:[#allocation50_spill] sm:$0xff]  ;;  %v16778_v4 = vld [vmem:[#allocation51_spill] sm:$0xff] }
 0x4cb   : > { %10298 = vmatprep.subr.bf16.mxu0 %v16770_v50  ;;  %10330 = vmatprep.subr.bf16.mxu1 %v16771_v8  ;;  %v16779_v50 = vld [vmem:[#allocation52_spill] sm:$0xff]  ;;  %v16780_v8 = vld [vmem:[#allocation53_spill] sm:$0xff] }
 0x4cc   : > { %3356 = vmatprep.mubr.f32.mxu0 %v16556_v48  ;;  %3427 = vmatprep.mubr.f32.mxu1 %v16556_v48 }
 0x4ce   : > { %10300 = vmatpush1.bf16.msra.mxu0 %v16772_v17  ;;  %10332 = vmatpush1.bf16.msra.mxu1 %v16773_v15  ;;  %v16783_v17 = vld [vmem:[#allocation56_spill] sm:$0xff]  ;;  %v16784_v15 = vld [vmem:[#allocation57_spill] sm:$0xff] }
 0x4cf   : > { %10302 = vmatprep.subr.bf16.mxu0 %v16774_v18  ;;  %10334 = vmatprep.subr.bf16.mxu1 %v16775_v34  ;;  %v16785_v18 = vld [vmem:[#allocation58_spill] sm:$0xff]  ;;  %v16786_v34 = vld [vmem:[#allocation59_spill] sm:$0xff] }
 0x4d2   : > { %10304 = vmatpush1.bf16.msra.mxu0 %v16776_v10  ;;  %10336 = vmatpush1.bf16.msra.mxu1 %v16777_v37  ;;  %v16787_v10 = vld [vmem:[#allocation60_spill] sm:$0xff]  ;;  %v16788_v37 = vld [vmem:[#allocation61_spill] sm:$0xff] }
 0x4d3   : > { %10306 = vmatprep.subr.bf16.mxu0 %v16778_v4  ;;  %10338 = vmatprep.subr.bf16.mxu1 %v16779_v50  ;;  %v16789_v4 = vld [vmem:[#allocation62_spill] sm:$0xff]  ;;  %v16790_v50 = vld [vmem:[#allocation63_spill] sm:$0xff] }
 0x4d6   : > { %10308 = vmatpush1.bf16.msra.mxu0 %v16780_v8  ;;  %10340 = vmatpush1.bf16.msra.mxu1 %v16781_v2  ;;  %v16791_v8 = vld [vmem:[#allocation64_spill] sm:$0xff]  ;;  %v16792_v2 = vld [vmem:[#allocation65_spill] sm:$0xff] }
 0x4d7   : > { %10310 = vmatprep.subr.bf16.mxu0 %v16782_v43  ;;  %10342 = vmatprep.subr.bf16.mxu1 %v16783_v17  ;;  %v16793_v43 = vld [vmem:[#allocation66_spill] sm:$0xff]  ;;  %v16794_v17 = vld [vmem:[#allocation67_spill] sm:$0xff] }
 0x4da   : > { %10312 = vmatpush1.bf16.msra.mxu0 %v16784_v15  ;;  %10344 = vmatpush1.bf16.msra.mxu1 %v16785_v18  ;;  %v16795_v15 = vld [vmem:[#allocation68_spill] sm:$0xff]  ;;  %v16796_v18 = vld [vmem:[#allocation69_spill] sm:$0xff] }
 0x4db   : > { %10314 = vmatprep.subr.bf16.mxu0 %v16786_v34  ;;  %10346 = vmatprep.subr.bf16.mxu1 %v16787_v10  ;;  %v16797_v34 = vld [vmem:[#allocation70_spill] sm:$0xff]  ;;  %v16798_v10 = vld [vmem:[#allocation71_spill] sm:$0xff] }
 0x4de   : > { %10316 = vmatpush1.bf16.msra.mxu0 %v16788_v37  ;;  %10348 = vmatpush1.bf16.msra.mxu1 %v16789_v4  ;;  %v16799_v37 = vld [vmem:[#allocation72_spill] sm:$0xff] }
 0x4df   : > { %10318 = vmatprep.subr.bf16.mxu0 %v16790_v50  ;;  %10350 = vmatprep.subr.bf16.mxu1 %v16791_v8 }
 0x4e2   : > { %10320 = vmatpush1.bf16.msra.mxu0 %v16792_v2  ;;  %10352 = vmatpush1.bf16.msra.mxu1 %v16793_v43 }
 0x4e3   : > { %10322 = vmatprep.subr.bf16.mxu0 %v16794_v17  ;;  %10354 = vmatprep.subr.bf16.mxu1 %v16795_v15 }
 0x4e6   : > { %10324 = vmatpush1.bf16.msra.mxu0 %v16796_v18  ;;  %10356 = vmatpush1.bf16.msra.mxu1 %v16797_v34 }
 0x4e7   : > { %10358 = vmatprep.subr.bf16.mxu0 %v16798_v10  ;;  %10390 = vmatprep.subr.bf16.mxu1 %v16799_v37 }
 0x57c   : > { %v3026_v4 = vpop.f32.mrb[38].mxu0  ;;  %v3097_v50 = vpop.f32.mrb[38].mxu1 }
 0x57d   : > { %v3102_v8 = vadd.f32 %v3026_v4, %v16800_v56  ;;  %v3028_v59 = vpop.f32.mrb[39].mxu0  ;;  %v3099_v2 = vpop.f32.mrb[39].mxu1  ;;  %v3104_v15 = vadd.f32 %v3097_v50, %v16677_v21 }
 0x57e   : > { %v3103_v43 = vadd.f32 %v3028_v59, %v16676_v20  ;;  %v3105_v34 = vadd.f32 %v3099_v2, %v16678_v31 }
 0x57f   : > { %v3106_v51 = vmul.f32 0.5, %v3102_v8 }
 0x580   : > { %v3110_v17 = vmul.f32 0.5, %v3103_v43  ;;  %v3115_v10 = vmul.f32 0.5, %v3105_v34 }
 0x581   : > { %12885 = vtanh.f32 %v3106_v51 }
 0x582   : > { %12887 = vtanh.f32 %v3110_v17 }
 0x583   : > { %12889 = vtanh.f32 %v3104_v15 }
 0x584   : > { %12891 = vtanh.f32 %v3115_v10 }
 0x58b   : > { %v12886_v18 = vpop.eup %12885 }
 0x58c   : > { %v12888_v37 = vpop.eup %12887  ;;  %v3108_v55 = vmul.f32 0.5, %v12886_v18 }
 0x58d   : > { %v3112_v41 = vmul.f32 0.5, %v12888_v37  ;;  %v12890_v56 = vpop.eup %12889 }
 0x58e   : > { %v3109_v4 = vadd.f32 0.5, %v3108_v55  ;;  %v12892_v51 = vpop.eup %12891 }
 0x58f   : > { %v3113_v45 = vadd.f32 0.5, %v3112_v41  ;;  %v3117_v50 = vmul.f32 0.5, %v12892_v51 }
 0x590   : > { %v3120_v36 = vmul.f32 %v12890_v56, %v3109_v4 }
 0x591   : > { %v3119_v59 = vmul.f32 %v3113_v45, %v14661_v14  ;;  %v3118_v37 = vadd.f32 0.5, %v3117_v50 }
 0x593   : > { %v14779_v8 = vadd.f32 %v3120_v36, %v3119_v59 }
 0x595   : > { %12893 = vtanh.f32 %v14779_v8 }
 0x59c   : > { %v3194_v43 = vpop.f32.mrb[8].mxu0  ;;  %v3265_v2 = vpop.f32.mrb[8].mxu1 }
 0x59d   : > { %v12586_v17 = vadd.f32 %v3194_v43, %v16615_v33  ;;  %v3196_v15 = vpop.f32.mrb[9].mxu0  ;;  %v3267_v18 = vpop.f32.mrb[9].mxu1  ;;  %v12618_v36 = vadd.f32 %v3265_v2, %v16617_v60 }
 0x59e   : > { %v12587_v55 = vadd.f32 %v3196_v15, %v16616_v5  ;;  %v12619_v45 = vadd.f32 %v3267_v18, %v16681_v27 }
 0x59f   : > { %v12894_v34 = vpop.eup %12893  ;;  %v3274_v41 = vmul.f32 0.5, %v12586_v17 }
 0x5a0   : > { %v3123_v56 = vmul.f32 %v12894_v34, %v3118_v37  ;;  %v3278_v10 = vmul.f32 0.5, %v12587_v55  ;;  %v3283_v14 = vmul.f32 0.5, %v12619_v45  ;;  %v16803_v45 = vld [vmem:[#allocation14_spill] sm:$0xff] }
 0x5a1   : > { %12895 = vtanh.f32 %v3274_v41 }
 0x5a2   : > { %12897 = vtanh.f32 %v3278_v10  ;;  %3357 = vmatmul.mubr.f32.vlgmr.msra.gmra.mrb[40].mxu0 %v3123_v56  ;;  %3428 = vmatmul.mubr.f32.vlgmr.msra.gmra.mrb[40].mxu1 %v3123_v56  ;;  %v16801_v10 = vld [vmem:[#allocation13_spill] sm:$0xff] }
 0x5a3   : > { %10360 = vmatpush1.bf16.msra.mxu0 %v16618_v63  ;;  %10392 = vmatpush1.bf16.msra.mxu1 %v16619_v13  ;;  %12899 = vtanh.f32 %v12618_v36  ;;  %v16802_v36 = vld [vmem:[#allocation15_spill] sm:$0xff] }
 0x5a4   : > { %10362 = vmatprep.subr.bf16.mxu0 %v16679_v61  ;;  %10394 = vmatprep.subr.bf16.mxu1 %v16680_v26  ;;  %12901 = vtanh.f32 %v3283_v14  ;;  %v16804_v14 = vld [vmem:[#allocation17_spill] sm:$0xff] }
 0x5a5   : > { %3498 = vmatprep.mubr.f32.mxu0 %v16556_v48  ;;  %3569 = vmatprep.mubr.f32.mxu1 %v16556_v48 }
 0x5a7   : > { %10364 = vmatpush1.bf16.msra.mxu0 %v16682_v11  ;;  %10396 = vmatpush1.bf16.msra.mxu1 %v16740_v58 }
 0x5a8   : > { %10366 = vmatprep.subr.bf16.mxu0 %v16741_v53  ;;  %10398 = vmatprep.subr.bf16.mxu1 %v16742_v16 }
 0x5ab   : > { %v12896_v4 = vpop.eup %12895  ;;  %10368 = vmatpush1.bf16.msra.mxu0 %v16743_v24  ;;  %10400 = vmatpush1.bf16.msra.mxu1 %v16744_v57 }
 0x5ac   : > { %v12898_v59 = vpop.eup %12897  ;;  %v3276_v51 = vmul.f32 0.5, %v12896_v4  ;;  %10370 = vmatprep.subr.bf16.mxu0 %v16745_v35  ;;  %10402 = vmatprep.subr.bf16.mxu1 %v16629_v19  ;;  %v16805_v4 = vld [vmem:[#allocation16_spill] sm:$0xff] }
 0x5ad   : > { %v3280_v50 = vmul.f32 0.5, %v12898_v59  ;;  %v12900_v2 = vpop.eup %12899  ;;  %v16806_v59 = vld [vmem:[#allocation19_spill] sm:$0xff] }
 0x5ae   : > { %v3277_v43 = vadd.f32 0.5, %v3276_v51  ;;  %v12902_v55 = vpop.eup %12901  ;;  %v16807_v51 = vld [vmem:[#allocation18_spill] sm:$0xff] }
 0x5af   : > { %v3281_v17 = vadd.f32 0.5, %v3280_v50  ;;  %10372 = vmatpush1.bf16.msra.mxu0 %v16630_v12  ;;  %10404 = vmatpush1.bf16.msra.mxu1 %v16631_v42  ;;  %v16808_v50 = vld [vmem:[#allocation21_spill] sm:$0xff] }
 0x5b0   : > { %v3288_v15 = vmul.f32 %v12900_v2, %v3277_v43  ;;  %10374 = vmatprep.subr.bf16.mxu0 %v16689_v0  ;;  %10406 = vmatprep.subr.bf16.mxu1 %v16746_v25  ;;  %v16809_v43 = vld [vmem:[#allocation20_spill] sm:$0xff]  ;;  %v16810_v2 = vld [vmem:[#allocation23_spill] sm:$0xff] }
 0x5b1   : > { %v3287_v18 = vmul.f32 %v3281_v17, %v14687_v3  ;;  %v3285_v3 = vmul.f32 0.5, %v12902_v55  ;;  %v16811_v17 = vld [vmem:[#allocation22_spill] sm:$0xff]  ;;  %v16814_v55 = vld [vmem:[#allocation27_spill] sm:$0xff] }
 0x5b3   : > { %v14805_v37 = vadd.f32 %v3288_v15, %v3287_v18  ;;  %10376 = vmatpush1.bf16.msra.mxu0 %v16692_v54  ;;  %10408 = vmatpush1.bf16.msra.mxu1 %v16693_v32  ;;  %v3286_v34 = vadd.f32 0.5, %v3285_v3  ;;  %v16812_v15 = vld [vmem:[#allocation25_spill] sm:$0xff]  ;;  %v16813_v18 = vld [vmem:[#allocation24_spill] sm:$0xff]  ;;  %v16815_v3 = vld [vmem:[#allocation26_spill] sm:$0xff] }
 0x5b4   : > { %10378 = vmatprep.subr.bf16.mxu0 %v16694_v23  ;;  %10410 = vmatprep.subr.bf16.mxu1 %v16695_v7 }
 0x5b5   : > { %12903 = vtanh.f32 %v14805_v37 }
 0x5b7   : > { %10380 = vmatpush1.bf16.msra.mxu0 %v16696_v39  ;;  %10412 = vmatpush1.bf16.msra.mxu1 %v16697_v52 }
 0x5b8   : > { %10382 = vmatprep.subr.bf16.mxu0 %v16698_v1  ;;  %10414 = vmatprep.subr.bf16.mxu1 %v16642_v6 }
 0x5bb   : > { %10384 = vmatpush1.bf16.msra.mxu0 %v16643_v62  ;;  %10416 = vmatpush1.bf16.msra.mxu1 %v16644_v38 }
 0x5bc   : > { %10386 = vmatprep.subr.bf16.mxu0 %v16645_v46  ;;  %10418 = vmatprep.subr.bf16.mxu1 %v16646_v28 }
 0x5bf   : > { %v12904_v41 = vpop.eup %12903  ;;  %10388 = vmatpush1.bf16.msra.mxu0 %v16647_v47  ;;  %10420 = vmatpush1.bf16.msra.mxu1 %v16648_v44 }
 0x5c0   : > { %v3291_v56 = vmul.f32 %v12904_v41, %v3286_v34  ;;  %10422 = vmatprep.subr.bf16.mxu0 %v16649_v49  ;;  %10454 = vmatprep.subr.bf16.mxu1 %v16650_v9  ;;  %v16816_v34 = vld [vmem:[#allocation29_spill] sm:$0xff]  ;;  %v16817_v41 = vld [vmem:[#allocation28_spill] sm:$0xff] }
 0x5c2   : > { %3499 = vmatmul.mubr.f32.vlgmr.msra.gmra.mrb[40].mxu0 %v3291_v56  ;;  %3570 = vmatmul.mubr.f32.vlgmr.msra.gmra.mrb[40].mxu1 %v3291_v56 }
 0x5c3   : > { %10424 = vmatpush1.bf16.msra.mxu0 %v13370_v22  ;;  %10456 = vmatpush1.bf16.msra.mxu1 %v13393_v30 }
 0x5c4   : > { %10426 = vmatprep.subr.bf16.mxu0 %v13391_v29  ;;  %10458 = vmatprep.subr.bf16.mxu1 %v13425_v40 }
 0x5c5   : > { %3666 = vmatprep.mubr.f32.mxu0 %v16556_v48  ;;  %3737 = vmatprep.mubr.f32.mxu1 %v16556_v48 }
 0x5c7   : > { %10428 = vmatpush1.bf16.msra.mxu0 %v16801_v10  ;;  %10460 = vmatpush1.bf16.msra.mxu1 %v16802_v36 }
 0x5c8   : > { %10430 = vmatprep.subr.bf16.mxu0 %v16803_v45  ;;  %10462 = vmatprep.subr.bf16.mxu1 %v16804_v14 }
 0x5cb   : > { %10432 = vmatpush1.bf16.msra.mxu0 %v16805_v4  ;;  %10464 = vmatpush1.bf16.msra.mxu1 %v16806_v59 }
 0x5cc   : > { %10434 = vmatprep.subr.bf16.mxu0 %v16807_v51  ;;  %10466 = vmatprep.subr.bf16.mxu1 %v16808_v50  ;;  %v16818_v51 = vld [vmem:[#allocation31_spill] sm:$0xff]  ;;  %v16819_v50 = vld [vmem:[#allocation30_spill] sm:$0xff] }
 0x5cf   : > { %10436 = vmatpush1.bf16.msra.mxu0 %v16809_v43  ;;  %10468 = vmatpush1.bf16.msra.mxu1 %v16810_v2  ;;  %v16820_v43 = vld [vmem:[#allocation33_spill] sm:$0xff]  ;;  %v16821_v2 = vld [vmem:[#allocation32_spill] sm:$0xff] }
 0x5d0   : > { %10438 = vmatprep.subr.bf16.mxu0 %v16811_v17  ;;  %10470 = vmatprep.subr.bf16.mxu1 %v16812_v15  ;;  %v16822_v17 = vld [vmem:[#allocation35_spill] sm:$0xff]  ;;  %v16823_v15 = vld [vmem:[#allocation34_spill] sm:$0xff] }
 0x5d3   : > { %10440 = vmatpush1.bf16.msra.mxu0 %v16813_v18  ;;  %10472 = vmatpush1.bf16.msra.mxu1 %v16814_v55  ;;  %v16824_v18 = vld [vmem:[#allocation37_spill] sm:$0xff]  ;;  %v16825_v55 = vld [vmem:[#allocation36_spill] sm:$0xff] }
 0x5d4   : > { %10442 = vmatprep.subr.bf16.mxu0 %v16815_v3  ;;  %10474 = vmatprep.subr.bf16.mxu1 %v16816_v34  ;;  %v16826_v3 = vld [vmem:[#allocation39_spill] sm:$0xff]  ;;  %v16827_v34 = vld [vmem:[#allocation38_spill] sm:$0xff] }
 0x5d7   : > { %10444 = vmatpush1.bf16.msra.mxu0 %v16817_v41  ;;  %10476 = vmatpush1.bf16.msra.mxu1 %v16818_v51  ;;  %v16828_v41 = vld [vmem:[#allocation40_spill] sm:$0xff]  ;;  %v16861_v51 = vld [vmem:[#allocation107_spill] sm:$0xff] }
 0x5d8   : > { %10446 = vmatprep.subr.bf16.mxu0 %v16819_v50  ;;  %10478 = vmatprep.subr.bf16.mxu1 %v16820_v43  ;;  %v16829_v50 = vld [vmem:[#allocation41_spill] sm:$0xff]  ;;  %v16830_v43 = vld [vmem:[#allocation42_spill] sm:$0xff] }
 0x5db   : > { %10448 = vmatpush1.bf16.msra.mxu0 %v16821_v2  ;;  %10480 = vmatpush1.bf16.msra.mxu1 %v16822_v17  ;;  %v16831_v2 = vld [vmem:[#allocation43_spill] sm:$0xff]  ;;  %v16832_v17 = vld [vmem:[#allocation44_spill] sm:$0xff] }
 0x5dc   : > { %10450 = vmatprep.subr.bf16.mxu0 %v16823_v15  ;;  %10482 = vmatprep.subr.bf16.mxu1 %v16824_v18  ;;  %v16842_v18 = vld [vmem:[#allocation54_spill] sm:$0xff]  ;;  %v16843_v15 = vld [vmem:[#allocation55_spill] sm:$0xff] }
 0x5df   : > { %10452 = vmatpush1.bf16.msra.mxu0 %v16825_v55  ;;  %10484 = vmatpush1.bf16.msra.mxu1 %v16826_v3  ;;  %v16833_v55 = vld [vmem:[#allocation45_spill] sm:$0xff]  ;;  %v16834_v3 = vld [vmem:[#allocation46_spill] sm:$0xff] }
 0x5e0   : > { %10486 = vmatprep.subr.bf16.mxu0 %v16827_v34  ;;  %10518 = vmatprep.subr.bf16.mxu1 %v16828_v41  ;;  %v16835_v34 = vld [vmem:[#allocation47_spill] sm:$0xff]  ;;  %v16836_v41 = vld [vmem:[#allocation48_spill] sm:$0xff] }
 0x5e2   : > { %3667 = vmatmul.mubr.f32.vlgmr.msra.gmra.mrb[10].mxu0 %v3291_v56  ;;  %3738 = vmatmul.mubr.f32.vlgmr.msra.gmra.mrb[10].mxu1 %v3291_v56  ;;  %v16837_v56 = vld [vmem:[#allocation49_spill] sm:$0xff] }
 0x5e3   : > { %10488 = vmatpush1.bf16.msra.mxu0 %v16829_v50  ;;  %10520 = vmatpush1.bf16.msra.mxu1 %v16830_v43  ;;  %v16838_v50 = vld [vmem:[#allocation50_spill] sm:$0xff]  ;;  %v16839_v43 = vld [vmem:[#allocation51_spill] sm:$0xff] }
 0x5e4   : > { %10490 = vmatprep.subr.bf16.mxu0 %v16831_v2  ;;  %10522 = vmatprep.subr.bf16.mxu1 %v16832_v17  ;;  %v16840_v2 = vld [vmem:[#allocation52_spill] sm:$0xff]  ;;  %v16841_v17 = vld [vmem:[#allocation53_spill] sm:$0xff] }
 0x5e5   : > { %3830 = vmatprep.mubr.f32.mxu0 %v16556_v48  ;;  %3901 = vmatprep.mubr.f32.mxu1 %v16556_v48 }
 0x5e7   : > { %10492 = vmatpush1.bf16.msra.mxu0 %v16833_v55  ;;  %10524 = vmatpush1.bf16.msra.mxu1 %v16834_v3  ;;  %v16844_v55 = vld [vmem:[#allocation56_spill] sm:$0xff]  ;;  %v16845_v3 = vld [vmem:[#allocation57_spill] sm:$0xff] }
 0x5e8   : > { %10494 = vmatprep.subr.bf16.mxu0 %v16835_v34  ;;  %10526 = vmatprep.subr.bf16.mxu1 %v16836_v41  ;;  %v16846_v34 = vld [vmem:[#allocation58_spill] sm:$0xff]  ;;  %v16847_v41 = vld [vmem:[#allocation59_spill] sm:$0xff] }
 0x5eb   : > { %10496 = vmatpush1.bf16.msra.mxu0 %v16837_v56  ;;  %10528 = vmatpush1.bf16.msra.mxu1 %v16838_v50  ;;  %v16848_v56 = vld [vmem:[#allocation60_spill] sm:$0xff]  ;;  %v16849_v50 = vld [vmem:[#allocation61_spill] sm:$0xff] }
 0x5ec   : > { %10498 = vmatprep.subr.bf16.mxu0 %v16839_v43  ;;  %10530 = vmatprep.subr.bf16.mxu1 %v16840_v2  ;;  %v16850_v43 = vld [vmem:[#allocation62_spill] sm:$0xff]  ;;  %v16851_v2 = vld [vmem:[#allocation63_spill] sm:$0xff] }
 0x5ef   : > { %10500 = vmatpush1.bf16.msra.mxu0 %v16841_v17  ;;  %10532 = vmatpush1.bf16.msra.mxu1 %v16842_v18  ;;  %v16852_v17 = vld [vmem:[#allocation64_spill] sm:$0xff]  ;;  %v16853_v18 = vld [vmem:[#allocation65_spill] sm:$0xff] }
 0x5f0   : > { %10502 = vmatprep.subr.bf16.mxu0 %v16843_v15  ;;  %10534 = vmatprep.subr.bf16.mxu1 %v16844_v55  ;;  %v16854_v15 = vld [vmem:[#allocation66_spill] sm:$0xff]  ;;  %v16855_v55 = vld [vmem:[#allocation67_spill] sm:$0xff] }
 0x5f3   : > { %10504 = vmatpush1.bf16.msra.mxu0 %v16845_v3  ;;  %10536 = vmatpush1.bf16.msra.mxu1 %v16846_v34  ;;  %v16856_v3 = vld [vmem:[#allocation68_spill] sm:$0xff]  ;;  %v16857_v34 = vld [vmem:[#allocation69_spill] sm:$0xff] }
 0x5f4   : > { %10506 = vmatprep.subr.bf16.mxu0 %v16847_v41  ;;  %10538 = vmatprep.subr.bf16.mxu1 %v16848_v56  ;;  %v16858_v41 = vld [vmem:[#allocation70_spill] sm:$0xff]  ;;  %v16859_v56 = vld [vmem:[#allocation71_spill] sm:$0xff] }
 0x5f7   : > { %10508 = vmatpush1.bf16.msra.mxu0 %v16849_v50  ;;  %10540 = vmatpush1.bf16.msra.mxu1 %v16850_v43  ;;  %v16860_v50 = vld [vmem:[#allocation72_spill] sm:$0xff] }
 0x5f8   : > { %10510 = vmatprep.subr.bf16.mxu0 %v16851_v2  ;;  %10542 = vmatprep.subr.bf16.mxu1 %v16852_v17 }
 0x5fb   : > { %10512 = vmatpush1.bf16.msra.mxu0 %v16853_v18  ;;  %10544 = vmatpush1.bf16.msra.mxu1 %v16854_v15 }
 0x5fc   : > { %10514 = vmatprep.subr.bf16.mxu0 %v16855_v55  ;;  %10546 = vmatprep.subr.bf16.mxu1 %v16856_v3 }
 0x5ff   : > { %10516 = vmatpush1.bf16.msra.mxu0 %v16857_v34  ;;  %10548 = vmatpush1.bf16.msra.mxu1 %v16858_v41 }
 0x600   : > { %10550 = vmatprep.subr.bf16.mxu0 %v16859_v56  ;;  %10582 = vmatprep.subr.bf16.mxu1 %v16860_v50 }
 0x695   : > { %v3500_v43 = vpop.f32.mrb[40].mxu0  ;;  %v3571_v2 = vpop.f32.mrb[40].mxu1 }
 0x696   : > { %v3576_v17 = vadd.f32 %v3500_v43, %v16861_v51  ;;  %v3502_v59 = vpop.f32.mrb[41].mxu0  ;;  %v3573_v18 = vpop.f32.mrb[41].mxu1  ;;  %v3578_v3 = vadd.f32 %v3571_v2, %v16677_v21 }
 0x697   : > { %v3577_v15 = vadd.f32 %v3502_v59, %v16676_v20  ;;  %v3579_v41 = vadd.f32 %v3573_v18, %v16678_v31 }
 0x698   : > { %v3580_v4 = vmul.f32 0.5, %v3576_v17 }
 0x699   : > { %v3584_v55 = vmul.f32 0.5, %v3577_v15  ;;  %v3589_v56 = vmul.f32 0.5, %v3579_v41 }
 0x69a   : > { %12905 = vtanh.f32 %v3580_v4 }
 0x69b   : > { %12907 = vtanh.f32 %v3584_v55 }
 0x69c   : > { %12909 = vtanh.f32 %v3578_v3 }
 0x69d   : > { %12911 = vtanh.f32 %v3589_v56 }
 0x6a4   : > { %v12906_v34 = vpop.eup %12905 }
 0x6a5   : > { %v12908_v50 = vpop.eup %12907  ;;  %v3582_v14 = vmul.f32 0.5, %v12906_v34 }
 0x6a6   : > { %v3586_v45 = vmul.f32 0.5, %v12908_v50  ;;  %v12910_v51 = vpop.eup %12909 }
 0x6a7   : > { %v3583_v43 = vadd.f32 0.5, %v3582_v14  ;;  %v12912_v4 = vpop.eup %12911 }
 0x6a8   : > { %v3587_v36 = vadd.f32 0.5, %v3586_v45  ;;  %v3591_v2 = vmul.f32 0.5, %v12912_v4 }
 0x6a9   : > { %v3594_v10 = vmul.f32 %v12910_v51, %v3583_v43 }
 0x6aa   : > { %v3593_v59 = vmul.f32 %v3587_v36, %v14779_v8  ;;  %v3592_v50 = vadd.f32 0.5, %v3591_v2 }
 0x6ac   : > { %v14897_v17 = vadd.f32 %v3594_v10, %v3593_v59 }
 0x6ae   : > { %12913 = vtanh.f32 %v14897_v17 }
 0x6b5   : > { %v3668_v15 = vpop.f32.mrb[10].mxu0  ;;  %v3739_v18 = vpop.f32.mrb[10].mxu1 }
 0x6b6   : > { %v12588_v55 = vadd.f32 %v3668_v15, %v16615_v33  ;;  %v3670_v3 = vpop.f32.mrb[11].mxu0  ;;  %v3741_v34 = vpop.f32.mrb[11].mxu1  ;;  %v12620_v8 = vadd.f32 %v3739_v18, %v16617_v60 }
 0x6b7   : > { %v12589_v14 = vadd.f32 %v3670_v3, %v16616_v5  ;;  %v12621_v10 = vadd.f32 %v3741_v34, %v16681_v27 }
 0x6b8   : > { %v12914_v41 = vpop.eup %12913  ;;  %v3748_v45 = vmul.f32 0.5, %v12588_v55 }
 0x6b9   : > { %v3597_v51 = vmul.f32 %v12914_v41, %v3592_v50  ;;  %v3752_v56 = vmul.f32 0.5, %v12589_v14  ;;  %v3757_v36 = vmul.f32 0.5, %v12621_v10  ;;  %v16864_v10 = vld [vmem:[#allocation14_spill] sm:$0xff] }
 0x6ba   : > { %12915 = vtanh.f32 %v3748_v45 }
 0x6bb   : > { %12917 = vtanh.f32 %v3752_v56  ;;  %3831 = vmatmul.mubr.f32.vlgmr.msra.gmra.mrb[42].mxu0 %v3597_v51  ;;  %3902 = vmatmul.mubr.f32.vlgmr.msra.gmra.mrb[42].mxu1 %v3597_v51  ;;  %v16862_v56 = vld [vmem:[#allocation13_spill] sm:$0xff] }
 0x6bc   : > { %10552 = vmatpush1.bf16.msra.mxu0 %v16618_v63  ;;  %10584 = vmatpush1.bf16.msra.mxu1 %v16619_v13  ;;  %12919 = vtanh.f32 %v12620_v8  ;;  %v16863_v8 = vld [vmem:[#allocation15_spill] sm:$0xff] }
 0x6bd   : > { %10554 = vmatprep.subr.bf16.mxu0 %v16679_v61  ;;  %10586 = vmatprep.subr.bf16.mxu1 %v16680_v26  ;;  %12921 = vtanh.f32 %v3757_v36  ;;  %v16865_v36 = vld [vmem:[#allocation17_spill] sm:$0xff] }
 0x6be   : > { %3972 = vmatprep.mubr.f32.mxu0 %v16556_v48  ;;  %4043 = vmatprep.mubr.f32.mxu1 %v16556_v48 }
 0x6c0   : > { %10556 = vmatpush1.bf16.msra.mxu0 %v16682_v11  ;;  %10588 = vmatpush1.bf16.msra.mxu1 %v16740_v58 }
 0x6c1   : > { %10558 = vmatprep.subr.bf16.mxu0 %v16741_v53  ;;  %10590 = vmatprep.subr.bf16.mxu1 %v16742_v16 }
 0x6c4   : > { %v12916_v43 = vpop.eup %12915  ;;  %10560 = vmatpush1.bf16.msra.mxu0 %v16743_v24  ;;  %10592 = vmatpush1.bf16.msra.mxu1 %v16744_v57 }
 0x6c5   : > { %v12918_v59 = vpop.eup %12917  ;;  %v3750_v4 = vmul.f32 0.5, %v12916_v43  ;;  %10562 = vmatprep.subr.bf16.mxu0 %v16745_v35  ;;  %10594 = vmatprep.subr.bf16.mxu1 %v16629_v19  ;;  %v16866_v43 = vld [vmem:[#allocation16_spill] sm:$0xff] }
 0x6c6   : > { %v3754_v2 = vmul.f32 0.5, %v12918_v59  ;;  %v12920_v18 = vpop.eup %12919  ;;  %v16867_v59 = vld [vmem:[#allocation19_spill] sm:$0xff] }
 0x6c7   : > { %v3751_v15 = vadd.f32 0.5, %v3750_v4  ;;  %v12922_v14 = vpop.eup %12921  ;;  %v16868_v4 = vld [vmem:[#allocation18_spill] sm:$0xff] }
 0x6c8   : > { %v3755_v55 = vadd.f32 0.5, %v3754_v2  ;;  %10564 = vmatpush1.bf16.msra.mxu0 %v16630_v12  ;;  %10596 = vmatpush1.bf16.msra.mxu1 %v16631_v42  ;;  %v16869_v2 = vld [vmem:[#allocation21_spill] sm:$0xff] }
 0x6c9   : > { %v3762_v3 = vmul.f32 %v12920_v18, %v3751_v15  ;;  %10566 = vmatprep.subr.bf16.mxu0 %v16689_v0  ;;  %10598 = vmatprep.subr.bf16.mxu1 %v16746_v25  ;;  %v16870_v15 = vld [vmem:[#allocation20_spill] sm:$0xff]  ;;  %v16871_v18 = vld [vmem:[#allocation23_spill] sm:$0xff] }
 0x6ca   : > { %v3761_v34 = vmul.f32 %v3755_v55, %v14805_v37  ;;  %v3759_v37 = vmul.f32 0.5, %v12922_v14  ;;  %v16872_v55 = vld [vmem:[#allocation22_spill] sm:$0xff]  ;;  %v16875_v14 = vld [vmem:[#allocation27_spill] sm:$0xff] }
 0x6cc   : > { %v14923_v50 = vadd.f32 %v3762_v3, %v3761_v34  ;;  %10568 = vmatpush1.bf16.msra.mxu0 %v16692_v54  ;;  %10600 = vmatpush1.bf16.msra.mxu1 %v16693_v32  ;;  %v3760_v41 = vadd.f32 0.5, %v3759_v37  ;;  %v16873_v3 = vld [vmem:[#allocation25_spill] sm:$0xff]  ;;  %v16874_v34 = vld [vmem:[#allocation24_spill] sm:$0xff]  ;;  %v16876_v37 = vld [vmem:[#allocation26_spill] sm:$0xff] }
 0x6cd   : > { %10570 = vmatprep.subr.bf16.mxu0 %v16694_v23  ;;  %10602 = vmatprep.subr.bf16.mxu1 %v16695_v7 }
 0x6ce   : > { %12923 = vtanh.f32 %v14923_v50 }
 0x6d0   : > { %10572 = vmatpush1.bf16.msra.mxu0 %v16696_v39  ;;  %10604 = vmatpush1.bf16.msra.mxu1 %v16697_v52 }
 0x6d1   : > { %10574 = vmatprep.subr.bf16.mxu0 %v16698_v1  ;;  %10606 = vmatprep.subr.bf16.mxu1 %v16642_v6 }
 0x6d4   : > { %10576 = vmatpush1.bf16.msra.mxu0 %v16643_v62  ;;  %10608 = vmatpush1.bf16.msra.mxu1 %v16644_v38 }
 0x6d5   : > { %10578 = vmatprep.subr.bf16.mxu0 %v16645_v46  ;;  %10610 = vmatprep.subr.bf16.mxu1 %v16646_v28 }
 0x6d8   : > { %v12924_v45 = vpop.eup %12923  ;;  %10580 = vmatpush1.bf16.msra.mxu0 %v16647_v47  ;;  %10612 = vmatpush1.bf16.msra.mxu1 %v16648_v44 }
 0x6d9   : > { %v3765_v51 = vmul.f32 %v12924_v45, %v3760_v41  ;;  %10614 = vmatprep.subr.bf16.mxu0 %v16649_v49  ;;  %10646 = vmatprep.subr.bf16.mxu1 %v16650_v9  ;;  %v16877_v41 = vld [vmem:[#allocation29_spill] sm:$0xff]  ;;  %v16878_v45 = vld [vmem:[#allocation28_spill] sm:$0xff] }
 0x6db   : > { %3973 = vmatmul.mubr.f32.vlgmr.msra.gmra.mrb[42].mxu0 %v3765_v51  ;;  %4044 = vmatmul.mubr.f32.vlgmr.msra.gmra.mrb[42].mxu1 %v3765_v51 }
 0x6dc   : > { %10616 = vmatpush1.bf16.msra.mxu0 %v13370_v22  ;;  %10648 = vmatpush1.bf16.msra.mxu1 %v13393_v30 }
 0x6dd   : > { %10618 = vmatprep.subr.bf16.mxu0 %v13391_v29  ;;  %10650 = vmatprep.subr.bf16.mxu1 %v13425_v40 }
 0x6de   : > { %4140 = vmatprep.mubr.f32.mxu0 %v16556_v48  ;;  %4211 = vmatprep.mubr.f32.mxu1 %v16556_v48 }
 0x6e0   : > { %10620 = vmatpush1.bf16.msra.mxu0 %v16862_v56  ;;  %10652 = vmatpush1.bf16.msra.mxu1 %v16863_v8 }
 0x6e1   : > { %10622 = vmatprep.subr.bf16.mxu0 %v16864_v10  ;;  %10654 = vmatprep.subr.bf16.mxu1 %v16865_v36 }
 0x6e4   : > { %10624 = vmatpush1.bf16.msra.mxu0 %v16866_v43  ;;  %10656 = vmatpush1.bf16.msra.mxu1 %v16867_v59 }
 0x6e5   : > { %10626 = vmatprep.subr.bf16.mxu0 %v16868_v4  ;;  %10658 = vmatprep.subr.bf16.mxu1 %v16869_v2  ;;  %v16879_v4 = vld [vmem:[#allocation31_spill] sm:$0xff]  ;;  %v16880_v2 = vld [vmem:[#allocation30_spill] sm:$0xff] }
 0x6e8   : > { %10628 = vmatpush1.bf16.msra.mxu0 %v16870_v15  ;;  %10660 = vmatpush1.bf16.msra.mxu1 %v16871_v18  ;;  %v16881_v15 = vld [vmem:[#allocation33_spill] sm:$0xff]  ;;  %v16882_v18 = vld [vmem:[#allocation32_spill] sm:$0xff] }
 0x6e9   : > { %10630 = vmatprep.subr.bf16.mxu0 %v16872_v55  ;;  %10662 = vmatprep.subr.bf16.mxu1 %v16873_v3  ;;  %v16883_v55 = vld [vmem:[#allocation35_spill] sm:$0xff]  ;;  %v16884_v3 = vld [vmem:[#allocation34_spill] sm:$0xff] }
 0x6ec   : > { %10632 = vmatpush1.bf16.msra.mxu0 %v16874_v34  ;;  %10664 = vmatpush1.bf16.msra.mxu1 %v16875_v14  ;;  %v16885_v34 = vld [vmem:[#allocation37_spill] sm:$0xff]  ;;  %v16886_v14 = vld [vmem:[#allocation36_spill] sm:$0xff] }
 0x6ed   : > { %10634 = vmatprep.subr.bf16.mxu0 %v16876_v37  ;;  %10666 = vmatprep.subr.bf16.mxu1 %v16877_v41  ;;  %v16887_v37 = vld [vmem:[#allocation39_spill] sm:$0xff]  ;;  %v16888_v41 = vld [vmem:[#allocation38_spill] sm:$0xff] }
 0x6f0   : > { %10636 = vmatpush1.bf16.msra.mxu0 %v16878_v45  ;;  %10668 = vmatpush1.bf16.msra.mxu1 %v16879_v4  ;;  %v16889_v45 = vld [vmem:[#allocation40_spill] sm:$0xff]  ;;  %v16922_v4 = vld [vmem:[#allocation107_spill] sm:$0xff] }
 0x6f1   : > { %10638 = vmatprep.subr.bf16.mxu0 %v16880_v2  ;;  %10670 = vmatprep.subr.bf16.mxu1 %v16881_v15  ;;  %v16890_v2 = vld [vmem:[#allocation41_spill] sm:$0xff]  ;;  %v16891_v15 = vld [vmem:[#allocation42_spill] sm:$0xff] }
 0x6f4   : > { %10640 = vmatpush1.bf16.msra.mxu0 %v16882_v18  ;;  %10672 = vmatpush1.bf16.msra.mxu1 %v16883_v55  ;;  %v16892_v18 = vld [vmem:[#allocation43_spill] sm:$0xff]  ;;  %v16893_v55 = vld [vmem:[#allocation44_spill] sm:$0xff] }
 0x6f5   : > { %10642 = vmatprep.subr.bf16.mxu0 %v16884_v3  ;;  %10674 = vmatprep.subr.bf16.mxu1 %v16885_v34  ;;  %v16903_v34 = vld [vmem:[#allocation54_spill] sm:$0xff]  ;;  %v16904_v3 = vld [vmem:[#allocation55_spill] sm:$0xff] }
 0x6f8   : > { %10644 = vmatpush1.bf16.msra.mxu0 %v16886_v14  ;;  %10676 = vmatpush1.bf16.msra.mxu1 %v16887_v37  ;;  %v16894_v14 = vld [vmem:[#allocation45_spill] sm:$0xff]  ;;  %v16895_v37 = vld [vmem:[#allocation46_spill] sm:$0xff] }
 0x6f9   : > { %10678 = vmatprep.subr.bf16.mxu0 %v16888_v41  ;;  %10710 = vmatprep.subr.bf16.mxu1 %v16889_v45  ;;  %v16896_v41 = vld [vmem:[#allocation47_spill] sm:$0xff]  ;;  %v16897_v45 = vld [vmem:[#allocation48_spill] sm:$0xff] }
 0x6fb   : > { %4141 = vmatmul.mubr.f32.vlgmr.msra.gmra.mrb[12].mxu0 %v3765_v51  ;;  %4212 = vmatmul.mubr.f32.vlgmr.msra.gmra.mrb[12].mxu1 %v3765_v51  ;;  %v16898_v51 = vld [vmem:[#allocation49_spill] sm:$0xff] }
 0x6fc   : > { %10680 = vmatpush1.bf16.msra.mxu0 %v16890_v2  ;;  %10712 = vmatpush1.bf16.msra.mxu1 %v16891_v15  ;;  %v16899_v2 = vld [vmem:[#allocation50_spill] sm:$0xff]  ;;  %v16900_v15 = vld [vmem:[#allocation51_spill] sm:$0xff] }
 0x6fd   : > { %10682 = vmatprep.subr.bf16.mxu0 %v16892_v18  ;;  %10714 = vmatprep.subr.bf16.mxu1 %v16893_v55  ;;  %v16901_v18 = vld [vmem:[#allocation52_spill] sm:$0xff]  ;;  %v16902_v55 = vld [vmem:[#allocation53_spill] sm:$0xff] }
 0x6fe   : > { %4304 = vmatprep.mubr.f32.mxu0 %v16556_v48  ;;  %4375 = vmatprep.mubr.f32.mxu1 %v16556_v48 }
 0x700   : > { %10684 = vmatpush1.bf16.msra.mxu0 %v16894_v14  ;;  %10716 = vmatpush1.bf16.msra.mxu1 %v16895_v37  ;;  %v16905_v14 = vld [vmem:[#allocation56_spill] sm:$0xff]  ;;  %v16906_v37 = vld [vmem:[#allocation57_spill] sm:$0xff] }
 0x701   : > { %10686 = vmatprep.subr.bf16.mxu0 %v16896_v41  ;;  %10718 = vmatprep.subr.bf16.mxu1 %v16897_v45  ;;  %v16907_v41 = vld [vmem:[#allocation58_spill] sm:$0xff]  ;;  %v16908_v45 = vld [vmem:[#allocation59_spill] sm:$0xff] }
 0x704   : > { %10688 = vmatpush1.bf16.msra.mxu0 %v16898_v51  ;;  %10720 = vmatpush1.bf16.msra.mxu1 %v16899_v2  ;;  %v16909_v51 = vld [vmem:[#allocation60_spill] sm:$0xff]  ;;  %v16910_v2 = vld [vmem:[#allocation61_spill] sm:$0xff] }
 0x705   : > { %10690 = vmatprep.subr.bf16.mxu0 %v16900_v15  ;;  %10722 = vmatprep.subr.bf16.mxu1 %v16901_v18  ;;  %v16911_v15 = vld [vmem:[#allocation62_spill] sm:$0xff]  ;;  %v16912_v18 = vld [vmem:[#allocation63_spill] sm:$0xff] }
 0x708   : > { %10692 = vmatpush1.bf16.msra.mxu0 %v16902_v55  ;;  %10724 = vmatpush1.bf16.msra.mxu1 %v16903_v34  ;;  %v16913_v55 = vld [vmem:[#allocation64_spill] sm:$0xff]  ;;  %v16914_v34 = vld [vmem:[#allocation65_spill] sm:$0xff] }
 0x709   : > { %10694 = vmatprep.subr.bf16.mxu0 %v16904_v3  ;;  %10726 = vmatprep.subr.bf16.mxu1 %v16905_v14  ;;  %v16915_v3 = vld [vmem:[#allocation66_spill] sm:$0xff]  ;;  %v16916_v14 = vld [vmem:[#allocation67_spill] sm:$0xff] }
 0x70c   : > { %10696 = vmatpush1.bf16.msra.mxu0 %v16906_v37  ;;  %10728 = vmatpush1.bf16.msra.mxu1 %v16907_v41  ;;  %v16917_v37 = vld [vmem:[#allocation68_spill] sm:$0xff]  ;;  %v16918_v41 = vld [vmem:[#allocation69_spill] sm:$0xff] }
 0x70d   : > { %10698 = vmatprep.subr.bf16.mxu0 %v16908_v45  ;;  %10730 = vmatprep.subr.bf16.mxu1 %v16909_v51  ;;  %v16919_v45 = vld [vmem:[#allocation70_spill] sm:$0xff]  ;;  %v16920_v51 = vld [vmem:[#allocation71_spill] sm:$0xff] }
 0x710   : > { %10700 = vmatpush1.bf16.msra.mxu0 %v16910_v2  ;;  %10732 = vmatpush1.bf16.msra.mxu1 %v16911_v15  ;;  %v16921_v2 = vld [vmem:[#allocation72_spill] sm:$0xff] }
 0x711   : > { %10702 = vmatprep.subr.bf16.mxu0 %v16912_v18  ;;  %10734 = vmatprep.subr.bf16.mxu1 %v16913_v55 }
 0x714   : > { %10704 = vmatpush1.bf16.msra.mxu0 %v16914_v34  ;;  %10736 = vmatpush1.bf16.msra.mxu1 %v16915_v3 }
 0x715   : > { %10706 = vmatprep.subr.bf16.mxu0 %v16916_v14  ;;  %10738 = vmatprep.subr.bf16.mxu1 %v16917_v37 }
 0x718   : > { %10708 = vmatpush1.bf16.msra.mxu0 %v16918_v41  ;;  %10740 = vmatpush1.bf16.msra.mxu1 %v16919_v45 }
 0x719   : > { %10742 = vmatprep.subr.bf16.mxu0 %v16920_v51  ;;  %10774 = vmatprep.subr.bf16.mxu1 %v16921_v2 }
 0x7ae   : > { %v3974_v15 = vpop.f32.mrb[42].mxu0  ;;  %v4045_v18 = vpop.f32.mrb[42].mxu1 }
 0x7af   : > { %v4050_v55 = vadd.f32 %v3974_v15, %v16922_v4  ;;  %v3976_v59 = vpop.f32.mrb[43].mxu0  ;;  %v4047_v34 = vpop.f32.mrb[43].mxu1  ;;  %v4052_v37 = vadd.f32 %v4045_v18, %v16677_v21 }
 0x7b0   : > { %v4051_v3 = vadd.f32 %v3976_v59, %v16676_v20  ;;  %v4053_v45 = vadd.f32 %v4047_v34, %v16678_v31 }
 0x7b1   : > { %v4054_v43 = vmul.f32 0.5, %v4050_v55 }
 0x7b2   : > { %v4058_v14 = vmul.f32 0.5, %v4051_v3  ;;  %v4063_v51 = vmul.f32 0.5, %v4053_v45 }
 0x7b3   : > { %12925 = vtanh.f32 %v4054_v43 }
 0x7b4   : > { %12927 = vtanh.f32 %v4058_v14 }
 0x7b5   : > { %12929 = vtanh.f32 %v4052_v37 }
 0x7b6   : > { %12931 = vtanh.f32 %v4063_v51 }
 0x7bd   : > { %v12926_v41 = vpop.eup %12925 }
 0x7be   : > { %v12928_v2 = vpop.eup %12927  ;;  %v4056_v36 = vmul.f32 0.5, %v12926_v41 }
 0x7bf   : > { %v4060_v10 = vmul.f32 0.5, %v12928_v2  ;;  %v12930_v4 = vpop.eup %12929 }
 0x7c0   : > { %v4057_v15 = vadd.f32 0.5, %v4056_v36  ;;  %v12932_v43 = vpop.eup %12931 }
 0x7c1   : > { %v4061_v8 = vadd.f32 0.5, %v4060_v10  ;;  %v4065_v18 = vmul.f32 0.5, %v12932_v43 }
 0x7c2   : > { %v4068_v56 = vmul.f32 %v12930_v4, %v4057_v15 }
 0x7c3   : > { %v4067_v59 = vmul.f32 %v4061_v8, %v14897_v17  ;;  %v4066_v2 = vadd.f32 0.5, %v4065_v18 }
 0x7c5   : > { %v15015_v55 = vadd.f32 %v4068_v56, %v4067_v59 }
 0x7c7   : > { %12933 = vtanh.f32 %v15015_v55 }
 0x7ce   : > { %v4142_v3 = vpop.f32.mrb[12].mxu0  ;;  %v4213_v34 = vpop.f32.mrb[12].mxu1 }
 0x7cf   : > { %v12590_v14 = vadd.f32 %v4142_v3, %v16615_v33  ;;  %v4144_v37 = vpop.f32.mrb[13].mxu0  ;;  %v4215_v41 = vpop.f32.mrb[13].mxu1  ;;  %v12622_v17 = vadd.f32 %v4213_v34, %v16617_v60 }
 0x7d0   : > { %v12591_v36 = vadd.f32 %v4144_v37, %v16616_v5  ;;  %v12623_v56 = vadd.f32 %v4215_v41, %v16681_v27 }
 0x7d1   : > { %v12934_v45 = vpop.eup %12933  ;;  %v4222_v10 = vmul.f32 0.5, %v12590_v14 }
 0x7d2   : > { %v4071_v4 = vmul.f32 %v12934_v45, %v4066_v2  ;;  %v4226_v51 = vmul.f32 0.5, %v12591_v36  ;;  %v4231_v8 = vmul.f32 0.5, %v12623_v56  ;;  %v16925_v56 = vld [vmem:[#allocation14_spill] sm:$0xff] }
 0x7d3   : > { %12935 = vtanh.f32 %v4222_v10 }
 0x7d4   : > { %12937 = vtanh.f32 %v4226_v51  ;;  %4305 = vmatmul.mubr.f32.vlgmr.msra.gmra.mrb[44].mxu0 %v4071_v4  ;;  %4376 = vmatmul.mubr.f32.vlgmr.msra.gmra.mrb[44].mxu1 %v4071_v4  ;;  %v16923_v51 = vld [vmem:[#allocation13_spill] sm:$0xff] }
 0x7d5   : > { %10744 = vmatpush1.bf16.msra.mxu0 %v16618_v63  ;;  %10776 = vmatpush1.bf16.msra.mxu1 %v16619_v13  ;;  %12939 = vtanh.f32 %v12622_v17  ;;  %v16924_v17 = vld [vmem:[#allocation15_spill] sm:$0xff] }
 0x7d6   : > { %10746 = vmatprep.subr.bf16.mxu0 %v16679_v61  ;;  %10778 = vmatprep.subr.bf16.mxu1 %v16680_v26  ;;  %12941 = vtanh.f32 %v4231_v8  ;;  %v16926_v8 = vld [vmem:[#allocation17_spill] sm:$0xff] }
 0x7d7   : > { %4446 = vmatprep.mubr.f32.mxu0 %v16556_v48  ;;  %4517 = vmatprep.mubr.f32.mxu1 %v16556_v48 }
 0x7d9   : > { %10748 = vmatpush1.bf16.msra.mxu0 %v16682_v11  ;;  %10780 = vmatpush1.bf16.msra.mxu1 %v16740_v58 }
 0x7da   : > { %10750 = vmatprep.subr.bf16.mxu0 %v16741_v53  ;;  %10782 = vmatprep.subr.bf16.mxu1 %v16742_v16 }
 0x7dd   : > { %v12936_v15 = vpop.eup %12935  ;;  %10752 = vmatpush1.bf16.msra.mxu0 %v16743_v24  ;;  %10784 = vmatpush1.bf16.msra.mxu1 %v16744_v57 }
 0x7de   : > { %v12938_v59 = vpop.eup %12937  ;;  %v4224_v43 = vmul.f32 0.5, %v12936_v15  ;;  %10754 = vmatprep.subr.bf16.mxu0 %v16745_v35  ;;  %10786 = vmatprep.subr.bf16.mxu1 %v16629_v19  ;;  %v16927_v15 = vld [vmem:[#allocation16_spill] sm:$0xff] }
 0x7df   : > { %v4228_v18 = vmul.f32 0.5, %v12938_v59  ;;  %v12940_v34 = vpop.eup %12939  ;;  %v16928_v59 = vld [vmem:[#allocation19_spill] sm:$0xff] }
 0x7e0   : > { %v4225_v3 = vadd.f32 0.5, %v4224_v43  ;;  %v12942_v36 = vpop.eup %12941  ;;  %v16929_v43 = vld [vmem:[#allocation18_spill] sm:$0xff] }
 0x7e1   : > { %v4229_v14 = vadd.f32 0.5, %v4228_v18  ;;  %10756 = vmatpush1.bf16.msra.mxu0 %v16630_v12  ;;  %10788 = vmatpush1.bf16.msra.mxu1 %v16631_v42  ;;  %v16930_v18 = vld [vmem:[#allocation21_spill] sm:$0xff] }
 0x7e2   : > { %v4236_v37 = vmul.f32 %v12940_v34, %v4225_v3  ;;  %10758 = vmatprep.subr.bf16.mxu0 %v16689_v0  ;;  %10790 = vmatprep.subr.bf16.mxu1 %v16746_v25  ;;  %v16931_v3 = vld [vmem:[#allocation20_spill] sm:$0xff]  ;;  %v16932_v34 = vld [vmem:[#allocation23_spill] sm:$0xff] }
 0x7e3   : > { %v4235_v41 = vmul.f32 %v4229_v14, %v14923_v50  ;;  %v4233_v50 = vmul.f32 0.5, %v12942_v36  ;;  %v16933_v14 = vld [vmem:[#allocation22_spill] sm:$0xff]  ;;  %v16936_v36 = vld [vmem:[#allocation27_spill] sm:$0xff] }
 0x7e5   : > { %v15041_v2 = vadd.f32 %v4236_v37, %v4235_v41  ;;  %10760 = vmatpush1.bf16.msra.mxu0 %v16692_v54  ;;  %10792 = vmatpush1.bf16.msra.mxu1 %v16693_v32  ;;  %v4234_v45 = vadd.f32 0.5, %v4233_v50  ;;  %v16934_v37 = vld [vmem:[#allocation25_spill] sm:$0xff]  ;;  %v16935_v41 = vld [vmem:[#allocation24_spill] sm:$0xff]  ;;  %v16937_v50 = vld [vmem:[#allocation26_spill] sm:$0xff] }
 0x7e6   : > { %10762 = vmatprep.subr.bf16.mxu0 %v16694_v23  ;;  %10794 = vmatprep.subr.bf16.mxu1 %v16695_v7 }
 0x7e7   : > { %12943 = vtanh.f32 %v15041_v2 }
 0x7e9   : > { %10764 = vmatpush1.bf16.msra.mxu0 %v16696_v39  ;;  %10796 = vmatpush1.bf16.msra.mxu1 %v16697_v52 }
 0x7ea   : > { %10766 = vmatprep.subr.bf16.mxu0 %v16698_v1  ;;  %10798 = vmatprep.subr.bf16.mxu1 %v16642_v6 }
 0x7ed   : > { %10768 = vmatpush1.bf16.msra.mxu0 %v16643_v62  ;;  %10800 = vmatpush1.bf16.msra.mxu1 %v16644_v38 }
 0x7ee   : > { %10770 = vmatprep.subr.bf16.mxu0 %v16645_v46  ;;  %10802 = vmatprep.subr.bf16.mxu1 %v16646_v28 }
 0x7f1   : > { %v12944_v10 = vpop.eup %12943  ;;  %10772 = vmatpush1.bf16.msra.mxu0 %v16647_v47  ;;  %10804 = vmatpush1.bf16.msra.mxu1 %v16648_v44 }
 0x7f2   : > { %v4239_v4 = vmul.f32 %v12944_v10, %v4234_v45  ;;  %10806 = vmatprep.subr.bf16.mxu0 %v16649_v49  ;;  %10838 = vmatprep.subr.bf16.mxu1 %v16650_v9  ;;  %v16938_v45 = vld [vmem:[#allocation29_spill] sm:$0xff]  ;;  %v16939_v10 = vld [vmem:[#allocation28_spill] sm:$0xff] }
 0x7f4   : > { %4447 = vmatmul.mubr.f32.vlgmr.msra.gmra.mrb[44].mxu0 %v4239_v4  ;;  %4518 = vmatmul.mubr.f32.vlgmr.msra.gmra.mrb[44].mxu1 %v4239_v4 }
 0x7f5   : > { %10808 = vmatpush1.bf16.msra.mxu0 %v13370_v22  ;;  %10840 = vmatpush1.bf16.msra.mxu1 %v13393_v30 }
 0x7f6   : > { %10810 = vmatprep.subr.bf16.mxu0 %v13391_v29  ;;  %10842 = vmatprep.subr.bf16.mxu1 %v13425_v40 }
 0x7f7   : > { %4614 = vmatprep.mubr.f32.mxu0 %v16556_v48  ;;  %4685 = vmatprep.mubr.f32.mxu1 %v16556_v48 }
 0x7f9   : > { %10812 = vmatpush1.bf16.msra.mxu0 %v16923_v51  ;;  %10844 = vmatpush1.bf16.msra.mxu1 %v16924_v17 }
 0x7fa   : > { %10814 = vmatprep.subr.bf16.mxu0 %v16925_v56  ;;  %10846 = vmatprep.subr.bf16.mxu1 %v16926_v8 }
 0x7fd   : > { %10816 = vmatpush1.bf16.msra.mxu0 %v16927_v15  ;;  %10848 = vmatpush1.bf16.msra.mxu1 %v16928_v59 }
 0x7fe   : > { %10818 = vmatprep.subr.bf16.mxu0 %v16929_v43  ;;  %10850 = vmatprep.subr.bf16.mxu1 %v16930_v18  ;;  %v16940_v43 = vld [vmem:[#allocation31_spill] sm:$0xff]  ;;  %v16941_v18 = vld [vmem:[#allocation30_spill] sm:$0xff] }
 0x801   : > { %10820 = vmatpush1.bf16.msra.mxu0 %v16931_v3  ;;  %10852 = vmatpush1.bf16.msra.mxu1 %v16932_v34  ;;  %v16942_v3 = vld [vmem:[#allocation33_spill] sm:$0xff]  ;;  %v16943_v34 = vld [vmem:[#allocation32_spill] sm:$0xff] }
 0x802   : > { %10822 = vmatprep.subr.bf16.mxu0 %v16933_v14  ;;  %10854 = vmatprep.subr.bf16.mxu1 %v16934_v37  ;;  %v16944_v14 = vld [vmem:[#allocation35_spill] sm:$0xff]  ;;  %v16945_v37 = vld [vmem:[#allocation34_spill] sm:$0xff] }
 0x805   : > { %10824 = vmatpush1.bf16.msra.mxu0 %v16935_v41  ;;  %10856 = vmatpush1.bf16.msra.mxu1 %v16936_v36  ;;  %v16946_v41 = vld [vmem:[#allocation37_spill] sm:$0xff]  ;;  %v16947_v36 = vld [vmem:[#allocation36_spill] sm:$0xff] }
 0x806   : > { %10826 = vmatprep.subr.bf16.mxu0 %v16937_v50  ;;  %10858 = vmatprep.subr.bf16.mxu1 %v16938_v45  ;;  %v16948_v50 = vld [vmem:[#allocation39_spill] sm:$0xff]  ;;  %v16949_v45 = vld [vmem:[#allocation38_spill] sm:$0xff] }
 0x809   : > { %10828 = vmatpush1.bf16.msra.mxu0 %v16939_v10  ;;  %10860 = vmatpush1.bf16.msra.mxu1 %v16940_v43  ;;  %v16950_v10 = vld [vmem:[#allocation40_spill] sm:$0xff]  ;;  %v16983_v43 = vld [vmem:[#allocation107_spill] sm:$0xff] }
 0x80a   : > { %10830 = vmatprep.subr.bf16.mxu0 %v16941_v18  ;;  %10862 = vmatprep.subr.bf16.mxu1 %v16942_v3  ;;  %v16951_v18 = vld [vmem:[#allocation41_spill] sm:$0xff]  ;;  %v16952_v3 = vld [vmem:[#allocation42_spill] sm:$0xff] }
 0x80d   : > { %10832 = vmatpush1.bf16.msra.mxu0 %v16943_v34  ;;  %10864 = vmatpush1.bf16.msra.mxu1 %v16944_v14  ;;  %v16953_v34 = vld [vmem:[#allocation43_spill] sm:$0xff]  ;;  %v16954_v14 = vld [vmem:[#allocation44_spill] sm:$0xff] }
 0x80e   : > { %10834 = vmatprep.subr.bf16.mxu0 %v16945_v37  ;;  %10866 = vmatprep.subr.bf16.mxu1 %v16946_v41  ;;  %v16964_v41 = vld [vmem:[#allocation54_spill] sm:$0xff]  ;;  %v16965_v37 = vld [vmem:[#allocation55_spill] sm:$0xff] }
 0x811   : > { %10836 = vmatpush1.bf16.msra.mxu0 %v16947_v36  ;;  %10868 = vmatpush1.bf16.msra.mxu1 %v16948_v50  ;;  %v16955_v36 = vld [vmem:[#allocation45_spill] sm:$0xff]  ;;  %v16956_v50 = vld [vmem:[#allocation46_spill] sm:$0xff] }
 0x812   : > { %10870 = vmatprep.subr.bf16.mxu0 %v16949_v45  ;;  %10902 = vmatprep.subr.bf16.mxu1 %v16950_v10  ;;  %v16957_v45 = vld [vmem:[#allocation47_spill] sm:$0xff]  ;;  %v16958_v10 = vld [vmem:[#allocation48_spill] sm:$0xff] }
 0x814   : > { %4615 = vmatmul.mubr.f32.vlgmr.msra.gmra.mrb[14].mxu0 %v4239_v4  ;;  %4686 = vmatmul.mubr.f32.vlgmr.msra.gmra.mrb[14].mxu1 %v4239_v4  ;;  %v16959_v4 = vld [vmem:[#allocation49_spill] sm:$0xff] }
 0x815   : > { %10872 = vmatpush1.bf16.msra.mxu0 %v16951_v18  ;;  %10904 = vmatpush1.bf16.msra.mxu1 %v16952_v3  ;;  %v16960_v18 = vld [vmem:[#allocation50_spill] sm:$0xff]  ;;  %v16961_v3 = vld [vmem:[#allocation51_spill] sm:$0xff] }
 0x816   : > { %10874 = vmatprep.subr.bf16.mxu0 %v16953_v34  ;;  %10906 = vmatprep.subr.bf16.mxu1 %v16954_v14  ;;  %v16962_v34 = vld [vmem:[#allocation52_spill] sm:$0xff]  ;;  %v16963_v14 = vld [vmem:[#allocation53_spill] sm:$0xff] }
 0x817   : > { %4778 = vmatprep.mubr.f32.mxu0 %v16556_v48  ;;  %4849 = vmatprep.mubr.f32.mxu1 %v16556_v48 }
 0x819   : > { %10876 = vmatpush1.bf16.msra.mxu0 %v16955_v36  ;;  %10908 = vmatpush1.bf16.msra.mxu1 %v16956_v50  ;;  %v16966_v36 = vld [vmem:[#allocation56_spill] sm:$0xff]  ;;  %v16967_v50 = vld [vmem:[#allocation57_spill] sm:$0xff] }
 0x81a   : > { %10878 = vmatprep.subr.bf16.mxu0 %v16957_v45  ;;  %10910 = vmatprep.subr.bf16.mxu1 %v16958_v10  ;;  %v16968_v45 = vld [vmem:[#allocation58_spill] sm:$0xff]  ;;  %v16969_v10 = vld [vmem:[#allocation59_spill] sm:$0xff] }
 0x81d   : > { %10880 = vmatpush1.bf16.msra.mxu0 %v16959_v4  ;;  %10912 = vmatpush1.bf16.msra.mxu1 %v16960_v18  ;;  %v16970_v4 = vld [vmem:[#allocation60_spill] sm:$0xff]  ;;  %v16971_v18 = vld [vmem:[#allocation61_spill] sm:$0xff] }
 0x81e   : > { %10882 = vmatprep.subr.bf16.mxu0 %v16961_v3  ;;  %10914 = vmatprep.subr.bf16.mxu1 %v16962_v34  ;;  %v16972_v3 = vld [vmem:[#allocation62_spill] sm:$0xff]  ;;  %v16973_v34 = vld [vmem:[#allocation63_spill] sm:$0xff] }
 0x821   : > { %10884 = vmatpush1.bf16.msra.mxu0 %v16963_v14  ;;  %10916 = vmatpush1.bf16.msra.mxu1 %v16964_v41  ;;  %v16974_v14 = vld [vmem:[#allocation64_spill] sm:$0xff]  ;;  %v16975_v41 = vld [vmem:[#allocation65_spill] sm:$0xff] }
 0x822   : > { %10886 = vmatprep.subr.bf16.mxu0 %v16965_v37  ;;  %10918 = vmatprep.subr.bf16.mxu1 %v16966_v36  ;;  %v16976_v37 = vld [vmem:[#allocation66_spill] sm:$0xff]  ;;  %v16977_v36 = vld [vmem:[#allocation67_spill] sm:$0xff] }
 0x825   : > { %10888 = vmatpush1.bf16.msra.mxu0 %v16967_v50  ;;  %10920 = vmatpush1.bf16.msra.mxu1 %v16968_v45  ;;  %v16978_v50 = vld [vmem:[#allocation68_spill] sm:$0xff]  ;;  %v16979_v45 = vld [vmem:[#allocation69_spill] sm:$0xff] }
 0x826   : > { %10890 = vmatprep.subr.bf16.mxu0 %v16969_v10  ;;  %10922 = vmatprep.subr.bf16.mxu1 %v16970_v4  ;;  %v16980_v10 = vld [vmem:[#allocation70_spill] sm:$0xff]  ;;  %v16981_v4 = vld [vmem:[#allocation71_spill] sm:$0xff] }
 0x829   : > { %10892 = vmatpush1.bf16.msra.mxu0 %v16971_v18  ;;  %10924 = vmatpush1.bf16.msra.mxu1 %v16972_v3  ;;  %v16982_v18 = vld [vmem:[#allocation72_spill] sm:$0xff] }
 0x82a   : > { %10894 = vmatprep.subr.bf16.mxu0 %v16973_v34  ;;  %10926 = vmatprep.subr.bf16.mxu1 %v16974_v14 }
 0x82d   : > { %10896 = vmatpush1.bf16.msra.mxu0 %v16975_v41  ;;  %10928 = vmatpush1.bf16.msra.mxu1 %v16976_v37 }
 0x82e   : > { %10898 = vmatprep.subr.bf16.mxu0 %v16977_v36  ;;  %10930 = vmatprep.subr.bf16.mxu1 %v16978_v50 }
 0x831   : > { %10900 = vmatpush1.bf16.msra.mxu0 %v16979_v45  ;;  %10932 = vmatpush1.bf16.msra.mxu1 %v16980_v10 }
 0x832   : > { %10934 = vmatprep.subr.bf16.mxu0 %v16981_v4  ;;  %10966 = vmatprep.subr.bf16.mxu1 %v16982_v18 }
 0x8c7   : > { %v4448_v3 = vpop.f32.mrb[44].mxu0  ;;  %v4519_v34 = vpop.f32.mrb[44].mxu1 }
 0x8c8   : > { %v4524_v14 = vadd.f32 %v4448_v3, %v16983_v43  ;;  %v4450_v59 = vpop.f32.mrb[45].mxu0  ;;  %v4521_v41 = vpop.f32.mrb[45].mxu1  ;;  %v4526_v50 = vadd.f32 %v4519_v34, %v16677_v21 }
 0x8c9   : > { %v4525_v37 = vadd.f32 %v4450_v59, %v16676_v20  ;;  %v4527_v10 = vadd.f32 %v4521_v41, %v16678_v31 }
 0x8ca   : > { %v4528_v15 = vmul.f32 0.5, %v4524_v14 }
 0x8cb   : > { %v4532_v36 = vmul.f32 0.5, %v4525_v37  ;;  %v4537_v4 = vmul.f32 0.5, %v4527_v10 }
 0x8cc   : > { %12945 = vtanh.f32 %v4528_v15 }
 0x8cd   : > { %12947 = vtanh.f32 %v4532_v36 }
 0x8ce   : > { %12949 = vtanh.f32 %v4526_v50 }
 0x8cf   : > { %12951 = vtanh.f32 %v4537_v4 }
 0x8d6   : > { %v12946_v45 = vpop.eup %12945 }
 0x8d7   : > { %v12948_v18 = vpop.eup %12947  ;;  %v4530_v8 = vmul.f32 0.5, %v12946_v45 }
 0x8d8   : > { %v4534_v56 = vmul.f32 0.5, %v12948_v18  ;;  %v12950_v43 = vpop.eup %12949 }
 0x8d9   : > { %v4531_v3 = vadd.f32 0.5, %v4530_v8  ;;  %v12952_v15 = vpop.eup %12951 }
 0x8da   : > { %v4535_v17 = vadd.f32 0.5, %v4534_v56  ;;  %v4539_v34 = vmul.f32 0.5, %v12952_v15 }
 0x8db   : > { %v4542_v51 = vmul.f32 %v12950_v43, %v4531_v3 }
 0x8dc   : > { %v4541_v59 = vmul.f32 %v4535_v17, %v15015_v55  ;;  %v4540_v18 = vadd.f32 0.5, %v4539_v34 }
 0x8de   : > { %v15133_v14 = vadd.f32 %v4542_v51, %v4541_v59 }
 0x8e0   : > { %12953 = vtanh.f32 %v15133_v14 }
 0x8e7   : > { %v4616_v37 = vpop.f32.mrb[14].mxu0  ;;  %v4687_v41 = vpop.f32.mrb[14].mxu1 }
 0x8e8   : > { %v12592_v36 = vadd.f32 %v4616_v37, %v16615_v33  ;;  %v4618_v50 = vpop.f32.mrb[15].mxu0  ;;  %v4689_v45 = vpop.f32.mrb[15].mxu1  ;;  %v12624_v55 = vadd.f32 %v4687_v41, %v16617_v60 }
 0x8e9   : > { %v12593_v8 = vadd.f32 %v4618_v50, %v16616_v5  ;;  %v12625_v51 = vadd.f32 %v4689_v45, %v16681_v27 }
 0x8ea   : > { %v12954_v10 = vpop.eup %12953  ;;  %v4696_v56 = vmul.f32 0.5, %v12592_v36 }
 0x8eb   : > { %v4545_v43 = vmul.f32 %v12954_v10, %v4540_v18  ;;  %v4700_v4 = vmul.f32 0.5, %v12593_v8  ;;  %v4705_v17 = vmul.f32 0.5, %v12625_v51  ;;  %v16986_v51 = vld [vmem:[#allocation14_spill] sm:$0xff] }
 0x8ec   : > { %12955 = vtanh.f32 %v4696_v56 }
 0x8ed   : > { %12957 = vtanh.f32 %v4700_v4  ;;  %4779 = vmatmul.mubr.f32.vlgmr.msra.gmra.mrb[46].mxu0 %v4545_v43  ;;  %4850 = vmatmul.mubr.f32.vlgmr.msra.gmra.mrb[46].mxu1 %v4545_v43  ;;  %v16984_v4 = vld [vmem:[#allocation13_spill] sm:$0xff] }
 0x8ee   : > { %10936 = vmatpush1.bf16.msra.mxu0 %v16618_v63  ;;  %10968 = vmatpush1.bf16.msra.mxu1 %v16619_v13  ;;  %12959 = vtanh.f32 %v12624_v55  ;;  %v16985_v55 = vld [vmem:[#allocation15_spill] sm:$0xff] }
 0x8ef   : > { %10938 = vmatprep.subr.bf16.mxu0 %v16679_v61  ;;  %10970 = vmatprep.subr.bf16.mxu1 %v16680_v26  ;;  %12961 = vtanh.f32 %v4705_v17  ;;  %v16987_v17 = vld [vmem:[#allocation17_spill] sm:$0xff] }
 0x8f0   : > { %4920 = vmatprep.mubr.f32.mxu0 %v16556_v48  ;;  %4991 = vmatprep.mubr.f32.mxu1 %v16556_v48 }
 0x8f2   : > { %10940 = vmatpush1.bf16.msra.mxu0 %v16682_v11  ;;  %10972 = vmatpush1.bf16.msra.mxu1 %v16740_v58 }
 0x8f3   : > { %10942 = vmatprep.subr.bf16.mxu0 %v16741_v53  ;;  %10974 = vmatprep.subr.bf16.mxu1 %v16742_v16 }
 0x8f6   : > { %v12956_v3 = vpop.eup %12955  ;;  %10944 = vmatpush1.bf16.msra.mxu0 %v16743_v24  ;;  %10976 = vmatpush1.bf16.msra.mxu1 %v16744_v57 }
 0x8f7   : > { %v12958_v59 = vpop.eup %12957  ;;  %v4698_v15 = vmul.f32 0.5, %v12956_v3  ;;  %10946 = vmatprep.subr.bf16.mxu0 %v16745_v35  ;;  %10978 = vmatprep.subr.bf16.mxu1 %v16629_v19  ;;  %v16988_v3 = vld [vmem:[#allocation16_spill] sm:$0xff] }
 0x8f8   : > { %v4702_v34 = vmul.f32 0.5, %v12958_v59  ;;  %v12960_v41 = vpop.eup %12959  ;;  %v16989_v59 = vld [vmem:[#allocation19_spill] sm:$0xff] }
 0x8f9   : > { %v4699_v37 = vadd.f32 0.5, %v4698_v15  ;;  %v12962_v8 = vpop.eup %12961  ;;  %v16990_v15 = vld [vmem:[#allocation18_spill] sm:$0xff] }
 0x8fa   : > { %v4703_v36 = vadd.f32 0.5, %v4702_v34  ;;  %10948 = vmatpush1.bf16.msra.mxu0 %v16630_v12  ;;  %10980 = vmatpush1.bf16.msra.mxu1 %v16631_v42  ;;  %v16991_v34 = vld [vmem:[#allocation21_spill] sm:$0xff] }
 0x8fb   : > { %v4710_v50 = vmul.f32 %v12960_v41, %v4699_v37  ;;  %10950 = vmatprep.subr.bf16.mxu0 %v16689_v0  ;;  %10982 = vmatprep.subr.bf16.mxu1 %v16746_v25  ;;  %v16992_v37 = vld [vmem:[#allocation20_spill] sm:$0xff]  ;;  %v16993_v41 = vld [vmem:[#allocation23_spill] sm:$0xff] }
 0x8fc   : > { %v4709_v45 = vmul.f32 %v4703_v36, %v15041_v2  ;;  %v4707_v2 = vmul.f32 0.5, %v12962_v8  ;;  %v16994_v36 = vld [vmem:[#allocation22_spill] sm:$0xff]  ;;  %v16997_v8 = vld [vmem:[#allocation27_spill] sm:$0xff] }
 0x8fe   : > { %v15159_v18 = vadd.f32 %v4710_v50, %v4709_v45  ;;  %10952 = vmatpush1.bf16.msra.mxu0 %v16692_v54  ;;  %10984 = vmatpush1.bf16.msra.mxu1 %v16693_v32  ;;  %v4708_v10 = vadd.f32 0.5, %v4707_v2  ;;  %v16995_v50 = vld [vmem:[#allocation25_spill] sm:$0xff]  ;;  %v16996_v45 = vld [vmem:[#allocation24_spill] sm:$0xff]  ;;  %v16998_v2 = vld [vmem:[#allocation26_spill] sm:$0xff] }
 0x8ff   : > { %10954 = vmatprep.subr.bf16.mxu0 %v16694_v23  ;;  %10986 = vmatprep.subr.bf16.mxu1 %v16695_v7 }
 0x900   : > { %12963 = vtanh.f32 %v15159_v18 }
 0x902   : > { %10956 = vmatpush1.bf16.msra.mxu0 %v16696_v39  ;;  %10988 = vmatpush1.bf16.msra.mxu1 %v16697_v52 }
 0x903   : > { %10958 = vmatprep.subr.bf16.mxu0 %v16698_v1  ;;  %10990 = vmatprep.subr.bf16.mxu1 %v16642_v6 }
 0x906   : > { %10960 = vmatpush1.bf16.msra.mxu0 %v16643_v62  ;;  %10992 = vmatpush1.bf16.msra.mxu1 %v16644_v38 }
 0x907   : > { %10962 = vmatprep.subr.bf16.mxu0 %v16645_v46  ;;  %10994 = vmatprep.subr.bf16.mxu1 %v16646_v28 }
 0x90a   : > { %v12964_v56 = vpop.eup %12963  ;;  %10964 = vmatpush1.bf16.msra.mxu0 %v16647_v47  ;;  %10996 = vmatpush1.bf16.msra.mxu1 %v16648_v44 }
 0x90b   : > { %v4713_v43 = vmul.f32 %v12964_v56, %v4708_v10  ;;  %10998 = vmatprep.subr.bf16.mxu0 %v16649_v49  ;;  %11030 = vmatprep.subr.bf16.mxu1 %v16650_v9  ;;  %v16999_v10 = vld [vmem:[#allocation29_spill] sm:$0xff]  ;;  %v17000_v56 = vld [vmem:[#allocation28_spill] sm:$0xff] }
 0x90d   : > { %4921 = vmatmul.mubr.f32.vlgmr.msra.gmra.mrb[46].mxu0 %v4713_v43  ;;  %4992 = vmatmul.mubr.f32.vlgmr.msra.gmra.mrb[46].mxu1 %v4713_v43 }
 0x90e   : > { %11000 = vmatpush1.bf16.msra.mxu0 %v13370_v22  ;;  %11032 = vmatpush1.bf16.msra.mxu1 %v13393_v30 }
 0x90f   : > { %11002 = vmatprep.subr.bf16.mxu0 %v13391_v29  ;;  %11034 = vmatprep.subr.bf16.mxu1 %v13425_v40 }
 0x910   : > { %5088 = vmatprep.mubr.f32.mxu0 %v16556_v48  ;;  %5159 = vmatprep.mubr.f32.mxu1 %v16556_v48 }
 0x912   : > { %11004 = vmatpush1.bf16.msra.mxu0 %v16984_v4  ;;  %11036 = vmatpush1.bf16.msra.mxu1 %v16985_v55 }
 0x913   : > { %11006 = vmatprep.subr.bf16.mxu0 %v16986_v51  ;;  %11038 = vmatprep.subr.bf16.mxu1 %v16987_v17 }
 0x916   : > { %11008 = vmatpush1.bf16.msra.mxu0 %v16988_v3  ;;  %11040 = vmatpush1.bf16.msra.mxu1 %v16989_v59 }
 0x917   : > { %11010 = vmatprep.subr.bf16.mxu0 %v16990_v15  ;;  %11042 = vmatprep.subr.bf16.mxu1 %v16991_v34  ;;  %v17001_v15 = vld [vmem:[#allocation31_spill] sm:$0xff]  ;;  %v17002_v34 = vld [vmem:[#allocation30_spill] sm:$0xff] }
 0x91a   : > { %11012 = vmatpush1.bf16.msra.mxu0 %v16992_v37  ;;  %11044 = vmatpush1.bf16.msra.mxu1 %v16993_v41  ;;  %v17003_v37 = vld [vmem:[#allocation33_spill] sm:$0xff]  ;;  %v17004_v41 = vld [vmem:[#allocation32_spill] sm:$0xff] }
 0x91b   : > { %11014 = vmatprep.subr.bf16.mxu0 %v16994_v36  ;;  %11046 = vmatprep.subr.bf16.mxu1 %v16995_v50  ;;  %v17005_v36 = vld [vmem:[#allocation35_spill] sm:$0xff]  ;;  %v17006_v50 = vld [vmem:[#allocation34_spill] sm:$0xff] }
 0x91e   : > { %11016 = vmatpush1.bf16.msra.mxu0 %v16996_v45  ;;  %11048 = vmatpush1.bf16.msra.mxu1 %v16997_v8  ;;  %v17007_v45 = vld [vmem:[#allocation37_spill] sm:$0xff]  ;;  %v17008_v8 = vld [vmem:[#allocation36_spill] sm:$0xff] }
 0x91f   : > { %11018 = vmatprep.subr.bf16.mxu0 %v16998_v2  ;;  %11050 = vmatprep.subr.bf16.mxu1 %v16999_v10  ;;  %v17009_v2 = vld [vmem:[#allocation39_spill] sm:$0xff]  ;;  %v17010_v10 = vld [vmem:[#allocation38_spill] sm:$0xff] }
 0x922   : > { %11020 = vmatpush1.bf16.msra.mxu0 %v17000_v56  ;;  %11052 = vmatpush1.bf16.msra.mxu1 %v17001_v15  ;;  %v17011_v56 = vld [vmem:[#allocation40_spill] sm:$0xff]  ;;  %v17044_v15 = vld [vmem:[#allocation107_spill] sm:$0xff] }
 0x923   : > { %11022 = vmatprep.subr.bf16.mxu0 %v17002_v34  ;;  %11054 = vmatprep.subr.bf16.mxu1 %v17003_v37  ;;  %v17012_v34 = vld [vmem:[#allocation41_spill] sm:$0xff]  ;;  %v17013_v37 = vld [vmem:[#allocation42_spill] sm:$0xff] }
 0x926   : > { %11024 = vmatpush1.bf16.msra.mxu0 %v17004_v41  ;;  %11056 = vmatpush1.bf16.msra.mxu1 %v17005_v36  ;;  %v17014_v41 = vld [vmem:[#allocation43_spill] sm:$0xff]  ;;  %v17015_v36 = vld [vmem:[#allocation44_spill] sm:$0xff] }
 0x927   : > { %11026 = vmatprep.subr.bf16.mxu0 %v17006_v50  ;;  %11058 = vmatprep.subr.bf16.mxu1 %v17007_v45  ;;  %v17025_v45 = vld [vmem:[#allocation54_spill] sm:$0xff]  ;;  %v17026_v50 = vld [vmem:[#allocation55_spill] sm:$0xff] }
 0x92a   : > { %11028 = vmatpush1.bf16.msra.mxu0 %v17008_v8  ;;  %11060 = vmatpush1.bf16.msra.mxu1 %v17009_v2  ;;  %v17016_v8 = vld [vmem:[#allocation45_spill] sm:$0xff]  ;;  %v17017_v2 = vld [vmem:[#allocation46_spill] sm:$0xff] }
 0x92b   : > { %11062 = vmatprep.subr.bf16.mxu0 %v17010_v10  ;;  %11094 = vmatprep.subr.bf16.mxu1 %v17011_v56  ;;  %v17018_v10 = vld [vmem:[#allocation47_spill] sm:$0xff]  ;;  %v17019_v56 = vld [vmem:[#allocation48_spill] sm:$0xff] }
 0x92d   : > { %5089 = vmatmul.mubr.f32.vlgmr.msra.gmra.mrb[16].mxu0 %v4713_v43  ;;  %5160 = vmatmul.mubr.f32.vlgmr.msra.gmra.mrb[16].mxu1 %v4713_v43  ;;  %v17020_v43 = vld [vmem:[#allocation49_spill] sm:$0xff] }
 0x92e   : > { %11064 = vmatpush1.bf16.msra.mxu0 %v17012_v34  ;;  %11096 = vmatpush1.bf16.msra.mxu1 %v17013_v37  ;;  %v17021_v34 = vld [vmem:[#allocation50_spill] sm:$0xff]  ;;  %v17022_v37 = vld [vmem:[#allocation51_spill] sm:$0xff] }
 0x92f   : > { %11066 = vmatprep.subr.bf16.mxu0 %v17014_v41  ;;  %11098 = vmatprep.subr.bf16.mxu1 %v17015_v36  ;;  %v17023_v41 = vld [vmem:[#allocation52_spill] sm:$0xff]  ;;  %v17024_v36 = vld [vmem:[#allocation53_spill] sm:$0xff] }
 0x930   : > { %5252 = vmatprep.mubr.f32.mxu0 %v16556_v48  ;;  %5323 = vmatprep.mubr.f32.mxu1 %v16556_v48 }
 0x932   : > { %11068 = vmatpush1.bf16.msra.mxu0 %v17016_v8  ;;  %11100 = vmatpush1.bf16.msra.mxu1 %v17017_v2  ;;  %v17027_v8 = vld [vmem:[#allocation56_spill] sm:$0xff]  ;;  %v17028_v2 = vld [vmem:[#allocation57_spill] sm:$0xff] }
 0x933   : > { %11070 = vmatprep.subr.bf16.mxu0 %v17018_v10  ;;  %11102 = vmatprep.subr.bf16.mxu1 %v17019_v56  ;;  %v17029_v10 = vld [vmem:[#allocation58_spill] sm:$0xff]  ;;  %v17030_v56 = vld [vmem:[#allocation59_spill] sm:$0xff] }
 0x936   : > { %11072 = vmatpush1.bf16.msra.mxu0 %v17020_v43  ;;  %11104 = vmatpush1.bf16.msra.mxu1 %v17021_v34  ;;  %v17031_v43 = vld [vmem:[#allocation60_spill] sm:$0xff]  ;;  %v17032_v34 = vld [vmem:[#allocation61_spill] sm:$0xff] }
 0x937   : > { %11074 = vmatprep.subr.bf16.mxu0 %v17022_v37  ;;  %11106 = vmatprep.subr.bf16.mxu1 %v17023_v41  ;;  %v17033_v37 = vld [vmem:[#allocation62_spill] sm:$0xff]  ;;  %v17034_v41 = vld [vmem:[#allocation63_spill] sm:$0xff] }
 0x93a   : > { %11076 = vmatpush1.bf16.msra.mxu0 %v17024_v36  ;;  %11108 = vmatpush1.bf16.msra.mxu1 %v17025_v45  ;;  %v17035_v36 = vld [vmem:[#allocation64_spill] sm:$0xff]  ;;  %v17036_v45 = vld [vmem:[#allocation65_spill] sm:$0xff] }
 0x93b   : > { %11078 = vmatprep.subr.bf16.mxu0 %v17026_v50  ;;  %11110 = vmatprep.subr.bf16.mxu1 %v17027_v8  ;;  %v17037_v50 = vld [vmem:[#allocation66_spill] sm:$0xff]  ;;  %v17038_v8 = vld [vmem:[#allocation67_spill] sm:$0xff] }
 0x93e   : > { %11080 = vmatpush1.bf16.msra.mxu0 %v17028_v2  ;;  %11112 = vmatpush1.bf16.msra.mxu1 %v17029_v10  ;;  %v17039_v2 = vld [vmem:[#allocation68_spill] sm:$0xff]  ;;  %v17040_v10 = vld [vmem:[#allocation69_spill] sm:$0xff] }
 0x93f   : > { %11082 = vmatprep.subr.bf16.mxu0 %v17030_v56  ;;  %11114 = vmatprep.subr.bf16.mxu1 %v17031_v43  ;;  %v17041_v56 = vld [vmem:[#allocation70_spill] sm:$0xff]  ;;  %v17042_v43 = vld [vmem:[#allocation71_spill] sm:$0xff] }
 0x942   : > { %11084 = vmatpush1.bf16.msra.mxu0 %v17032_v34  ;;  %11116 = vmatpush1.bf16.msra.mxu1 %v17033_v37  ;;  %v17043_v34 = vld [vmem:[#allocation72_spill] sm:$0xff] }
 0x943   : > { %11086 = vmatprep.subr.bf16.mxu0 %v17034_v41  ;;  %11118 = vmatprep.subr.bf16.mxu1 %v17035_v36 }
 0x946   : > { %11088 = vmatpush1.bf16.msra.mxu0 %v17036_v45  ;;  %11120 = vmatpush1.bf16.msra.mxu1 %v17037_v50 }
 0x947   : > { %11090 = vmatprep.subr.bf16.mxu0 %v17038_v8  ;;  %11122 = vmatprep.subr.bf16.mxu1 %v17039_v2 }
 0x94a   : > { %11092 = vmatpush1.bf16.msra.mxu0 %v17040_v10  ;;  %11124 = vmatpush1.bf16.msra.mxu1 %v17041_v56 }
 0x94b   : > { %11126 = vmatprep.subr.bf16.mxu0 %v17042_v43  ;;  %11158 = vmatprep.subr.bf16.mxu1 %v17043_v34 }
 0x9e0   : > { %v4922_v37 = vpop.f32.mrb[46].mxu0  ;;  %v4993_v41 = vpop.f32.mrb[46].mxu1 }
 0x9e1   : > { %v4998_v36 = vadd.f32 %v4922_v37, %v17044_v15  ;;  %v4924_v59 = vpop.f32.mrb[47].mxu0  ;;  %v4995_v45 = vpop.f32.mrb[47].mxu1  ;;  %v5000_v2 = vadd.f32 %v4993_v41, %v16677_v21 }
 0x9e2   : > { %v4999_v50 = vadd.f32 %v4924_v59, %v16676_v20  ;;  %v5001_v56 = vadd.f32 %v4995_v45, %v16678_v31 }
 0x9e3   : > { %v5002_v3 = vmul.f32 0.5, %v4998_v36 }
 0x9e4   : > { %v5006_v8 = vmul.f32 0.5, %v4999_v50  ;;  %v5011_v43 = vmul.f32 0.5, %v5001_v56 }
 0x9e5   : > { %12965 = vtanh.f32 %v5002_v3 }
 0x9e6   : > { %12967 = vtanh.f32 %v5006_v8 }
 0x9e7   : > { %12969 = vtanh.f32 %v5000_v2 }
 0x9e8   : > { %12971 = vtanh.f32 %v5011_v43 }
 0x9ef   : > { %v12966_v10 = vpop.eup %12965 }
 0x9f0   : > { %v12968_v34 = vpop.eup %12967  ;;  %v5004_v17 = vmul.f32 0.5, %v12966_v10 }
 0x9f1   : > { %v5008_v51 = vmul.f32 0.5, %v12968_v34  ;;  %v12970_v15 = vpop.eup %12969 }
 0x9f2   : > { %v5005_v37 = vadd.f32 0.5, %v5004_v17  ;;  %v12972_v3 = vpop.eup %12971 }
 0x9f3   : > { %v5009_v55 = vadd.f32 0.5, %v5008_v51  ;;  %v5013_v41 = vmul.f32 0.5, %v12972_v3 }
 0x9f4   : > { %v5016_v4 = vmul.f32 %v12970_v15, %v5005_v37 }
 0x9f5   : > { %v5015_v59 = vmul.f32 %v5009_v55, %v15133_v14  ;;  %v5014_v34 = vadd.f32 0.5, %v5013_v41 }
 0x9f7   : > { %v15251_v36 = vadd.f32 %v5016_v4, %v5015_v59 }
 0x9f9   : > { %12973 = vtanh.f32 %v15251_v36 }
 0xa00   : > { %v5090_v50 = vpop.f32.mrb[16].mxu0  ;;  %v5161_v45 = vpop.f32.mrb[16].mxu1 }
 0xa01   : > { %v12594_v8 = vadd.f32 %v5090_v50, %v16615_v33  ;;  %v5092_v2 = vpop.f32.mrb[17].mxu0  ;;  %v5163_v10 = vpop.f32.mrb[17].mxu1  ;;  %v12626_v14 = vadd.f32 %v5161_v45, %v16617_v60 }
 0xa02   : > { %v12595_v17 = vadd.f32 %v5092_v2, %v16616_v5  ;;  %v12627_v4 = vadd.f32 %v5163_v10, %v16681_v27 }
 0xa03   : > { %v12974_v56 = vpop.eup %12973  ;;  %v5170_v51 = vmul.f32 0.5, %v12594_v8 }
 0xa04   : > { %v5019_v15 = vmul.f32 %v12974_v56, %v5014_v34  ;;  %v5174_v43 = vmul.f32 0.5, %v12595_v17  ;;  %v5179_v55 = vmul.f32 0.5, %v12627_v4  ;;  %v17047_v4 = vld [vmem:[#allocation14_spill] sm:$0xff] }
 0xa05   : > { %12975 = vtanh.f32 %v5170_v51 }
 0xa06   : > { %12977 = vtanh.f32 %v5174_v43  ;;  %5253 = vmatmul.mubr.f32.vlgmr.msra.gmra.mrb[48].mxu0 %v5019_v15  ;;  %5324 = vmatmul.mubr.f32.vlgmr.msra.gmra.mrb[48].mxu1 %v5019_v15  ;;  %v17045_v43 = vld [vmem:[#allocation13_spill] sm:$0xff] }
 0xa07   : > { %11128 = vmatpush1.bf16.msra.mxu0 %v16618_v63  ;;  %11160 = vmatpush1.bf16.msra.mxu1 %v16619_v13  ;;  %12979 = vtanh.f32 %v12626_v14  ;;  %v17046_v14 = vld [vmem:[#allocation15_spill] sm:$0xff] }
 0xa08   : > { %11130 = vmatprep.subr.bf16.mxu0 %v16679_v61  ;;  %11162 = vmatprep.subr.bf16.mxu1 %v16680_v26  ;;  %12981 = vtanh.f32 %v5179_v55  ;;  %v17048_v55 = vld [vmem:[#allocation17_spill] sm:$0xff] }
 0xa09   : > { %5394 = vmatprep.mubr.f32.mxu0 %v16556_v48  ;;  %5465 = vmatprep.mubr.f32.mxu1 %v16556_v48 }
 0xa0b   : > { %11132 = vmatpush1.bf16.msra.mxu0 %v16682_v11  ;;  %11164 = vmatpush1.bf16.msra.mxu1 %v16740_v58 }
 0xa0c   : > { %11134 = vmatprep.subr.bf16.mxu0 %v16741_v53  ;;  %11166 = vmatprep.subr.bf16.mxu1 %v16742_v16 }
 0xa0f   : > { %v12976_v37 = vpop.eup %12975  ;;  %11136 = vmatpush1.bf16.msra.mxu0 %v16743_v24  ;;  %11168 = vmatpush1.bf16.msra.mxu1 %v16744_v57 }
 0xa10   : > { %v12978_v59 = vpop.eup %12977  ;;  %v5172_v3 = vmul.f32 0.5, %v12976_v37  ;;  %11138 = vmatprep.subr.bf16.mxu0 %v16745_v35  ;;  %11170 = vmatprep.subr.bf16.mxu1 %v16629_v19  ;;  %v17049_v37 = vld [vmem:[#allocation16_spill] sm:$0xff] }
 0xa11   : > { %v5176_v41 = vmul.f32 0.5, %v12978_v59  ;;  %v12980_v45 = vpop.eup %12979  ;;  %v17050_v59 = vld [vmem:[#allocation19_spill] sm:$0xff] }
 0xa12   : > { %v5173_v50 = vadd.f32 0.5, %v5172_v3  ;;  %v12982_v17 = vpop.eup %12981  ;;  %v17051_v3 = vld [vmem:[#allocation18_spill] sm:$0xff] }
 0xa13   : > { %v5177_v8 = vadd.f32 0.5, %v5176_v41  ;;  %11140 = vmatpush1.bf16.msra.mxu0 %v16630_v12  ;;  %11172 = vmatpush1.bf16.msra.mxu1 %v16631_v42  ;;  %v17052_v41 = vld [vmem:[#allocation21_spill] sm:$0xff] }
 0xa14   : > { %v5184_v2 = vmul.f32 %v12980_v45, %v5173_v50  ;;  %11142 = vmatprep.subr.bf16.mxu0 %v16689_v0  ;;  %11174 = vmatprep.subr.bf16.mxu1 %v16746_v25  ;;  %v17053_v50 = vld [vmem:[#allocation20_spill] sm:$0xff]  ;;  %v17054_v45 = vld [vmem:[#allocation23_spill] sm:$0xff] }
 0xa15   : > { %v5183_v10 = vmul.f32 %v5177_v8, %v15159_v18  ;;  %v5181_v18 = vmul.f32 0.5, %v12982_v17  ;;  %v17055_v8 = vld [vmem:[#allocation22_spill] sm:$0xff]  ;;  %v17058_v17 = vld [vmem:[#allocation27_spill] sm:$0xff] }
 0xa17   : > { %v15277_v34 = vadd.f32 %v5184_v2, %v5183_v10  ;;  %11144 = vmatpush1.bf16.msra.mxu0 %v16692_v54  ;;  %11176 = vmatpush1.bf16.msra.mxu1 %v16693_v32  ;;  %v5182_v56 = vadd.f32 0.5, %v5181_v18  ;;  %v17056_v2 = vld [vmem:[#allocation25_spill] sm:$0xff]  ;;  %v17057_v10 = vld [vmem:[#allocation24_spill] sm:$0xff]  ;;  %v17059_v18 = vld [vmem:[#allocation26_spill] sm:$0xff] }
 0xa18   : > { %11146 = vmatprep.subr.bf16.mxu0 %v16694_v23  ;;  %11178 = vmatprep.subr.bf16.mxu1 %v16695_v7 }
 0xa19   : > { %12983 = vtanh.f32 %v15277_v34 }
 0xa1b   : > { %11148 = vmatpush1.bf16.msra.mxu0 %v16696_v39  ;;  %11180 = vmatpush1.bf16.msra.mxu1 %v16697_v52 }
 0xa1c   : > { %11150 = vmatprep.subr.bf16.mxu0 %v16698_v1  ;;  %11182 = vmatprep.subr.bf16.mxu1 %v16642_v6 }
 0xa1f   : > { %11152 = vmatpush1.bf16.msra.mxu0 %v16643_v62  ;;  %11184 = vmatpush1.bf16.msra.mxu1 %v16644_v38 }
 0xa20   : > { %11154 = vmatprep.subr.bf16.mxu0 %v16645_v46  ;;  %11186 = vmatprep.subr.bf16.mxu1 %v16646_v28 }
 0xa23   : > { %v12984_v51 = vpop.eup %12983  ;;  %11156 = vmatpush1.bf16.msra.mxu0 %v16647_v47  ;;  %11188 = vmatpush1.bf16.msra.mxu1 %v16648_v44 }
 0xa24   : > { %v5187_v15 = vmul.f32 %v12984_v51, %v5182_v56  ;;  %11190 = vmatprep.subr.bf16.mxu0 %v16649_v49  ;;  %11222 = vmatprep.subr.bf16.mxu1 %v16650_v9  ;;  %v17060_v56 = vld [vmem:[#allocation29_spill] sm:$0xff]  ;;  %v17061_v51 = vld [vmem:[#allocation28_spill] sm:$0xff] }
 0xa26   : > { %5395 = vmatmul.mubr.f32.vlgmr.msra.gmra.mrb[48].mxu0 %v5187_v15  ;;  %5466 = vmatmul.mubr.f32.vlgmr.msra.gmra.mrb[48].mxu1 %v5187_v15 }
 0xa27   : > { %11192 = vmatpush1.bf16.msra.mxu0 %v13370_v22  ;;  %11224 = vmatpush1.bf16.msra.mxu1 %v13393_v30 }
 0xa28   : > { %11194 = vmatprep.subr.bf16.mxu0 %v13391_v29  ;;  %11226 = vmatprep.subr.bf16.mxu1 %v13425_v40 }
 0xa29   : > { %5562 = vmatprep.mubr.f32.mxu0 %v16556_v48  ;;  %5633 = vmatprep.mubr.f32.mxu1 %v16556_v48 }
 0xa2b   : > { %11196 = vmatpush1.bf16.msra.mxu0 %v17045_v43  ;;  %11228 = vmatpush1.bf16.msra.mxu1 %v17046_v14 }
 0xa2c   : > { %11198 = vmatprep.subr.bf16.mxu0 %v17047_v4  ;;  %11230 = vmatprep.subr.bf16.mxu1 %v17048_v55 }
 0xa2f   : > { %11200 = vmatpush1.bf16.msra.mxu0 %v17049_v37  ;;  %11232 = vmatpush1.bf16.msra.mxu1 %v17050_v59 }
 0xa30   : > { %11202 = vmatprep.subr.bf16.mxu0 %v17051_v3  ;;  %11234 = vmatprep.subr.bf16.mxu1 %v17052_v41  ;;  %v17062_v3 = vld [vmem:[#allocation31_spill] sm:$0xff]  ;;  %v17063_v41 = vld [vmem:[#allocation30_spill] sm:$0xff] }
 0xa33   : > { %11204 = vmatpush1.bf16.msra.mxu0 %v17053_v50  ;;  %11236 = vmatpush1.bf16.msra.mxu1 %v17054_v45  ;;  %v17064_v50 = vld [vmem:[#allocation33_spill] sm:$0xff]  ;;  %v17065_v45 = vld [vmem:[#allocation32_spill] sm:$0xff] }
 0xa34   : > { %11206 = vmatprep.subr.bf16.mxu0 %v17055_v8  ;;  %11238 = vmatprep.subr.bf16.mxu1 %v17056_v2  ;;  %v17066_v8 = vld [vmem:[#allocation35_spill] sm:$0xff]  ;;  %v17067_v2 = vld [vmem:[#allocation34_spill] sm:$0xff] }
 0xa37   : > { %11208 = vmatpush1.bf16.msra.mxu0 %v17057_v10  ;;  %11240 = vmatpush1.bf16.msra.mxu1 %v17058_v17  ;;  %v17068_v10 = vld [vmem:[#allocation37_spill] sm:$0xff]  ;;  %v17069_v17 = vld [vmem:[#allocation36_spill] sm:$0xff] }
 0xa38   : > { %11210 = vmatprep.subr.bf16.mxu0 %v17059_v18  ;;  %11242 = vmatprep.subr.bf16.mxu1 %v17060_v56  ;;  %v17070_v18 = vld [vmem:[#allocation39_spill] sm:$0xff]  ;;  %v17071_v56 = vld [vmem:[#allocation38_spill] sm:$0xff] }
 0xa3b   : > { %11212 = vmatpush1.bf16.msra.mxu0 %v17061_v51  ;;  %11244 = vmatpush1.bf16.msra.mxu1 %v17062_v3  ;;  %v17072_v51 = vld [vmem:[#allocation40_spill] sm:$0xff]  ;;  %v17105_v3 = vld [vmem:[#allocation107_spill] sm:$0xff] }
 0xa3c   : > { %11214 = vmatprep.subr.bf16.mxu0 %v17063_v41  ;;  %11246 = vmatprep.subr.bf16.mxu1 %v17064_v50  ;;  %v17073_v41 = vld [vmem:[#allocation41_spill] sm:$0xff]  ;;  %v17074_v50 = vld [vmem:[#allocation42_spill] sm:$0xff] }
 0xa3f   : > { %11216 = vmatpush1.bf16.msra.mxu0 %v17065_v45  ;;  %11248 = vmatpush1.bf16.msra.mxu1 %v17066_v8  ;;  %v17075_v45 = vld [vmem:[#allocation43_spill] sm:$0xff]  ;;  %v17076_v8 = vld [vmem:[#allocation44_spill] sm:$0xff] }
 0xa40   : > { %11218 = vmatprep.subr.bf16.mxu0 %v17067_v2  ;;  %11250 = vmatprep.subr.bf16.mxu1 %v17068_v10  ;;  %v17086_v10 = vld [vmem:[#allocation54_spill] sm:$0xff]  ;;  %v17087_v2 = vld [vmem:[#allocation55_spill] sm:$0xff] }
 0xa43   : > { %11220 = vmatpush1.bf16.msra.mxu0 %v17069_v17  ;;  %11252 = vmatpush1.bf16.msra.mxu1 %v17070_v18  ;;  %v17077_v17 = vld [vmem:[#allocation45_spill] sm:$0xff]  ;;  %v17078_v18 = vld [vmem:[#allocation46_spill] sm:$0xff] }
 0xa44   : > { %11254 = vmatprep.subr.bf16.mxu0 %v17071_v56  ;;  %11286 = vmatprep.subr.bf16.mxu1 %v17072_v51  ;;  %v17079_v56 = vld [vmem:[#allocation47_spill] sm:$0xff]  ;;  %v17080_v51 = vld [vmem:[#allocation48_spill] sm:$0xff] }
 0xa46   : > { %5563 = vmatmul.mubr.f32.vlgmr.msra.gmra.mrb[18].mxu0 %v5187_v15  ;;  %5634 = vmatmul.mubr.f32.vlgmr.msra.gmra.mrb[18].mxu1 %v5187_v15  ;;  %v17081_v15 = vld [vmem:[#allocation49_spill] sm:$0xff] }
 0xa47   : > { %11256 = vmatpush1.bf16.msra.mxu0 %v17073_v41  ;;  %11288 = vmatpush1.bf16.msra.mxu1 %v17074_v50  ;;  %v17082_v41 = vld [vmem:[#allocation50_spill] sm:$0xff]  ;;  %v17083_v50 = vld [vmem:[#allocation51_spill] sm:$0xff] }
 0xa48   : > { %11258 = vmatprep.subr.bf16.mxu0 %v17075_v45  ;;  %11290 = vmatprep.subr.bf16.mxu1 %v17076_v8  ;;  %v17084_v45 = vld [vmem:[#allocation52_spill] sm:$0xff]  ;;  %v17085_v8 = vld [vmem:[#allocation53_spill] sm:$0xff] }
 0xa49   : > { %5726 = vmatprep.mubr.f32.mxu0 %v16556_v48  ;;  %5797 = vmatprep.mubr.f32.mxu1 %v16556_v48 }
 0xa4b   : > { %11260 = vmatpush1.bf16.msra.mxu0 %v17077_v17  ;;  %11292 = vmatpush1.bf16.msra.mxu1 %v17078_v18  ;;  %v17088_v17 = vld [vmem:[#allocation56_spill] sm:$0xff]  ;;  %v17089_v18 = vld [vmem:[#allocation57_spill] sm:$0xff] }
 0xa4c   : > { %11262 = vmatprep.subr.bf16.mxu0 %v17079_v56  ;;  %11294 = vmatprep.subr.bf16.mxu1 %v17080_v51  ;;  %v17090_v56 = vld [vmem:[#allocation58_spill] sm:$0xff]  ;;  %v17091_v51 = vld [vmem:[#allocation59_spill] sm:$0xff] }
 0xa4f   : > { %11264 = vmatpush1.bf16.msra.mxu0 %v17081_v15  ;;  %11296 = vmatpush1.bf16.msra.mxu1 %v17082_v41  ;;  %v17092_v15 = vld [vmem:[#allocation60_spill] sm:$0xff]  ;;  %v17093_v41 = vld [vmem:[#allocation61_spill] sm:$0xff] }
 0xa50   : > { %11266 = vmatprep.subr.bf16.mxu0 %v17083_v50  ;;  %11298 = vmatprep.subr.bf16.mxu1 %v17084_v45  ;;  %v17094_v50 = vld [vmem:[#allocation62_spill] sm:$0xff]  ;;  %v17095_v45 = vld [vmem:[#allocation63_spill] sm:$0xff] }
 0xa53   : > { %11268 = vmatpush1.bf16.msra.mxu0 %v17085_v8  ;;  %11300 = vmatpush1.bf16.msra.mxu1 %v17086_v10  ;;  %v17096_v8 = vld [vmem:[#allocation64_spill] sm:$0xff]  ;;  %v17097_v10 = vld [vmem:[#allocation65_spill] sm:$0xff] }
 0xa54   : > { %11270 = vmatprep.subr.bf16.mxu0 %v17087_v2  ;;  %11302 = vmatprep.subr.bf16.mxu1 %v17088_v17  ;;  %v17098_v2 = vld [vmem:[#allocation66_spill] sm:$0xff]  ;;  %v17099_v17 = vld [vmem:[#allocation67_spill] sm:$0xff] }
 0xa57   : > { %11272 = vmatpush1.bf16.msra.mxu0 %v17089_v18  ;;  %11304 = vmatpush1.bf16.msra.mxu1 %v17090_v56  ;;  %v17100_v18 = vld [vmem:[#allocation68_spill] sm:$0xff]  ;;  %v17101_v56 = vld [vmem:[#allocation69_spill] sm:$0xff] }
 0xa58   : > { %11274 = vmatprep.subr.bf16.mxu0 %v17091_v51  ;;  %11306 = vmatprep.subr.bf16.mxu1 %v17092_v15  ;;  %v17102_v51 = vld [vmem:[#allocation70_spill] sm:$0xff]  ;;  %v17103_v15 = vld [vmem:[#allocation71_spill] sm:$0xff] }
 0xa5b   : > { %11276 = vmatpush1.bf16.msra.mxu0 %v17093_v41  ;;  %11308 = vmatpush1.bf16.msra.mxu1 %v17094_v50  ;;  %v17104_v41 = vld [vmem:[#allocation72_spill] sm:$0xff] }
 0xa5c   : > { %11278 = vmatprep.subr.bf16.mxu0 %v17095_v45  ;;  %11310 = vmatprep.subr.bf16.mxu1 %v17096_v8 }
 0xa5f   : > { %11280 = vmatpush1.bf16.msra.mxu0 %v17097_v10  ;;  %11312 = vmatpush1.bf16.msra.mxu1 %v17098_v2 }
 0xa60   : > { %11282 = vmatprep.subr.bf16.mxu0 %v17099_v17  ;;  %11314 = vmatprep.subr.bf16.mxu1 %v17100_v18 }
 0xa63   : > { %11284 = vmatpush1.bf16.msra.mxu0 %v17101_v56  ;;  %11316 = vmatpush1.bf16.msra.mxu1 %v17102_v51 }
 0xa64   : > { %11318 = vmatprep.subr.bf16.mxu0 %v17103_v15  ;;  %11350 = vmatprep.subr.bf16.mxu1 %v17104_v41 }
 0xaf9   : > { %v5396_v50 = vpop.f32.mrb[48].mxu0  ;;  %v5467_v45 = vpop.f32.mrb[48].mxu1 }
 0xafa   : > { %v5472_v8 = vadd.f32 %v5396_v50, %v17105_v3  ;;  %v5398_v59 = vpop.f32.mrb[49].mxu0  ;;  %v5469_v10 = vpop.f32.mrb[49].mxu1  ;;  %v5474_v18 = vadd.f32 %v5467_v45, %v16677_v21 }
 0xafb   : > { %v5473_v2 = vadd.f32 %v5398_v59, %v16676_v20  ;;  %v5475_v51 = vadd.f32 %v5469_v10, %v16678_v31 }
 0xafc   : > { %v5476_v37 = vmul.f32 0.5, %v5472_v8 }
 0xafd   : > { %v5480_v17 = vmul.f32 0.5, %v5473_v2  ;;  %v5485_v15 = vmul.f32 0.5, %v5475_v51 }
 0xafe   : > { %12985 = vtanh.f32 %v5476_v37 }
 0xaff   : > { %12987 = vtanh.f32 %v5480_v17 }
 0xb00   : > { %12989 = vtanh.f32 %v5474_v18 }
 0xb01   : > { %12991 = vtanh.f32 %v5485_v15 }
 0xb08   : > { %v12986_v56 = vpop.eup %12985 }
 0xb09   : > { %v12988_v41 = vpop.eup %12987  ;;  %v5478_v55 = vmul.f32 0.5, %v12986_v56 }
 0xb0a   : > { %v5482_v4 = vmul.f32 0.5, %v12988_v41  ;;  %v12990_v3 = vpop.eup %12989 }
 0xb0b   : > { %v5479_v50 = vadd.f32 0.5, %v5478_v55  ;;  %v12992_v37 = vpop.eup %12991 }
 0xb0c   : > { %v5483_v14 = vadd.f32 0.5, %v5482_v4  ;;  %v5487_v45 = vmul.f32 0.5, %v12992_v37 }
 0xb0d   : > { %v5490_v43 = vmul.f32 %v12990_v3, %v5479_v50 }
 0xb0e   : > { %v5489_v59 = vmul.f32 %v5483_v14, %v15251_v36  ;;  %v5488_v41 = vadd.f32 0.5, %v5487_v45 }
 0xb10   : > { %v15369_v8 = vadd.f32 %v5490_v43, %v5489_v59 }
 0xb12   : > { %12993 = vtanh.f32 %v15369_v8 }
 0xb19   : > { %v5564_v2 = vpop.f32.mrb[18].mxu0  ;;  %v5635_v10 = vpop.f32.mrb[18].mxu1 }
 0xb1a   : > { %v12596_v17 = vadd.f32 %v5564_v2, %v16615_v33  ;;  %v5566_v18 = vpop.f32.mrb[19].mxu0  ;;  %v5637_v56 = vpop.f32.mrb[19].mxu1  ;;  %v12628_v36 = vadd.f32 %v5635_v10, %v16617_v60 }
 0xb1b   : > { %v12597_v55 = vadd.f32 %v5566_v18, %v16616_v5  ;;  %v12629_v43 = vadd.f32 %v5637_v56, %v16681_v27 }
 0xb1c   : > { %v12994_v51 = vpop.eup %12993  ;;  %v5644_v4 = vmul.f32 0.5, %v12596_v17 }
 0xb1d   : > { %v5493_v3 = vmul.f32 %v12994_v51, %v5488_v41  ;;  %v5648_v15 = vmul.f32 0.5, %v12597_v55  ;;  %v5653_v14 = vmul.f32 0.5, %v12629_v43  ;;  %v17108_v43 = vld [vmem:[#allocation14_spill] sm:$0xff] }
 0xb1e   : > { %12995 = vtanh.f32 %v5644_v4 }
 0xb1f   : > { %12997 = vtanh.f32 %v5648_v15  ;;  %5727 = vmatmul.mubr.f32.vlgmr.msra.gmra.mrb[50].mxu0 %v5493_v3  ;;  %5798 = vmatmul.mubr.f32.vlgmr.msra.gmra.mrb[50].mxu1 %v5493_v3  ;;  %v17106_v15 = vld [vmem:[#allocation13_spill] sm:$0xff] }
 0xb20   : > { %11320 = vmatpush1.bf16.msra.mxu0 %v16618_v63  ;;  %11352 = vmatpush1.bf16.msra.mxu1 %v16619_v13  ;;  %12999 = vtanh.f32 %v12628_v36  ;;  %v17107_v36 = vld [vmem:[#allocation15_spill] sm:$0xff] }
 0xb21   : > { %11322 = vmatprep.subr.bf16.mxu0 %v16679_v61  ;;  %11354 = vmatprep.subr.bf16.mxu1 %v16680_v26  ;;  %13001 = vtanh.f32 %v5653_v14  ;;  %v17109_v14 = vld [vmem:[#allocation17_spill] sm:$0xff] }
 0xb22   : > { %5868 = vmatprep.mubr.f32.mxu0 %v16556_v48  ;;  %5939 = vmatprep.mubr.f32.mxu1 %v16556_v48 }
 0xb24   : > { %11324 = vmatpush1.bf16.msra.mxu0 %v16682_v11  ;;  %11356 = vmatpush1.bf16.msra.mxu1 %v16740_v58 }
 0xb25   : > { %11326 = vmatprep.subr.bf16.mxu0 %v16741_v53  ;;  %11358 = vmatprep.subr.bf16.mxu1 %v16742_v16 }
 0xb28   : > { %v12996_v50 = vpop.eup %12995  ;;  %11328 = vmatpush1.bf16.msra.mxu0 %v16743_v24  ;;  %11360 = vmatpush1.bf16.msra.mxu1 %v16744_v57 }
 0xb29   : > { %v12998_v59 = vpop.eup %12997  ;;  %v5646_v37 = vmul.f32 0.5, %v12996_v50  ;;  %11330 = vmatprep.subr.bf16.mxu0 %v16745_v35  ;;  %11362 = vmatprep.subr.bf16.mxu1 %v16629_v19  ;;  %v17110_v50 = vld [vmem:[#allocation16_spill] sm:$0xff] }
 0xb2a   : > { %v5650_v45 = vmul.f32 0.5, %v12998_v59  ;;  %v13000_v10 = vpop.eup %12999  ;;  %v17111_v59 = vld [vmem:[#allocation19_spill] sm:$0xff] }
 0xb2b   : > { %v5647_v2 = vadd.f32 0.5, %v5646_v37  ;;  %v13002_v55 = vpop.eup %13001  ;;  %v17112_v37 = vld [vmem:[#allocation18_spill] sm:$0xff] }
 0xb2c   : > { %v5651_v17 = vadd.f32 0.5, %v5650_v45  ;;  %11332 = vmatpush1.bf16.msra.mxu0 %v16630_v12  ;;  %11364 = vmatpush1.bf16.msra.mxu1 %v16631_v42  ;;  %v17113_v45 = vld [vmem:[#allocation21_spill] sm:$0xff] }
 0xb2d   : > { %v5658_v18 = vmul.f32 %v13000_v10, %v5647_v2  ;;  %11334 = vmatprep.subr.bf16.mxu0 %v16689_v0  ;;  %11366 = vmatprep.subr.bf16.mxu1 %v16746_v25  ;;  %v17114_v2 = vld [vmem:[#allocation20_spill] sm:$0xff]  ;;  %v17115_v10 = vld [vmem:[#allocation23_spill] sm:$0xff] }
 0xb2e   : > { %v5657_v56 = vmul.f32 %v5651_v17, %v15277_v34  ;;  %v5655_v34 = vmul.f32 0.5, %v13002_v55  ;;  %v17116_v17 = vld [vmem:[#allocation22_spill] sm:$0xff]  ;;  %v17119_v55 = vld [vmem:[#allocation27_spill] sm:$0xff] }
 0xb30   : > { %v15395_v41 = vadd.f32 %v5658_v18, %v5657_v56  ;;  %11336 = vmatpush1.bf16.msra.mxu0 %v16692_v54  ;;  %11368 = vmatpush1.bf16.msra.mxu1 %v16693_v32  ;;  %v5656_v51 = vadd.f32 0.5, %v5655_v34  ;;  %v17117_v18 = vld [vmem:[#allocation25_spill] sm:$0xff]  ;;  %v17118_v56 = vld [vmem:[#allocation24_spill] sm:$0xff]  ;;  %v17120_v34 = vld [vmem:[#allocation26_spill] sm:$0xff] }
 0xb31   : > { %11338 = vmatprep.subr.bf16.mxu0 %v16694_v23  ;;  %11370 = vmatprep.subr.bf16.mxu1 %v16695_v7 }
 0xb32   : > { %13003 = vtanh.f32 %v15395_v41 }
 0xb34   : > { %11340 = vmatpush1.bf16.msra.mxu0 %v16696_v39  ;;  %11372 = vmatpush1.bf16.msra.mxu1 %v16697_v52 }
 0xb35   : > { %11342 = vmatprep.subr.bf16.mxu0 %v16698_v1  ;;  %11374 = vmatprep.subr.bf16.mxu1 %v16642_v6 }
 0xb38   : > { %11344 = vmatpush1.bf16.msra.mxu0 %v16643_v62  ;;  %11376 = vmatpush1.bf16.msra.mxu1 %v16644_v38 }
 0xb39   : > { %11346 = vmatprep.subr.bf16.mxu0 %v16645_v46  ;;  %11378 = vmatprep.subr.bf16.mxu1 %v16646_v28 }
 0xb3c   : > { %v13004_v4 = vpop.eup %13003  ;;  %11348 = vmatpush1.bf16.msra.mxu0 %v16647_v47  ;;  %11380 = vmatpush1.bf16.msra.mxu1 %v16648_v44 }
 0xb3d   : > { %v5661_v3 = vmul.f32 %v13004_v4, %v5656_v51  ;;  %11382 = vmatprep.subr.bf16.mxu0 %v16649_v49  ;;  %11414 = vmatprep.subr.bf16.mxu1 %v16650_v9  ;;  %v17121_v51 = vld [vmem:[#allocation29_spill] sm:$0xff]  ;;  %v17122_v4 = vld [vmem:[#allocation28_spill] sm:$0xff] }
 0xb3f   : > { %5869 = vmatmul.mubr.f32.vlgmr.msra.gmra.mrb[50].mxu0 %v5661_v3  ;;  %5940 = vmatmul.mubr.f32.vlgmr.msra.gmra.mrb[50].mxu1 %v5661_v3 }
 0xb40   : > { %11384 = vmatpush1.bf16.msra.mxu0 %v13370_v22  ;;  %11416 = vmatpush1.bf16.msra.mxu1 %v13393_v30 }
 0xb41   : > { %11386 = vmatprep.subr.bf16.mxu0 %v13391_v29  ;;  %11418 = vmatprep.subr.bf16.mxu1 %v13425_v40 }
 0xb42   : > { %6036 = vmatprep.mubr.f32.mxu0 %v16556_v48  ;;  %6107 = vmatprep.mubr.f32.mxu1 %v16556_v48 }
 0xb44   : > { %11388 = vmatpush1.bf16.msra.mxu0 %v17106_v15  ;;  %11420 = vmatpush1.bf16.msra.mxu1 %v17107_v36 }
 0xb45   : > { %11390 = vmatprep.subr.bf16.mxu0 %v17108_v43  ;;  %11422 = vmatprep.subr.bf16.mxu1 %v17109_v14 }
 0xb48   : > { %11392 = vmatpush1.bf16.msra.mxu0 %v17110_v50  ;;  %11424 = vmatpush1.bf16.msra.mxu1 %v17111_v59 }
 0xb49   : > { %11394 = vmatprep.subr.bf16.mxu0 %v17112_v37  ;;  %11426 = vmatprep.subr.bf16.mxu1 %v17113_v45  ;;  %v17123_v37 = vld [vmem:[#allocation31_spill] sm:$0xff]  ;;  %v17124_v45 = vld [vmem:[#allocation30_spill] sm:$0xff] }
 0xb4c   : > { %11396 = vmatpush1.bf16.msra.mxu0 %v17114_v2  ;;  %11428 = vmatpush1.bf16.msra.mxu1 %v17115_v10  ;;  %v17125_v2 = vld [vmem:[#allocation33_spill] sm:$0xff]  ;;  %v17126_v10 = vld [vmem:[#allocation32_spill] sm:$0xff] }
 0xb4d   : > { %11398 = vmatprep.subr.bf16.mxu0 %v17116_v17  ;;  %11430 = vmatprep.subr.bf16.mxu1 %v17117_v18  ;;  %v17127_v17 = vld [vmem:[#allocation35_spill] sm:$0xff]  ;;  %v17128_v18 = vld [vmem:[#allocation34_spill] sm:$0xff] }
 0xb50   : > { %11400 = vmatpush1.bf16.msra.mxu0 %v17118_v56  ;;  %11432 = vmatpush1.bf16.msra.mxu1 %v17119_v55  ;;  %v17129_v56 = vld [vmem:[#allocation37_spill] sm:$0xff]  ;;  %v17130_v55 = vld [vmem:[#allocation36_spill] sm:$0xff] }
 0xb51   : > { %11402 = vmatprep.subr.bf16.mxu0 %v17120_v34  ;;  %11434 = vmatprep.subr.bf16.mxu1 %v17121_v51  ;;  %v17131_v34 = vld [vmem:[#allocation39_spill] sm:$0xff]  ;;  %v17132_v51 = vld [vmem:[#allocation38_spill] sm:$0xff] }
 0xb54   : > { %11404 = vmatpush1.bf16.msra.mxu0 %v17122_v4  ;;  %11436 = vmatpush1.bf16.msra.mxu1 %v17123_v37  ;;  %v17133_v4 = vld [vmem:[#allocation40_spill] sm:$0xff]  ;;  %v17166_v37 = vld [vmem:[#allocation107_spill] sm:$0xff] }
 0xb55   : > { %11406 = vmatprep.subr.bf16.mxu0 %v17124_v45  ;;  %11438 = vmatprep.subr.bf16.mxu1 %v17125_v2  ;;  %v17134_v45 = vld [vmem:[#allocation41_spill] sm:$0xff]  ;;  %v17135_v2 = vld [vmem:[#allocation42_spill] sm:$0xff] }
 0xb58   : > { %11408 = vmatpush1.bf16.msra.mxu0 %v17126_v10  ;;  %11440 = vmatpush1.bf16.msra.mxu1 %v17127_v17  ;;  %v17136_v10 = vld [vmem:[#allocation43_spill] sm:$0xff]  ;;  %v17137_v17 = vld [vmem:[#allocation44_spill] sm:$0xff] }
 0xb59   : > { %11410 = vmatprep.subr.bf16.mxu0 %v17128_v18  ;;  %11442 = vmatprep.subr.bf16.mxu1 %v17129_v56  ;;  %v17147_v56 = vld [vmem:[#allocation54_spill] sm:$0xff]  ;;  %v17148_v18 = vld [vmem:[#allocation55_spill] sm:$0xff] }
 0xb5c   : > { %11412 = vmatpush1.bf16.msra.mxu0 %v17130_v55  ;;  %11444 = vmatpush1.bf16.msra.mxu1 %v17131_v34  ;;  %v17138_v55 = vld [vmem:[#allocation45_spill] sm:$0xff]  ;;  %v17139_v34 = vld [vmem:[#allocation46_spill] sm:$0xff] }
 0xb5d   : > { %11446 = vmatprep.subr.bf16.mxu0 %v17132_v51  ;;  %11478 = vmatprep.subr.bf16.mxu1 %v17133_v4  ;;  %v17140_v51 = vld [vmem:[#allocation47_spill] sm:$0xff]  ;;  %v17141_v4 = vld [vmem:[#allocation48_spill] sm:$0xff] }
 0xb5f   : > { %6037 = vmatmul.mubr.f32.vlgmr.msra.gmra.mrb[20].mxu0 %v5661_v3  ;;  %6108 = vmatmul.mubr.f32.vlgmr.msra.gmra.mrb[20].mxu1 %v5661_v3  ;;  %v17142_v3 = vld [vmem:[#allocation49_spill] sm:$0xff] }
 0xb60   : > { %11448 = vmatpush1.bf16.msra.mxu0 %v17134_v45  ;;  %11480 = vmatpush1.bf16.msra.mxu1 %v17135_v2  ;;  %v17143_v45 = vld [vmem:[#allocation50_spill] sm:$0xff]  ;;  %v17144_v2 = vld [vmem:[#allocation51_spill] sm:$0xff] }
 0xb61   : > { %11450 = vmatprep.subr.bf16.mxu0 %v17136_v10  ;;  %11482 = vmatprep.subr.bf16.mxu1 %v17137_v17  ;;  %v17145_v10 = vld [vmem:[#allocation52_spill] sm:$0xff]  ;;  %v17146_v17 = vld [vmem:[#allocation53_spill] sm:$0xff] }
 0xb62   : > { %6200 = vmatprep.mubr.f32.mxu0 %v16556_v48  ;;  %6271 = vmatprep.mubr.f32.mxu1 %v16556_v48 }
 0xb64   : > { %11452 = vmatpush1.bf16.msra.mxu0 %v17138_v55  ;;  %11484 = vmatpush1.bf16.msra.mxu1 %v17139_v34  ;;  %v17149_v55 = vld [vmem:[#allocation56_spill] sm:$0xff]  ;;  %v17150_v34 = vld [vmem:[#allocation57_spill] sm:$0xff] }
 0xb65   : > { %11454 = vmatprep.subr.bf16.mxu0 %v17140_v51  ;;  %11486 = vmatprep.subr.bf16.mxu1 %v17141_v4  ;;  %v17151_v51 = vld [vmem:[#allocation58_spill] sm:$0xff]  ;;  %v17152_v4 = vld [vmem:[#allocation59_spill] sm:$0xff] }
 0xb68   : > { %11456 = vmatpush1.bf16.msra.mxu0 %v17142_v3  ;;  %11488 = vmatpush1.bf16.msra.mxu1 %v17143_v45  ;;  %v17153_v3 = vld [vmem:[#allocation60_spill] sm:$0xff]  ;;  %v17154_v45 = vld [vmem:[#allocation61_spill] sm:$0xff] }
 0xb69   : > { %11458 = vmatprep.subr.bf16.mxu0 %v17144_v2  ;;  %11490 = vmatprep.subr.bf16.mxu1 %v17145_v10  ;;  %v17155_v2 = vld [vmem:[#allocation62_spill] sm:$0xff]  ;;  %v17156_v10 = vld [vmem:[#allocation63_spill] sm:$0xff] }
 0xb6c   : > { %11460 = vmatpush1.bf16.msra.mxu0 %v17146_v17  ;;  %11492 = vmatpush1.bf16.msra.mxu1 %v17147_v56  ;;  %v17157_v17 = vld [vmem:[#allocation64_spill] sm:$0xff]  ;;  %v17158_v56 = vld [vmem:[#allocation65_spill] sm:$0xff] }
 0xb6d   : > { %11462 = vmatprep.subr.bf16.mxu0 %v17148_v18  ;;  %11494 = vmatprep.subr.bf16.mxu1 %v17149_v55  ;;  %v17159_v18 = vld [vmem:[#allocation66_spill] sm:$0xff]  ;;  %v17160_v55 = vld [vmem:[#allocation67_spill] sm:$0xff] }
 0xb70   : > { %11464 = vmatpush1.bf16.msra.mxu0 %v17150_v34  ;;  %11496 = vmatpush1.bf16.msra.mxu1 %v17151_v51  ;;  %v17161_v34 = vld [vmem:[#allocation68_spill] sm:$0xff]  ;;  %v17162_v51 = vld [vmem:[#allocation69_spill] sm:$0xff] }
 0xb71   : > { %11466 = vmatprep.subr.bf16.mxu0 %v17152_v4  ;;  %11498 = vmatprep.subr.bf16.mxu1 %v17153_v3  ;;  %v17163_v4 = vld [vmem:[#allocation70_spill] sm:$0xff]  ;;  %v17164_v3 = vld [vmem:[#allocation71_spill] sm:$0xff] }
 0xb74   : > { %11468 = vmatpush1.bf16.msra.mxu0 %v17154_v45  ;;  %11500 = vmatpush1.bf16.msra.mxu1 %v17155_v2  ;;  %v17165_v45 = vld [vmem:[#allocation72_spill] sm:$0xff] }
 0xb75   : > { %11470 = vmatprep.subr.bf16.mxu0 %v17156_v10  ;;  %11502 = vmatprep.subr.bf16.mxu1 %v17157_v17 }
 0xb78   : > { %11472 = vmatpush1.bf16.msra.mxu0 %v17158_v56  ;;  %11504 = vmatpush1.bf16.msra.mxu1 %v17159_v18 }
 0xb79   : > { %11474 = vmatprep.subr.bf16.mxu0 %v17160_v55  ;;  %11506 = vmatprep.subr.bf16.mxu1 %v17161_v34 }
 0xb7c   : > { %11476 = vmatpush1.bf16.msra.mxu0 %v17162_v51  ;;  %11508 = vmatpush1.bf16.msra.mxu1 %v17163_v4 }
 0xb7d   : > { %11510 = vmatprep.subr.bf16.mxu0 %v17164_v3  ;;  %11542 = vmatprep.subr.bf16.mxu1 %v17165_v45 }
 0xc12   : > { %v5870_v2 = vpop.f32.mrb[50].mxu0  ;;  %v5941_v10 = vpop.f32.mrb[50].mxu1 }
 0xc13   : > { %v5946_v17 = vadd.f32 %v5870_v2, %v17166_v37  ;;  %v5872_v59 = vpop.f32.mrb[51].mxu0  ;;  %v5943_v56 = vpop.f32.mrb[51].mxu1  ;;  %v5948_v34 = vadd.f32 %v5941_v10, %v16677_v21 }
 0xc14   : > { %v5947_v18 = vadd.f32 %v5872_v59, %v16676_v20  ;;  %v5949_v4 = vadd.f32 %v5943_v56, %v16678_v31 }
 0xc15   : > { %v5950_v50 = vmul.f32 0.5, %v5946_v17 }
 0xc16   : > { %v5954_v55 = vmul.f32 0.5, %v5947_v18  ;;  %v5959_v3 = vmul.f32 0.5, %v5949_v4 }
 0xc17   : > { %13005 = vtanh.f32 %v5950_v50 }
 0xc18   : > { %13007 = vtanh.f32 %v5954_v55 }
 0xc19   : > { %13009 = vtanh.f32 %v5948_v34 }
 0xc1a   : > { %13011 = vtanh.f32 %v5959_v3 }
 0xc21   : > { %v13006_v51 = vpop.eup %13005 }
 0xc22   : > { %v13008_v45 = vpop.eup %13007  ;;  %v5952_v14 = vmul.f32 0.5, %v13006_v51 }
 0xc23   : > { %v5956_v43 = vmul.f32 0.5, %v13008_v45  ;;  %v13010_v37 = vpop.eup %13009 }
 0xc24   : > { %v5953_v2 = vadd.f32 0.5, %v5952_v14  ;;  %v13012_v50 = vpop.eup %13011 }
 0xc25   : > { %v5957_v36 = vadd.f32 0.5, %v5956_v43  ;;  %v5961_v10 = vmul.f32 0.5, %v13012_v50 }
 0xc26   : > { %v5964_v15 = vmul.f32 %v13010_v37, %v5953_v2 }
 0xc27   : > { %v5963_v59 = vmul.f32 %v5957_v36, %v15369_v8  ;;  %v5962_v45 = vadd.f32 0.5, %v5961_v10 }
 0xc29   : > { %v15487_v17 = vadd.f32 %v5964_v15, %v5963_v59 }
 0xc2b   : > { %13013 = vtanh.f32 %v15487_v17 }
 0xc32   : > { %v6038_v18 = vpop.f32.mrb[20].mxu0  ;;  %v6109_v56 = vpop.f32.mrb[20].mxu1 }
 0xc33   : > { %v12598_v55 = vadd.f32 %v6038_v18, %v16615_v33  ;;  %v6040_v34 = vpop.f32.mrb[21].mxu0  ;;  %v6111_v51 = vpop.f32.mrb[21].mxu1  ;;  %v12630_v8 = vadd.f32 %v6109_v56, %v16617_v60 }
 0xc34   : > { %v12599_v14 = vadd.f32 %v6040_v34, %v16616_v5  ;;  %v12631_v15 = vadd.f32 %v6111_v51, %v16681_v27 }
 0xc35   : > { %v13014_v4 = vpop.eup %13013  ;;  %v6118_v43 = vmul.f32 0.5, %v12598_v55 }
 0xc36   : > { %v5967_v37 = vmul.f32 %v13014_v4, %v5962_v45  ;;  %v6122_v3 = vmul.f32 0.5, %v12599_v14  ;;  %v6127_v36 = vmul.f32 0.5, %v12631_v15  ;;  %v17169_v15 = vld [vmem:[#allocation14_spill] sm:$0xff] }
 0xc37   : > { %13015 = vtanh.f32 %v6118_v43 }
 0xc38   : > { %13017 = vtanh.f32 %v6122_v3  ;;  %6201 = vmatmul.mubr.f32.vlgmr.msra.gmra.mrb[52].mxu0 %v5967_v37  ;;  %6272 = vmatmul.mubr.f32.vlgmr.msra.gmra.mrb[52].mxu1 %v5967_v37  ;;  %v17167_v3 = vld [vmem:[#allocation13_spill] sm:$0xff] }
 0xc39   : > { %11512 = vmatpush1.bf16.msra.mxu0 %v16618_v63  ;;  %11544 = vmatpush1.bf16.msra.mxu1 %v16619_v13  ;;  %13019 = vtanh.f32 %v12630_v8  ;;  %v17168_v8 = vld [vmem:[#allocation15_spill] sm:$0xff] }
 0xc3a   : > { %11514 = vmatprep.subr.bf16.mxu0 %v16679_v61  ;;  %11546 = vmatprep.subr.bf16.mxu1 %v16680_v26  ;;  %13021 = vtanh.f32 %v6127_v36  ;;  %v17170_v36 = vld [vmem:[#allocation17_spill] sm:$0xff] }
 0xc3b   : > { %6342 = vmatprep.mubr.f32.mxu0 %v16556_v48  ;;  %6413 = vmatprep.mubr.f32.mxu1 %v16556_v48 }
 0xc3d   : > { %11516 = vmatpush1.bf16.msra.mxu0 %v16682_v11  ;;  %11548 = vmatpush1.bf16.msra.mxu1 %v16740_v58 }
 0xc3e   : > { %11518 = vmatprep.subr.bf16.mxu0 %v16741_v53  ;;  %11550 = vmatprep.subr.bf16.mxu1 %v16742_v16 }
 0xc41   : > { %v13016_v2 = vpop.eup %13015  ;;  %11520 = vmatpush1.bf16.msra.mxu0 %v16743_v24  ;;  %11552 = vmatpush1.bf16.msra.mxu1 %v16744_v57 }
 0xc42   : > { %v13018_v59 = vpop.eup %13017  ;;  %v6120_v50 = vmul.f32 0.5, %v13016_v2  ;;  %11522 = vmatprep.subr.bf16.mxu0 %v16745_v35  ;;  %11554 = vmatprep.subr.bf16.mxu1 %v16629_v19  ;;  %v17171_v2 = vld [vmem:[#allocation16_spill] sm:$0xff] }
 0xc43   : > { %v6124_v10 = vmul.f32 0.5, %v13018_v59  ;;  %v13020_v56 = vpop.eup %13019  ;;  %v17172_v59 = vld [vmem:[#allocation19_spill] sm:$0xff] }
 0xc44   : > { %v6121_v18 = vadd.f32 0.5, %v6120_v50  ;;  %v13022_v14 = vpop.eup %13021  ;;  %v17173_v50 = vld [vmem:[#allocation18_spill] sm:$0xff] }
 0xc45   : > { %v6125_v55 = vadd.f32 0.5, %v6124_v10  ;;  %11524 = vmatpush1.bf16.msra.mxu0 %v16630_v12  ;;  %11556 = vmatpush1.bf16.msra.mxu1 %v16631_v42  ;;  %v17174_v10 = vld [vmem:[#allocation21_spill] sm:$0xff] }
 0xc46   : > { %v6132_v34 = vmul.f32 %v13020_v56, %v6121_v18  ;;  %11526 = vmatprep.subr.bf16.mxu0 %v16689_v0  ;;  %11558 = vmatprep.subr.bf16.mxu1 %v16746_v25  ;;  %v17175_v18 = vld [vmem:[#allocation20_spill] sm:$0xff]  ;;  %v17176_v56 = vld [vmem:[#allocation23_spill] sm:$0xff] }
 0xc47   : > { %v6131_v51 = vmul.f32 %v6125_v55, %v15395_v41  ;;  %v6129_v41 = vmul.f32 0.5, %v13022_v14  ;;  %v17177_v55 = vld [vmem:[#allocation22_spill] sm:$0xff]  ;;  %v17180_v14 = vld [vmem:[#allocation27_spill] sm:$0xff] }
 0xc49   : > { %v15513_v45 = vadd.f32 %v6132_v34, %v6131_v51  ;;  %11528 = vmatpush1.bf16.msra.mxu0 %v16692_v54  ;;  %11560 = vmatpush1.bf16.msra.mxu1 %v16693_v32  ;;  %v6130_v4 = vadd.f32 0.5, %v6129_v41  ;;  %v17178_v34 = vld [vmem:[#allocation25_spill] sm:$0xff]  ;;  %v17179_v51 = vld [vmem:[#allocation24_spill] sm:$0xff]  ;;  %v17181_v41 = vld [vmem:[#allocation26_spill] sm:$0xff] }
 0xc4a   : > { %11530 = vmatprep.subr.bf16.mxu0 %v16694_v23  ;;  %11562 = vmatprep.subr.bf16.mxu1 %v16695_v7 }
 0xc4b   : > { %13023 = vtanh.f32 %v15513_v45 }
 0xc4d   : > { %11532 = vmatpush1.bf16.msra.mxu0 %v16696_v39  ;;  %11564 = vmatpush1.bf16.msra.mxu1 %v16697_v52 }
 0xc4e   : > { %11534 = vmatprep.subr.bf16.mxu0 %v16698_v1  ;;  %11566 = vmatprep.subr.bf16.mxu1 %v16642_v6 }
 0xc51   : > { %11536 = vmatpush1.bf16.msra.mxu0 %v16643_v62  ;;  %11568 = vmatpush1.bf16.msra.mxu1 %v16644_v38 }
 0xc52   : > { %11538 = vmatprep.subr.bf16.mxu0 %v16645_v46  ;;  %11570 = vmatprep.subr.bf16.mxu1 %v16646_v28 }
 0xc55   : > { %v13024_v43 = vpop.eup %13023  ;;  %11540 = vmatpush1.bf16.msra.mxu0 %v16647_v47  ;;  %11572 = vmatpush1.bf16.msra.mxu1 %v16648_v44 }
 0xc56   : > { %v6135_v37 = vmul.f32 %v13024_v43, %v6130_v4  ;;  %11574 = vmatprep.subr.bf16.mxu0 %v16649_v49  ;;  %11606 = vmatprep.subr.bf16.mxu1 %v16650_v9  ;;  %v17182_v4 = vld [vmem:[#allocation29_spill] sm:$0xff]  ;;  %v17183_v43 = vld [vmem:[#allocation28_spill] sm:$0xff] }
 0xc58   : > { %6343 = vmatmul.mubr.f32.vlgmr.msra.gmra.mrb[52].mxu0 %v6135_v37  ;;  %6414 = vmatmul.mubr.f32.vlgmr.msra.gmra.mrb[52].mxu1 %v6135_v37 }
 0xc59   : > { %11576 = vmatpush1.bf16.msra.mxu0 %v13370_v22  ;;  %11608 = vmatpush1.bf16.msra.mxu1 %v13393_v30 }
 0xc5a   : > { %11578 = vmatprep.subr.bf16.mxu0 %v13391_v29  ;;  %11610 = vmatprep.subr.bf16.mxu1 %v13425_v40 }
 0xc5b   : > { %6510 = vmatprep.mubr.f32.mxu0 %v16556_v48  ;;  %6581 = vmatprep.mubr.f32.mxu1 %v16556_v48 }
 0xc5d   : > { %11580 = vmatpush1.bf16.msra.mxu0 %v17167_v3  ;;  %11612 = vmatpush1.bf16.msra.mxu1 %v17168_v8 }
 0xc5e   : > { %11582 = vmatprep.subr.bf16.mxu0 %v17169_v15  ;;  %11614 = vmatprep.subr.bf16.mxu1 %v17170_v36 }
 0xc61   : > { %11584 = vmatpush1.bf16.msra.mxu0 %v17171_v2  ;;  %11616 = vmatpush1.bf16.msra.mxu1 %v17172_v59 }
 0xc62   : > { %11586 = vmatprep.subr.bf16.mxu0 %v17173_v50  ;;  %11618 = vmatprep.subr.bf16.mxu1 %v17174_v10  ;;  %v17184_v50 = vld [vmem:[#allocation31_spill] sm:$0xff]  ;;  %v17185_v10 = vld [vmem:[#allocation30_spill] sm:$0xff] }
 0xc65   : > { %11588 = vmatpush1.bf16.msra.mxu0 %v17175_v18  ;;  %11620 = vmatpush1.bf16.msra.mxu1 %v17176_v56  ;;  %v17186_v18 = vld [vmem:[#allocation33_spill] sm:$0xff]  ;;  %v17187_v56 = vld [vmem:[#allocation32_spill] sm:$0xff] }
 0xc66   : > { %11590 = vmatprep.subr.bf16.mxu0 %v17177_v55  ;;  %11622 = vmatprep.subr.bf16.mxu1 %v17178_v34  ;;  %v17188_v55 = vld [vmem:[#allocation35_spill] sm:$0xff]  ;;  %v17189_v34 = vld [vmem:[#allocation34_spill] sm:$0xff] }
 0xc69   : > { %11592 = vmatpush1.bf16.msra.mxu0 %v17179_v51  ;;  %11624 = vmatpush1.bf16.msra.mxu1 %v17180_v14  ;;  %v17190_v51 = vld [vmem:[#allocation37_spill] sm:$0xff]  ;;  %v17191_v14 = vld [vmem:[#allocation36_spill] sm:$0xff] }
 0xc6a   : > { %11594 = vmatprep.subr.bf16.mxu0 %v17181_v41  ;;  %11626 = vmatprep.subr.bf16.mxu1 %v17182_v4  ;;  %v17192_v41 = vld [vmem:[#allocation39_spill] sm:$0xff]  ;;  %v17193_v4 = vld [vmem:[#allocation38_spill] sm:$0xff] }
 0xc6d   : > { %11596 = vmatpush1.bf16.msra.mxu0 %v17183_v43  ;;  %11628 = vmatpush1.bf16.msra.mxu1 %v17184_v50  ;;  %v17194_v43 = vld [vmem:[#allocation40_spill] sm:$0xff]  ;;  %v17227_v50 = vld [vmem:[#allocation107_spill] sm:$0xff] }
 0xc6e   : > { %11598 = vmatprep.subr.bf16.mxu0 %v17185_v10  ;;  %11630 = vmatprep.subr.bf16.mxu1 %v17186_v18  ;;  %v17195_v10 = vld [vmem:[#allocation41_spill] sm:$0xff]  ;;  %v17196_v18 = vld [vmem:[#allocation42_spill] sm:$0xff] }
 0xc71   : > { %11600 = vmatpush1.bf16.msra.mxu0 %v17187_v56  ;;  %11632 = vmatpush1.bf16.msra.mxu1 %v17188_v55  ;;  %v17197_v56 = vld [vmem:[#allocation43_spill] sm:$0xff]  ;;  %v17198_v55 = vld [vmem:[#allocation44_spill] sm:$0xff] }
 0xc72   : > { %11602 = vmatprep.subr.bf16.mxu0 %v17189_v34  ;;  %11634 = vmatprep.subr.bf16.mxu1 %v17190_v51  ;;  %v17208_v51 = vld [vmem:[#allocation54_spill] sm:$0xff]  ;;  %v17209_v34 = vld [vmem:[#allocation55_spill] sm:$0xff] }
 0xc75   : > { %11604 = vmatpush1.bf16.msra.mxu0 %v17191_v14  ;;  %11636 = vmatpush1.bf16.msra.mxu1 %v17192_v41  ;;  %v17199_v14 = vld [vmem:[#allocation45_spill] sm:$0xff]  ;;  %v17200_v41 = vld [vmem:[#allocation46_spill] sm:$0xff] }
 0xc76   : > { %11638 = vmatprep.subr.bf16.mxu0 %v17193_v4  ;;  %11670 = vmatprep.subr.bf16.mxu1 %v17194_v43  ;;  %v17201_v4 = vld [vmem:[#allocation47_spill] sm:$0xff]  ;;  %v17202_v43 = vld [vmem:[#allocation48_spill] sm:$0xff] }
 0xc78   : > { %6511 = vmatmul.mubr.f32.vlgmr.msra.gmra.mrb[22].mxu0 %v6135_v37  ;;  %6582 = vmatmul.mubr.f32.vlgmr.msra.gmra.mrb[22].mxu1 %v6135_v37  ;;  %v17203_v37 = vld [vmem:[#allocation49_spill] sm:$0xff] }
 0xc79   : > { %11640 = vmatpush1.bf16.msra.mxu0 %v17195_v10  ;;  %11672 = vmatpush1.bf16.msra.mxu1 %v17196_v18  ;;  %v17204_v10 = vld [vmem:[#allocation50_spill] sm:$0xff]  ;;  %v17205_v18 = vld [vmem:[#allocation51_spill] sm:$0xff] }
 0xc7a   : > { %11642 = vmatprep.subr.bf16.mxu0 %v17197_v56  ;;  %11674 = vmatprep.subr.bf16.mxu1 %v17198_v55  ;;  %v17206_v56 = vld [vmem:[#allocation52_spill] sm:$0xff]  ;;  %v17207_v55 = vld [vmem:[#allocation53_spill] sm:$0xff] }
 0xc7b   : > { %6674 = vmatprep.mubr.f32.mxu0 %v16556_v48  ;;  %6745 = vmatprep.mubr.f32.mxu1 %v16556_v48 }
 0xc7d   : > { %11644 = vmatpush1.bf16.msra.mxu0 %v17199_v14  ;;  %11676 = vmatpush1.bf16.msra.mxu1 %v17200_v41  ;;  %v17210_v14 = vld [vmem:[#allocation56_spill] sm:$0xff]  ;;  %v17211_v41 = vld [vmem:[#allocation57_spill] sm:$0xff] }
 0xc7e   : > { %11646 = vmatprep.subr.bf16.mxu0 %v17201_v4  ;;  %11678 = vmatprep.subr.bf16.mxu1 %v17202_v43  ;;  %v17212_v4 = vld [vmem:[#allocation58_spill] sm:$0xff]  ;;  %v17213_v43 = vld [vmem:[#allocation59_spill] sm:$0xff] }
 0xc81   : > { %11648 = vmatpush1.bf16.msra.mxu0 %v17203_v37  ;;  %11680 = vmatpush1.bf16.msra.mxu1 %v17204_v10  ;;  %v17214_v37 = vld [vmem:[#allocation60_spill] sm:$0xff]  ;;  %v17215_v10 = vld [vmem:[#allocation61_spill] sm:$0xff] }
 0xc82   : > { %11650 = vmatprep.subr.bf16.mxu0 %v17205_v18  ;;  %11682 = vmatprep.subr.bf16.mxu1 %v17206_v56  ;;  %v17216_v18 = vld [vmem:[#allocation62_spill] sm:$0xff]  ;;  %v17217_v56 = vld [vmem:[#allocation63_spill] sm:$0xff] }
 0xc85   : > { %11652 = vmatpush1.bf16.msra.mxu0 %v17207_v55  ;;  %11684 = vmatpush1.bf16.msra.mxu1 %v17208_v51  ;;  %v17218_v55 = vld [vmem:[#allocation64_spill] sm:$0xff]  ;;  %v17219_v51 = vld [vmem:[#allocation65_spill] sm:$0xff] }
 0xc86   : > { %11654 = vmatprep.subr.bf16.mxu0 %v17209_v34  ;;  %11686 = vmatprep.subr.bf16.mxu1 %v17210_v14  ;;  %v17220_v34 = vld [vmem:[#allocation66_spill] sm:$0xff]  ;;  %v17221_v14 = vld [vmem:[#allocation67_spill] sm:$0xff] }
 0xc89   : > { %11656 = vmatpush1.bf16.msra.mxu0 %v17211_v41  ;;  %11688 = vmatpush1.bf16.msra.mxu1 %v17212_v4  ;;  %v17222_v41 = vld [vmem:[#allocation68_spill] sm:$0xff]  ;;  %v17223_v4 = vld [vmem:[#allocation69_spill] sm:$0xff] }
 0xc8a   : > { %11658 = vmatprep.subr.bf16.mxu0 %v17213_v43  ;;  %11690 = vmatprep.subr.bf16.mxu1 %v17214_v37  ;;  %v17224_v43 = vld [vmem:[#allocation70_spill] sm:$0xff]  ;;  %v17225_v37 = vld [vmem:[#allocation71_spill] sm:$0xff] }
 0xc8d   : > { %11660 = vmatpush1.bf16.msra.mxu0 %v17215_v10  ;;  %11692 = vmatpush1.bf16.msra.mxu1 %v17216_v18  ;;  %v17226_v10 = vld [vmem:[#allocation72_spill] sm:$0xff] }
 0xc8e   : > { %11662 = vmatprep.subr.bf16.mxu0 %v17217_v56  ;;  %11694 = vmatprep.subr.bf16.mxu1 %v17218_v55 }
 0xc91   : > { %11664 = vmatpush1.bf16.msra.mxu0 %v17219_v51  ;;  %11696 = vmatpush1.bf16.msra.mxu1 %v17220_v34 }
 0xc92   : > { %11666 = vmatprep.subr.bf16.mxu0 %v17221_v14  ;;  %11698 = vmatprep.subr.bf16.mxu1 %v17222_v41 }
 0xc95   : > { %11668 = vmatpush1.bf16.msra.mxu0 %v17223_v4  ;;  %11700 = vmatpush1.bf16.msra.mxu1 %v17224_v43 }
 0xc96   : > { %11702 = vmatprep.subr.bf16.mxu0 %v17225_v37  ;;  %11734 = vmatprep.subr.bf16.mxu1 %v17226_v10 }
 0xd2b   : > { %v6344_v18 = vpop.f32.mrb[52].mxu0  ;;  %v6415_v56 = vpop.f32.mrb[52].mxu1 }
 0xd2c   : > { %v6420_v55 = vadd.f32 %v6344_v18, %v17227_v50  ;;  %v6346_v59 = vpop.f32.mrb[53].mxu0  ;;  %v6417_v51 = vpop.f32.mrb[53].mxu1  ;;  %v6422_v41 = vadd.f32 %v6415_v56, %v16677_v21 }
 0xd2d   : > { %v6421_v34 = vadd.f32 %v6346_v59, %v16676_v20  ;;  %v6423_v43 = vadd.f32 %v6417_v51, %v16678_v31 }
 0xd2e   : > { %v6424_v2 = vmul.f32 0.5, %v6420_v55 }
 0xd2f   : > { %v6428_v14 = vmul.f32 0.5, %v6421_v34  ;;  %v6433_v37 = vmul.f32 0.5, %v6423_v43 }
 0xd30   : > { %13025 = vtanh.f32 %v6424_v2 }
 0xd31   : > { %13027 = vtanh.f32 %v6428_v14 }
 0xd32   : > { %13029 = vtanh.f32 %v6422_v41 }
 0xd33   : > { %13031 = vtanh.f32 %v6433_v37 }
 0xd3a   : > { %v13026_v4 = vpop.eup %13025 }
 0xd3b   : > { %v13028_v10 = vpop.eup %13027  ;;  %v6426_v36 = vmul.f32 0.5, %v13026_v4 }
 0xd3c   : > { %v6430_v15 = vmul.f32 0.5, %v13028_v10  ;;  %v13030_v50 = vpop.eup %13029 }
 0xd3d   : > { %v6427_v18 = vadd.f32 0.5, %v6426_v36  ;;  %v13032_v2 = vpop.eup %13031 }
 0xd3e   : > { %v6431_v8 = vadd.f32 0.5, %v6430_v15  ;;  %v6435_v56 = vmul.f32 0.5, %v13032_v2 }
 0xd3f   : > { %v6438_v3 = vmul.f32 %v13030_v50, %v6427_v18 }
 0xd40   : > { %v6437_v59 = vmul.f32 %v6431_v8, %v15487_v17  ;;  %v6436_v10 = vadd.f32 0.5, %v6435_v56 }
 0xd42   : > { %v15605_v55 = vadd.f32 %v6438_v3, %v6437_v59 }
 0xd44   : > { %13033 = vtanh.f32 %v15605_v55 }
 0xd4b   : > { %v6512_v34 = vpop.f32.mrb[22].mxu0  ;;  %v6583_v51 = vpop.f32.mrb[22].mxu1 }
 0xd4c   : > { %v12600_v14 = vadd.f32 %v6512_v34, %v16615_v33  ;;  %v6514_v41 = vpop.f32.mrb[23].mxu0  ;;  %v6585_v4 = vpop.f32.mrb[23].mxu1  ;;  %v12632_v17 = vadd.f32 %v6583_v51, %v16617_v60 }
 0xd4d   : > { %v12601_v36 = vadd.f32 %v6514_v41, %v16616_v5  ;;  %v12633_v3 = vadd.f32 %v6585_v4, %v16681_v27 }
 0xd4e   : > { %v13034_v43 = vpop.eup %13033  ;;  %v6592_v15 = vmul.f32 0.5, %v12600_v14 }
 0xd4f   : > { %v6441_v50 = vmul.f32 %v13034_v43, %v6436_v10  ;;  %v6596_v37 = vmul.f32 0.5, %v12601_v36  ;;  %v6601_v8 = vmul.f32 0.5, %v12633_v3  ;;  %v17230_v3 = vld [vmem:[#allocation14_spill] sm:$0xff] }
 0xd50   : > { %13035 = vtanh.f32 %v6592_v15 }
 0xd51   : > { %13037 = vtanh.f32 %v6596_v37  ;;  %6675 = vmatmul.mubr.f32.vlgmr.msra.gmra.mrb[54].mxu0 %v6441_v50  ;;  %6746 = vmatmul.mubr.f32.vlgmr.msra.gmra.mrb[54].mxu1 %v6441_v50  ;;  %v17228_v37 = vld [vmem:[#allocation13_spill] sm:$0xff] }
 0xd52   : > { %11704 = vmatpush1.bf16.msra.mxu0 %v16618_v63  ;;  %11736 = vmatpush1.bf16.msra.mxu1 %v16619_v13  ;;  %13039 = vtanh.f32 %v12632_v17  ;;  %v17229_v17 = vld [vmem:[#allocation15_spill] sm:$0xff] }
 0xd53   : > { %11706 = vmatprep.subr.bf16.mxu0 %v16679_v61  ;;  %11738 = vmatprep.subr.bf16.mxu1 %v16680_v26  ;;  %13041 = vtanh.f32 %v6601_v8  ;;  %v17231_v8 = vld [vmem:[#allocation17_spill] sm:$0xff] }
 0xd54   : > { %6816 = vmatprep.mubr.f32.mxu0 %v16556_v48  ;;  %6887 = vmatprep.mubr.f32.mxu1 %v16556_v48 }
 0xd56   : > { %11708 = vmatpush1.bf16.msra.mxu0 %v16682_v11  ;;  %11740 = vmatpush1.bf16.msra.mxu1 %v16740_v58 }
 0xd57   : > { %11710 = vmatprep.subr.bf16.mxu0 %v16741_v53  ;;  %11742 = vmatprep.subr.bf16.mxu1 %v16742_v16 }
 0xd5a   : > { %v13036_v18 = vpop.eup %13035  ;;  %11712 = vmatpush1.bf16.msra.mxu0 %v16743_v24  ;;  %11744 = vmatpush1.bf16.msra.mxu1 %v16744_v57 }
 0xd5b   : > { %v13038_v59 = vpop.eup %13037  ;;  %v6594_v2 = vmul.f32 0.5, %v13036_v18  ;;  %11714 = vmatprep.subr.bf16.mxu0 %v16745_v35  ;;  %11746 = vmatprep.subr.bf16.mxu1 %v16629_v19  ;;  %v17232_v18 = vld [vmem:[#allocation16_spill] sm:$0xff] }
 0xd5c   : > { %v6598_v56 = vmul.f32 0.5, %v13038_v59  ;;  %v13040_v51 = vpop.eup %13039  ;;  %v17233_v59 = vld [vmem:[#allocation19_spill] sm:$0xff] }
 0xd5d   : > { %v6595_v34 = vadd.f32 0.5, %v6594_v2  ;;  %v13042_v36 = vpop.eup %13041  ;;  %v17234_v2 = vld [vmem:[#allocation18_spill] sm:$0xff] }
 0xd5e   : > { %v6599_v14 = vadd.f32 0.5, %v6598_v56  ;;  %11716 = vmatpush1.bf16.msra.mxu0 %v16630_v12  ;;  %11748 = vmatpush1.bf16.msra.mxu1 %v16631_v42  ;;  %v17235_v56 = vld [vmem:[#allocation21_spill] sm:$0xff] }
 0xd5f   : > { %v6606_v41 = vmul.f32 %v13040_v51, %v6595_v34  ;;  %11718 = vmatprep.subr.bf16.mxu0 %v16689_v0  ;;  %11750 = vmatprep.subr.bf16.mxu1 %v16746_v25  ;;  %v17236_v34 = vld [vmem:[#allocation20_spill] sm:$0xff]  ;;  %v17237_v51 = vld [vmem:[#allocation23_spill] sm:$0xff] }
 0xd60   : > { %v6605_v4 = vmul.f32 %v6599_v14, %v15513_v45  ;;  %v6603_v45 = vmul.f32 0.5, %v13042_v36  ;;  %v17238_v14 = vld [vmem:[#allocation22_spill] sm:$0xff]  ;;  %v17241_v36 = vld [vmem:[#allocation27_spill] sm:$0xff] }
 0xd62   : > { %v15631_v10 = vadd.f32 %v6606_v41, %v6605_v4  ;;  %11720 = vmatpush1.bf16.msra.mxu0 %v16692_v54  ;;  %11752 = vmatpush1.bf16.msra.mxu1 %v16693_v32  ;;  %v6604_v43 = vadd.f32 0.5, %v6603_v45  ;;  %v17239_v41 = vld [vmem:[#allocation25_spill] sm:$0xff]  ;;  %v17240_v4 = vld [vmem:[#allocation24_spill] sm:$0xff]  ;;  %v17242_v45 = vld [vmem:[#allocation26_spill] sm:$0xff] }
 0xd63   : > { %11722 = vmatprep.subr.bf16.mxu0 %v16694_v23  ;;  %11754 = vmatprep.subr.bf16.mxu1 %v16695_v7 }
 0xd64   : > { %13043 = vtanh.f32 %v15631_v10 }
 0xd66   : > { %11724 = vmatpush1.bf16.msra.mxu0 %v16696_v39  ;;  %11756 = vmatpush1.bf16.msra.mxu1 %v16697_v52 }
 0xd67   : > { %11726 = vmatprep.subr.bf16.mxu0 %v16698_v1  ;;  %11758 = vmatprep.subr.bf16.mxu1 %v16642_v6 }
 0xd6a   : > { %11728 = vmatpush1.bf16.msra.mxu0 %v16643_v62  ;;  %11760 = vmatpush1.bf16.msra.mxu1 %v16644_v38 }
 0xd6b   : > { %11730 = vmatprep.subr.bf16.mxu0 %v16645_v46  ;;  %11762 = vmatprep.subr.bf16.mxu1 %v16646_v28 }
 0xd6e   : > { %v13044_v15 = vpop.eup %13043  ;;  %11732 = vmatpush1.bf16.msra.mxu0 %v16647_v47  ;;  %11764 = vmatpush1.bf16.msra.mxu1 %v16648_v44 }
 0xd6f   : > { %v6609_v50 = vmul.f32 %v13044_v15, %v6604_v43  ;;  %11766 = vmatprep.subr.bf16.mxu0 %v16649_v49  ;;  %11798 = vmatprep.subr.bf16.mxu1 %v16650_v9  ;;  %v17243_v43 = vld [vmem:[#allocation29_spill] sm:$0xff]  ;;  %v17244_v15 = vld [vmem:[#allocation28_spill] sm:$0xff] }
 0xd71   : > { %6817 = vmatmul.mubr.f32.vlgmr.msra.gmra.mrb[54].mxu0 %v6609_v50  ;;  %6888 = vmatmul.mubr.f32.vlgmr.msra.gmra.mrb[54].mxu1 %v6609_v50 }
 0xd72   : > { %11768 = vmatpush1.bf16.msra.mxu0 %v13370_v22  ;;  %11800 = vmatpush1.bf16.msra.mxu1 %v13393_v30 }
 0xd73   : > { %11770 = vmatprep.subr.bf16.mxu0 %v13391_v29  ;;  %11802 = vmatprep.subr.bf16.mxu1 %v13425_v40 }
 0xd74   : > { %6984 = vmatprep.mubr.f32.mxu0 %v16556_v48  ;;  %7055 = vmatprep.mubr.f32.mxu1 %v16556_v48 }
 0xd76   : > { %11772 = vmatpush1.bf16.msra.mxu0 %v17228_v37  ;;  %11804 = vmatpush1.bf16.msra.mxu1 %v17229_v17 }
 0xd77   : > { %11774 = vmatprep.subr.bf16.mxu0 %v17230_v3  ;;  %11806 = vmatprep.subr.bf16.mxu1 %v17231_v8 }
 0xd7a   : > { %11776 = vmatpush1.bf16.msra.mxu0 %v17232_v18  ;;  %11808 = vmatpush1.bf16.msra.mxu1 %v17233_v59 }
 0xd7b   : > { %11778 = vmatprep.subr.bf16.mxu0 %v17234_v2  ;;  %11810 = vmatprep.subr.bf16.mxu1 %v17235_v56  ;;  %v17245_v2 = vld [vmem:[#allocation31_spill] sm:$0xff]  ;;  %v17246_v56 = vld [vmem:[#allocation30_spill] sm:$0xff] }
 0xd7e   : > { %11780 = vmatpush1.bf16.msra.mxu0 %v17236_v34  ;;  %11812 = vmatpush1.bf16.msra.mxu1 %v17237_v51  ;;  %v17247_v34 = vld [vmem:[#allocation33_spill] sm:$0xff]  ;;  %v17248_v51 = vld [vmem:[#allocation32_spill] sm:$0xff] }
 0xd7f   : > { %11782 = vmatprep.subr.bf16.mxu0 %v17238_v14  ;;  %11814 = vmatprep.subr.bf16.mxu1 %v17239_v41  ;;  %v17249_v14 = vld [vmem:[#allocation35_spill] sm:$0xff]  ;;  %v17250_v41 = vld [vmem:[#allocation34_spill] sm:$0xff] }
 0xd82   : > { %11784 = vmatpush1.bf16.msra.mxu0 %v17240_v4  ;;  %11816 = vmatpush1.bf16.msra.mxu1 %v17241_v36  ;;  %v17251_v4 = vld [vmem:[#allocation37_spill] sm:$0xff]  ;;  %v17252_v36 = vld [vmem:[#allocation36_spill] sm:$0xff] }
 0xd83   : > { %11786 = vmatprep.subr.bf16.mxu0 %v17242_v45  ;;  %11818 = vmatprep.subr.bf16.mxu1 %v17243_v43  ;;  %v17253_v45 = vld [vmem:[#allocation39_spill] sm:$0xff]  ;;  %v17254_v43 = vld [vmem:[#allocation38_spill] sm:$0xff] }
 0xd86   : > { %11788 = vmatpush1.bf16.msra.mxu0 %v17244_v15  ;;  %11820 = vmatpush1.bf16.msra.mxu1 %v17245_v2  ;;  %v17255_v15 = vld [vmem:[#allocation40_spill] sm:$0xff]  ;;  %v17288_v2 = vld [vmem:[#allocation107_spill] sm:$0xff] }
 0xd87   : > { %11790 = vmatprep.subr.bf16.mxu0 %v17246_v56  ;;  %11822 = vmatprep.subr.bf16.mxu1 %v17247_v34  ;;  %v17256_v56 = vld [vmem:[#allocation41_spill] sm:$0xff]  ;;  %v17257_v34 = vld [vmem:[#allocation42_spill] sm:$0xff] }
 0xd8a   : > { %11792 = vmatpush1.bf16.msra.mxu0 %v17248_v51  ;;  %11824 = vmatpush1.bf16.msra.mxu1 %v17249_v14  ;;  %v17258_v51 = vld [vmem:[#allocation43_spill] sm:$0xff]  ;;  %v17259_v14 = vld [vmem:[#allocation44_spill] sm:$0xff] }
 0xd8b   : > { %11794 = vmatprep.subr.bf16.mxu0 %v17250_v41  ;;  %11826 = vmatprep.subr.bf16.mxu1 %v17251_v4  ;;  %v17269_v4 = vld [vmem:[#allocation54_spill] sm:$0xff]  ;;  %v17270_v41 = vld [vmem:[#allocation55_spill] sm:$0xff] }
 0xd8e   : > { %11796 = vmatpush1.bf16.msra.mxu0 %v17252_v36  ;;  %11828 = vmatpush1.bf16.msra.mxu1 %v17253_v45  ;;  %v17260_v36 = vld [vmem:[#allocation45_spill] sm:$0xff]  ;;  %v17261_v45 = vld [vmem:[#allocation46_spill] sm:$0xff] }
 0xd8f   : > { %11830 = vmatprep.subr.bf16.mxu0 %v17254_v43  ;;  %11862 = vmatprep.subr.bf16.mxu1 %v17255_v15  ;;  %v17262_v43 = vld [vmem:[#allocation47_spill] sm:$0xff]  ;;  %v17263_v15 = vld [vmem:[#allocation48_spill] sm:$0xff] }
 0xd91   : > { %6985 = vmatmul.mubr.f32.vlgmr.msra.gmra.mrb[24].mxu0 %v6609_v50  ;;  %7056 = vmatmul.mubr.f32.vlgmr.msra.gmra.mrb[24].mxu1 %v6609_v50  ;;  %v17264_v50 = vld [vmem:[#allocation49_spill] sm:$0xff] }
 0xd92   : > { %11832 = vmatpush1.bf16.msra.mxu0 %v17256_v56  ;;  %11864 = vmatpush1.bf16.msra.mxu1 %v17257_v34  ;;  %v17265_v56 = vld [vmem:[#allocation50_spill] sm:$0xff]  ;;  %v17266_v34 = vld [vmem:[#allocation51_spill] sm:$0xff] }
 0xd93   : > { %11834 = vmatprep.subr.bf16.mxu0 %v17258_v51  ;;  %11866 = vmatprep.subr.bf16.mxu1 %v17259_v14  ;;  %v17267_v51 = vld [vmem:[#allocation52_spill] sm:$0xff]  ;;  %v17268_v14 = vld [vmem:[#allocation53_spill] sm:$0xff] }
 0xd94   : > { %7148 = vmatprep.mubr.f32.mxu0 %v16556_v48  ;;  %7219 = vmatprep.mubr.f32.mxu1 %v16556_v48 }
 0xd96   : > { %11836 = vmatpush1.bf16.msra.mxu0 %v17260_v36  ;;  %11868 = vmatpush1.bf16.msra.mxu1 %v17261_v45  ;;  %v17271_v36 = vld [vmem:[#allocation56_spill] sm:$0xff]  ;;  %v17272_v45 = vld [vmem:[#allocation57_spill] sm:$0xff] }
 0xd97   : > { %11838 = vmatprep.subr.bf16.mxu0 %v17262_v43  ;;  %11870 = vmatprep.subr.bf16.mxu1 %v17263_v15  ;;  %v17273_v43 = vld [vmem:[#allocation58_spill] sm:$0xff]  ;;  %v17274_v15 = vld [vmem:[#allocation59_spill] sm:$0xff] }
 0xd9a   : > { %11840 = vmatpush1.bf16.msra.mxu0 %v17264_v50  ;;  %11872 = vmatpush1.bf16.msra.mxu1 %v17265_v56  ;;  %v17275_v50 = vld [vmem:[#allocation60_spill] sm:$0xff]  ;;  %v17276_v56 = vld [vmem:[#allocation61_spill] sm:$0xff] }
 0xd9b   : > { %11842 = vmatprep.subr.bf16.mxu0 %v17266_v34  ;;  %11874 = vmatprep.subr.bf16.mxu1 %v17267_v51  ;;  %v17277_v34 = vld [vmem:[#allocation62_spill] sm:$0xff]  ;;  %v17278_v51 = vld [vmem:[#allocation63_spill] sm:$0xff] }
 0xd9e   : > { %11844 = vmatpush1.bf16.msra.mxu0 %v17268_v14  ;;  %11876 = vmatpush1.bf16.msra.mxu1 %v17269_v4  ;;  %v17279_v14 = vld [vmem:[#allocation64_spill] sm:$0xff]  ;;  %v17280_v4 = vld [vmem:[#allocation65_spill] sm:$0xff] }
 0xd9f   : > { %11846 = vmatprep.subr.bf16.mxu0 %v17270_v41  ;;  %11878 = vmatprep.subr.bf16.mxu1 %v17271_v36  ;;  %v17281_v41 = vld [vmem:[#allocation66_spill] sm:$0xff]  ;;  %v17282_v36 = vld [vmem:[#allocation67_spill] sm:$0xff] }
 0xda2   : > { %11848 = vmatpush1.bf16.msra.mxu0 %v17272_v45  ;;  %11880 = vmatpush1.bf16.msra.mxu1 %v17273_v43  ;;  %v17283_v45 = vld [vmem:[#allocation68_spill] sm:$0xff]  ;;  %v17284_v43 = vld [vmem:[#allocation69_spill] sm:$0xff] }
 0xda3   : > { %11850 = vmatprep.subr.bf16.mxu0 %v17274_v15  ;;  %11882 = vmatprep.subr.bf16.mxu1 %v17275_v50  ;;  %v17285_v15 = vld [vmem:[#allocation70_spill] sm:$0xff]  ;;  %v17286_v50 = vld [vmem:[#allocation71_spill] sm:$0xff] }
 0xda6   : > { %11852 = vmatpush1.bf16.msra.mxu0 %v17276_v56  ;;  %11884 = vmatpush1.bf16.msra.mxu1 %v17277_v34  ;;  %v17287_v56 = vld [vmem:[#allocation72_spill] sm:$0xff] }
 0xda7   : > { %11854 = vmatprep.subr.bf16.mxu0 %v17278_v51  ;;  %11886 = vmatprep.subr.bf16.mxu1 %v17279_v14 }
 0xdaa   : > { %11856 = vmatpush1.bf16.msra.mxu0 %v17280_v4  ;;  %11888 = vmatpush1.bf16.msra.mxu1 %v17281_v41 }
 0xdab   : > { %11858 = vmatprep.subr.bf16.mxu0 %v17282_v36  ;;  %11890 = vmatprep.subr.bf16.mxu1 %v17283_v45 }
 0xdae   : > { %11860 = vmatpush1.bf16.msra.mxu0 %v17284_v43  ;;  %11892 = vmatpush1.bf16.msra.mxu1 %v17285_v15 }
 0xdaf   : > { %11894 = vmatprep.subr.bf16.mxu0 %v17286_v50  ;;  %11926 = vmatprep.subr.bf16.mxu1 %v17287_v56 }
 0xe44   : > { %v6818_v34 = vpop.f32.mrb[54].mxu0  ;;  %v6889_v51 = vpop.f32.mrb[54].mxu1 }
 0xe45   : > { %v6894_v14 = vadd.f32 %v6818_v34, %v17288_v2  ;;  %v6820_v59 = vpop.f32.mrb[55].mxu0  ;;  %v6891_v4 = vpop.f32.mrb[55].mxu1  ;;  %v6896_v45 = vadd.f32 %v6889_v51, %v16677_v21 }
 0xe46   : > { %v6895_v41 = vadd.f32 %v6820_v59, %v16676_v20  ;;  %v6897_v15 = vadd.f32 %v6891_v4, %v16678_v31 }
 0xe47   : > { %v6898_v18 = vmul.f32 0.5, %v6894_v14 }
 0xe48   : > { %v6902_v36 = vmul.f32 0.5, %v6895_v41  ;;  %v6907_v50 = vmul.f32 0.5, %v6897_v15 }
 0xe49   : > { %13045 = vtanh.f32 %v6898_v18 }
 0xe4a   : > { %13047 = vtanh.f32 %v6902_v36 }
 0xe4b   : > { %13049 = vtanh.f32 %v6896_v45 }
 0xe4c   : > { %13051 = vtanh.f32 %v6907_v50 }
 0xe53   : > { %v13046_v43 = vpop.eup %13045 }
 0xe54   : > { %v13048_v56 = vpop.eup %13047  ;;  %v6900_v8 = vmul.f32 0.5, %v13046_v43 }
 0xe55   : > { %v6904_v3 = vmul.f32 0.5, %v13048_v56  ;;  %v13050_v2 = vpop.eup %13049 }
 0xe56   : > { %v6901_v34 = vadd.f32 0.5, %v6900_v8  ;;  %v13052_v18 = vpop.eup %13051 }
 0xe57   : > { %v6905_v17 = vadd.f32 0.5, %v6904_v3  ;;  %v6909_v51 = vmul.f32 0.5, %v13052_v18 }
 0xe58   : > { %v6912_v37 = vmul.f32 %v13050_v2, %v6901_v34 }
 0xe59   : > { %v6911_v59 = vmul.f32 %v6905_v17, %v15605_v55  ;;  %v6910_v56 = vadd.f32 0.5, %v6909_v51 }
 0xe5b   : > { %v15723_v14 = vadd.f32 %v6912_v37, %v6911_v59 }
 0xe5d   : > { %13053 = vtanh.f32 %v15723_v14 }
 0xe64   : > { %v6986_v41 = vpop.f32.mrb[24].mxu0  ;;  %v7057_v4 = vpop.f32.mrb[24].mxu1 }
 0xe65   : > { %v12602_v36 = vadd.f32 %v6986_v41, %v16615_v33  ;;  %v6988_v45 = vpop.f32.mrb[25].mxu0  ;;  %v7059_v43 = vpop.f32.mrb[25].mxu1  ;;  %v12634_v55 = vadd.f32 %v7057_v4, %v16617_v60 }
 0xe66   : > { %v12603_v8 = vadd.f32 %v6988_v45, %v16616_v5  ;;  %v12635_v37 = vadd.f32 %v7059_v43, %v16681_v27 }
 0xe67   : > { %v13054_v15 = vpop.eup %13053  ;;  %v7066_v3 = vmul.f32 0.5, %v12602_v36 }
 0xe68   : > { %v6915_v2 = vmul.f32 %v13054_v15, %v6910_v56  ;;  %v7070_v50 = vmul.f32 0.5, %v12603_v8  ;;  %v7075_v17 = vmul.f32 0.5, %v12635_v37  ;;  %v17291_v37 = vld [vmem:[#allocation14_spill] sm:$0xff] }
 0xe69   : > { %13055 = vtanh.f32 %v7066_v3 }
 0xe6a   : > { %13057 = vtanh.f32 %v7070_v50  ;;  %7149 = vmatmul.mubr.f32.vlgmr.msra.gmra.mrb[56].mxu0 %v6915_v2  ;;  %7220 = vmatmul.mubr.f32.vlgmr.msra.gmra.mrb[56].mxu1 %v6915_v2  ;;  %v17289_v50 = vld [vmem:[#allocation13_spill] sm:$0xff] }
 0xe6b   : > { %11896 = vmatpush1.bf16.msra.mxu0 %v16618_v63  ;;  %11928 = vmatpush1.bf16.msra.mxu1 %v16619_v13  ;;  %13059 = vtanh.f32 %v12634_v55  ;;  %v17290_v55 = vld [vmem:[#allocation15_spill] sm:$0xff] }
 0xe6c   : > { %11898 = vmatprep.subr.bf16.mxu0 %v16679_v61  ;;  %11930 = vmatprep.subr.bf16.mxu1 %v16680_v26  ;;  %13061 = vtanh.f32 %v7075_v17  ;;  %v17292_v17 = vld [vmem:[#allocation17_spill] sm:$0xff] }
 0xe6d   : > { %7290 = vmatprep.mubr.f32.mxu0 %v16556_v48  ;;  %7361 = vmatprep.mubr.f32.mxu1 %v16556_v48 }
 0xe6f   : > { %11900 = vmatpush1.bf16.msra.mxu0 %v16682_v11  ;;  %11932 = vmatpush1.bf16.msra.mxu1 %v16740_v58 }
 0xe70   : > { %11902 = vmatprep.subr.bf16.mxu0 %v16741_v53  ;;  %11934 = vmatprep.subr.bf16.mxu1 %v16742_v16 }
 0xe73   : > { %v13056_v34 = vpop.eup %13055  ;;  %11904 = vmatpush1.bf16.msra.mxu0 %v16743_v24  ;;  %11936 = vmatpush1.bf16.msra.mxu1 %v16744_v57 }
 0xe74   : > { %v13058_v59 = vpop.eup %13057  ;;  %v7068_v18 = vmul.f32 0.5, %v13056_v34  ;;  %11906 = vmatprep.subr.bf16.mxu0 %v16745_v35  ;;  %11938 = vmatprep.subr.bf16.mxu1 %v16629_v19  ;;  %v17293_v34 = vld [vmem:[#allocation16_spill] sm:$0xff] }
 0xe75   : > { %v7072_v51 = vmul.f32 0.5, %v13058_v59  ;;  %v13060_v4 = vpop.eup %13059  ;;  %v17294_v59 = vld [vmem:[#allocation19_spill] sm:$0xff] }
 0xe76   : > { %v7069_v41 = vadd.f32 0.5, %v7068_v18  ;;  %v13062_v8 = vpop.eup %13061  ;;  %v17295_v18 = vld [vmem:[#allocation18_spill] sm:$0xff] }
 0xe77   : > { %v7073_v36 = vadd.f32 0.5, %v7072_v51  ;;  %11908 = vmatpush1.bf16.msra.mxu0 %v16630_v12  ;;  %11940 = vmatpush1.bf16.msra.mxu1 %v16631_v42  ;;  %v17296_v51 = vld [vmem:[#allocation21_spill] sm:$0xff] }
 0xe78   : > { %v7080_v45 = vmul.f32 %v13060_v4, %v7069_v41  ;;  %11910 = vmatprep.subr.bf16.mxu0 %v16689_v0  ;;  %11942 = vmatprep.subr.bf16.mxu1 %v16746_v25  ;;  %v17297_v41 = vld [vmem:[#allocation20_spill] sm:$0xff]  ;;  %v17298_v4 = vld [vmem:[#allocation23_spill] sm:$0xff] }
 0xe79   : > { %v7079_v43 = vmul.f32 %v7073_v36, %v15631_v10  ;;  %v7077_v10 = vmul.f32 0.5, %v13062_v8  ;;  %v17299_v36 = vld [vmem:[#allocation22_spill] sm:$0xff]  ;;  %v17302_v8 = vld [vmem:[#allocation27_spill] sm:$0xff] }
 0xe7b   : > { %v15749_v56 = vadd.f32 %v7080_v45, %v7079_v43  ;;  %11912 = vmatpush1.bf16.msra.mxu0 %v16692_v54  ;;  %11944 = vmatpush1.bf16.msra.mxu1 %v16693_v32  ;;  %v7078_v15 = vadd.f32 0.5, %v7077_v10  ;;  %v17300_v45 = vld [vmem:[#allocation25_spill] sm:$0xff]  ;;  %v17301_v43 = vld [vmem:[#allocation24_spill] sm:$0xff]  ;;  %v17303_v10 = vld [vmem:[#allocation26_spill] sm:$0xff] }
 0xe7c   : > { %11914 = vmatprep.subr.bf16.mxu0 %v16694_v23  ;;  %11946 = vmatprep.subr.bf16.mxu1 %v16695_v7 }
 0xe7d   : > { %13063 = vtanh.f32 %v15749_v56 }
 0xe7f   : > { %11916 = vmatpush1.bf16.msra.mxu0 %v16696_v39  ;;  %11948 = vmatpush1.bf16.msra.mxu1 %v16697_v52 }
 0xe80   : > { %11918 = vmatprep.subr.bf16.mxu0 %v16698_v1  ;;  %11950 = vmatprep.subr.bf16.mxu1 %v16642_v6 }
 0xe83   : > { %11920 = vmatpush1.bf16.msra.mxu0 %v16643_v62  ;;  %11952 = vmatpush1.bf16.msra.mxu1 %v16644_v38 }
 0xe84   : > { %11922 = vmatprep.subr.bf16.mxu0 %v16645_v46  ;;  %11954 = vmatprep.subr.bf16.mxu1 %v16646_v28 }
 0xe87   : > { %v13064_v3 = vpop.eup %13063  ;;  %11924 = vmatpush1.bf16.msra.mxu0 %v16647_v47  ;;  %11956 = vmatpush1.bf16.msra.mxu1 %v16648_v44 }
 0xe88   : > { %v7083_v2 = vmul.f32 %v13064_v3, %v7078_v15  ;;  %11958 = vmatprep.subr.bf16.mxu0 %v16649_v49  ;;  %11990 = vmatprep.subr.bf16.mxu1 %v16650_v9  ;;  %v17304_v15 = vld [vmem:[#allocation29_spill] sm:$0xff]  ;;  %v17305_v3 = vld [vmem:[#allocation28_spill] sm:$0xff] }
 0xe8a   : > { %7291 = vmatmul.mubr.f32.vlgmr.msra.gmra.mrb[56].mxu0 %v7083_v2  ;;  %7362 = vmatmul.mubr.f32.vlgmr.msra.gmra.mrb[56].mxu1 %v7083_v2 }
 0xe8b   : > { %11960 = vmatpush1.bf16.msra.mxu0 %v13370_v22  ;;  %11992 = vmatpush1.bf16.msra.mxu1 %v13393_v30 }
 0xe8c   : > { %11962 = vmatprep.subr.bf16.mxu0 %v13391_v29  ;;  %11994 = vmatprep.subr.bf16.mxu1 %v13425_v40 }
 0xe8d   : > { %7458 = vmatprep.mubr.f32.mxu0 %v16556_v48  ;;  %7529 = vmatprep.mubr.f32.mxu1 %v16556_v48 }
 0xe8f   : > { %11964 = vmatpush1.bf16.msra.mxu0 %v17289_v50  ;;  %11996 = vmatpush1.bf16.msra.mxu1 %v17290_v55 }
 0xe90   : > { %11966 = vmatprep.subr.bf16.mxu0 %v17291_v37  ;;  %11998 = vmatprep.subr.bf16.mxu1 %v17292_v17 }
 0xe93   : > { %11968 = vmatpush1.bf16.msra.mxu0 %v17293_v34  ;;  %12000 = vmatpush1.bf16.msra.mxu1 %v17294_v59 }
 0xe94   : > { %11970 = vmatprep.subr.bf16.mxu0 %v17295_v18  ;;  %12002 = vmatprep.subr.bf16.mxu1 %v17296_v51  ;;  %v17306_v18 = vld [vmem:[#allocation31_spill] sm:$0xff]  ;;  %v17307_v51 = vld [vmem:[#allocation30_spill] sm:$0xff] }
 0xe97   : > { %11972 = vmatpush1.bf16.msra.mxu0 %v17297_v41  ;;  %12004 = vmatpush1.bf16.msra.mxu1 %v17298_v4  ;;  %v17308_v41 = vld [vmem:[#allocation33_spill] sm:$0xff]  ;;  %v17309_v4 = vld [vmem:[#allocation32_spill] sm:$0xff] }
 0xe98   : > { %11974 = vmatprep.subr.bf16.mxu0 %v17299_v36  ;;  %12006 = vmatprep.subr.bf16.mxu1 %v17300_v45  ;;  %v17310_v36 = vld [vmem:[#allocation35_spill] sm:$0xff]  ;;  %v17311_v45 = vld [vmem:[#allocation34_spill] sm:$0xff] }
 0xe9b   : > { %11976 = vmatpush1.bf16.msra.mxu0 %v17301_v43  ;;  %12008 = vmatpush1.bf16.msra.mxu1 %v17302_v8  ;;  %v17312_v43 = vld [vmem:[#allocation37_spill] sm:$0xff]  ;;  %v17313_v8 = vld [vmem:[#allocation36_spill] sm:$0xff] }
 0xe9c   : > { %11978 = vmatprep.subr.bf16.mxu0 %v17303_v10  ;;  %12010 = vmatprep.subr.bf16.mxu1 %v17304_v15  ;;  %v17314_v10 = vld [vmem:[#allocation39_spill] sm:$0xff]  ;;  %v17315_v15 = vld [vmem:[#allocation38_spill] sm:$0xff] }
 0xe9f   : > { %11980 = vmatpush1.bf16.msra.mxu0 %v17305_v3  ;;  %12012 = vmatpush1.bf16.msra.mxu1 %v17306_v18  ;;  %v17316_v3 = vld [vmem:[#allocation40_spill] sm:$0xff]  ;;  %v17349_v18 = vld [vmem:[#allocation107_spill] sm:$0xff] }
 0xea0   : > { %11982 = vmatprep.subr.bf16.mxu0 %v17307_v51  ;;  %12014 = vmatprep.subr.bf16.mxu1 %v17308_v41  ;;  %v17317_v51 = vld [vmem:[#allocation41_spill] sm:$0xff]  ;;  %v17318_v41 = vld [vmem:[#allocation42_spill] sm:$0xff] }
 0xea3   : > { %11984 = vmatpush1.bf16.msra.mxu0 %v17309_v4  ;;  %12016 = vmatpush1.bf16.msra.mxu1 %v17310_v36  ;;  %v17319_v4 = vld [vmem:[#allocation43_spill] sm:$0xff]  ;;  %v17320_v36 = vld [vmem:[#allocation44_spill] sm:$0xff] }
 0xea4   : > { %11986 = vmatprep.subr.bf16.mxu0 %v17311_v45  ;;  %12018 = vmatprep.subr.bf16.mxu1 %v17312_v43  ;;  %v17330_v43 = vld [vmem:[#allocation54_spill] sm:$0xff]  ;;  %v17331_v45 = vld [vmem:[#allocation55_spill] sm:$0xff] }
 0xea7   : > { %11988 = vmatpush1.bf16.msra.mxu0 %v17313_v8  ;;  %12020 = vmatpush1.bf16.msra.mxu1 %v17314_v10  ;;  %v17321_v8 = vld [vmem:[#allocation45_spill] sm:$0xff]  ;;  %v17322_v10 = vld [vmem:[#allocation46_spill] sm:$0xff] }
 0xea8   : > { %12022 = vmatprep.subr.bf16.mxu0 %v17315_v15  ;;  %12054 = vmatprep.subr.bf16.mxu1 %v17316_v3  ;;  %v17323_v15 = vld [vmem:[#allocation47_spill] sm:$0xff]  ;;  %v17324_v3 = vld [vmem:[#allocation48_spill] sm:$0xff] }
 0xeaa   : > { %7459 = vmatmul.mubr.f32.vlgmr.msra.gmra.mrb[26].mxu0 %v7083_v2  ;;  %7530 = vmatmul.mubr.f32.vlgmr.msra.gmra.mrb[26].mxu1 %v7083_v2  ;;  %v17325_v2 = vld [vmem:[#allocation49_spill] sm:$0xff] }
 0xeab   : > { %12024 = vmatpush1.bf16.msra.mxu0 %v17317_v51  ;;  %12056 = vmatpush1.bf16.msra.mxu1 %v17318_v41  ;;  %v17326_v51 = vld [vmem:[#allocation50_spill] sm:$0xff]  ;;  %v17327_v41 = vld [vmem:[#allocation51_spill] sm:$0xff] }
 0xeac   : > { %12026 = vmatprep.subr.bf16.mxu0 %v17319_v4  ;;  %12058 = vmatprep.subr.bf16.mxu1 %v17320_v36  ;;  %v17328_v4 = vld [vmem:[#allocation52_spill] sm:$0xff]  ;;  %v17329_v36 = vld [vmem:[#allocation53_spill] sm:$0xff] }
 0xead   : > { %7622 = vmatprep.mubr.f32.mxu0 %v16556_v48  ;;  %7693 = vmatprep.mubr.f32.mxu1 %v16556_v48 }
 0xeaf   : > { %12028 = vmatpush1.bf16.msra.mxu0 %v17321_v8  ;;  %12060 = vmatpush1.bf16.msra.mxu1 %v17322_v10  ;;  %v17332_v8 = vld [vmem:[#allocation56_spill] sm:$0xff]  ;;  %v17333_v10 = vld [vmem:[#allocation57_spill] sm:$0xff] }
 0xeb0   : > { %12030 = vmatprep.subr.bf16.mxu0 %v17323_v15  ;;  %12062 = vmatprep.subr.bf16.mxu1 %v17324_v3  ;;  %v17334_v15 = vld [vmem:[#allocation58_spill] sm:$0xff]  ;;  %v17335_v3 = vld [vmem:[#allocation59_spill] sm:$0xff] }
 0xeb3   : > { %12032 = vmatpush1.bf16.msra.mxu0 %v17325_v2  ;;  %12064 = vmatpush1.bf16.msra.mxu1 %v17326_v51  ;;  %v17336_v2 = vld [vmem:[#allocation60_spill] sm:$0xff]  ;;  %v17337_v51 = vld [vmem:[#allocation61_spill] sm:$0xff] }
 0xeb4   : > { %12034 = vmatprep.subr.bf16.mxu0 %v17327_v41  ;;  %12066 = vmatprep.subr.bf16.mxu1 %v17328_v4  ;;  %v17338_v41 = vld [vmem:[#allocation62_spill] sm:$0xff]  ;;  %v17339_v4 = vld [vmem:[#allocation63_spill] sm:$0xff] }
 0xeb7   : > { %12036 = vmatpush1.bf16.msra.mxu0 %v17329_v36  ;;  %12068 = vmatpush1.bf16.msra.mxu1 %v17330_v43  ;;  %v17340_v36 = vld [vmem:[#allocation64_spill] sm:$0xff]  ;;  %v17341_v43 = vld [vmem:[#allocation65_spill] sm:$0xff] }
 0xeb8   : > { %12038 = vmatprep.subr.bf16.mxu0 %v17331_v45  ;;  %12070 = vmatprep.subr.bf16.mxu1 %v17332_v8  ;;  %v17342_v45 = vld [vmem:[#allocation66_spill] sm:$0xff]  ;;  %v17343_v8 = vld [vmem:[#allocation67_spill] sm:$0xff] }
 0xebb   : > { %12040 = vmatpush1.bf16.msra.mxu0 %v17333_v10  ;;  %12072 = vmatpush1.bf16.msra.mxu1 %v17334_v15  ;;  %v17344_v10 = vld [vmem:[#allocation68_spill] sm:$0xff]  ;;  %v17345_v15 = vld [vmem:[#allocation69_spill] sm:$0xff] }
 0xebc   : > { %12042 = vmatprep.subr.bf16.mxu0 %v17335_v3  ;;  %12074 = vmatprep.subr.bf16.mxu1 %v17336_v2  ;;  %v17346_v3 = vld [vmem:[#allocation70_spill] sm:$0xff]  ;;  %v17347_v2 = vld [vmem:[#allocation71_spill] sm:$0xff] }
 0xebf   : > { %12044 = vmatpush1.bf16.msra.mxu0 %v17337_v51  ;;  %12076 = vmatpush1.bf16.msra.mxu1 %v17338_v41  ;;  %v17348_v51 = vld [vmem:[#allocation72_spill] sm:$0xff] }
 0xec0   : > { %12046 = vmatprep.subr.bf16.mxu0 %v17339_v4  ;;  %12078 = vmatprep.subr.bf16.mxu1 %v17340_v36 }
 0xec3   : > { %12048 = vmatpush1.bf16.msra.mxu0 %v17341_v43  ;;  %12080 = vmatpush1.bf16.msra.mxu1 %v17342_v45 }
 0xec4   : > { %12050 = vmatprep.subr.bf16.mxu0 %v17343_v8  ;;  %12082 = vmatprep.subr.bf16.mxu1 %v17344_v10 }
 0xec7   : > { %12052 = vmatpush1.bf16.msra.mxu0 %v17345_v15  ;;  %12084 = vmatpush1.bf16.msra.mxu1 %v17346_v3 }
 0xec8   : > { %12086 = vmatprep.subr.bf16.mxu0 %v17347_v2  ;;  %12118 = vmatprep.subr.bf16.mxu1 %v17348_v51 }
 0xf5d   : > { %v7292_v41 = vpop.f32.mrb[56].mxu0  ;;  %v7363_v4 = vpop.f32.mrb[56].mxu1 }
 0xf5e   : > { %v7368_v36 = vadd.f32 %v7292_v41, %v17349_v18  ;;  %v7294_v59 = vpop.f32.mrb[57].mxu0  ;;  %v7365_v43 = vpop.f32.mrb[57].mxu1  ;;  %v7370_v10 = vadd.f32 %v7363_v4, %v16677_v21 }
 0xf5f   : > { %v7369_v45 = vadd.f32 %v7294_v59, %v16676_v20  ;;  %v7371_v3 = vadd.f32 %v7365_v43, %v16678_v31 }
 0xf60   : > { %v7372_v34 = vmul.f32 0.5, %v7368_v36 }
 0xf61   : > { %v7376_v8 = vmul.f32 0.5, %v7369_v45  ;;  %v7381_v2 = vmul.f32 0.5, %v7371_v3 }
 0xf62   : > { %13065 = vtanh.f32 %v7372_v34 }
 0xf63   : > { %13067 = vtanh.f32 %v7376_v8 }
 0xf64   : > { %13069 = vtanh.f32 %v7370_v10 }
 0xf65   : > { %13071 = vtanh.f32 %v7381_v2 }
 0xf6c   : > { %v13066_v15 = vpop.eup %13065 }
 0xf6d   : > { %v13068_v51 = vpop.eup %13067  ;;  %v7374_v17 = vmul.f32 0.5, %v13066_v15 }
 0xf6e   : > { %v7378_v37 = vmul.f32 0.5, %v13068_v51  ;;  %v13070_v18 = vpop.eup %13069 }
 0xf6f   : > { %v7375_v41 = vadd.f32 0.5, %v7374_v17  ;;  %v13072_v34 = vpop.eup %13071 }
 0xf70   : > { %v7379_v55 = vadd.f32 0.5, %v7378_v37  ;;  %v7383_v4 = vmul.f32 0.5, %v13072_v34 }
 0xf71   : > { %v7386_v50 = vmul.f32 %v13070_v18, %v7375_v41 }
 0xf72   : > { %v7385_v59 = vmul.f32 %v7379_v55, %v15723_v14  ;;  %v7384_v51 = vadd.f32 0.5, %v7383_v4 }
 0xf74   : > { %v15841_v36 = vadd.f32 %v7386_v50, %v7385_v59 }
 0xf76   : > { %13073 = vtanh.f32 %v15841_v36 }
 0xf7d   : > { %v7460_v45 = vpop.f32.mrb[26].mxu0  ;;  %v7531_v43 = vpop.f32.mrb[26].mxu1 }
 0xf7e   : > { %v12604_v8 = vadd.f32 %v7460_v45, %v16615_v33  ;;  %v7462_v10 = vpop.f32.mrb[27].mxu0  ;;  %v7533_v15 = vpop.f32.mrb[27].mxu1  ;;  %v12636_v14 = vadd.f32 %v7531_v43, %v16617_v60 }
 0xf7f   : > { %v12605_v17 = vadd.f32 %v7462_v10, %v16616_v5  ;;  %v12637_v50 = vadd.f32 %v7533_v15, %v16681_v27 }
 0xf80   : > { %v13074_v3 = vpop.eup %13073  ;;  %v7540_v37 = vmul.f32 0.5, %v12604_v8 }
 0xf81   : > { %v7389_v18 = vmul.f32 %v13074_v3, %v7384_v51  ;;  %v7544_v2 = vmul.f32 0.5, %v12605_v17  ;;  %v7549_v55 = vmul.f32 0.5, %v12637_v50  ;;  %v17352_v50 = vld [vmem:[#allocation14_spill] sm:$0xff] }
 0xf82   : > { %13075 = vtanh.f32 %v7540_v37 }
 0xf83   : > { %13077 = vtanh.f32 %v7544_v2  ;;  %7623 = vmatmul.mubr.f32.vlgmr.msra.gmra.mrb[58].mxu0 %v7389_v18  ;;  %7694 = vmatmul.mubr.f32.vlgmr.msra.gmra.mrb[58].mxu1 %v7389_v18  ;;  %v17350_v2 = vld [vmem:[#allocation13_spill] sm:$0xff] }
 0xf84   : > { %12088 = vmatpush1.bf16.msra.mxu0 %v16618_v63  ;;  %12120 = vmatpush1.bf16.msra.mxu1 %v16619_v13  ;;  %13079 = vtanh.f32 %v12636_v14  ;;  %v17351_v14 = vld [vmem:[#allocation15_spill] sm:$0xff] }
 0xf85   : > { %12090 = vmatprep.subr.bf16.mxu0 %v16679_v61  ;;  %12122 = vmatprep.subr.bf16.mxu1 %v16680_v26  ;;  %13081 = vtanh.f32 %v7549_v55  ;;  %v17353_v55 = vld [vmem:[#allocation17_spill] sm:$0xff] }
 0xf86   : > { %7764 = vmatprep.mubr.f32.mxu0 %v16556_v48  ;;  %7835 = vmatprep.mubr.f32.mxu1 %v16556_v48 }
 0xf88   : > { %12092 = vmatpush1.bf16.msra.mxu0 %v16682_v11  ;;  %12124 = vmatpush1.bf16.msra.mxu1 %v16740_v58 }
 0xf89   : > { %12094 = vmatprep.subr.bf16.mxu0 %v16741_v53  ;;  %12126 = vmatprep.subr.bf16.mxu1 %v16742_v16 }
 0xf8c   : > { %v13076_v41 = vpop.eup %13075  ;;  %12096 = vmatpush1.bf16.msra.mxu0 %v16743_v24  ;;  %12128 = vmatpush1.bf16.msra.mxu1 %v16744_v57 }
 0xf8d   : > { %v13078_v59 = vpop.eup %13077  ;;  %v7542_v34 = vmul.f32 0.5, %v13076_v41  ;;  %12098 = vmatprep.subr.bf16.mxu0 %v16745_v35  ;;  %12130 = vmatprep.subr.bf16.mxu1 %v16629_v19  ;;  %v17354_v41 = vld [vmem:[#allocation16_spill] sm:$0xff] }
 0xf8e   : > { %v7546_v4 = vmul.f32 0.5, %v13078_v59  ;;  %v13080_v43 = vpop.eup %13079  ;;  %v17355_v59 = vld [vmem:[#allocation19_spill] sm:$0xff] }
 0xf8f   : > { %v7543_v45 = vadd.f32 0.5, %v7542_v34  ;;  %v13082_v17 = vpop.eup %13081  ;;  %v17356_v34 = vld [vmem:[#allocation18_spill] sm:$0xff] }
 0xf90   : > { %v7547_v8 = vadd.f32 0.5, %v7546_v4  ;;  %12100 = vmatpush1.bf16.msra.mxu0 %v16630_v12  ;;  %12132 = vmatpush1.bf16.msra.mxu1 %v16631_v42  ;;  %v17357_v4 = vld [vmem:[#allocation21_spill] sm:$0xff] }
 0xf91   : > { %v7554_v10 = vmul.f32 %v13080_v43, %v7543_v45  ;;  %12102 = vmatprep.subr.bf16.mxu0 %v16689_v0  ;;  %12134 = vmatprep.subr.bf16.mxu1 %v16746_v25  ;;  %v17358_v45 = vld [vmem:[#allocation20_spill] sm:$0xff]  ;;  %v17359_v43 = vld [vmem:[#allocation23_spill] sm:$0xff] }
 0xf92   : > { %v7553_v15 = vmul.f32 %v7547_v8, %v15749_v56  ;;  %v7551_v56 = vmul.f32 0.5, %v13082_v17  ;;  %v17360_v8 = vld [vmem:[#allocation22_spill] sm:$0xff]  ;;  %v17363_v17 = vld [vmem:[#allocation27_spill] sm:$0xff] }
 0xf94   : > { %v15867_v51 = vadd.f32 %v7554_v10, %v7553_v15  ;;  %12104 = vmatpush1.bf16.msra.mxu0 %v16692_v54  ;;  %12136 = vmatpush1.bf16.msra.mxu1 %v16693_v32  ;;  %v7552_v3 = vadd.f32 0.5, %v7551_v56  ;;  %v17361_v10 = vld [vmem:[#allocation25_spill] sm:$0xff]  ;;  %v17362_v15 = vld [vmem:[#allocation24_spill] sm:$0xff]  ;;  %v17364_v56 = vld [vmem:[#allocation26_spill] sm:$0xff] }
 0xf95   : > { %12106 = vmatprep.subr.bf16.mxu0 %v16694_v23  ;;  %12138 = vmatprep.subr.bf16.mxu1 %v16695_v7 }
 0xf96   : > { %13083 = vtanh.f32 %v15867_v51 }
 0xf98   : > { %12108 = vmatpush1.bf16.msra.mxu0 %v16696_v39  ;;  %12140 = vmatpush1.bf16.msra.mxu1 %v16697_v52 }
 0xf99   : > { %12110 = vmatprep.subr.bf16.mxu0 %v16698_v1  ;;  %12142 = vmatprep.subr.bf16.mxu1 %v16642_v6 }
 0xf9c   : > { %12112 = vmatpush1.bf16.msra.mxu0 %v16643_v62  ;;  %12144 = vmatpush1.bf16.msra.mxu1 %v16644_v38 }
 0xf9d   : > { %12114 = vmatprep.subr.bf16.mxu0 %v16645_v46  ;;  %12146 = vmatprep.subr.bf16.mxu1 %v16646_v28 }
 0xfa0   : > { %v13084_v37 = vpop.eup %13083  ;;  %12116 = vmatpush1.bf16.msra.mxu0 %v16647_v47  ;;  %12148 = vmatpush1.bf16.msra.mxu1 %v16648_v44 }
 0xfa1   : > { %v7557_v18 = vmul.f32 %v13084_v37, %v7552_v3  ;;  %12150 = vmatprep.subr.bf16.mxu0 %v16649_v49  ;;  %12182 = vmatprep.subr.bf16.mxu1 %v16650_v9  ;;  %v17365_v3 = vld [vmem:[#allocation29_spill] sm:$0xff]  ;;  %v17366_v37 = vld [vmem:[#allocation28_spill] sm:$0xff] }
 0xfa3   : > { %7765 = vmatmul.mubr.f32.vlgmr.msra.gmra.mrb[58].mxu0 %v7557_v18  ;;  %7836 = vmatmul.mubr.f32.vlgmr.msra.gmra.mrb[58].mxu1 %v7557_v18 }
 0xfa4   : > { %12152 = vmatpush1.bf16.msra.mxu0 %v13370_v22  ;;  %12184 = vmatpush1.bf16.msra.mxu1 %v13393_v30 }
 0xfa5   : > { %12154 = vmatprep.subr.bf16.mxu0 %v13391_v29  ;;  %12186 = vmatprep.subr.bf16.mxu1 %v13425_v40 }
 0xfa6   : > { %7932 = vmatprep.mubr.f32.mxu0 %v16556_v48  ;;  %8003 = vmatprep.mubr.f32.mxu1 %v16556_v48 }
 0xfa8   : > { %12156 = vmatpush1.bf16.msra.mxu0 %v17350_v2  ;;  %12188 = vmatpush1.bf16.msra.mxu1 %v17351_v14 }
 0xfa9   : > { %12158 = vmatprep.subr.bf16.mxu0 %v17352_v50  ;;  %12190 = vmatprep.subr.bf16.mxu1 %v17353_v55 }
 0xfac   : > { %12160 = vmatpush1.bf16.msra.mxu0 %v17354_v41  ;;  %12192 = vmatpush1.bf16.msra.mxu1 %v17355_v59 }
 0xfad   : > { %12162 = vmatprep.subr.bf16.mxu0 %v17356_v34  ;;  %12194 = vmatprep.subr.bf16.mxu1 %v17357_v4  ;;  %v17367_v34 = vld [vmem:[#allocation31_spill] sm:$0xff]  ;;  %v17368_v4 = vld [vmem:[#allocation30_spill] sm:$0xff] }
 0xfb0   : > { %12164 = vmatpush1.bf16.msra.mxu0 %v17358_v45  ;;  %12196 = vmatpush1.bf16.msra.mxu1 %v17359_v43  ;;  %v17369_v45 = vld [vmem:[#allocation33_spill] sm:$0xff]  ;;  %v17370_v43 = vld [vmem:[#allocation32_spill] sm:$0xff] }
 0xfb1   : > { %12166 = vmatprep.subr.bf16.mxu0 %v17360_v8  ;;  %12198 = vmatprep.subr.bf16.mxu1 %v17361_v10  ;;  %v17371_v8 = vld [vmem:[#allocation35_spill] sm:$0xff]  ;;  %v17372_v10 = vld [vmem:[#allocation34_spill] sm:$0xff] }
 0xfb4   : > { %12168 = vmatpush1.bf16.msra.mxu0 %v17362_v15  ;;  %12200 = vmatpush1.bf16.msra.mxu1 %v17363_v17  ;;  %v17373_v15 = vld [vmem:[#allocation37_spill] sm:$0xff]  ;;  %v17374_v17 = vld [vmem:[#allocation36_spill] sm:$0xff] }
 0xfb5   : > { %12170 = vmatprep.subr.bf16.mxu0 %v17364_v56  ;;  %12202 = vmatprep.subr.bf16.mxu1 %v17365_v3  ;;  %v17375_v56 = vld [vmem:[#allocation39_spill] sm:$0xff]  ;;  %v17376_v3 = vld [vmem:[#allocation38_spill] sm:$0xff] }
 0xfb8   : > { %12172 = vmatpush1.bf16.msra.mxu0 %v17366_v37  ;;  %12204 = vmatpush1.bf16.msra.mxu1 %v17367_v34  ;;  %v17377_v37 = vld [vmem:[#allocation40_spill] sm:$0xff]  ;;  %v17410_v34 = vld [vmem:[#allocation107_spill] sm:$0xff] }
 0xfb9   : > { %12174 = vmatprep.subr.bf16.mxu0 %v17368_v4  ;;  %12206 = vmatprep.subr.bf16.mxu1 %v17369_v45  ;;  %v17378_v4 = vld [vmem:[#allocation41_spill] sm:$0xff]  ;;  %v17379_v45 = vld [vmem:[#allocation42_spill] sm:$0xff] }
 0xfbc   : > { %12176 = vmatpush1.bf16.msra.mxu0 %v17370_v43  ;;  %12208 = vmatpush1.bf16.msra.mxu1 %v17371_v8  ;;  %v17380_v43 = vld [vmem:[#allocation43_spill] sm:$0xff]  ;;  %v17381_v8 = vld [vmem:[#allocation44_spill] sm:$0xff] }
 0xfbd   : > { %12178 = vmatprep.subr.bf16.mxu0 %v17372_v10  ;;  %12210 = vmatprep.subr.bf16.mxu1 %v17373_v15  ;;  %v17391_v15 = vld [vmem:[#allocation54_spill] sm:$0xff]  ;;  %v17392_v10 = vld [vmem:[#allocation55_spill] sm:$0xff] }
 0xfc0   : > { %12180 = vmatpush1.bf16.msra.mxu0 %v17374_v17  ;;  %12212 = vmatpush1.bf16.msra.mxu1 %v17375_v56  ;;  %v17382_v17 = vld [vmem:[#allocation45_spill] sm:$0xff]  ;;  %v17383_v56 = vld [vmem:[#allocation46_spill] sm:$0xff] }
 0xfc1   : > { %12214 = vmatprep.subr.bf16.mxu0 %v17376_v3  ;;  %12246 = vmatprep.subr.bf16.mxu1 %v17377_v37  ;;  %v17384_v3 = vld [vmem:[#allocation47_spill] sm:$0xff]  ;;  %v17385_v37 = vld [vmem:[#allocation48_spill] sm:$0xff] }
 0xfc3   : > { %7933 = vmatmul.mubr.f32.vlgmr.msra.gmra.mrb[28].mxu0 %v7557_v18  ;;  %8004 = vmatmul.mubr.f32.vlgmr.msra.gmra.mrb[28].mxu1 %v7557_v18  ;;  %v17386_v18 = vld [vmem:[#allocation49_spill] sm:$0xff] }
 0xfc4   : > { %12216 = vmatpush1.bf16.msra.mxu0 %v17378_v4  ;;  %12248 = vmatpush1.bf16.msra.mxu1 %v17379_v45  ;;  %v17387_v4 = vld [vmem:[#allocation50_spill] sm:$0xff]  ;;  %v17388_v45 = vld [vmem:[#allocation51_spill] sm:$0xff] }
 0xfc5   : > { %12218 = vmatprep.subr.bf16.mxu0 %v17380_v43  ;;  %12250 = vmatprep.subr.bf16.mxu1 %v17381_v8  ;;  %v17389_v43 = vld [vmem:[#allocation52_spill] sm:$0xff]  ;;  %v17390_v8 = vld [vmem:[#allocation53_spill] sm:$0xff] }
 0xfc6   : > { %8096 = vmatprep.mubr.f32.mxu0 %v16556_v48  ;;  %8167 = vmatprep.mubr.f32.mxu1 %v16556_v48 }
 0xfc8   : > { %12220 = vmatpush1.bf16.msra.mxu0 %v17382_v17  ;;  %12252 = vmatpush1.bf16.msra.mxu1 %v17383_v56  ;;  %v17393_v17 = vld [vmem:[#allocation56_spill] sm:$0xff]  ;;  %v17394_v56 = vld [vmem:[#allocation57_spill] sm:$0xff] }
 0xfc9   : > { %12222 = vmatprep.subr.bf16.mxu0 %v17384_v3  ;;  %12254 = vmatprep.subr.bf16.mxu1 %v17385_v37  ;;  %v17395_v3 = vld [vmem:[#allocation58_spill] sm:$0xff]  ;;  %v17396_v37 = vld [vmem:[#allocation59_spill] sm:$0xff] }
 0xfcc   : > { %12224 = vmatpush1.bf16.msra.mxu0 %v17386_v18  ;;  %12256 = vmatpush1.bf16.msra.mxu1 %v17387_v4  ;;  %v17397_v18 = vld [vmem:[#allocation60_spill] sm:$0xff]  ;;  %v17398_v4 = vld [vmem:[#allocation61_spill] sm:$0xff] }
 0xfcd   : > { %12226 = vmatprep.subr.bf16.mxu0 %v17388_v45  ;;  %12258 = vmatprep.subr.bf16.mxu1 %v17389_v43  ;;  %v17399_v45 = vld [vmem:[#allocation62_spill] sm:$0xff]  ;;  %v17400_v43 = vld [vmem:[#allocation63_spill] sm:$0xff] }
 0xfd0   : > { %12228 = vmatpush1.bf16.msra.mxu0 %v17390_v8  ;;  %12260 = vmatpush1.bf16.msra.mxu1 %v17391_v15  ;;  %v17401_v8 = vld [vmem:[#allocation64_spill] sm:$0xff]  ;;  %v17402_v15 = vld [vmem:[#allocation65_spill] sm:$0xff] }
 0xfd1   : > { %12230 = vmatprep.subr.bf16.mxu0 %v17392_v10  ;;  %12262 = vmatprep.subr.bf16.mxu1 %v17393_v17  ;;  %v17403_v10 = vld [vmem:[#allocation66_spill] sm:$0xff]  ;;  %v17404_v17 = vld [vmem:[#allocation67_spill] sm:$0xff] }
 0xfd4   : > { %12232 = vmatpush1.bf16.msra.mxu0 %v17394_v56  ;;  %12264 = vmatpush1.bf16.msra.mxu1 %v17395_v3  ;;  %v17405_v56 = vld [vmem:[#allocation68_spill] sm:$0xff]  ;;  %v17406_v3 = vld [vmem:[#allocation69_spill] sm:$0xff] }
 0xfd5   : > { %12234 = vmatprep.subr.bf16.mxu0 %v17396_v37  ;;  %12266 = vmatprep.subr.bf16.mxu1 %v17397_v18  ;;  %v17407_v37 = vld [vmem:[#allocation70_spill] sm:$0xff]  ;;  %v17408_v18 = vld [vmem:[#allocation71_spill] sm:$0xff] }
 0xfd8   : > { %12236 = vmatpush1.bf16.msra.mxu0 %v17398_v4  ;;  %12268 = vmatpush1.bf16.msra.mxu1 %v17399_v45  ;;  %v17409_v4 = vld [vmem:[#allocation72_spill] sm:$0xff] }
 0xfd9   : > { %12238 = vmatprep.subr.bf16.mxu0 %v17400_v43  ;;  %12270 = vmatprep.subr.bf16.mxu1 %v17401_v8 }
 0xfdc   : > { %12240 = vmatpush1.bf16.msra.mxu0 %v17402_v15  ;;  %12272 = vmatpush1.bf16.msra.mxu1 %v17403_v10 }
 0xfdd   : > { %12242 = vmatprep.subr.bf16.mxu0 %v17404_v17  ;;  %12274 = vmatprep.subr.bf16.mxu1 %v17405_v56 }
 0xfe0   : > { %12244 = vmatpush1.bf16.msra.mxu0 %v17406_v3  ;;  %12276 = vmatpush1.bf16.msra.mxu1 %v17407_v37 }
 0xfe1   : > { %12278 = vmatprep.subr.bf16.mxu0 %v17408_v18  ;;  %12310 = vmatprep.subr.bf16.mxu1 %v17409_v4 }
0x1076   : > { %v7766_v45 = vpop.f32.mrb[58].mxu0  ;;  %v7837_v43 = vpop.f32.mrb[58].mxu1 }
0x1077   : > { %v7842_v8 = vadd.f32 %v7766_v45, %v17410_v34  ;;  %v7768_v59 = vpop.f32.mrb[59].mxu0  ;;  %v7839_v15 = vpop.f32.mrb[59].mxu1  ;;  %v7844_v56 = vadd.f32 %v7837_v43, %v16677_v21 }
0x1078   : > { %v7843_v10 = vadd.f32 %v7768_v59, %v16676_v20  ;;  %v7845_v37 = vadd.f32 %v7839_v15, %v16678_v31 }
0x1079   : > { %v7846_v41 = vmul.f32 0.5, %v7842_v8 }
0x107a   : > { %v7850_v17 = vmul.f32 0.5, %v7843_v10  ;;  %v7855_v18 = vmul.f32 0.5, %v7845_v37 }
0x107b   : > { %13085 = vtanh.f32 %v7846_v41 }
0x107c   : > { %13087 = vtanh.f32 %v7850_v17 }
0x107d   : > { %13089 = vtanh.f32 %v7844_v56 }
0x107e   : > { %13091 = vtanh.f32 %v7855_v18 }
0x1085   : > { %v13086_v3 = vpop.eup %13085 }
0x1086   : > { %v13088_v4 = vpop.eup %13087  ;;  %v7848_v55 = vmul.f32 0.5, %v13086_v3 }
0x1087   : > { %v7852_v50 = vmul.f32 0.5, %v13088_v4  ;;  %v13090_v34 = vpop.eup %13089 }
0x1088   : > { %v7849_v45 = vadd.f32 0.5, %v7848_v55  ;;  %v13092_v41 = vpop.eup %13091 }
0x1089   : > { %v7853_v14 = vadd.f32 0.5, %v7852_v50  ;;  %v7857_v43 = vmul.f32 0.5, %v13092_v41 }
0x108a   : > { %v7860_v2 = vmul.f32 %v13090_v34, %v7849_v45 }
0x108b   : > { %v7859_v59 = vmul.f32 %v7853_v14, %v15841_v36  ;;  %v7858_v4 = vadd.f32 0.5, %v7857_v43 }
0x108d   : > { %v15959_v8 = vadd.f32 %v7860_v2, %v7859_v59 }
0x108f   : > { %13093 = vtanh.f32 %v15959_v8 }
0x1096   : > { %v7934_v10 = vpop.f32.mrb[28].mxu0  ;;  %v8005_v15 = vpop.f32.mrb[28].mxu1 }
0x1097   : > { %v12606_v17 = vadd.f32 %v7934_v10, %v16615_v33  ;;  %v7936_v56 = vpop.f32.mrb[29].mxu0  ;;  %v8007_v3 = vpop.f32.mrb[29].mxu1  ;;  %v12638_v36 = vadd.f32 %v8005_v15, %v16617_v60 }
0x1098   : > { %v12607_v55 = vadd.f32 %v7936_v56, %v16616_v5  ;;  %v12639_v2 = vadd.f32 %v8007_v3, %v16681_v27 }
0x1099   : > { %v13094_v37 = vpop.eup %13093  ;;  %v8014_v50 = vmul.f32 0.5, %v12606_v17 }
0x109a   : > { %v7863_v34 = vmul.f32 %v13094_v37, %v7858_v4  ;;  %v8018_v18 = vmul.f32 0.5, %v12607_v55  ;;  %v8023_v14 = vmul.f32 0.5, %v12639_v2  ;;  %v17415_v2 = vld [vmem:[#allocation16_spill] sm:$0xff] }
0x109b   : > { %13095 = vtanh.f32 %v8014_v50 }
0x109c   : > { %13097 = vtanh.f32 %v8018_v18  ;;  %8097 = vmatmul.mubr.f32.vlgmr.msra.gmra.mrb[60].mxu0 %v7863_v34  ;;  %8168 = vmatmul.mubr.f32.vlgmr.msra.gmra.mrb[60].mxu1 %v7863_v34  ;;  %v17411_v18 = vld [vmem:[#allocation13_spill] sm:$0xff] }
0x109d   : > { %12280 = vmatpush1.bf16.msra.mxu0 %v16618_v63  ;;  %12312 = vmatpush1.bf16.msra.mxu1 %v16619_v13  ;;  %13099 = vtanh.f32 %v12638_v36  ;;  %v17412_v36 = vld [vmem:[#allocation15_spill] sm:$0xff] }
0x109e   : > { %12282 = vmatprep.subr.bf16.mxu0 %v16679_v61  ;;  %12314 = vmatprep.subr.bf16.mxu1 %v16680_v26  ;;  %13101 = vtanh.f32 %v8023_v14  ;;  %v17420_v14 = vld [vmem:[#allocation23_spill] sm:$0xff] }
0x109f   : > { %8238 = vmatprep.mubr.f32.mxu0 %v16556_v48  ;;  %8309 = vmatprep.mubr.f32.mxu1 %v16556_v48 }
0x10a1   : > { %12284 = vmatpush1.bf16.msra.mxu0 %v16682_v11  ;;  %12316 = vmatpush1.bf16.msra.mxu1 %v16740_v58 }
0x10a2   : > { %12286 = vmatprep.subr.bf16.mxu0 %v16741_v53  ;;  %12318 = vmatprep.subr.bf16.mxu1 %v16742_v16 }
0x10a5   : > { %v13096_v45 = vpop.eup %13095  ;;  %12288 = vmatpush1.bf16.msra.mxu0 %v16743_v24  ;;  %12320 = vmatpush1.bf16.msra.mxu1 %v16744_v57 }
0x10a6   : > { %v13098_v59 = vpop.eup %13097  ;;  %v8016_v41 = vmul.f32 0.5, %v13096_v45  ;;  %12290 = vmatprep.subr.bf16.mxu0 %v16745_v35  ;;  %12322 = vmatprep.subr.bf16.mxu1 %v16629_v19  ;;  %v17421_v45 = vld [vmem:[#allocation22_spill] sm:$0xff] }
0x10a7   : > { %v8020_v43 = vmul.f32 0.5, %v13098_v59  ;;  %v13100_v15 = vpop.eup %13099  ;;  %v17422_v59 = vld [vmem:[#allocation25_spill] sm:$0xff] }
0x10a8   : > { %v8017_v10 = vadd.f32 0.5, %v8016_v41  ;;  %v13102_v55 = vpop.eup %13101  ;;  %v17423_v41 = vld [vmem:[#allocation24_spill] sm:$0xff] }
0x10a9   : > { %v8021_v17 = vadd.f32 0.5, %v8020_v43  ;;  %12292 = vmatpush1.bf16.msra.mxu0 %v16630_v12  ;;  %12324 = vmatpush1.bf16.msra.mxu1 %v16631_v42  ;;  %v17424_v43 = vld [vmem:[#allocation27_spill] sm:$0xff] }
0x10aa   : > { %v8028_v56 = vmul.f32 %v13100_v15, %v8017_v10  ;;  %12294 = vmatprep.subr.bf16.mxu0 %v16689_v0  ;;  %12326 = vmatprep.subr.bf16.mxu1 %v16746_v25  ;;  %v17425_v10 = vld [vmem:[#allocation26_spill] sm:$0xff]  ;;  %v17426_v15 = vld [vmem:[#allocation29_spill] sm:$0xff] }
0x10ab   : > { %v8027_v3 = vmul.f32 %v8021_v17, %v15867_v51  ;;  %v8025_v51 = vmul.f32 0.5, %v13102_v55  ;;  %v17427_v17 = vld [vmem:[#allocation28_spill] sm:$0xff]  ;;  %v17430_v55 = vld [vmem:[#allocation33_spill] sm:$0xff] }
0x10ad   : > { %v15985_v4 = vadd.f32 %v8028_v56, %v8027_v3  ;;  %12296 = vmatpush1.bf16.msra.mxu0 %v16692_v54  ;;  %12328 = vmatpush1.bf16.msra.mxu1 %v16693_v32  ;;  %v8026_v37 = vadd.f32 0.5, %v8025_v51  ;;  %v17428_v56 = vld [vmem:[#allocation31_spill] sm:$0xff]  ;;  %v17429_v3 = vld [vmem:[#allocation30_spill] sm:$0xff]  ;;  %v17431_v51 = vld [vmem:[#allocation32_spill] sm:$0xff] }
0x10ae   : > { %12298 = vmatprep.subr.bf16.mxu0 %v16694_v23  ;;  %12330 = vmatprep.subr.bf16.mxu1 %v16695_v7 }
0x10af   : > { %13103 = vtanh.f32 %v15985_v4 }
0x10b1   : > { %12300 = vmatpush1.bf16.msra.mxu0 %v16696_v39  ;;  %12332 = vmatpush1.bf16.msra.mxu1 %v16697_v52 }
0x10b2   : > { %12302 = vmatprep.subr.bf16.mxu0 %v16698_v1  ;;  %12334 = vmatprep.subr.bf16.mxu1 %v16642_v6 }
0x10b5   : > { %12304 = vmatpush1.bf16.msra.mxu0 %v16643_v62  ;;  %12336 = vmatpush1.bf16.msra.mxu1 %v16644_v38 }
0x10b6   : > { %12306 = vmatprep.subr.bf16.mxu0 %v16645_v46  ;;  %12338 = vmatprep.subr.bf16.mxu1 %v16646_v28 }
0x10b9   : > { %v13104_v50 = vpop.eup %13103  ;;  %12308 = vmatpush1.bf16.msra.mxu0 %v16647_v47  ;;  %12340 = vmatpush1.bf16.msra.mxu1 %v16648_v44 }
0x10ba   : > { %v8031_v34 = vmul.f32 %v13104_v50, %v8026_v37  ;;  %12342 = vmatprep.subr.bf16.mxu0 %v16649_v49  ;;  %12374 = vmatprep.subr.bf16.mxu1 %v16650_v9  ;;  %v17413_v49 = vld [vmem:[#allocation14_spill] sm:$0xff]  ;;  %v17414_v9 = vld [vmem:[#allocation17_spill] sm:$0xff]  ;;  %v17432_v37 = vld [vmem:[#allocation35_spill] sm:$0xff] }
0x10bb   : > { %v17433_v50 = vld [vmem:[#allocation34_spill] sm:$0xff] }
0x10bc   : > { %8239 = vmatmul.mubr.f32.vlgmr.msra.gmra.mrb[60].mxu0 %v8031_v34  ;;  %8310 = vmatmul.mubr.f32.vlgmr.msra.gmra.mrb[60].mxu1 %v8031_v34 }
0x10bd   : > { %12344 = vmatpush1.bf16.msra.mxu0 %v13370_v22  ;;  %12376 = vmatpush1.bf16.msra.mxu1 %v13393_v30  ;;  %v17416_v22 = vld [vmem:[#allocation19_spill] sm:$0xff]  ;;  %v17417_v30 = vld [vmem:[#allocation18_spill] sm:$0xff] }
0x10be   : > { %12346 = vmatprep.subr.bf16.mxu0 %v13391_v29  ;;  %12378 = vmatprep.subr.bf16.mxu1 %v13425_v40  ;;  %v17418_v29 = vld [vmem:[#allocation21_spill] sm:$0xff]  ;;  %v17419_v40 = vld [vmem:[#allocation20_spill] sm:$0xff] }
0x10bf   : > { %8406 = vmatprep.mubr.f32.mxu0 %v16556_v48  ;;  %8477 = vmatprep.mubr.f32.mxu1 %v16556_v48 }
0x10c1   : > { %12348 = vmatpush1.bf16.msra.mxu0 %v17411_v18  ;;  %12380 = vmatpush1.bf16.msra.mxu1 %v17412_v36  ;;  %v17434_v18 = vld [vmem:[#allocation37_spill] sm:$0xff]  ;;  %v17435_v36 = vld [vmem:[#allocation36_spill] sm:$0xff] }
0x10c2   : > { %12350 = vmatprep.subr.bf16.mxu0 %v17413_v49  ;;  %12382 = vmatprep.subr.bf16.mxu1 %v17414_v9  ;;  %v17436_v49 = vld [vmem:[#allocation39_spill] sm:$0xff]  ;;  %v17437_v9 = vld [vmem:[#allocation38_spill] sm:$0xff] }
0x10c5   : > { %12352 = vmatpush1.bf16.msra.mxu0 %v17415_v2  ;;  %12384 = vmatpush1.bf16.msra.mxu1 %v17416_v22  ;;  %v17438_v2 = vld [vmem:[#allocation40_spill] sm:$0xff]  ;;  %v17439_v22 = vld [vmem:[#allocation41_spill] sm:$0xff] }
0x10c6   : > { %12354 = vmatprep.subr.bf16.mxu0 %v17417_v30  ;;  %12386 = vmatprep.subr.bf16.mxu1 %v17418_v29  ;;  %v17440_v30 = vld [vmem:[#allocation42_spill] sm:$0xff]  ;;  %v17441_v29 = vld [vmem:[#allocation43_spill] sm:$0xff] }
0x10c9   : > { %12356 = vmatpush1.bf16.msra.mxu0 %v17419_v40  ;;  %12388 = vmatpush1.bf16.msra.mxu1 %v17420_v14  ;;  %v17442_v40 = vld [vmem:[#allocation44_spill] sm:$0xff]  ;;  %v17443_v14 = vld [vmem:[#allocation45_spill] sm:$0xff] }
0x10ca   : > { %12358 = vmatprep.subr.bf16.mxu0 %v17421_v45  ;;  %12390 = vmatprep.subr.bf16.mxu1 %v17422_v59  ;;  %v17444_v45 = vld [vmem:[#allocation46_spill] sm:$0xff]  ;;  %v17445_v59 = vld [vmem:[#allocation47_spill] sm:$0xff] }
0x10cd   : > { %12360 = vmatpush1.bf16.msra.mxu0 %v17423_v41  ;;  %12392 = vmatpush1.bf16.msra.mxu1 %v17424_v43  ;;  %v17446_v41 = vld [vmem:[#allocation48_spill] sm:$0xff]  ;;  %v17448_v43 = vld [vmem:[#allocation50_spill] sm:$0xff] }
0x10ce   : > { %12362 = vmatprep.subr.bf16.mxu0 %v17425_v10  ;;  %12394 = vmatprep.subr.bf16.mxu1 %v17426_v15  ;;  %v17449_v10 = vld [vmem:[#allocation51_spill] sm:$0xff]  ;;  %v17450_v15 = vld [vmem:[#allocation52_spill] sm:$0xff] }
0x10d1   : > { %12364 = vmatpush1.bf16.msra.mxu0 %v17427_v17  ;;  %12396 = vmatpush1.bf16.msra.mxu1 %v17428_v56  ;;  %v17451_v17 = vld [vmem:[#allocation53_spill] sm:$0xff]  ;;  %v17452_v56 = vld [vmem:[#allocation54_spill] sm:$0xff] }
0x10d2   : > { %12366 = vmatprep.subr.bf16.mxu0 %v17429_v3  ;;  %12398 = vmatprep.subr.bf16.mxu1 %v17430_v55  ;;  %v17453_v3 = vld [vmem:[#allocation55_spill] sm:$0xff]  ;;  %v17454_v55 = vld [vmem:[#allocation56_spill] sm:$0xff] }
0x10d5   : > { %12368 = vmatpush1.bf16.msra.mxu0 %v17431_v51  ;;  %12400 = vmatpush1.bf16.msra.mxu1 %v17432_v37  ;;  %v17455_v51 = vld [vmem:[#allocation57_spill] sm:$0xff]  ;;  %v17456_v37 = vld [vmem:[#allocation58_spill] sm:$0xff] }
0x10d6   : > { %12370 = vmatprep.subr.bf16.mxu0 %v17433_v50  ;;  %12402 = vmatprep.subr.bf16.mxu1 %v17434_v18  ;;  %v17457_v50 = vld [vmem:[#allocation59_spill] sm:$0xff]  ;;  %v17458_v18 = vld [vmem:[#allocation60_spill] sm:$0xff] }
0x10d9   : > { %12372 = vmatpush1.bf16.msra.mxu0 %v17435_v36  ;;  %12404 = vmatpush1.bf16.msra.mxu1 %v17436_v49  ;;  %v17459_v36 = vld [vmem:[#allocation61_spill] sm:$0xff]  ;;  %v17460_v49 = vld [vmem:[#allocation62_spill] sm:$0xff] }
0x10da   : > { %12406 = vmatprep.subr.bf16.mxu0 %v17437_v9  ;;  %12438 = vmatprep.subr.bf16.mxu1 %v17438_v2  ;;  %v17461_v9 = vld [vmem:[#allocation63_spill] sm:$0xff]  ;;  %v17462_v2 = vld [vmem:[#allocation64_spill] sm:$0xff] }
0x10dc   : > { %8407 = vmatmul.mubr.f32.vlgmr.msra.gmra.mrb[30].mxu0 %v8031_v34  ;;  %8478 = vmatmul.mubr.f32.vlgmr.msra.gmra.mrb[30].mxu1 %v8031_v34  ;;  %v17447_v34 = vld [vmem:[#allocation49_spill] sm:$0xff] }
0x10dd   : > { %12408 = vmatpush1.bf16.msra.mxu0 %v17439_v22  ;;  %12440 = vmatpush1.bf16.msra.mxu1 %v17440_v30  ;;  %v17463_v22 = vld [vmem:[#allocation65_spill] sm:$0xff]  ;;  %v17464_v30 = vld [vmem:[#allocation66_spill] sm:$0xff] }
0x10de   : > { %12410 = vmatprep.subr.bf16.mxu0 %v17441_v29  ;;  %12442 = vmatprep.subr.bf16.mxu1 %v17442_v40  ;;  %v17465_v29 = vld [vmem:[#allocation67_spill] sm:$0xff]  ;;  %v17466_v40 = vld [vmem:[#allocation68_spill] sm:$0xff] }
0x10df   : > { %8570 = vmatprep.mubr.f32.mxu0 %v16556_v48  ;;  %8641 = vmatprep.mubr.f32.mxu1 %v16556_v48 }
0x10e1   : > { %12412 = vmatpush1.bf16.msra.mxu0 %v17443_v14  ;;  %12444 = vmatpush1.bf16.msra.mxu1 %v17444_v45  ;;  %v17467_v14 = vld [vmem:[#allocation69_spill] sm:$0xff]  ;;  %v17468_v45 = vld [vmem:[#allocation70_spill] sm:$0xff] }
0x10e2   : > { %12414 = vmatprep.subr.bf16.mxu0 %v17445_v59  ;;  %12446 = vmatprep.subr.bf16.mxu1 %v17446_v41  ;;  %v17469_v59 = vld [vmem:[#allocation71_spill] sm:$0xff]  ;;  %v17470_v41 = vld [vmem:[#allocation72_spill] sm:$0xff] }
0x10e5   : > { %12416 = vmatpush1.bf16.msra.mxu0 %v17447_v34  ;;  %12448 = vmatpush1.bf16.msra.mxu1 %v17448_v43 }
0x10e6   : > { %12418 = vmatprep.subr.bf16.mxu0 %v17449_v10  ;;  %12450 = vmatprep.subr.bf16.mxu1 %v17450_v15  ;;  %v17471_v10 = vld [vmem:[#allocation107_spill] sm:$0xff] }
0x10e9   : > { %12420 = vmatpush1.bf16.msra.mxu0 %v17451_v17  ;;  %12452 = vmatpush1.bf16.msra.mxu1 %v17452_v56 }
0x10ea   : > { %12422 = vmatprep.subr.bf16.mxu0 %v17453_v3  ;;  %12454 = vmatprep.subr.bf16.mxu1 %v17454_v55 }
0x10ed   : > { %12424 = vmatpush1.bf16.msra.mxu0 %v17455_v51  ;;  %12456 = vmatpush1.bf16.msra.mxu1 %v17456_v37 }
0x10ee   : > { %12426 = vmatprep.subr.bf16.mxu0 %v17457_v50  ;;  %12458 = vmatprep.subr.bf16.mxu1 %v17458_v18 }
0x10f1   : > { %12428 = vmatpush1.bf16.msra.mxu0 %v17459_v36  ;;  %12460 = vmatpush1.bf16.msra.mxu1 %v17460_v49 }
0x10f2   : > { %12430 = vmatprep.subr.bf16.mxu0 %v17461_v9  ;;  %12462 = vmatprep.subr.bf16.mxu1 %v17462_v2 }
0x10f5   : > { %12432 = vmatpush1.bf16.msra.mxu0 %v17463_v22  ;;  %12464 = vmatpush1.bf16.msra.mxu1 %v17464_v30 }
0x10f6   : > { %12434 = vmatprep.subr.bf16.mxu0 %v17465_v29  ;;  %12466 = vmatprep.subr.bf16.mxu1 %v17466_v40 }
0x10f9   : > { %12436 = vmatpush1.bf16.msra.mxu0 %v17467_v14  ;;  %12468 = vmatpush1.bf16.msra.mxu1 %v17468_v45 }
0x10fa   : > { %12470 = vmatprep.subr.bf16.mxu0 %v17469_v59  ;;  %12502 = vmatprep.subr.bf16.mxu1 %v17470_v41 }
0x118f   : > { %v8240_v34 = vpop.f32.mrb[60].mxu0  ;;  %v8311_v43 = vpop.f32.mrb[60].mxu1 }
0x1190   : > { %v8316_v15 = vadd.f32 %v8240_v34, %v17471_v10  ;;  %v8242_v17 = vpop.f32.mrb[61].mxu0  ;;  %v8313_v56 = vpop.f32.mrb[61].mxu1  ;;  %v8318_v37 = vadd.f32 %v8311_v43, %v16677_v21 }
0x1191   : > { %v8317_v3 = vadd.f32 %v8242_v17, %v16676_v20  ;;  %v8319_v50 = vadd.f32 %v8313_v56, %v16678_v31 }
0x1192   : > { %v8320_v55 = vmul.f32 0.5, %v8316_v15 }
0x1193   : > { %v8324_v51 = vmul.f32 0.5, %v8317_v3  ;;  %v8329_v18 = vmul.f32 0.5, %v8319_v50 }
0x1194   : > { %13105 = vtanh.f32 %v8320_v55 }
0x1195   : > { %13107 = vtanh.f32 %v8324_v51 }
0x1196   : > { %13109 = vtanh.f32 %v8318_v37 }
0x1197   : > { %13111 = vtanh.f32 %v8329_v18 }
0x119e   : > { %v13106_v36 = vpop.eup %13105 }
0x119f   : > { %v13108_v49 = vpop.eup %13107  ;;  %v8322_v9 = vmul.f32 0.5, %v13106_v36 }
0x11a0   : > { %v8326_v2 = vmul.f32 0.5, %v13108_v49  ;;  %v13110_v30 = vpop.eup %13109 }
0x11a1   : > { %v8323_v22 = vadd.f32 0.5, %v8322_v9  ;;  %v13112_v59 = vpop.eup %13111 }
0x11a2   : > { %v8327_v29 = vadd.f32 0.5, %v8326_v2  ;;  %v8331_v41 = vmul.f32 0.5, %v13112_v59  ;;  %v8820_v2 = vld [vmem:[%s16269_s7] sm:$0xff] (!%p9337_p8) }
0x11a3   : > { %v8334_v40 = vmul.f32 %v13110_v30, %v8323_v22  ;;  %v8821_v22 = vld [vmem:[%s16269_s7 + $0x8] sm:$0xff] (!%p9337_p8)  ;;  %v8822_v30 = vld [vmem:[%s16269_s7 + $0x10] sm:$0xff] (!%p9337_p8) }
0x11a4   : > { %v8333_v14 = vmul.f32 %v8327_v29, %v15959_v8  ;;  %v8332_v3 = vadd.f32 0.5, %v8331_v41  ;;  %v13195_v29 = vmov (!%p9337_p8), 0.0|0.0   ;;  %v8824_v41 = vld [vmem:[%s16269_s7 + $0x20] sm:$0xff] (!%p9337_p8) }
0x11a6   : > { %v16077_v45 = vadd.f32 %v8334_v40, %v8333_v14  ;;  %v12534_v40 = vpack.c.bf16 (!%p9337_p8), %v8821_v22, %v8820_v2  ;;  %v8823_v14 = vld [vmem:[%s16269_s7 + $0x18] sm:$0xff] (!%p9337_p8)  ;;  %v9339_v2 = vld [vmem:[%s16272_s10] ss:$0 sm:$0xff] (!%p9337_p8) }
0x11a7   : > { %v12537_v59 = vpack.c.bf16 (!%p9337_p8), %v8823_v14, %v8822_v30 }
0x11a8   : > { %13113 = vtanh.f32 %v16077_v45 }
0x11af   : > { %v8408_v34 = vpop.f32.mrb[30].mxu0  ;;  %v8479_v43 = vpop.f32.mrb[30].mxu1 }
0x11b0   : > { %v12608_v15 = vadd.f32 %v8408_v34, %v16615_v33  ;;  %v8410_v17 = vpop.f32.mrb[31].mxu0  ;;  %v8481_v56 = vpop.f32.mrb[31].mxu1  ;;  %v12640_v8 = vadd.f32 %v8479_v43, %v16617_v60  ;;  %v8825_v34 = vld [vmem:[%s16269_s7 + $0x28] sm:$0xff] (!%p9337_p8) }
0x11b1   : > { %v12609_v55 = vadd.f32 %v8410_v17, %v16616_v5  ;;  %v12641_v33 = vadd.f32 %v8481_v56, %v16681_v27  ;;  %v12540_v43 = vpack.c.bf16 (!%p9337_p8), %v8825_v34, %v8824_v41  ;;  %v8827_v17 = vld [vmem:[%s16269_s7 + $0x38] sm:$0xff] (!%p9337_p8) }
0x11b2   : > { %v13114_v51 = vpop.eup %13113  ;;  %v8488_v37 = vmul.f32 0.5, %v12608_v15  ;;  %v8826_v15 = vld [vmem:[%s16269_s7 + $0x30] sm:$0xff] (!%p9337_p8) }
0x11b3   : > { %v8337_v50 = vmul.f32 %v13114_v51, %v8332_v3  ;;  %v8492_v18 = vmul.f32 0.5, %v12609_v55  ;;  %v8497_v5 = vmul.f32 0.5, %v12641_v33  ;;  %v12543_v56 = vpack.c.bf16 (!%p9337_p8), %v8827_v17, %v8826_v15  ;;  %v8828_v3 = vld [vmem:[%s16269_s7 + $0x40] sm:$0xff] (!%p9337_p8)  ;;  %v8829_v55 = vld [vmem:[%s16269_s7 + $0x48] sm:$0xff] (!%p9337_p8) }
0x11b4   : > { %13115 = vtanh.f32 %v8488_v37  ;;  %v12546_v51 = vpack.c.bf16 (!%p9337_p8), %v8829_v55, %v8828_v3  ;;  %v8830_v37 = vld [vmem:[%s16269_s7 + $0x50] sm:$0xff] (!%p9337_p8)  ;;  %v8833_v33 = vld [vmem:[%s16269_s7 + $0x68] sm:$0xff] (!%p9337_p8) }
0x11b5   : > { %13117 = vtanh.f32 %v8492_v18  ;;  %8571 = vmatmul.mubr.f32.vlgmr.msra.gmra.mrb[62].mxu0 %v8337_v50  ;;  %8642 = vmatmul.mubr.f32.vlgmr.msra.gmra.mrb[62].mxu1 %v8337_v50  ;;  %v8831_v50 = vld [vmem:[%s16269_s7 + $0x58] sm:$0xff] (!%p9337_p8) }
0x11b6   : > { %12472 = vmatpush1.bf16.msra.mxu0 %v16618_v63  ;;  %12504 = vmatpush1.bf16.msra.mxu1 %v16619_v13  ;;  %13119 = vtanh.f32 %v12640_v8  ;;  %v12549_v18 = vpack.c.bf16 (!%p9337_p8), %v8831_v50, %v8830_v37  ;;  %v8832_v8 = vld [vmem:[%s16269_s7 + $0x60] sm:$0xff] (!%p9337_p8) }
0x11b7   : > { %12474 = vmatprep.subr.bf16.mxu0 %v16679_v61  ;;  %12506 = vmatprep.subr.bf16.mxu1 %v16680_v26  ;;  %13121 = vtanh.f32 %v8497_v5  ;;  %v12552_v5 = vpack.c.bf16 (!%p9337_p8), %v8833_v33, %v8832_v8  ;;  %v9138_v33 = vld [vmem:[%s16275_s13] sm:$0xff] (!%p9337_p8) }
0x11b8   : > { %8712 = vmatprep.mubr.f32.mxu0 %v16556_v48  ;;  %8783 = vmatprep.mubr.f32.mxu1 %v16556_v48 }
0x11ba   : > { %12476 = vmatpush1.bf16.msra.mxu0 %v16682_v11  ;;  %12508 = vmatpush1.bf16.msra.mxu1 %v16740_v58 }
0x11bb   : > { %12478 = vmatprep.subr.bf16.mxu0 %v16741_v53  ;;  %12510 = vmatprep.subr.bf16.mxu1 %v16742_v16 }
0x11be   : > { %v13116_v60 = vpop.eup %13115  ;;  %12480 = vmatpush1.bf16.msra.mxu0 %v16743_v24  ;;  %12512 = vmatpush1.bf16.msra.mxu1 %v16744_v57 }
0x11bf   : > { %v13118_v63 = vpop.eup %13117  ;;  %v8490_v13 = vmul.f32 0.5, %v13116_v60  ;;  %12482 = vmatprep.subr.bf16.mxu0 %v16745_v35  ;;  %12514 = vmatprep.subr.bf16.mxu1 %v16629_v19  ;;  %v8834_v60 = vld [vmem:[%s16269_s7 + $0x70] sm:$0xff] (!%p9337_p8) }
0x11c0   : > { %v8494_v48 = vmul.f32 0.5, %v13118_v63  ;;  %v13120_v26 = vpop.eup %13119  ;;  %v8835_v63 = vld [vmem:[%s16269_s7 + $0x78] sm:$0xff] (!%p9337_p8) }
0x11c1   : > { %v8491_v61 = vadd.f32 0.5, %v8490_v13  ;;  %v12555_v13 = vpack.c.bf16 (!%p9337_p8), %v8835_v63, %v8834_v60  ;;  %v9341_v63 = vld [vmem:[%s16274_s12] ss:$0 sm:$0xff] (!%p9337_p8) }
0x11c2   : > { %v8495_v27 = vadd.f32 0.5, %v8494_v48  ;;  %12484 = vmatpush1.bf16.msra.mxu0 %v16630_v12  ;;  %12516 = vmatpush1.bf16.msra.mxu1 %v16631_v42  ;;  %v13122_v12 = vpop.eup %13121  ;;  %v8930_v48 = vld [vmem:[%s16271_s9] sm:$0xff] (!%p9337_p8) }
0x11c3   : > { %v8502_v11 = vmul.f32 %v13120_v26, %v8491_v61  ;;  %12486 = vmatprep.subr.bf16.mxu0 %v16689_v0  ;;  %12518 = vmatprep.subr.bf16.mxu1 %v16746_v25  ;;  %v8499_v42 = vmul.f32 0.5, %v13122_v12  ;;  %v8931_v61 = vld [vmem:[%s16271_s9 + $0x8] sm:$0xff] (!%p9337_p8) }
0x11c4   : > { %v8501_v58 = vmul.f32 %v8495_v27, %v15985_v4  ;;  %v12558_v26 = vpack.c.bf16 (!%p9337_p8), %v8931_v61, %v8930_v48  ;;  %v8932_v27 = vld [vmem:[%s16271_s9 + $0x10] sm:$0xff] (!%p9337_p8)  ;;  %v8935_v12 = vld [vmem:[%s16271_s9 + $0x28] sm:$0xff] (!%p9337_p8) }
0x11c5   : > { %v8500_v19 = vadd.f32 0.5, %v8499_v42 }
0x11c6   : > { %v8503_v53 = vadd.f32 %v8502_v11, %v8501_v58  ;;  %12488 = vmatpush1.bf16.msra.mxu0 %v16692_v54  ;;  %12520 = vmatpush1.bf16.msra.mxu1 %v16693_v32  ;;  %v8933_v11 = vld [vmem:[%s16271_s9 + $0x18] sm:$0xff] (!%p9337_p8) }
0x11c7   : > { %12490 = vmatprep.subr.bf16.mxu0 %v16694_v23  ;;  %12522 = vmatprep.subr.bf16.mxu1 %v16695_v7  ;;  %v12561_v58 = vpack.c.bf16 (!%p9337_p8), %v8933_v11, %v8932_v27 }
0x11c8   : > { %13123 = vtanh.f32 %v8503_v53  ;;  %8813 = vst [vmem:[#allocation3] sm:$0xff] %v8503_v53  ;;  %v8934_v53 = vld [vmem:[%s16271_s9 + $0x20] sm:$0xff] (!%p9337_p8) }
0x11c9   : > { %v12564_v42 = vpack.c.bf16 (!%p9337_p8), %v8935_v12, %v8934_v53 }
0x11ca   : > { %12492 = vmatpush1.bf16.msra.mxu0 %v16696_v39  ;;  %12524 = vmatpush1.bf16.msra.mxu1 %v16697_v52 }
0x11cb   : > { %12494 = vmatprep.subr.bf16.mxu0 %v16698_v1  ;;  %12526 = vmatprep.subr.bf16.mxu1 %v16642_v6 }
0x11ce   : > { %12496 = vmatpush1.bf16.msra.mxu0 %v16643_v62  ;;  %12528 = vmatpush1.bf16.msra.mxu1 %v16644_v38 }
0x11cf   : > { %12498 = vmatprep.subr.bf16.mxu0 %v16645_v46  ;;  %12530 = vmatprep.subr.bf16.mxu1 %v16646_v28 }
0x11d2   : > { %v13124_v0 = vpop.eup %13123  ;;  %12500 = vmatpush1.bf16.msra.mxu0 %v16647_v47  ;;  %12532 = vmatpush1.bf16.msra.mxu1 %v16648_v44 }
0x11d3   : > { %v8505_v54 = vmul.f32 %v13124_v0, %v8500_v19  ;;  %12533 = vmatprep.subr.bf16.mxu0 (!%p9337_p8), %v13195_v29  ;;  %12557 = vmatprep.subr.bf16.mxu1 (!%p9337_p8), %v13195_v29  ;;  %v8936_v19 = vld [vmem:[%s16271_s9 + $0x30] sm:$0xff] (!%p9337_p8)  ;;  %v8937_v0 = vld [vmem:[%s16271_s9 + $0x38] sm:$0xff] (!%p9337_p8) }
0x11d5   : > { %8812 = vst [vmem:[#allocation2] sm:$0xff] %v8505_v54  ;;  %8713 = vmatmul.mubr.f32.vlgmr.msra.gmra.mrb[62].mxu0 %v8505_v54  ;;  %8784 = vmatmul.mubr.f32.vlgmr.msra.gmra.mrb[62].mxu1 %v8505_v54  ;;  %v12567_v54 = vpack.c.bf16 (!%p9337_p8), %v8937_v0, %v8936_v19 }
0x11d6   : > { %12535 = vmatpush3.bf16.msra.mxu0 (!%p9337_p8), %v12534_v40  ;;  %12559 = vmatpush3.bf16.msra.mxu1 (!%p9337_p8), %v12558_v26 }
0x11d7   : > { %12536 = vmatprep.subr.bf16.mxu0 (!%p9337_p8), %v13195_v29  ;;  %12560 = vmatprep.subr.bf16.mxu1 (!%p9337_p8), %v13195_v29 }
0x11da   : > { %12538 = vmatpush3.bf16.msra.mxu0 (!%p9337_p8), %v12537_v59  ;;  %12562 = vmatpush3.bf16.msra.mxu1 (!%p9337_p8), %v12561_v58 }
0x11db   : > { %12539 = vmatprep.subr.bf16.mxu0 (!%p9337_p8), %v13195_v29  ;;  %12563 = vmatprep.subr.bf16.mxu1 (!%p9337_p8), %v13195_v29 }
0x11de   : > { %12541 = vmatpush3.bf16.msra.mxu0 (!%p9337_p8), %v12540_v43  ;;  %12565 = vmatpush3.bf16.msra.mxu1 (!%p9337_p8), %v12564_v42 }
0x11df   : > { %12542 = vmatprep.subr.bf16.mxu0 (!%p9337_p8), %v13195_v29  ;;  %12566 = vmatprep.subr.bf16.mxu1 (!%p9337_p8), %v13195_v29 }
0x11e2   : > { %12544 = vmatpush3.bf16.msra.mxu0 (!%p9337_p8), %v12543_v56  ;;  %12568 = vmatpush3.bf16.msra.mxu1 (!%p9337_p8), %v12567_v54 }
0x11e3   : > { %12545 = vmatprep.subr.bf16.mxu0 (!%p9337_p8), %v13195_v29  ;;  %12569 = vmatprep.subr.bf16.mxu1 (!%p9337_p8), %v13195_v29 }
0x11e6   : > { %12547 = vmatpush3.bf16.msra.mxu0 (!%p9337_p8), %v12546_v51 }
0x11e7   : > { %12548 = vmatprep.subr.bf16.mxu0 (!%p9337_p8), %v13195_v29 }
0x11ea   : > { %12550 = vmatpush3.bf16.msra.mxu0 (!%p9337_p8), %v12549_v18 }
0x11eb   : > { %12551 = vmatprep.subr.bf16.mxu0 (!%p9337_p8), %v13195_v29 }
0x11ee   : > { %12553 = vmatpush3.bf16.msra.mxu0 (!%p9337_p8), %v12552_v5  ;;  %v9139_v5 = vld [vmem:[%s16275_s13 + $0x8] sm:$0xff] (!%p9337_p8) }
0x11ef   : > { %12554 = vmatprep.subr.bf16.mxu0 (!%p9337_p8), %v13195_v29  ;;  %v12576_v60 = vpack.c.bf16 (!%p9337_p8), %v9139_v5, %v9138_v33 }
0x11f2   : > { %12556 = vmatpush3.bf16.msra.mxu0 (!%p9337_p8), %v12555_v13 }
0x12a8   : > { %v8714_v6 = vpop.f32.mrb[62].mxu0  ;;  %v8785_v1 = vpop.f32.mrb[62].mxu1 }
0x12a9   : > { %v8790_v62 = vadd.f32 %v8714_v6, %v17471_v10  ;;  %v8716_v32 = vpop.f32.mrb[63].mxu0  ;;  %v8787_v38 = vpop.f32.mrb[63].mxu1  ;;  %v8792_v7 = vadd.f32 %v8785_v1, %v16677_v21  ;;  %v9338_v6 = vld [vmem:[%s16270_s8] ss:$0 sm:$0xff] (!%p9337_p8) }
0x12aa   : > { %v8791_v46 = vadd.f32 %v8716_v32, %v16676_v20  ;;  %v8793_v47 = vadd.f32 %v8787_v38, %v16678_v31 }
0x12ab   : > { %v8794_v23 = vmul.f32 0.5, %v8790_v62 }
0x12ac   : > { %v8798_v28 = vmul.f32 0.5, %v8791_v46  ;;  %v8803_v44 = vmul.f32 0.5, %v8793_v47 }
0x12ad   : > { %13125 = vtanh.f32 %v8794_v23 }
0x12ae   : > { %13127 = vtanh.f32 %v8798_v28 }
0x12af   : > { %13129 = vtanh.f32 %v8792_v7 }
0x12b0   : > { %13131 = vtanh.f32 %v8803_v44 }
0x12b7   : > { %v13126_v39 = vpop.eup %13125 }
0x12b8   : > { %v13128_v52 = vpop.eup %13127  ;;  %v8796_v16 = vmul.f32 0.5, %v13126_v39 }
0x12b9   : > { %v8800_v24 = vmul.f32 0.5, %v13128_v52  ;;  %v13130_v35 = vpop.eup %13129 }
0x12ba   : > { %v8797_v57 = vadd.f32 0.5, %v8796_v16  ;;  %v13132_v21 = vpop.eup %13131 }
0x12bb   : > { %v8801_v25 = vadd.f32 0.5, %v8800_v24  ;;  %v8805_v36 = vmul.f32 0.5, %v13132_v21  ;;  %v9037_v21 = vld [vmem:[%s16273_s11 + $0x8] sm:$0xff] (!%p9337_p8) }
0x12bc   : > { %v8808_v4 = vmul.f32 %v13130_v35, %v8797_v57 }
0x12bd   : > { %v8807_v20 = vmul.f32 %v8801_v25, %v16077_v45  ;;  %v8806_v49 = vadd.f32 0.5, %v8805_v36  ;;  %v13197_v45 = vmov (!%p9337_p8), 0.0  }
0x12be   : > { %9413 = vmatprep.mubr.msk.f32.mxu0 (!%p9337_p8), %vm13196_vm1, %v13197_v45  ;;  %9432 = vmatprep.mubr.msk.f32.mxu1 (!%p9337_p8), %vm13196_vm1, %v13197_v45 }
0x12bf   : > { %v8809_v10 = vadd.f32 %v8808_v4, %v8807_v20 }
0x12c1   : > { %13133 = vtanh.f32 %v8809_v10  ;;  %8815 = vst [vmem:[#allocation5] sm:$0xff] %v8809_v10  ;;  %v9036_v10 = vld [vmem:[%s16273_s11] sm:$0xff] (!%p9337_p8) }
0x12c2   : > { %v12570_v36 = vpack.c.bf16 (!%p9337_p8), %v9037_v21, %v9036_v10 }
0x12c8   : > { %8819 = sbr.rel (%p9337_p8) target bundleno = 5815 (0x16b7), region = 88 }
0x12cb   : > { %v13134_v9 = vpop.eup %13133 }
0x12cc   : > { %v8811_v31 = vmul.f32 %v13134_v9, %v8806_v49  ;;  %v9038_v49 = vld [vmem:[%s16273_s11 + $0x10] sm:$0xff] (!%p9337_p8)  ;;  %v9039_v9 = vld [vmem:[%s16273_s11 + $0x18] sm:$0xff] (!%p9337_p8) }
0x12ce   : > { %8814 = vst [vmem:[#allocation4] sm:$0xff] %v8811_v31  ;;  %9414 = vmatmul.mubr.f32.vlgmr.msra.gmra.mrb[0].mxu0 (!%p9337_p8), %v8811_v31  ;;  %v12573_v31 = vpack.c.bf16 (!%p9337_p8), %v9039_v9, %v9038_v49 }
0x13a1   : > { %v8909_v1 = vpop.f32.mrb[0].mxu0 }
0x13a2   : > { %v8910_v62 = vadd.f32 %v9338_v6, %v8909_v1  ;;  %v9415_v32 = vpop.f32.mrb[1].mxu0 }
0x13a4   : > { %v8914_v38 = vand.u32 2147483647, %v8910_v62  ;;  %v8913_v57 = vmax.f32 %v8910_v62, 0.0 }
0x13a6   : > { %v8915_v46 = vsub.f32 0.0, %v8914_v38 }
0x13a8   : > { %v8916_v23 = vmul.f32 1.442695, %v8915_v46  ;;  %v9343_v46 = vld [vmem:[#allocation7] ss:$0 sm:$0xff] }
0x13aa   : > { %13135 = vpow2.f32 %v8916_v23 }
0x13b4   : > { %v13136_v28 = vpop.eup %13135 }
0x13b5   : > { %v8918_v7 = vadd.f32 1.0, %v13136_v28  ;;  %v8921_v47 = vmul.f32 -0.5, %v13136_v28  ;;  %v8924_v39 = vand.u32 2147483647, %v13136_v28 }
0x13b7   : > { %13137 = vlog2.f32 %v8918_v7  ;;  %v8922_v44 = vadd.f32 1.0, %v8921_v47  ;;  %vm8925_vm2 = vcmp.lt.f32.partialorder %v8924_v39, 0.0004427343 }
0x13b9   : > { %v8923_v24 = vmul.f32 %v13136_v28, %v8922_v44 }
0x13c1   : > { %v13138_v52 = vpop.eup %13137 }
0x13c2   : > { %v8920_v16 = vmul.f32 0.6931472, %v13138_v52 }
0x13c4   : > { %v8926_v35 = vsel %vm8925_vm2, %v8923_v24, %v8920_v16 }
0x13c5   : > { %v8927_v25 = vadd.f32 %v8926_v35, %v8913_v57 }
0x13c7   : > { %13139 = vtanh.f32 %v8927_v25 }
0x13d1   : > { %v13140_v4 = vpop.eup %13139 }
0x13d2   : > { %v8929_v20 = vmul.f32 %v13140_v4, %v8910_v62 }
0x13d4   : > { %9433 = vmatmul.mubr.msk.f32.vlgmr.msra.gmra.mrb[0].mxu1 %vm8945_vm3, %v8929_v20 }
0x13d5   : > { %9443 = vmatprep.mubr.msk.f32.mxu1 %vm13196_vm1, %v13197_v45  ;;  %12571 = vmatpush3.bf16.msra.mxu1 %v12570_v36 }
0x13d6   : > { %12572 = vmatprep.subr.bf16.mxu1 %v13195_v29 }
0x13d9   : > { %12574 = vmatpush3.bf16.msra.mxu1 %v12573_v31 }
0x13da   : > { %12575 = vmatprep.subr.bf16.mxu1 %v13195_v29 }
0x14a7   : > { %v9015_v22 = vpop.f32.mrb[0].mxu1 }
0x14a8   : > { %v9016_v30 = vadd.f32 %v9339_v2, %v9015_v22  ;;  %v9434_v40 = vpop.f32.mrb[1].mxu1 }
0x14aa   : > { %v9020_v14 = vand.u32 2147483647, %v9016_v30  ;;  %v9019_v51 = vmax.f32 %v9016_v30, 0.0 }
0x14ac   : > { %v9021_v59 = vsub.f32 0.0, %v9020_v14 }
0x14ae   : > { %v9022_v41 = vmul.f32 1.442695, %v9021_v59 }
0x14b0   : > { %13141 = vpow2.f32 %v9022_v41 }
0x14ba   : > { %v13142_v34 = vpop.eup %13141 }
0x14bb   : > { %v9024_v43 = vadd.f32 1.0, %v13142_v34  ;;  %v9027_v15 = vmul.f32 -0.5, %v13142_v34  ;;  %v9030_v56 = vand.u32 2147483647, %v13142_v34 }
0x14bd   : > { %13143 = vlog2.f32 %v9024_v43  ;;  %v9028_v17 = vadd.f32 1.0, %v9027_v15  ;;  %vm9031_vm4 = vcmp.lt.f32.partialorder %v9030_v56, 0.0004427343 }
0x14bf   : > { %v9029_v29 = vmul.f32 %v13142_v34, %v9028_v17 }
0x14c7   : > { %v13144_v3 = vpop.eup %13143 }
0x14c8   : > { %v9026_v55 = vmul.f32 0.6931472, %v13144_v3 }
0x14ca   : > { %v9032_v37 = vsel %vm9031_vm4, %v9029_v29, %v9026_v55 }
0x14cb   : > { %v9033_v50 = vadd.f32 %v9032_v37, %v9019_v51 }
0x14cd   : > { %13145 = vtanh.f32 %v9033_v50 }
0x14d7   : > { %v13146_v18 = vpop.eup %13145 }
0x14d8   : > { %v9035_v8 = vmul.f32 %v13146_v18, %v9016_v30 }
0x14da   : > { %9444 = vmatmul.mubr.msk.f32.vlgmr.msra.gmra.mrb[2].mxu1 %vm9047_vm5, %v9035_v8 }
0x14db   : > { %9450 = vmatprep.mubr.msk.f32.mxu1 %vm13196_vm1, %v13197_v45  ;;  %12577 = vmatpush3.bf16.msra.mxu1 %v12576_v60 }
0x15ad   : > { %v9117_v13 = vpop.f32.mrb[2].mxu1 }
0x15ae   : > { %v9118_v48 = vadd.f32 %v9341_v63, %v9117_v13  ;;  %v9445_v61 = vpop.f32.mrb[3].mxu1 }
0x15b0   : > { %v9122_v26 = vand.u32 2147483647, %v9118_v48  ;;  %v9121_v6 = vmax.f32 %v9118_v48, 0.0 }
0x15b2   : > { %v9123_v27 = vsub.f32 0.0, %v9122_v26 }
0x15b4   : > { %v9124_v45 = vmul.f32 1.442695, %v9123_v27 }
0x15b6   : > { %13147 = vpow2.f32 %v9124_v45 }
0x15c0   : > { %v13148_v11 = vpop.eup %13147 }
0x15c1   : > { %v9126_v58 = vadd.f32 1.0, %v13148_v11  ;;  %v9129_v53 = vmul.f32 -0.5, %v13148_v11  ;;  %v9132_v42 = vand.u32 2147483647, %v13148_v11 }
0x15c3   : > { %13149 = vlog2.f32 %v9126_v58  ;;  %v9130_v12 = vadd.f32 1.0, %v9129_v53  ;;  %vm9133_vm6 = vcmp.lt.f32.partialorder %v9132_v42, 0.0004427343 }
0x15c5   : > { %v9131_v54 = vmul.f32 %v13148_v11, %v9130_v12 }
0x15cd   : > { %v13150_v19 = vpop.eup %13149 }
0x15ce   : > { %v9128_v0 = vmul.f32 0.6931472, %v13150_v19 }
0x15d0   : > { %v9134_v1 = vsel %vm9133_vm6, %v9131_v54, %v9128_v0 }
0x15d1   : > { %v9135_v62 = vadd.f32 %v9134_v1, %v9121_v6 }
0x15d3   : > { %13151 = vtanh.f32 %v9135_v62 }
0x15dd   : > { %v13152_v32 = vpop.eup %13151 }
0x15de   : > { %v9137_v38 = vmul.f32 %v13152_v32, %v9118_v48 }
0x15e0   : > { %9451 = vmatmul.mubr.msk.f32.vlgmr.msra.gmra.mrb[4].mxu1 %vm575_vm0, %v9137_v38 }
0x16b3   : > { %v9216_v23 = vpop.f32.mrb[4].mxu1 }
0x16b4   : > { %v9217_v28 = vadd.f32 %v9343_v46, %v9216_v23  ;;  %v9452_v7 = vpop.f32.mrb[5].mxu1 }
0x16b6   : > { %9221 = vst.msk [vmem:[%s13318_s17] sm:$0xff] %vm9220_vm7, %v9217_v28 }
0x16b7 PF: > { %s27_s24 = sadd.s32 1, %s13191_s24   ;;  %s17472_s21 = sld [smem:[#allocation8_spill]] }
0x16b8   : > { %p24_p9 = scmp.ge.s32.totalorder %s27_s24, 6   ;;  %s17473_s19 = sld [smem:[#allocation9_spill]] }
0x16b9   : > { %s17474_s23 = sld [smem:[#allocation10_spill]]  ;;  %s17475_s20 = smov %s13183_s22 }
0x16ba   :  { %26 = sbr.rel (!%p24_p9) target bundleno = 3 (0x3), region = 118 }
0x16be   : > { %s17476_s22 = smov %s17473_s19 }

</bundles_post_ra>
